<compile_context>
chip_gen: v7x
topology: tpu7x:2x2x1
jax: 0.10.0
libtpu: 0.0.40
codegen_flags: <defaults>
</compile_context>

<pallas_src>
import jax
import jax.numpy as jnp
from jax import lax
from jax.experimental import pallas as pl
from jax.experimental.pallas import tpu as pltpu

IN_FEAT = 128 * 5 * 5   # 3200
H1 = 1024
H2 = 128
NUM_CLASSES = 2
BN_EPS = 1e-5


# -----------------------------------------------------------------------------
# Kernel: one batch block per grid step.
# -----------------------------------------------------------------------------
def classifier_kernel(
    x_ref,            # (TB, 3200)  bf16
    w1_ref, b1_ref,   # (3200,1024) bf16, (1,1024) f32   (BN folded in)
    w2_ref, b2_ref,   # (1024,128)  bf16, (1,128)  f32   (BN folded in)
    w3d_ref, b3d_ref, # (128,1) f32, (1,1) f32           (w3[:,1]-w3[:,0], b3 diff)
    out_ref,          # (TB, 2) f32 log-probs
):
    # ---- fc1 (+ folded BatchNorm1d(1024)) + ReLU ----------------------------
    h = jnp.dot(x_ref[...], w1_ref[...], preferred_element_type=jnp.float32)
    h = jnp.maximum(h + b1_ref[...], 0.0)

    # ---- fc2 (+ Dropout2d eval = identity, folded BatchNorm1d(128)) + ReLU --
    h = jnp.dot(h.astype(jnp.bfloat16), w2_ref[...],
                preferred_element_type=jnp.float32)
    h = jnp.maximum(h + b2_ref[...], 0.0)

    # ---- fc3 + LogSoftmax(dim=1), 2-class closed form -----------------------
    # z = logit1 - logit0 ; log_softmax = (-softplus(z), z - softplus(z))
    z = jnp.dot(h, w3d_ref[...], preferred_element_type=jnp.float32) + b3d_ref[...]
    sp = jnp.maximum(z, 0.0) + jnp.log1p(jnp.exp(-jnp.abs(z)))   # stable softplus
    out_ref[...] = jnp.concatenate([-sp, z - sp], axis=1)


# -----------------------------------------------------------------------------
# Parameter construction / BN folding (wrapper-side, f32).
# -----------------------------------------------------------------------------
def init_params(key):
    """Deterministic init mimicking PyTorch Linear default (U(-1/sqrt(fan_in), ..))."""
    ks = jax.random.split(key, 12)

    def linear(kw, kb, fan_in, fan_out):
        bound = 1.0 / jnp.sqrt(jnp.float32(fan_in))
        w = jax.random.uniform(kw, (fan_in, fan_out), jnp.float32, -bound, bound)
        b = jax.random.uniform(kb, (1, fan_out), jnp.float32, -bound, bound)
        return w, b

    w1, b1 = linear(ks[0], ks[1], IN_FEAT, H1)
    w2, b2 = linear(ks[2], ks[3], H1, H2)
    w3, b3 = linear(ks[4], ks[5], H2, NUM_CLASSES)

    g1 = jnp.ones((1, H1), jnp.float32)
    beta1 = jnp.zeros((1, H1), jnp.float32)
    rm1 = 0.01 * jax.random.normal(ks[6], (1, H1), jnp.float32)
    rv1 = 1.0 + 0.1 * jax.random.uniform(ks[7], (1, H1), jnp.float32)

    g2 = jnp.ones((1, H2), jnp.float32)
    beta2 = jnp.zeros((1, H2), jnp.float32)
    rm2 = 0.01 * jax.random.normal(ks[8], (1, H2), jnp.float32)
    rv2 = 1.0 + 0.1 * jax.random.uniform(ks[9], (1, H2), jnp.float32)

    return (w1, b1, g1, beta1, rm1, rv1,
            w2, b2, g2, beta2, rm2, rv2,
            w3, b3)


def fold_bn_into_linear(params):
    """Fold inference-mode BatchNorm into the preceding Linear (all f32)."""
    (w1, b1, g1, beta1, rm1, rv1,
     w2, b2, g2, beta2, rm2, rv2,
     w3, b3) = params

    s1 = g1 * lax.rsqrt(rv1 + BN_EPS)                  # (1, H1)
    w1f = w1 * s1                                      # (IN_FEAT, H1)
    b1f = (b1 - rm1) * s1 + beta1                      # (1, H1)

    s2 = g2 * lax.rsqrt(rv2 + BN_EPS)                  # (1, H2)
    w2f = w2 * s2                                      # (H1, H2)
    b2f = (b2 - rm2) * s2 + beta2                      # (1, H2)

    w3d = (w3[:, 1:2] - w3[:, 0:1]).astype(jnp.float32)  # (H2, 1)
    b3d = (b3[:, 1:2] - b3[:, 0:1]).astype(jnp.float32)  # (1, 1)
    return w1f, b1f, w2f, b2f, w3d, b3d


# -----------------------------------------------------------------------------
# Pallas wrapper.
# -----------------------------------------------------------------------------
def classifier_forward(x_nchw, folded_f32, tb=512):
    w1f, b1f, w2f, b2f, w3d, b3d = folded_f32
    # bf16 operands for the two big matmuls (MXU-native); accumulation stays f32.
    w1b = w1f.astype(jnp.bfloat16)
    w2b = w2f.astype(jnp.bfloat16)

    B = x_nchw.shape[0]
    x_flat = x_nchw.reshape(B, -1).astype(jnp.bfloat16)   # torch .view(B, -1)
    assert x_flat.shape[1] == IN_FEAT, x_flat.shape

    # Pad batch to a multiple of 8 sublanes and pick the batch block.
    Bp = ((B + 7) // 8) * 8
    TB = min(tb, Bp)
    Bp = ((Bp + TB - 1) // TB) * TB
    if Bp != B:
        x_flat = jnp.pad(x_flat, ((0, Bp - B), (0, 0)))
    grid = (Bp // TB,)

    out = pl.pallas_call(
        classifier_kernel,
        out_shape=jax.ShapeDtypeStruct((Bp, NUM_CLASSES), jnp.float32),
        grid_spec=pltpu.PrefetchScalarGridSpec(
            num_scalar_prefetch=0,
            grid=grid,
            in_specs=[
                pl.BlockSpec((TB, IN_FEAT), lambda i: (i, 0)),   # x: blocked on B
                pl.BlockSpec((IN_FEAT, H1), lambda i: (0, 0)),   # w1: resident
                pl.BlockSpec((1, H1), lambda i: (0, 0)),
                pl.BlockSpec((H1, H2), lambda i: (0, 0)),        # w2: resident
                pl.BlockSpec((1, H2), lambda i: (0, 0)),
                pl.BlockSpec((H2, 1), lambda i: (0, 0)),
                pl.BlockSpec((1, 1), lambda i: (0, 0)),
            ],
            out_specs=pl.BlockSpec((TB, NUM_CLASSES), lambda i: (i, 0)),
        ),
        compiler_params=pltpu.CompilerParams(
            dimension_semantics=("parallel",),
            vmem_limit_bytes=32 << 20,
        ),
    )(x_flat, w1b, b1f, w2b, b2f, w3d, b3d)
    return out[:B]


# -----------------------------------------------------------------------------
# References.
# -----------------------------------------------------------------------------
def reference_unfolded(x_nchw, params):
    """Original module math, all f32 (semantic reference)."""
    (w1, b1, g1, beta1, rm1, rv1,
     w2, b2, g2, beta2, rm2, rv2,
     w3, b3) = params
    x = x_nchw.reshape(x_nchw.shape[0], -1).astype(jnp.float32)
    h = x @ w1 + b1
    h = (h - rm1) / jnp.sqrt(rv1 + BN_EPS) * g1 + beta1
    h = jnp.maximum(h, 0.0)
    h = h @ w2 + b2                      # Dropout2d eval = identity
    h = (h - rm2) / jnp.sqrt(rv2 + BN_EPS) * g2 + beta2
    h = jnp.maximum(h, 0.0)
    logits = h @ w3 + b3
    return jax.nn.log_softmax(logits, axis=1)


def reference_folded(x_nchw, folded_f32, matmul_dtype=jnp.float32):
    """Same math as the kernel (folded BN, optional bf16 matmul operands)."""
    w1f, b1f, w2f, b2f, w3d, b3d = folded_f32
    x = x_nchw.reshape(x_nchw.shape[0], -1).astype(matmul_dtype)
    h = jnp.dot(x, w1f.astype(matmul_dtype),
                preferred_element_type=jnp.float32) + b1f
    h = jnp.maximum(h, 0.0)
    h = jnp.dot(h.astype(matmul_dtype), w2f.astype(matmul_dtype),
                preferred_element_type=jnp.float32) + b2f
    h = jnp.maximum(h, 0.0)
    z = jnp.dot(h, w3d, preferred_element_type=jnp.float32) + b3d
    sp = jax.nn.softplus(z)
    return jnp.concatenate([-sp, z - sp], axis=1)


if __name__ == "__main__":
    key = jax.random.PRNGKey(0)
    k_params, k_x = jax.random.split(key)

    params = init_params(k_params)
    folded = fold_bn_into_linear(params)

    # Input implied by fc1: (B, 128, 5, 5). Small batch of 8.
    B = 8
    x = jax.random.normal(k_x, (B, 128, 5, 5), jnp.float32)

    # 1) BN-fold correctness (pure f32 vs original unfolded math).
    ref_unf = reference_unfolded(x, params)
    ref_fold_f32 = reference_folded(x, folded, matmul_dtype=jnp.float32)
    assert jnp.allclose(ref_fold_f32, ref_unf, atol=1e-4, rtol=1e-4), (
        float(jnp.max(jnp.abs(ref_fold_f32 - ref_unf))))

    # 2) Kernel vs matched (bf16-matmul) reference.
    out = classifier_forward(x, folded)
    out = jax.block_until_ready(out)
    ref = reference_folded(x, folded, matmul_dtype=jnp.bfloat16)
    assert out.shape == (B, NUM_CLASSES), out.shape
    assert jnp.allclose(out, ref, atol=2e-3, rtol=2e-3), (
        float(jnp.max(jnp.abs(out - ref))))

    print("KERNEL_OK")
</pallas_src>

<mosaic_0001>
module attributes {stable_mosaic.version = 11 : i64} {
  func.func @classifier_kernel(%arg0: i32, %arg1: memref<8x3200xbf16, #tpu.memory_space<vmem>>, %arg2: memref<3200x1024xbf16, #tpu.memory_space<vmem>>, %arg3: memref<1x1024xf32, #tpu.memory_space<vmem>>, %arg4: memref<1024x128xbf16, #tpu.memory_space<vmem>>, %arg5: memref<1x128xf32, #tpu.memory_space<vmem>>, %arg6: memref<128x1xf32, #tpu.memory_space<vmem>>, %arg7: memref<1x1xf32, #tpu.memory_space<vmem>>, %arg8: memref<8x2xf32, #tpu.memory_space<vmem>>) attributes {dimension_semantics = [#tpu.dimension_semantics<parallel>], iteration_bounds = array<i64: 1>, scalar_prefetch = 0 : i64, scratch_operands = 0 : i64, tpu.core_type = #tpu.core_type<tc>, window_params = [{transform_indices = @transform_0, window_bounds = array<i64: 8, 3200>}, {pipeline_mode = #tpu.pipeline_mode<synchronous>, transform_indices = @transform_1, window_bounds = array<i64: 3200, 1024>}, {pipeline_mode = #tpu.pipeline_mode<synchronous>, transform_indices = @transform_2, window_bounds = array<i64: 1, 1024>}, {pipeline_mode = #tpu.pipeline_mode<synchronous>, transform_indices = @transform_3, window_bounds = array<i64: 1024, 128>}, {pipeline_mode = #tpu.pipeline_mode<synchronous>, transform_indices = @transform_4, window_bounds = array<i64: 1, 128>}, {pipeline_mode = #tpu.pipeline_mode<synchronous>, transform_indices = @transform_5, window_bounds = array<i64: 128, 1>}, {pipeline_mode = #tpu.pipeline_mode<synchronous>, transform_indices = @transform_6, window_bounds = array<i64: 1, 1>}, {transform_indices = @transform_7, window_bounds = array<i64: 8, 2>}]} {
    %c0 = arith.constant 0 : index
    %c0_0 = arith.constant 0 : index
    %0 = vector.load %arg1[%c0, %c0_0] : memref<8x3200xbf16, #tpu.memory_space<vmem>>, vector<8x3200xbf16>
    %c0_1 = arith.constant 0 : index
    %c0_2 = arith.constant 0 : index
    %1 = vector.load %arg2[%c0_1, %c0_2] : memref<3200x1024xbf16, #tpu.memory_space<vmem>>, vector<3200x1024xbf16>
    %cst = arith.constant dense<0.000000e+00> : vector<8x1024xf32>
    %2 = tpu.matmul %0, %1, %cst {dimension_numbers = #tpu.dot_dimension_numbers<[1], [0], [0], [1], [0, 0, 1, 1], [], []>} : vector<8x3200xbf16>, vector<3200x1024xbf16>, vector<8x1024xf32> -> vector<8x1024xf32>
    %c0_3 = arith.constant 0 : index
    %c0_4 = arith.constant 0 : index
    %3 = vector.load %arg3[%c0_3, %c0_4] : memref<1x1024xf32, #tpu.memory_space<vmem>>, vector<1x1024xf32>
    %4 = vector.broadcast %3 : vector<1x1024xf32> to vector<8x1024xf32>
    %5 = arith.addf %2, %4 : vector<8x1024xf32>
    %cst_5 = arith.constant 0.000000e+00 : f32
    %6 = vector.broadcast %cst_5 : f32 to vector<8x1024xf32>
    %7 = arith.maximumf %5, %6 : vector<8x1024xf32>
    %8 = arith.truncf %7 : vector<8x1024xf32> to vector<8x1024xbf16>
    %c0_6 = arith.constant 0 : index
    %c0_7 = arith.constant 0 : index
    %9 = vector.load %arg4[%c0_6, %c0_7] : memref<1024x128xbf16, #tpu.memory_space<vmem>>, vector<1024x128xbf16>
    %cst_8 = arith.constant dense<0.000000e+00> : vector<8x128xf32>
    %10 = tpu.matmul %8, %9, %cst_8 {dimension_numbers = #tpu.dot_dimension_numbers<[1], [0], [0], [1], [0, 0, 1, 1], [], []>} : vector<8x1024xbf16>, vector<1024x128xbf16>, vector<8x128xf32> -> vector<8x128xf32>
    %c0_9 = arith.constant 0 : index
    %c0_10 = arith.constant 0 : index
    %11 = vector.load %arg5[%c0_9, %c0_10] : memref<1x128xf32, #tpu.memory_space<vmem>>, vector<1x128xf32>
    %12 = vector.broadcast %11 : vector<1x128xf32> to vector<8x128xf32>
    %13 = arith.addf %10, %12 : vector<8x128xf32>
    %cst_11 = arith.constant 0.000000e+00 : f32
    %14 = vector.broadcast %cst_11 : f32 to vector<8x128xf32>
    %15 = arith.maximumf %13, %14 : vector<8x128xf32>
    %c0_12 = arith.constant 0 : index
    %c0_13 = arith.constant 0 : index
    %16 = vector.load %arg6[%c0_12, %c0_13] : memref<128x1xf32, #tpu.memory_space<vmem>>, vector<128x1xf32>
    %cst_14 = arith.constant dense<0.000000e+00> : vector<8x1xf32>
    %17 = tpu.matmul %15, %16, %cst_14 {dimension_numbers = #tpu.dot_dimension_numbers<[1], [0], [0], [1], [0, 0, 1, 1], [], []>} : vector<8x128xf32>, vector<128x1xf32>, vector<8x1xf32> -> vector<8x1xf32>
    %c0_15 = arith.constant 0 : index
    %c0_16 = arith.constant 0 : index
    %18 = vector.load %arg7[%c0_15, %c0_16] : memref<1x1xf32, #tpu.memory_space<vmem>>, vector<1x1xf32>
    %19 = vector.broadcast %18 : vector<1x1xf32> to vector<8x1xf32>
    %20 = arith.addf %17, %19 : vector<8x1xf32>
    %cst_17 = arith.constant 0.000000e+00 : f32
    %21 = vector.broadcast %cst_17 : f32 to vector<8x1xf32>
    %22 = arith.maximumf %20, %21 : vector<8x1xf32>
    %23 = math.absf %20 : vector<8x1xf32>
    %cst_18 = arith.constant 0.000000e+00 : f32
    %24 = vector.broadcast %cst_18 : f32 to vector<8x1xf32>
    %25 = arith.subf %24, %23 : vector<8x1xf32>
    %26 = math.exp %25 : vector<8x1xf32>
    %27 = math.log1p %26 : vector<8x1xf32>
    %28 = arith.addf %22, %27 : vector<8x1xf32>
    %cst_19 = arith.constant 0.000000e+00 : f32
    %29 = vector.broadcast %cst_19 : f32 to vector<8x1xf32>
    %30 = arith.subf %29, %28 : vector<8x1xf32>
    %31 = arith.subf %20, %28 : vector<8x1xf32>
    %32 = tpu.concatenate %30, %31 in 1 : vector<8x1xf32>, vector<8x1xf32> -> vector<8x2xf32>
    %c0_20 = arith.constant 0 : index
    %c0_21 = arith.constant 0 : index
    %33 = vector.load %arg8[%c0_20, %c0_21] : memref<8x2xf32, #tpu.memory_space<vmem>>, vector<8x2xf32>
    tpu.vector_store %arg8[%c0_20, %c0_21], %32 {strides = array<i32>} : memref<8x2xf32, #tpu.memory_space<vmem>>, vector<8x2xf32>,
    return
  }
  func.func @transform_0(%arg0: i32) -> (i32, i32) {
    %c0_i32 = arith.constant 0 : i32
    %c0_i32_0 = arith.constant 0 : i32
    return %arg0, %c0_i32 : i32, i32
  }
  func.func @transform_1(%arg0: i32) -> (i32, i32) {
    %c0_i32 = arith.constant 0 : i32
    %c0_i32_0 = arith.constant 0 : i32
    %c0_i32_1 = arith.constant 0 : i32
    return %c0_i32, %c0_i32_0 : i32, i32
  }
  func.func @transform_2(%arg0: i32) -> (i32, i32) {
    %c0_i32 = arith.constant 0 : i32
    %c0_i32_0 = arith.constant 0 : i32
    %c0_i32_1 = arith.constant 0 : i32
    return %c0_i32, %c0_i32_0 : i32, i32
  }
  func.func @transform_3(%arg0: i32) -> (i32, i32) {
    %c0_i32 = arith.constant 0 : i32
    %c0_i32_0 = arith.constant 0 : i32
    %c0_i32_1 = arith.constant 0 : i32
    return %c0_i32, %c0_i32_0 : i32, i32
  }
  func.func @transform_4(%arg0: i32) -> (i32, i32) {
    %c0_i32 = arith.constant 0 : i32
    %c0_i32_0 = arith.constant 0 : i32
    %c0_i32_1 = arith.constant 0 : i32
    return %c0_i32, %c0_i32_0 : i32, i32
  }
  func.func @transform_5(%arg0: i32) -> (i32, i32) {
    %c0_i32 = arith.constant 0 : i32
    %c0_i32_0 = arith.constant 0 : i32
    %c0_i32_1 = arith.constant 0 : i32
    return %c0_i32, %c0_i32_0 : i32, i32
  }
  func.func @transform_6(%arg0: i32) -> (i32, i32) {
    %c0_i32 = arith.constant 0 : i32
    %c0_i32_0 = arith.constant 0 : i32
    %c0_i32_1 = arith.constant 0 : i32
    return %c0_i32, %c0_i32_0 : i32, i32
  }
  func.func @transform_7(%arg0: i32) -> (i32, i32) {
    %c0_i32 = arith.constant 0 : i32
    %c0_i32_0 = arith.constant 0 : i32
    return %arg0, %c0_i32 : i32, i32
  }
}

</mosaic_0001>

<bundles_post_ra>
// kernel: tpu_custom_call.1
= control target key start
LH: loop header
LB: loop body
LE: loop exit
PB: predicated region body
PF: predicated region fallthrough
CT: control target
= control target key end

     0   :  { %s15494_s0 = inlined_call_operand.hbm [shape: bf16[8,3200], index: 0, kind: input, shape index: {}]   ;;  %s15495_s1 = inlined_call_operand.hbm [shape: bf16[3200,1024], index: 1, kind: input, shape index: {}]   ;;  %s15496_s2 = inlined_call_operand.hbm [shape: f32[1,1024], index: 2, kind: input, shape index: {}]   ;;  %s15497_s3 = inlined_call_operand.hbm [shape: bf16[1024,128], index: 3, kind: input, shape index: {}]   ;;  %s15498_s4 = inlined_call_operand.hbm [shape: f32[1,128], index: 4, kind: input, shape index: {}]   ;;  %s15499_s5 = inlined_call_operand.vmem [shape: f32[128,1], index: 5, kind: input, shape index: {}]   ;;  %s15500_s6 = inlined_call_operand.<no memory space> [shape: f32[1,1], index: 6, kind: input, shape index: {}]   ;;  %s15501_s7 = inlined_call_operand.vmem [shape: f32[8,2], index: 7, kind: output, shape index: {}]  }
   0x1   :  { %v12_v0 = vstv %s15500_s6 }
   0x2   :  { %13 = vst [vmem:[#allocation2] sm:$0x1] %v12_v0 }
   0x3   :  { %14 = vsyncpa [#allocation4], 0 }
   0x4   :  { %15 = vsyncpa [#allocation6], 0 }
   0x5   :  { %16 = vsyncpa [#allocation9], 0  ;;  %s15066_s26 = smov [#allocation5]   ;;  %s14950_s30 = scalar_lea.hbm %s15495_s1, 204800 }
   0x6   :  { %s32_s27 = sshll.u32 %s15066_s26, 4  ;;  %p14951_p0 = scmp.ne.s32.totalorder %s15495_s1, %s14950_s30  ;;  %s33_s27 = int_to_ptr.vmem [resolvable:$true] %s32_s27 }
   0x7   :  { %p14954_p1 = scmp.lt.u32.totalorder %s14950_s30, %s15495_s1 }
   0x9   :  { %p14956_p2 = pnand %p14954_p1, %p14951_p0 }
   0xb   :  { %14959 = shalt.err (!%p14956_p2)
}
   0xc   :  { %s14960_s6 = scalar_lea.vmem %s33_s27, 204800  ;;  %p14965_p4 = scmp.lt.s32.totalorder %s33_s27, %s33_s27 }
   0xd   :  { %p14961_p3 = scmp.ne.s32.totalorder %s33_s27, %s14960_s6  ;;  %p14966_p5 = scmp.lt.s32.totalorder %s14960_s6, %s14960_s6 }
   0xf   :  { %p14967_p6 = por %p14966_p5, %p14965_p4 }
  0x11   :  { %p14968_p7 = pnand %p14967_p6, %p14961_p3 }
  0x13   :  { %14971 = shalt.err (!%p14968_p7)
}
  0x14   :  { %s15067_s12 = smov 512   ;;  %s15068_s13 = smov 32  }
  0x15   :  { %38 = dma.hbm_to_vmem [thread:$0]  %s15495_s1, 204800, %s33_s27, [#allocation6], %s15067_s12, %s15067_s12, %s15068_s13  }
  0x16   :  { %s15069_s16 = smov [#allocation8]   ;;  %s14972_s20 = scalar_lea.hbm %s15497_s3, 8192 }
  0x17   :  { %s54_s17 = sshll.u32 %s15069_s16, 4  ;;  %p14973_p8 = scmp.ne.s32.totalorder %s15497_s3, %s14972_s20  ;;  %s55_s17 = int_to_ptr.vmem [resolvable:$true] %s54_s17 }
  0x18   :  { %p14976_p9 = scmp.lt.u32.totalorder %s14972_s20, %s15497_s3 }
  0x1a   :  { %p14978_p10 = pnand %p14976_p9, %p14973_p8 }
  0x1c   :  { %14981 = shalt.err (!%p14978_p10)
}
  0x1d   :  { %s14982_s25 = scalar_lea.vmem %s55_s17, 8192  ;;  %p14987_p12 = scmp.lt.s32.totalorder %s55_s17, %s55_s17 }
  0x1e   :  { %p14983_p11 = scmp.ne.s32.totalorder %s55_s17, %s14982_s25  ;;  %p14988_p13 = scmp.lt.s32.totalorder %s14982_s25, %s14982_s25 }
  0x20   :  { %p14989_p0 = por %p14988_p13, %p14987_p12 }
  0x22   :  { %p14990_p1 = pnand %p14989_p0, %p14983_p11 }
  0x24   :  { %14993 = shalt.err (!%p14990_p1)
}
  0x25   :  { %s15070_s1 = smov 64   ;;  %s15071_s26 = smov 4  }
  0x26   :  { %60 = dma.hbm_to_vmem [thread:$0]  %s15497_s3, 8192, %s55_s17, [#allocation9], %s15070_s1, %s15070_s1, %s15071_s26  }
  0x27   :  { %s15072_s29 = smov [#allocation3]   ;;  %s15073_s8 = smov [#allocation7]  }
  0x28   :  { %s23_s30 = sshll.u32 %s15072_s29, 4  ;;  %s45_s9 = sshll.u32 %s15073_s8, 4  ;;  %s24_s30 = int_to_ptr.vmem [resolvable:$true] %s23_s30  ;;  %s46_s9 = int_to_ptr.vmem [resolvable:$true] %s45_s9 }
  0x29   :  { %s14994_s6 = scalar_lea.hbm %s15494_s0, 1600 }
  0x2a   :  { %p14995_p2 = scmp.ne.s32.totalorder %s15494_s0, %s14994_s6  ;;  %p14998_p3 = scmp.lt.u32.totalorder %s14994_s6, %s15494_s0 }
  0x2c   :  { %p15000_p4 = pnand %p14998_p3, %p14995_p2 }
  0x2e   :  { %15003 = shalt.err (!%p15000_p4)
}
  0x2f   :  { %s15004_s3 = scalar_lea.vmem %s24_s30, 1600  ;;  %p15009_p6 = scmp.lt.s32.totalorder %s24_s30, %s24_s30 }
  0x30   :  { %p15005_p5 = scmp.ne.s32.totalorder %s24_s30, %s15004_s3  ;;  %p15010_p7 = scmp.lt.s32.totalorder %s15004_s3, %s15004_s3 }
  0x32   :  { %p15011_p8 = por %p15010_p7, %p15009_p6 }
  0x34   :  { %p15012_p9 = pnand %p15011_p8, %p15005_p5 }
  0x36   :  { %15015 = shalt.err (!%p15012_p9)
}
  0x37   :  { %26 = dma.hbm_to_vmem [thread:$0]  %s15494_s0, 1600, %s24_s30, [#allocation4]  }
  0x38   :  { %s15016_s20 = scalar_lea.hbm %s15496_s2, 128 }
  0x39   :  { %p15017_p10 = scmp.ne.s32.totalorder %s15496_s2, %s15016_s20  ;;  %p15020_p11 = scmp.lt.u32.totalorder %s15016_s20, %s15496_s2 }
  0x3b   :  { %p15022_p12 = pnand %p15020_p11, %p15017_p10 }
  0x3d   :  { %15025 = shalt.err (!%p15022_p12)
}
  0x3e   :  { %s15026_s25 = scalar_lea.vmem %s46_s9, 128  ;;  %p15031_p0 = scmp.lt.s32.totalorder %s46_s9, %s46_s9 }
  0x3f   :  { %p15027_p13 = scmp.ne.s32.totalorder %s46_s9, %s15026_s25  ;;  %p15032_p1 = scmp.lt.s32.totalorder %s15026_s25, %s15026_s25 }
  0x41   :  { %p15033_p2 = por %p15032_p1, %p15031_p0 }
  0x43   :  { %p15034_p3 = pnand %p15033_p2, %p15027_p13 }
  0x45   :  { %15037 = shalt.err (!%p15034_p3)
}
  0x46   :  { %48 = dma.hbm_to_vmem [thread:$0]  %s15496_s2, 128, %s46_s9, [#allocation6]  }
  0x47   :  { %s15074_s26 = smov [#allocation10]   ;;  %s15038_s30 = scalar_lea.hbm %s15498_s4, 16 }
  0x48   :  { %s67_s27 = sshll.u32 %s15074_s26, 4  ;;  %p15039_p4 = scmp.ne.s32.totalorder %s15498_s4, %s15038_s30  ;;  %s68_s27 = int_to_ptr.vmem [resolvable:$true] %s67_s27 }
  0x49   :  { %p15042_p5 = scmp.lt.u32.totalorder %s15038_s30, %s15498_s4 }
  0x4b   :  { %p15044_p6 = pnand %p15042_p5, %p15039_p4 }
  0x4d   :  { %15047 = shalt.err (!%p15044_p6)
}
  0x4e   :  { %s15048_s12 = scalar_lea.vmem %s68_s27, 16  ;;  %s15052_s2 = scalar_lea.vmem %s68_s27, 32 }
  0x4f   :  { %p15049_p7 = scmp.ne.s32.totalorder %s68_s27, %s15048_s12  ;;  %p15053_p8 = scmp.lt.s32.totalorder %s68_s27, %s68_s27 }
  0x50   :  { %p15054_p9 = scmp.lt.s32.totalorder %s15052_s2, %s15048_s12 }
  0x52   :  { %p15055_p10 = por %p15054_p9, %p15053_p8 }
  0x54   :  { %p15056_p11 = pnand %p15055_p10, %p15049_p7 }
  0x56   :  { %15059 = shalt.err (!%p15056_p11)
}
  0x57   :  { %70 = dma.hbm_to_vmem [thread:$0]  %s15498_s4, 16, %s68_s27, [#allocation9]  }
  0x58   :  { %15060 = dma.done.wait [#allocation4], 1600  }
  0x59   :  { %15061 = vsyncadd [#allocation4], 4294965696 }
  0x5a   :  { %15062 = dma.done.wait [#allocation6], 204928  }
  0x5b   :  { %15063 = vsyncadd [#allocation6], 4294762368 }
  0x5c   :  { %15064 = dma.done.wait [#allocation9], 8208  }
  0x5d   :  { %15065 = vsyncadd [#allocation9], 4294959088  ;;  %v104_v1 = vld [vmem:[#allocation5] sm:$0xff]  ;;  %v105_v3 = vld [vmem:[#allocation5 + $0x8] sm:$0xff]  ;;  %vm15077_vm0 = vmmov 0   ;;  %vm12776_vm2 = vcmask 7168  }
  0x5e   :  { %v108_v2 = vld [vmem:[#allocation5 + $0x20] sm:$0xff]  ;;  %v109_v5 = vld [vmem:[#allocation5 + $0x28] sm:$0xff]  ;;  %vm12778_vm3 = vcmask 15360  }
  0x5f   :  { %v12813_v4 = vcombine.high %v104_v1, %v108_v2  ;;  %v12812_v6 = vcombine.low %v104_v1, %v108_v2  ;;  %v112_v7 = vld [vmem:[#allocation5 + $0x40] sm:$0xff]  ;;  %v12815_v9 = vcombine.high %v105_v3, %v109_v5  ;;  %v12814_v10 = vcombine.low %v105_v3, %v109_v5  ;;  %v113_v12 = vld [vmem:[#allocation5 + $0x48] sm:$0xff] }
  0x60   :  { %v116_v8 = vld [vmem:[#allocation5 + $0x60] sm:$0xff]  ;;  %v117_v13 = vld [vmem:[#allocation5 + $0x68] sm:$0xff] }
  0x61   :  { %v12821_v11 = vcombine.high %v112_v7, %v116_v8  ;;  %v120_v14 = vld [vmem:[#allocation5 + $0x80] sm:$0xff]  ;;  %9834 = vmatprep.subr.bf16.mxu0 %v12813_v4  ;;  %v12823_v15 = vcombine.high %v113_v12, %v117_v13  ;;  %v121_v17 = vld [vmem:[#allocation5 + $0x88] sm:$0xff]  ;;  %10367 = vmatprep.subr.bf16.mxu1 %v12815_v9  ;;  %v12820_v19 = vcombine.low %v112_v7, %v116_v8 }
  0x62   :  { %v124_v16 = vld [vmem:[#allocation5 + $0xa0] sm:$0xff]  ;;  %v125_v18 = vld [vmem:[#allocation5 + $0xa8] sm:$0xff]  ;;  %9835 = vmatpush1.bf16.msra.mxu0 %v12812_v6  ;;  %10368 = vmatpush1.bf16.msra.mxu1 %v12814_v10  ;;  %v12822_v20 = vcombine.low %v113_v12, %v117_v13 }
  0x63   :  { %9836 = vmatprep.subr.bf16.mxu0 %v12821_v11  ;;  %v12829_v21 = vcombine.high %v120_v14, %v124_v16  ;;  %10369 = vmatprep.subr.bf16.mxu1 %v12823_v15  ;;  %v12831_v22 = vcombine.high %v121_v17, %v125_v18  ;;  %v128_v23 = vld [vmem:[#allocation5 + $0xc0] sm:$0xff]  ;;  %v129_v25 = vld [vmem:[#allocation5 + $0xc8] sm:$0xff]  ;;  %v12828_v27 = vcombine.low %v120_v14, %v124_v16 }
  0x64   :  { %v132_v24 = vld [vmem:[#allocation5 + $0xe0] sm:$0xff]  ;;  %v133_v26 = vld [vmem:[#allocation5 + $0xe8] sm:$0xff]  ;;  %v12830_v28 = vcombine.low %v121_v17, %v125_v18 }
  0x65   :  { %v12837_v29 = vcombine.high %v128_v23, %v132_v24  ;;  %v12839_v30 = vcombine.high %v129_v25, %v133_v26  ;;  %v136_v31 = vld [vmem:[#allocation5 + $0x100] sm:$0xff]  ;;  %v137_v33 = vld [vmem:[#allocation5 + $0x108] sm:$0xff]  ;;  %v12836_v35 = vcombine.low %v128_v23, %v132_v24  ;;  %v12838_v36 = vcombine.low %v129_v25, %v133_v26 }
  0x66   :  { %9837 = vmatpush1.bf16.msra.mxu0 %v12820_v19  ;;  %10370 = vmatpush1.bf16.msra.mxu1 %v12822_v20  ;;  %v140_v32 = vld [vmem:[#allocation5 + $0x120] sm:$0xff]  ;;  %v141_v34 = vld [vmem:[#allocation5 + $0x128] sm:$0xff] }
  0x67   :  { %9838 = vmatprep.subr.bf16.mxu0 %v12829_v21  ;;  %10371 = vmatprep.subr.bf16.mxu1 %v12831_v22  ;;  %v12845_v37 = vcombine.high %v136_v31, %v140_v32  ;;  %v12847_v38 = vcombine.high %v137_v33, %v141_v34  ;;  %v144_v39 = vld [vmem:[#allocation5 + $0x140] sm:$0xff]  ;;  %v145_v41 = vld [vmem:[#allocation5 + $0x148] sm:$0xff]  ;;  %v12844_v43 = vcombine.low %v136_v31, %v140_v32 }
  0x68   :  { %v148_v40 = vld [vmem:[#allocation5 + $0x160] sm:$0xff]  ;;  %v149_v42 = vld [vmem:[#allocation5 + $0x168] sm:$0xff]  ;;  %v12846_v44 = vcombine.low %v137_v33, %v141_v34 }
  0x69   :  { %v12853_v45 = vcombine.high %v144_v39, %v148_v40  ;;  %v12855_v46 = vcombine.high %v145_v41, %v149_v42  ;;  %v152_v47 = vld [vmem:[#allocation5 + $0x180] sm:$0xff]  ;;  %v153_v49 = vld [vmem:[#allocation5 + $0x188] sm:$0xff]  ;;  %v12852_v51 = vcombine.low %v144_v39, %v148_v40  ;;  %v12854_v52 = vcombine.low %v145_v41, %v149_v42 }
  0x6a   :  { %9839 = vmatpush1.bf16.msra.mxu0 %v12828_v27  ;;  %10372 = vmatpush1.bf16.msra.mxu1 %v12830_v28  ;;  %v156_v48 = vld [vmem:[#allocation5 + $0x1a0] sm:$0xff]  ;;  %v157_v50 = vld [vmem:[#allocation5 + $0x1a8] sm:$0xff] }
  0x6b   :  { %9840 = vmatprep.subr.bf16.mxu0 %v12837_v29  ;;  %10373 = vmatprep.subr.bf16.mxu1 %v12839_v30  ;;  %v12861_v53 = vcombine.high %v152_v47, %v156_v48  ;;  %v15183_v54 = vld [vmem:[#allocation3] sm:$0xff]  ;;  %v12863_v55 = vcombine.high %v153_v49, %v157_v50  ;;  %v161_v59 = vld [vmem:[#allocation5 + $0x1c8] sm:$0xff]  ;;  %v12860_v61 = vcombine.low %v152_v47, %v156_v48 }
  0x6c   :  { %v160_v56 = vld [vmem:[#allocation5 + $0x1c0] sm:$0xff]  ;;  %v15187_v58 = vcombine.high %v15183_v54, %v15183_v54  ;;  %v165_v60 = vld [vmem:[#allocation5 + $0x1e8] sm:$0xff]  ;;  %v12862_v62 = vcombine.low %v153_v49, %v157_v50 }
  0x6d   :  { %v164_v57 = vld [vmem:[#allocation5 + $0x1e0] sm:$0xff]  ;;  %v12871_v0 = vcombine.high %v161_v59, %v165_v60  ;;  %v169_v3 = vld [vmem:[#allocation5 + $0x208] sm:$0xff]  ;;  %v12870_v6 = vcombine.low %v161_v59, %v165_v60 }
  0x6e   :  { %9841 = vmatpush1.bf16.msra.mxu0 %v12836_v35  ;;  %10374 = vmatpush1.bf16.msra.mxu1 %v12838_v36  ;;  %v12869_v63 = vcombine.high %v160_v56, %v164_v57  ;;  %v168_v1 = vld [vmem:[#allocation5 + $0x200] sm:$0xff]  ;;  %v173_v4 = vld [vmem:[#allocation5 + $0x228] sm:$0xff]  ;;  %v12868_v5 = vcombine.low %v160_v56, %v164_v57 }
  0x6f   :  { %9842 = vmatprep.subr.bf16.mxu0 %v12845_v37  ;;  %10375 = vmatprep.subr.bf16.mxu1 %v12847_v38  ;;  %v172_v2 = vld [vmem:[#allocation5 + $0x220] sm:$0xff]  ;;  %v12879_v8 = vcombine.high %v169_v3, %v173_v4  ;;  %v177_v11 = vld [vmem:[#allocation5 + $0x248] sm:$0xff]  ;;  %v12878_v14 = vcombine.low %v169_v3, %v173_v4 }
  0x70   :  { %9866 = vmatprep.mubr.bf16.mxu0 %v15187_v58  ;;  %10399 = vmatprep.mubr.bf16.mxu1 %v15187_v58  ;;  %v12877_v7 = vcombine.high %v168_v1, %v172_v2  ;;  %v176_v9 = vld [vmem:[#allocation5 + $0x240] sm:$0xff]  ;;  %v181_v12 = vld [vmem:[#allocation5 + $0x268] sm:$0xff]  ;;  %v12876_v13 = vcombine.low %v168_v1, %v172_v2 }
  0x71   :  { %v180_v10 = vld [vmem:[#allocation5 + $0x260] sm:$0xff]  ;;  %v12887_v16 = vcombine.high %v177_v11, %v181_v12  ;;  %v185_v19 = vld [vmem:[#allocation5 + $0x288] sm:$0xff]  ;;  %v12886_v22 = vcombine.low %v177_v11, %v181_v12 }
  0x72   :  { %9843 = vmatpush1.bf16.msra.mxu0 %v12844_v43  ;;  %10376 = vmatpush1.bf16.msra.mxu1 %v12846_v44  ;;  %v12885_v15 = vcombine.high %v176_v9, %v180_v10  ;;  %v184_v17 = vld [vmem:[#allocation5 + $0x280] sm:$0xff]  ;;  %v189_v20 = vld [vmem:[#allocation5 + $0x2a8] sm:$0xff]  ;;  %v12884_v21 = vcombine.low %v176_v9, %v180_v10 }
  0x73   :  { %9844 = vmatprep.subr.bf16.mxu0 %v12853_v45  ;;  %10377 = vmatprep.subr.bf16.mxu1 %v12855_v46  ;;  %v188_v18 = vld [vmem:[#allocation5 + $0x2a0] sm:$0xff]  ;;  %v12895_v24 = vcombine.high %v185_v19, %v189_v20  ;;  %v193_v27 = vld [vmem:[#allocation5 + $0x2c8] sm:$0xff]  ;;  %v12894_v30 = vcombine.low %v185_v19, %v189_v20 }
  0x74   :  { %v12893_v23 = vcombine.high %v184_v17, %v188_v18  ;;  %v192_v25 = vld [vmem:[#allocation5 + $0x2c0] sm:$0xff]  ;;  %v197_v28 = vld [vmem:[#allocation5 + $0x2e8] sm:$0xff]  ;;  %v12892_v29 = vcombine.low %v184_v17, %v188_v18 }
  0x75   :  { %v196_v26 = vld [vmem:[#allocation5 + $0x2e0] sm:$0xff]  ;;  %v12903_v32 = vcombine.high %v193_v27, %v197_v28  ;;  %v201_v35 = vld [vmem:[#allocation5 + $0x308] sm:$0xff]  ;;  %v12902_v38 = vcombine.low %v193_v27, %v197_v28 }
  0x76   :  { %9845 = vmatpush1.bf16.msra.mxu0 %v12852_v51  ;;  %10378 = vmatpush1.bf16.msra.mxu1 %v12854_v52  ;;  %v12901_v31 = vcombine.high %v192_v25, %v196_v26  ;;  %v200_v33 = vld [vmem:[#allocation5 + $0x300] sm:$0xff]  ;;  %v205_v36 = vld [vmem:[#allocation5 + $0x328] sm:$0xff]  ;;  %v12900_v37 = vcombine.low %v192_v25, %v196_v26 }
  0x77   :  { %9846 = vmatprep.subr.bf16.mxu0 %v12861_v53  ;;  %10379 = vmatprep.subr.bf16.mxu1 %v12863_v55  ;;  %v204_v34 = vld [vmem:[#allocation5 + $0x320] sm:$0xff]  ;;  %v12911_v40 = vcombine.high %v201_v35, %v205_v36  ;;  %v209_v43 = vld [vmem:[#allocation5 + $0x348] sm:$0xff]  ;;  %v12910_v46 = vcombine.low %v201_v35, %v205_v36 }
  0x78   :  { %v12909_v39 = vcombine.high %v200_v33, %v204_v34  ;;  %v208_v41 = vld [vmem:[#allocation5 + $0x340] sm:$0xff]  ;;  %v213_v44 = vld [vmem:[#allocation5 + $0x368] sm:$0xff]  ;;  %v12908_v45 = vcombine.low %v200_v33, %v204_v34 }
  0x79   :  { %v212_v42 = vld [vmem:[#allocation5 + $0x360] sm:$0xff]  ;;  %v12919_v48 = vcombine.high %v209_v43, %v213_v44  ;;  %v217_v51 = vld [vmem:[#allocation5 + $0x388] sm:$0xff]  ;;  %v12918_v55 = vcombine.low %v209_v43, %v213_v44 }
  0x7a   :  { %9847 = vmatpush1.bf16.msra.mxu0 %v12860_v61  ;;  %10380 = vmatpush1.bf16.msra.mxu1 %v12862_v62  ;;  %v12917_v47 = vcombine.high %v208_v41, %v212_v42  ;;  %v216_v49 = vld [vmem:[#allocation5 + $0x380] sm:$0xff]  ;;  %v221_v52 = vld [vmem:[#allocation5 + $0x3a8] sm:$0xff]  ;;  %v12916_v53 = vcombine.low %v208_v41, %v212_v42 }
  0x7b   :  { %9848 = vmatprep.subr.bf16.mxu0 %v12869_v63  ;;  %10381 = vmatprep.subr.bf16.mxu1 %v12871_v0  ;;  %v220_v50 = vld [vmem:[#allocation5 + $0x3a0] sm:$0xff]  ;;  %v12927_v57 = vcombine.high %v217_v51, %v221_v52  ;;  %v225_v61 = vld [vmem:[#allocation5 + $0x3c8] sm:$0xff]  ;;  %v12926_v0 = vcombine.low %v217_v51, %v221_v52 }
  0x7c   :  { %v12925_v56 = vcombine.high %v216_v49, %v220_v50  ;;  %v224_v59 = vld [vmem:[#allocation5 + $0x3c0] sm:$0xff]  ;;  %v229_v62 = vld [vmem:[#allocation5 + $0x3e8] sm:$0xff]  ;;  %v12924_v63 = vcombine.low %v216_v49, %v220_v50 }
  0x7d   :  { %v228_v60 = vld [vmem:[#allocation5 + $0x3e0] sm:$0xff]  ;;  %v12935_v2 = vcombine.high %v225_v61, %v229_v62 }
  0x7e   :  { %9849 = vmatpush1.bf16.msra.mxu0 %v12868_v5  ;;  %10382 = vmatpush1.bf16.msra.mxu1 %v12870_v6  ;;  %v12933_v1 = vcombine.high %v224_v59, %v228_v60  ;;  %v232_v3 = vld [vmem:[#allocation5 + $0x400] sm:$0xff]  ;;  %v233_v5 = vld [vmem:[#allocation5 + $0x408] sm:$0xff] }
  0x7f   :  { %9850 = vmatprep.subr.bf16.mxu0 %v12877_v7  ;;  %10383 = vmatprep.subr.bf16.mxu1 %v12879_v8  ;;  %v236_v4 = vld [vmem:[#allocation5 + $0x420] sm:$0xff]  ;;  %v237_v6 = vld [vmem:[#allocation5 + $0x428] sm:$0xff]  ;;  %v12932_v7 = vcombine.low %v224_v59, %v228_v60  ;;  %v12934_v8 = vcombine.low %v225_v61, %v229_v62 }
  0x80   :  { %v12941_v9 = vcombine.high %v232_v3, %v236_v4  ;;  %v12943_v10 = vcombine.high %v233_v5, %v237_v6  ;;  %v240_v11 = vld [vmem:[#allocation5 + $0x440] sm:$0xff]  ;;  %v12940_v17 = vcombine.low %v232_v3, %v236_v4  ;;  %v12942_v18 = vcombine.low %v233_v5, %v237_v6 }
  0x81   :  { %v244_v12 = vld [vmem:[#allocation5 + $0x460] sm:$0xff] }
  0x82   :  { %9851 = vmatpush1.bf16.msra.mxu0 %v12876_v13  ;;  %10384 = vmatpush1.bf16.msra.mxu1 %v12878_v14  ;;  %v15193_v13 = vcombine.low %v15183_v54, %v15183_v54  ;;  %v241_v14 = vld [vmem:[#allocation5 + $0x448] sm:$0xff]  ;;  %v12949_v19 = vcombine.high %v240_v11, %v244_v12  ;;  %v248_v20 = vld [vmem:[#allocation5 + $0x480] sm:$0xff]  ;;  %v12948_v25 = vcombine.low %v240_v11, %v244_v12 }
  0x83   :  { %9852 = vmatprep.subr.bf16.mxu0 %v12885_v15  ;;  %10385 = vmatprep.subr.bf16.mxu1 %v12887_v16  ;;  %v245_v15 = vld [vmem:[#allocation5 + $0x468] sm:$0xff]  ;;  %v256_v28 = vld [vmem:[#allocation5 + $0x4c0] sm:$0xff] }
  0x84   :  { %v15195_v16 = vld [vmem:[#allocation3 + $0x8] sm:$0xff]  ;;  %v12950_v26 = vcombine.low %v241_v14, %v245_v15 }
  0x85   :  { %v15199_v54 = vcombine.high %v15195_v16, %v15195_v16  ;;  %v264_v36 = vld [vmem:[#allocation5 + $0x500] sm:$0xff] }
  0x86   :  { %9853 = vmatpush1.bf16.msra.mxu0 %v12884_v21  ;;  %10386 = vmatpush1.bf16.msra.mxu1 %v12886_v22  ;;  %v252_v21 = vld [vmem:[#allocation5 + $0x4a0] sm:$0xff]  ;;  %v12951_v22 = vcombine.high %v241_v14, %v245_v15 }
  0x87   :  { %9854 = vmatprep.subr.bf16.mxu0 %v12893_v23  ;;  %10387 = vmatprep.subr.bf16.mxu1 %v12895_v24  ;;  %v249_v23 = vld [vmem:[#allocation5 + $0x488] sm:$0xff]  ;;  %v12957_v27 = vcombine.high %v248_v20, %v252_v21  ;;  %v12956_v33 = vcombine.low %v248_v20, %v252_v21  ;;  %v272_v44 = vld [vmem:[#allocation5 + $0x540] sm:$0xff] }
  0x88   :  { %v253_v24 = vld [vmem:[#allocation5 + $0x4a8] sm:$0xff]  ;;  %v280_v52 = vld [vmem:[#allocation5 + $0x580] sm:$0xff] }
  0x89   :  { %v12958_v34 = vcombine.low %v249_v23, %v253_v24  ;;  %v288_v62 = vld [vmem:[#allocation5 + $0x5c0] sm:$0xff]  ;;  %v309_v20 = vld [vmem:[#allocation5 + $0x668] sm:$0xff] }
  0x8a   :  { %9855 = vmatpush1.bf16.msra.mxu0 %v12892_v29  ;;  %10388 = vmatpush1.bf16.msra.mxu1 %v12894_v30  ;;  %v260_v29 = vld [vmem:[#allocation5 + $0x4e0] sm:$0xff]  ;;  %v257_v30 = vld [vmem:[#allocation5 + $0x4c8] sm:$0xff] }
  0x8b   :  { %9856 = vmatprep.subr.bf16.mxu0 %v12901_v31  ;;  %10389 = vmatprep.subr.bf16.mxu1 %v12903_v32  ;;  %v12959_v31 = vcombine.high %v249_v23, %v253_v24  ;;  %v261_v32 = vld [vmem:[#allocation5 + $0x4e8] sm:$0xff]  ;;  %v12965_v35 = vcombine.high %v256_v28, %v260_v29  ;;  %v12964_v41 = vcombine.low %v256_v28, %v260_v29  ;;  %v296_v6 = vld [vmem:[#allocation5 + $0x600] sm:$0xff] }
  0x8c   :  { %v12966_v42 = vcombine.low %v257_v30, %v261_v32  ;;  %v304_v15 = vld [vmem:[#allocation5 + $0x640] sm:$0xff]  ;;  %v317_v28 = vld [vmem:[#allocation5 + $0x6a8] sm:$0xff] }
  0x8d   :  { %v312_v24 = vld [vmem:[#allocation5 + $0x680] sm:$0xff] }
  0x8e   :  { %9857 = vmatpush1.bf16.msra.mxu0 %v12900_v37  ;;  %10390 = vmatpush1.bf16.msra.mxu1 %v12902_v38  ;;  %v268_v37 = vld [vmem:[#allocation5 + $0x520] sm:$0xff]  ;;  %v265_v38 = vld [vmem:[#allocation5 + $0x508] sm:$0xff] }
  0x8f   :  { %9858 = vmatprep.subr.bf16.mxu0 %v12909_v39  ;;  %10391 = vmatprep.subr.bf16.mxu1 %v12911_v40  ;;  %v12967_v39 = vcombine.high %v257_v30, %v261_v32  ;;  %v269_v40 = vld [vmem:[#allocation5 + $0x528] sm:$0xff]  ;;  %v12973_v43 = vcombine.high %v264_v36, %v268_v37  ;;  %v12972_v49 = vcombine.low %v264_v36, %v268_v37  ;;  %v320_v32 = vld [vmem:[#allocation5 + $0x6c0] sm:$0xff] }
  0x90   :  { %v12974_v50 = vcombine.low %v265_v38, %v269_v40  ;;  %v325_v36 = vld [vmem:[#allocation5 + $0x6e8] sm:$0xff] }
  0x92   :  { %9859 = vmatpush1.bf16.msra.mxu0 %v12908_v45  ;;  %10392 = vmatpush1.bf16.msra.mxu1 %v12910_v46  ;;  %v276_v45 = vld [vmem:[#allocation5 + $0x560] sm:$0xff]  ;;  %v273_v46 = vld [vmem:[#allocation5 + $0x548] sm:$0xff] }
  0x93   :  { %9860 = vmatprep.subr.bf16.mxu0 %v12917_v47  ;;  %10393 = vmatprep.subr.bf16.mxu1 %v12919_v48  ;;  %v12975_v47 = vcombine.high %v265_v38, %v269_v40  ;;  %v277_v48 = vld [vmem:[#allocation5 + $0x568] sm:$0xff]  ;;  %v12981_v51 = vcombine.high %v272_v44, %v276_v45  ;;  %v12980_v59 = vcombine.low %v272_v44, %v276_v45  ;;  %v328_v40 = vld [vmem:[#allocation5 + $0x700] sm:$0xff] }
  0x94   :  { %v12982_v60 = vcombine.low %v273_v46, %v277_v48  ;;  %v333_v44 = vld [vmem:[#allocation5 + $0x728] sm:$0xff] }
  0x96   :  { %9861 = vmatpush1.bf16.msra.mxu0 %v12916_v53  ;;  %10394 = vmatpush1.bf16.msra.mxu1 %v12918_v55  ;;  %v284_v53 = vld [vmem:[#allocation5 + $0x5a0] sm:$0xff]  ;;  %v281_v55 = vld [vmem:[#allocation5 + $0x588] sm:$0xff] }
  0x97   :  { %9862 = vmatprep.subr.bf16.mxu0 %v12925_v56  ;;  %10395 = vmatprep.subr.bf16.mxu1 %v12927_v57  ;;  %v12983_v56 = vcombine.high %v273_v46, %v277_v48  ;;  %v285_v57 = vld [vmem:[#allocation5 + $0x5a8] sm:$0xff]  ;;  %v12989_v61 = vcombine.high %v280_v52, %v284_v53  ;;  %v12988_v3 = vcombine.low %v280_v52, %v284_v53  ;;  %v336_v48 = vld [vmem:[#allocation5 + $0x740] sm:$0xff] }
  0x98   :  { %v12990_v4 = vcombine.low %v281_v55, %v285_v57  ;;  %v341_v52 = vld [vmem:[#allocation5 + $0x768] sm:$0xff] }
  0x9a   :  { %9863 = vmatpush1.bf16.msra.mxu0 %v12924_v63  ;;  %10396 = vmatpush1.bf16.msra.mxu1 %v12926_v0  ;;  %v292_v63 = vld [vmem:[#allocation5 + $0x5e0] sm:$0xff]  ;;  %v289_v0 = vld [vmem:[#allocation5 + $0x5c8] sm:$0xff] }
  0x9b   :  { %9864 = vmatprep.subr.bf16.mxu0 %v12933_v1  ;;  %10397 = vmatprep.subr.bf16.mxu1 %v12935_v2  ;;  %v12991_v1 = vcombine.high %v281_v55, %v285_v57  ;;  %v293_v2 = vld [vmem:[#allocation5 + $0x5e8] sm:$0xff]  ;;  %v12997_v5 = vcombine.high %v288_v62, %v292_v63  ;;  %v12996_v11 = vcombine.low %v288_v62, %v292_v63  ;;  %v344_v57 = vld [vmem:[#allocation5 + $0x780] sm:$0xff] }
  0x9c   :  { %v12998_v12 = vcombine.low %v289_v0, %v293_v2  ;;  %v349_v62 = vld [vmem:[#allocation5 + $0x7a8] sm:$0xff] }
  0x9e   :  { %9865 = vmatpush1.bf16.msra.mxu0 %v12932_v7  ;;  %10398 = vmatpush1.bf16.msra.mxu1 %v12934_v8  ;;  %v300_v7 = vld [vmem:[#allocation5 + $0x620] sm:$0xff]  ;;  %v297_v8 = vld [vmem:[#allocation5 + $0x608] sm:$0xff] }
  0x9f   :  { %9875 = vmatprep.subr.bf16.mxu0 %v12941_v9  ;;  %10408 = vmatprep.subr.bf16.mxu1 %v12943_v10  ;;  %v12999_v9 = vcombine.high %v289_v0, %v293_v2  ;;  %v301_v10 = vld [vmem:[#allocation5 + $0x628] sm:$0xff]  ;;  %v13005_v14 = vcombine.high %v296_v6, %v300_v7  ;;  %v13004_v21 = vcombine.low %v296_v6, %v300_v7  ;;  %v352_v2 = vld [vmem:[#allocation5 + $0x7c0] sm:$0xff] }
  0xa0   :  { %v357_v6 = vld [vmem:[#allocation5 + $0x7e8] sm:$0xff] }
  0xa1   :  { %9867 = vmatmul.mubr.bf16.vlgmr.msra.gmra.mrb[0].mxu0 %v15193_v13  ;;  %10400 = vmatmul.mubr.bf16.vlgmr.msra.gmra.mrb[0].mxu1 %v15193_v13 }
  0xa2   :  { %9876 = vmatpush1.bf16.msra.mxu0 %v12940_v17  ;;  %10409 = vmatpush1.bf16.msra.mxu1 %v12942_v18  ;;  %v308_v17 = vld [vmem:[#allocation5 + $0x660] sm:$0xff]  ;;  %v305_v18 = vld [vmem:[#allocation5 + $0x648] sm:$0xff] }
  0xa3   :  { %9877 = vmatprep.subr.bf16.mxu0 %v12949_v19  ;;  %10410 = vmatprep.subr.bf16.mxu1 %v12951_v22  ;;  %v13007_v19 = vcombine.high %v297_v8, %v301_v10  ;;  %v13006_v22 = vcombine.low %v297_v8, %v301_v10  ;;  %v13013_v23 = vcombine.high %v304_v15, %v308_v17  ;;  %v360_v10 = vld [vmem:[#allocation5 + $0x800] sm:$0xff] }
  0xa4   :  { %9907 = vmatprep.mubr.bf16.mxu0 %v15199_v54  ;;  %10440 = vmatprep.mubr.bf16.mxu1 %v15199_v54  ;;  %v13012_v29 = vcombine.low %v304_v15, %v308_v17  ;;  %v13014_v30 = vcombine.low %v305_v18, %v309_v20  ;;  %v365_v15 = vld [vmem:[#allocation5 + $0x828] sm:$0xff] }
  0xa6   :  { %9878 = vmatpush1.bf16.msra.mxu0 %v12948_v25  ;;  %10411 = vmatpush1.bf16.msra.mxu1 %v12950_v26  ;;  %v316_v25 = vld [vmem:[#allocation5 + $0x6a0] sm:$0xff]  ;;  %v313_v26 = vld [vmem:[#allocation5 + $0x688] sm:$0xff] }
  0xa7   :  { %9879 = vmatprep.subr.bf16.mxu0 %v12957_v27  ;;  %10412 = vmatprep.subr.bf16.mxu1 %v12959_v31  ;;  %v13015_v27 = vcombine.high %v305_v18, %v309_v20  ;;  %v13021_v31 = vcombine.high %v312_v24, %v316_v25  ;;  %v13020_v37 = vcombine.low %v312_v24, %v316_v25  ;;  %v368_v18 = vld [vmem:[#allocation5 + $0x840] sm:$0xff]  ;;  %v15205_v25 = vld [vmem:[#allocation3 + $0x10] sm:$0xff] }
  0xa8   :  { %v13022_v38 = vcombine.low %v313_v26, %v317_v28 }
  0xaa   :  { %9880 = vmatpush1.bf16.msra.mxu0 %v12956_v33  ;;  %10413 = vmatpush1.bf16.msra.mxu1 %v12958_v34  ;;  %v324_v33 = vld [vmem:[#allocation5 + $0x6e0] sm:$0xff]  ;;  %v321_v34 = vld [vmem:[#allocation5 + $0x6c8] sm:$0xff] }
  0xab   :  { %9881 = vmatprep.subr.bf16.mxu0 %v12965_v35  ;;  %10414 = vmatprep.subr.bf16.mxu1 %v12967_v39  ;;  %v13023_v35 = vcombine.high %v313_v26, %v317_v28  ;;  %v13029_v39 = vcombine.high %v320_v32, %v324_v33  ;;  %v13028_v45 = vcombine.low %v320_v32, %v324_v33  ;;  %v380_v32 = vld [vmem:[#allocation5 + $0x8a0] sm:$0xff] }
  0xac   :  { %v13030_v46 = vcombine.low %v321_v34, %v325_v36  ;;  %v15209_v26 = vcombine.low %v15195_v16, %v15195_v16  ;;  %v15213_v33 = vcombine.high %v15205_v25, %v15205_v25 }
  0xae   :  { %9882 = vmatpush1.bf16.msra.mxu0 %v12964_v41  ;;  %10415 = vmatpush1.bf16.msra.mxu1 %v12966_v42  ;;  %v332_v41 = vld [vmem:[#allocation5 + $0x720] sm:$0xff]  ;;  %v329_v42 = vld [vmem:[#allocation5 + $0x708] sm:$0xff] }
  0xaf   :  { %9883 = vmatprep.subr.bf16.mxu0 %v12973_v43  ;;  %10416 = vmatprep.subr.bf16.mxu1 %v12975_v47  ;;  %v13031_v43 = vcombine.high %v321_v34, %v325_v36  ;;  %v13037_v47 = vcombine.high %v328_v40, %v332_v41  ;;  %v13036_v53 = vcombine.low %v328_v40, %v332_v41  ;;  %v377_v34 = vld [vmem:[#allocation5 + $0x888] sm:$0xff]  ;;  %v388_v40 = vld [vmem:[#allocation5 + $0x8e0] sm:$0xff] }
  0xb0   :  { %v13038_v55 = vcombine.low %v329_v42, %v333_v44  ;;  %v385_v41 = vld [vmem:[#allocation5 + $0x8c8] sm:$0xff] }
  0xb2   :  { %9884 = vmatpush1.bf16.msra.mxu0 %v12972_v49  ;;  %10417 = vmatpush1.bf16.msra.mxu1 %v12974_v50  ;;  %v340_v49 = vld [vmem:[#allocation5 + $0x760] sm:$0xff]  ;;  %v337_v50 = vld [vmem:[#allocation5 + $0x748] sm:$0xff] }
  0xb3   :  { %9885 = vmatprep.subr.bf16.mxu0 %v12981_v51  ;;  %10418 = vmatprep.subr.bf16.mxu1 %v12983_v56  ;;  %v13039_v51 = vcombine.high %v329_v42, %v333_v44  ;;  %v13045_v56 = vcombine.high %v336_v48, %v340_v49  ;;  %v13044_v63 = vcombine.low %v336_v48, %v340_v49  ;;  %v389_v42 = vld [vmem:[#allocation5 + $0x8e8] sm:$0xff]  ;;  %v396_v48 = vld [vmem:[#allocation5 + $0x920] sm:$0xff] }
  0xb4   :  { %v13046_v0 = vcombine.low %v337_v50, %v341_v52  ;;  %v393_v49 = vld [vmem:[#allocation5 + $0x908] sm:$0xff] }
  0xb6   :  { %9886 = vmatpush1.bf16.msra.mxu0 %v12980_v59  ;;  %10419 = vmatpush1.bf16.msra.mxu1 %v12982_v60  ;;  %v348_v59 = vld [vmem:[#allocation5 + $0x7a0] sm:$0xff]  ;;  %v345_v60 = vld [vmem:[#allocation5 + $0x788] sm:$0xff] }
  0xb7   :  { %9887 = vmatprep.subr.bf16.mxu0 %v12989_v61  ;;  %10420 = vmatprep.subr.bf16.mxu1 %v12991_v1  ;;  %v13047_v61 = vcombine.high %v337_v50, %v341_v52  ;;  %v13053_v1 = vcombine.high %v344_v57, %v348_v59  ;;  %v13052_v7 = vcombine.low %v344_v57, %v348_v59  ;;  %v397_v50 = vld [vmem:[#allocation5 + $0x928] sm:$0xff]  ;;  %v404_v57 = vld [vmem:[#allocation5 + $0x960] sm:$0xff] }
  0xb8   :  { %v13054_v8 = vcombine.low %v345_v60, %v349_v62  ;;  %v13094_v52 = vcombine.low %v385_v41, %v389_v42  ;;  %v401_v59 = vld [vmem:[#allocation5 + $0x948] sm:$0xff] }
  0xba   :  { %9888 = vmatpush1.bf16.msra.mxu0 %v12988_v3  ;;  %10421 = vmatpush1.bf16.msra.mxu1 %v12990_v4  ;;  %v356_v3 = vld [vmem:[#allocation5 + $0x7e0] sm:$0xff]  ;;  %v353_v4 = vld [vmem:[#allocation5 + $0x7c8] sm:$0xff] }
  0xbb   :  { %9889 = vmatprep.subr.bf16.mxu0 %v12997_v5  ;;  %10422 = vmatprep.subr.bf16.mxu1 %v12999_v9  ;;  %v13055_v5 = vcombine.high %v345_v60, %v349_v62  ;;  %v13061_v9 = vcombine.high %v352_v2, %v356_v3  ;;  %v13060_v17 = vcombine.low %v352_v2, %v356_v3  ;;  %v405_v60 = vld [vmem:[#allocation5 + $0x968] sm:$0xff]  ;;  %v412_v2 = vld [vmem:[#allocation5 + $0x9a0] sm:$0xff] }
  0xbc   :  { %v13102_v62 = vcombine.low %v393_v49, %v397_v50  ;;  %v409_v3 = vld [vmem:[#allocation5 + $0x988] sm:$0xff] }
  0xbe   :  { %9890 = vmatpush1.bf16.msra.mxu0 %v12996_v11  ;;  %10423 = vmatpush1.bf16.msra.mxu1 %v12998_v12  ;;  %v364_v11 = vld [vmem:[#allocation5 + $0x820] sm:$0xff]  ;;  %v361_v12 = vld [vmem:[#allocation5 + $0x808] sm:$0xff] }
  0xbf   :  { %9891 = vmatprep.subr.bf16.mxu0 %v13005_v14  ;;  %10424 = vmatprep.subr.bf16.mxu1 %v13007_v19  ;;  %v13063_v14 = vcombine.high %v353_v4, %v357_v6  ;;  %v13062_v19 = vcombine.low %v353_v4, %v357_v6  ;;  %v13069_v20 = vcombine.high %v360_v10, %v364_v11  ;;  %v413_v4 = vld [vmem:[#allocation5 + $0x9a8] sm:$0xff] }
  0xc0   :  { %v13071_v24 = vcombine.high %v361_v12, %v365_v15  ;;  %v13070_v28 = vcombine.low %v361_v12, %v365_v15  ;;  %v13110_v6 = vcombine.low %v401_v59, %v405_v60  ;;  %v421_v12 = vld [vmem:[#allocation5 + $0x9e8] sm:$0xff]  ;;  %v13118_v15 = vcombine.low %v409_v3, %v413_v4 }
  0xc2   :  { %9892 = vmatpush1.bf16.msra.mxu0 %v13004_v21  ;;  %10425 = vmatpush1.bf16.msra.mxu1 %v13006_v22  ;;  %v372_v21 = vld [vmem:[#allocation5 + $0x860] sm:$0xff]  ;;  %v369_v22 = vld [vmem:[#allocation5 + $0x848] sm:$0xff] }
  0xc3   :  { %9893 = vmatprep.subr.bf16.mxu0 %v13013_v23  ;;  %10426 = vmatprep.subr.bf16.mxu1 %v13015_v27  ;;  %v373_v23 = vld [vmem:[#allocation5 + $0x868] sm:$0xff]  ;;  %v13068_v27 = vcombine.low %v360_v10, %v364_v11  ;;  %v13076_v16 = vcombine.low %v368_v18, %v372_v21  ;;  %v420_v10 = vld [vmem:[#allocation5 + $0x9e0] sm:$0xff] }
  0xc4   :  { %v13078_v36 = vcombine.low %v369_v22, %v373_v23  ;;  %v417_v11 = vld [vmem:[#allocation5 + $0x9c8] sm:$0xff] }
  0xc6   :  { %9894 = vmatpush1.bf16.msra.mxu0 %v13012_v29  ;;  %10427 = vmatpush1.bf16.msra.mxu1 %v13014_v30  ;;  %v13077_v29 = vcombine.high %v368_v18, %v372_v21  ;;  %v13079_v30 = vcombine.high %v369_v22, %v373_v23  ;;  %v13127_v18 = vcombine.high %v417_v11, %v421_v12  ;;  %v425_v21 = vld [vmem:[#allocation5 + $0xa08] sm:$0xff] }
  0xc7   :  { %9895 = vmatprep.subr.bf16.mxu0 %v13021_v31  ;;  %10428 = vmatprep.subr.bf16.mxu1 %v13023_v35  ;;  %v376_v31 = vld [vmem:[#allocation5 + $0x880] sm:$0xff]  ;;  %v381_v35 = vld [vmem:[#allocation5 + $0x8a8] sm:$0xff] }
  0xc8   :  { %v13086_v44 = vcombine.low %v377_v34, %v381_v35  ;;  %v429_v22 = vld [vmem:[#allocation5 + $0xa28] sm:$0xff] }
  0xca   :  { %9896 = vmatpush1.bf16.msra.mxu0 %v13020_v37  ;;  %10429 = vmatpush1.bf16.msra.mxu1 %v13022_v38  ;;  %v13085_v37 = vcombine.high %v376_v31, %v380_v32  ;;  %v13087_v38 = vcombine.high %v377_v34, %v381_v35  ;;  %v13134_v35 = vcombine.low %v425_v21, %v429_v22 }
  0xcb   :  { %9897 = vmatprep.subr.bf16.mxu0 %v13029_v39  ;;  %10430 = vmatprep.subr.bf16.mxu1 %v13031_v43  ;;  %v384_v39 = vld [vmem:[#allocation5 + $0x8c0] sm:$0xff]  ;;  %v13084_v43 = vcombine.low %v376_v31, %v380_v32  ;;  %v433_v31 = vld [vmem:[#allocation5 + $0xa48] sm:$0xff] }
  0xcc   :  { %v437_v32 = vld [vmem:[#allocation5 + $0xa68] sm:$0xff] }
  0xce   :  { %9898 = vmatpush1.bf16.msra.mxu0 %v13028_v45  ;;  %10431 = vmatpush1.bf16.msra.mxu1 %v13030_v46  ;;  %v13093_v45 = vcombine.high %v384_v39, %v388_v40  ;;  %v13095_v46 = vcombine.high %v385_v41, %v389_v42  ;;  %v13142_v42 = vcombine.low %v433_v31, %v437_v32 }
  0xcf   :  { %9899 = vmatprep.subr.bf16.mxu0 %v13037_v47  ;;  %10432 = vmatprep.subr.bf16.mxu1 %v13039_v51  ;;  %v392_v47 = vld [vmem:[#allocation5 + $0x900] sm:$0xff]  ;;  %v13092_v51 = vcombine.low %v384_v39, %v388_v40  ;;  %v441_v39 = vld [vmem:[#allocation5 + $0xa88] sm:$0xff] }
  0xd0   :  { %v445_v40 = vld [vmem:[#allocation5 + $0xaa8] sm:$0xff] }
  0xd2   :  { %9900 = vmatpush1.bf16.msra.mxu0 %v13036_v53  ;;  %10433 = vmatpush1.bf16.msra.mxu1 %v13038_v55  ;;  %v13101_v53 = vcombine.high %v392_v47, %v396_v48  ;;  %v13103_v55 = vcombine.high %v393_v49, %v397_v50  ;;  %v13150_v50 = vcombine.low %v441_v39, %v445_v40 }
  0xd3   :  { %9901 = vmatprep.subr.bf16.mxu0 %v13045_v56  ;;  %10434 = vmatprep.subr.bf16.mxu1 %v13047_v61  ;;  %v400_v56 = vld [vmem:[#allocation5 + $0x940] sm:$0xff]  ;;  %v13100_v61 = vcombine.low %v392_v47, %v396_v48  ;;  %v449_v47 = vld [vmem:[#allocation5 + $0xac8] sm:$0xff] }
  0xd4   :  { %v453_v48 = vld [vmem:[#allocation5 + $0xae8] sm:$0xff] }
  0xd6   :  { %9902 = vmatpush1.bf16.msra.mxu0 %v13044_v63  ;;  %10435 = vmatpush1.bf16.msra.mxu1 %v13046_v0  ;;  %v13109_v63 = vcombine.high %v400_v56, %v404_v57  ;;  %v13111_v0 = vcombine.high %v401_v59, %v405_v60  ;;  %v13158_v60 = vcombine.low %v449_v47, %v453_v48 }
  0xd7   :  { %9903 = vmatprep.subr.bf16.mxu0 %v13053_v1  ;;  %10436 = vmatprep.subr.bf16.mxu1 %v13055_v5  ;;  %v408_v1 = vld [vmem:[#allocation5 + $0x980] sm:$0xff]  ;;  %v13108_v5 = vcombine.low %v400_v56, %v404_v57  ;;  %v457_v56 = vld [vmem:[#allocation5 + $0xb08] sm:$0xff] }
  0xd8   :  { %v461_v57 = vld [vmem:[#allocation5 + $0xb28] sm:$0xff] }
  0xda   :  { %9904 = vmatpush1.bf16.msra.mxu0 %v13052_v7  ;;  %10437 = vmatpush1.bf16.msra.mxu1 %v13054_v8  ;;  %v13117_v7 = vcombine.high %v408_v1, %v412_v2  ;;  %v13119_v8 = vcombine.high %v409_v3, %v413_v4  ;;  %v13166_v4 = vcombine.low %v457_v56, %v461_v57 }
  0xdb   :  { %9905 = vmatprep.subr.bf16.mxu0 %v13061_v9  ;;  %10438 = vmatprep.subr.bf16.mxu1 %v13063_v14  ;;  %v416_v9 = vld [vmem:[#allocation5 + $0x9c0] sm:$0xff]  ;;  %v13116_v14 = vcombine.low %v408_v1, %v412_v2  ;;  %v465_v1 = vld [vmem:[#allocation5 + $0xb48] sm:$0xff] }
  0xdc   :  { %v13124_v23 = vcombine.low %v416_v9, %v420_v10  ;;  %v469_v2 = vld [vmem:[#allocation5 + $0xb68] sm:$0xff] }
  0xde   :  { %9906 = vmatpush1.bf16.msra.mxu0 %v13060_v17  ;;  %10439 = vmatpush1.bf16.msra.mxu1 %v13062_v19  ;;  %v13125_v17 = vcombine.high %v416_v9, %v420_v10  ;;  %v424_v19 = vld [vmem:[#allocation5 + $0xa00] sm:$0xff]  ;;  %v473_v9 = vld [vmem:[#allocation5 + $0xb88] sm:$0xff] }
  0xdf   :  { %9916 = vmatprep.subr.bf16.mxu0 %v13069_v20  ;;  %10449 = vmatprep.subr.bf16.mxu1 %v13071_v24  ;;  %v428_v20 = vld [vmem:[#allocation5 + $0xa20] sm:$0xff]  ;;  %v13126_v24 = vcombine.low %v417_v11, %v421_v12  ;;  %v477_v10 = vld [vmem:[#allocation5 + $0xba8] sm:$0xff]  ;;  %v13174_v12 = vcombine.low %v465_v1, %v469_v2 }
  0xe0   :  { %v13132_v34 = vcombine.low %v424_v19, %v428_v20 }
  0xe1   :  { %9908 = vmatmul.mubr.bf16.vlgmr.msra.gmra.mrb[0].mxu0 %v15209_v26  ;;  %10441 = vmatmul.mubr.bf16.vlgmr.msra.gmra.mrb[0].mxu1 %v15209_v26 }
  0xe2   :  { %9917 = vmatpush1.bf16.msra.mxu0 %v13068_v27  ;;  %10450 = vmatpush1.bf16.msra.mxu1 %v13070_v28  ;;  %v13133_v27 = vcombine.high %v424_v19, %v428_v20  ;;  %v13135_v28 = vcombine.high %v425_v21, %v429_v22  ;;  %v481_v19 = vld [vmem:[#allocation5 + $0xbc8] sm:$0xff]  ;;  %v13182_v22 = vcombine.low %v473_v9, %v477_v10 }
  0xe3   :  { %9918 = vmatprep.subr.bf16.mxu0 %v13077_v29  ;;  %10451 = vmatprep.subr.bf16.mxu1 %v13079_v30  ;;  %v432_v29 = vld [vmem:[#allocation5 + $0xa40] sm:$0xff]  ;;  %v485_v20 = vld [vmem:[#allocation5 + $0xbe8] sm:$0xff] }
  0xe4   :  { %9948 = vmatprep.mubr.bf16.mxu0 %v15213_v33  ;;  %10481 = vmatprep.mubr.bf16.mxu1 %v15213_v33  ;;  %v436_v30 = vld [vmem:[#allocation5 + $0xa60] sm:$0xff] }
  0xe5   :  { %v13140_v41 = vcombine.low %v432_v29, %v436_v30 }
  0xe6   :  { %9919 = vmatpush1.bf16.msra.mxu0 %v13076_v16  ;;  %10452 = vmatpush1.bf16.msra.mxu1 %v13078_v36  ;;  %v13141_v16 = vcombine.high %v432_v29, %v436_v30  ;;  %v13143_v36 = vcombine.high %v433_v31, %v437_v32  ;;  %v489_v29 = vld [vmem:[#allocation5 + $0xc08] sm:$0xff]  ;;  %v13190_v32 = vcombine.low %v481_v19, %v485_v20 }
  0xe7   :  { %9920 = vmatprep.subr.bf16.mxu0 %v13085_v37  ;;  %10453 = vmatprep.subr.bf16.mxu1 %v13087_v38  ;;  %v440_v37 = vld [vmem:[#allocation5 + $0xa80] sm:$0xff]  ;;  %v493_v30 = vld [vmem:[#allocation5 + $0xc28] sm:$0xff] }
  0xe8   :  { %v444_v38 = vld [vmem:[#allocation5 + $0xaa0] sm:$0xff] }
  0xe9   :  { %v13148_v49 = vcombine.low %v440_v37, %v444_v38 }
  0xea   :  { %9921 = vmatpush1.bf16.msra.mxu0 %v13084_v43  ;;  %10454 = vmatpush1.bf16.msra.mxu1 %v13086_v44  ;;  %v13149_v43 = vcombine.high %v440_v37, %v444_v38  ;;  %v13151_v44 = vcombine.high %v441_v39, %v445_v40  ;;  %v15221_v37 = vcombine.low %v15205_v25, %v15205_v25  ;;  %v497_v38 = vld [vmem:[#allocation5 + $0xc48] sm:$0xff]  ;;  %v15223_v40 = vld [vmem:[#allocation3 + $0x18] sm:$0xff] }
  0xeb   :  { %9922 = vmatprep.subr.bf16.mxu0 %v13093_v45  ;;  %10455 = vmatprep.subr.bf16.mxu1 %v13095_v46  ;;  %v448_v45 = vld [vmem:[#allocation5 + $0xac0] sm:$0xff]  ;;  %v501_v39 = vld [vmem:[#allocation5 + $0xc68] sm:$0xff] }
  0xec   :  { %v452_v46 = vld [vmem:[#allocation5 + $0xae0] sm:$0xff]  ;;  %v505_v25 = vld [vmem:[#allocation5 + $0xc88] sm:$0xff] }
  0xed   :  { %v13156_v59 = vcombine.low %v448_v45, %v452_v46 }
  0xee   :  { %9923 = vmatpush1.bf16.msra.mxu0 %v13092_v51  ;;  %10456 = vmatpush1.bf16.msra.mxu1 %v13094_v52  ;;  %v13157_v51 = vcombine.high %v448_v45, %v452_v46  ;;  %v13159_v52 = vcombine.high %v449_v47, %v453_v48  ;;  %v504_v45 = vld [vmem:[#allocation5 + $0xc80] sm:$0xff]  ;;  %v15227_v47 = vcombine.high %v15223_v40, %v15223_v40  ;;  %v509_v48 = vld [vmem:[#allocation5 + $0xca8] sm:$0xff] }
  0xef   :  { %9924 = vmatprep.subr.bf16.mxu0 %v13101_v53  ;;  %10457 = vmatprep.subr.bf16.mxu1 %v13103_v55  ;;  %v456_v53 = vld [vmem:[#allocation5 + $0xb00] sm:$0xff] }
  0xf0   :  { %v460_v55 = vld [vmem:[#allocation5 + $0xb20] sm:$0xff] }
  0xf1   :  { %v13164_v3 = vcombine.low %v456_v53, %v460_v55  ;;  %v508_v46 = vld [vmem:[#allocation5 + $0xca0] sm:$0xff] }
  0xf2   :  { %9925 = vmatpush1.bf16.msra.mxu0 %v13100_v61  ;;  %10458 = vmatpush1.bf16.msra.mxu1 %v13102_v62  ;;  %v13165_v61 = vcombine.high %v456_v53, %v460_v55  ;;  %v13167_v62 = vcombine.high %v457_v56, %v461_v57  ;;  %v512_v53 = vld [vmem:[#allocation5 + $0xcc0] sm:$0xff]  ;;  %v513_v56 = vld [vmem:[#allocation5 + $0xcc8] sm:$0xff] }
  0xf3   :  { %9926 = vmatprep.subr.bf16.mxu0 %v13109_v63  ;;  %10459 = vmatprep.subr.bf16.mxu1 %v13111_v0  ;;  %v464_v63 = vld [vmem:[#allocation5 + $0xb40] sm:$0xff]  ;;  %v517_v57 = vld [vmem:[#allocation5 + $0xce8] sm:$0xff] }
  0xf4   :  { %v468_v0 = vld [vmem:[#allocation5 + $0xb60] sm:$0xff] }
  0xf5   :  { %v13172_v11 = vcombine.low %v464_v63, %v468_v0  ;;  %v516_v55 = vld [vmem:[#allocation5 + $0xce0] sm:$0xff] }
  0xf6   :  { %9927 = vmatpush1.bf16.msra.mxu0 %v13108_v5  ;;  %10460 = vmatpush1.bf16.msra.mxu1 %v13110_v6  ;;  %v13173_v5 = vcombine.high %v464_v63, %v468_v0  ;;  %v13175_v6 = vcombine.high %v465_v1, %v469_v2  ;;  %v520_v63 = vld [vmem:[#allocation5 + $0xd00] sm:$0xff]  ;;  %v521_v1 = vld [vmem:[#allocation5 + $0xd08] sm:$0xff] }
  0xf7   :  { %9928 = vmatprep.subr.bf16.mxu0 %v13117_v7  ;;  %10461 = vmatprep.subr.bf16.mxu1 %v13119_v8  ;;  %v472_v7 = vld [vmem:[#allocation5 + $0xb80] sm:$0xff]  ;;  %v525_v2 = vld [vmem:[#allocation5 + $0xd28] sm:$0xff] }
  0xf8   :  { %v476_v8 = vld [vmem:[#allocation5 + $0xba0] sm:$0xff] }
  0xf9   :  { %v13180_v21 = vcombine.low %v472_v7, %v476_v8  ;;  %v524_v0 = vld [vmem:[#allocation5 + $0xd20] sm:$0xff] }
  0xfa   :  { %9929 = vmatpush1.bf16.msra.mxu0 %v13116_v14  ;;  %10462 = vmatpush1.bf16.msra.mxu1 %v13118_v15  ;;  %v13181_v14 = vcombine.high %v472_v7, %v476_v8  ;;  %v13183_v15 = vcombine.high %v473_v9, %v477_v10  ;;  %v528_v7 = vld [vmem:[#allocation5 + $0xd40] sm:$0xff]  ;;  %v529_v9 = vld [vmem:[#allocation5 + $0xd48] sm:$0xff] }
  0xfb   :  { %9930 = vmatprep.subr.bf16.mxu0 %v13125_v17  ;;  %10463 = vmatprep.subr.bf16.mxu1 %v13127_v18  ;;  %v480_v17 = vld [vmem:[#allocation5 + $0xbc0] sm:$0xff]  ;;  %v533_v10 = vld [vmem:[#allocation5 + $0xd68] sm:$0xff] }
  0xfc   :  { %v484_v18 = vld [vmem:[#allocation5 + $0xbe0] sm:$0xff] }
  0xfd   :  { %v13188_v31 = vcombine.low %v480_v17, %v484_v18  ;;  %v532_v8 = vld [vmem:[#allocation5 + $0xd60] sm:$0xff] }
  0xfe   :  { %9931 = vmatpush1.bf16.msra.mxu0 %v13124_v23  ;;  %10464 = vmatpush1.bf16.msra.mxu1 %v13126_v24  ;;  %v13189_v23 = vcombine.high %v480_v17, %v484_v18  ;;  %v13191_v24 = vcombine.high %v481_v19, %v485_v20  ;;  %v536_v17 = vld [vmem:[#allocation5 + $0xd80] sm:$0xff]  ;;  %v537_v19 = vld [vmem:[#allocation5 + $0xd88] sm:$0xff] }
  0xff   :  { %9932 = vmatprep.subr.bf16.mxu0 %v13133_v27  ;;  %10465 = vmatprep.subr.bf16.mxu1 %v13135_v28  ;;  %v488_v27 = vld [vmem:[#allocation5 + $0xc00] sm:$0xff]  ;;  %v541_v20 = vld [vmem:[#allocation5 + $0xda8] sm:$0xff] }
 0x100   :  { %v492_v28 = vld [vmem:[#allocation5 + $0xc20] sm:$0xff] }
 0x101   :  { %v540_v18 = vld [vmem:[#allocation5 + $0xda0] sm:$0xff] }
 0x102   :  { %9933 = vmatpush1.bf16.msra.mxu0 %v13132_v34  ;;  %10466 = vmatpush1.bf16.msra.mxu1 %v13134_v35  ;;  %v13197_v34 = vcombine.high %v488_v27, %v492_v28  ;;  %v13199_v35 = vcombine.high %v489_v29, %v493_v30 }
 0x103   :  { %9934 = vmatprep.subr.bf16.mxu0 %v13141_v16  ;;  %10467 = vmatprep.subr.bf16.mxu1 %v13143_v36  ;;  %v496_v16 = vld [vmem:[#allocation5 + $0xc40] sm:$0xff] }
 0x104   :  { %v500_v36 = vld [vmem:[#allocation5 + $0xc60] sm:$0xff] }
 0x106   :  { %9935 = vmatpush1.bf16.msra.mxu0 %v13140_v41  ;;  %10468 = vmatpush1.bf16.msra.mxu1 %v13142_v42  ;;  %v13196_v41 = vcombine.low %v488_v27, %v492_v28  ;;  %v13198_v42 = vcombine.low %v489_v29, %v493_v30  ;;  %v544_v27 = vld [vmem:[#allocation5 + $0xdc0] sm:$0xff]  ;;  %v545_v29 = vld [vmem:[#allocation5 + $0xdc8] sm:$0xff] }
 0x107   :  { %9936 = vmatprep.subr.bf16.mxu0 %v13149_v43  ;;  %10469 = vmatprep.subr.bf16.mxu1 %v13151_v44  ;;  %v13205_v43 = vcombine.high %v496_v16, %v500_v36  ;;  %v13207_v44 = vcombine.high %v497_v38, %v501_v39  ;;  %v548_v28 = vld [vmem:[#allocation5 + $0xde0] sm:$0xff]  ;;  %v549_v30 = vld [vmem:[#allocation5 + $0xde8] sm:$0xff] }
 0x10a   :  { %9937 = vmatpush1.bf16.msra.mxu0 %v13148_v49  ;;  %10470 = vmatpush1.bf16.msra.mxu1 %v13150_v50  ;;  %v13204_v49 = vcombine.low %v496_v16, %v500_v36  ;;  %v13206_v50 = vcombine.low %v497_v38, %v501_v39  ;;  %v552_v16 = vld [vmem:[#allocation5 + $0xe00] sm:$0xff]  ;;  %v553_v38 = vld [vmem:[#allocation5 + $0xe08] sm:$0xff] }
 0x10b   :  { %9938 = vmatprep.subr.bf16.mxu0 %v13157_v51  ;;  %10471 = vmatprep.subr.bf16.mxu1 %v13159_v52  ;;  %v13213_v51 = vcombine.high %v504_v45, %v508_v46  ;;  %v13215_v52 = vcombine.high %v505_v25, %v509_v48  ;;  %v556_v36 = vld [vmem:[#allocation5 + $0xe20] sm:$0xff]  ;;  %v557_v39 = vld [vmem:[#allocation5 + $0xe28] sm:$0xff] }
 0x10e   :  { %9939 = vmatpush1.bf16.msra.mxu0 %v13156_v59  ;;  %10472 = vmatpush1.bf16.msra.mxu1 %v13158_v60  ;;  %v13212_v59 = vcombine.low %v504_v45, %v508_v46  ;;  %v13214_v60 = vcombine.low %v505_v25, %v509_v48  ;;  %v560_v45 = vld [vmem:[#allocation5 + $0xe40] sm:$0xff]  ;;  %v561_v25 = vld [vmem:[#allocation5 + $0xe48] sm:$0xff] }
 0x10f   :  { %9940 = vmatprep.subr.bf16.mxu0 %v13165_v61  ;;  %10473 = vmatprep.subr.bf16.mxu1 %v13167_v62  ;;  %v13221_v61 = vcombine.high %v512_v53, %v516_v55  ;;  %v13223_v62 = vcombine.high %v513_v56, %v517_v57  ;;  %v564_v46 = vld [vmem:[#allocation5 + $0xe60] sm:$0xff]  ;;  %v565_v48 = vld [vmem:[#allocation5 + $0xe68] sm:$0xff] }
 0x112   :  { %9941 = vmatpush1.bf16.msra.mxu0 %v13164_v3  ;;  %10474 = vmatpush1.bf16.msra.mxu1 %v13166_v4  ;;  %v13220_v3 = vcombine.low %v512_v53, %v516_v55  ;;  %v13222_v4 = vcombine.low %v513_v56, %v517_v57  ;;  %v568_v53 = vld [vmem:[#allocation5 + $0xe80] sm:$0xff]  ;;  %v569_v56 = vld [vmem:[#allocation5 + $0xe88] sm:$0xff] }
 0x113   :  { %9942 = vmatprep.subr.bf16.mxu0 %v13173_v5  ;;  %10475 = vmatprep.subr.bf16.mxu1 %v13175_v6  ;;  %v13229_v5 = vcombine.high %v520_v63, %v524_v0  ;;  %v13231_v6 = vcombine.high %v521_v1, %v525_v2  ;;  %v572_v55 = vld [vmem:[#allocation5 + $0xea0] sm:$0xff]  ;;  %v573_v57 = vld [vmem:[#allocation5 + $0xea8] sm:$0xff] }
 0x116   :  { %9943 = vmatpush1.bf16.msra.mxu0 %v13172_v11  ;;  %10476 = vmatpush1.bf16.msra.mxu1 %v13174_v12  ;;  %v13228_v11 = vcombine.low %v520_v63, %v524_v0  ;;  %v13230_v12 = vcombine.low %v521_v1, %v525_v2  ;;  %v576_v63 = vld [vmem:[#allocation5 + $0xec0] sm:$0xff]  ;;  %v577_v1 = vld [vmem:[#allocation5 + $0xec8] sm:$0xff] }
 0x117   :  { %9944 = vmatprep.subr.bf16.mxu0 %v13181_v14  ;;  %10477 = vmatprep.subr.bf16.mxu1 %v13183_v15  ;;  %v13237_v14 = vcombine.high %v528_v7, %v532_v8  ;;  %v13239_v15 = vcombine.high %v529_v9, %v533_v10  ;;  %v580_v0 = vld [vmem:[#allocation5 + $0xee0] sm:$0xff]  ;;  %v581_v2 = vld [vmem:[#allocation5 + $0xee8] sm:$0xff] }
 0x11a   :  { %9945 = vmatpush1.bf16.msra.mxu0 %v13180_v21  ;;  %10478 = vmatpush1.bf16.msra.mxu1 %v13182_v22  ;;  %v13236_v21 = vcombine.low %v528_v7, %v532_v8  ;;  %v13238_v22 = vcombine.low %v529_v9, %v533_v10  ;;  %v584_v7 = vld [vmem:[#allocation5 + $0xf00] sm:$0xff]  ;;  %v585_v9 = vld [vmem:[#allocation5 + $0xf08] sm:$0xff] }
 0x11b   :  { %9946 = vmatprep.subr.bf16.mxu0 %v13189_v23  ;;  %10479 = vmatprep.subr.bf16.mxu1 %v13191_v24  ;;  %v13245_v23 = vcombine.high %v536_v17, %v540_v18  ;;  %v13247_v24 = vcombine.high %v537_v19, %v541_v20  ;;  %v588_v8 = vld [vmem:[#allocation5 + $0xf20] sm:$0xff]  ;;  %v589_v10 = vld [vmem:[#allocation5 + $0xf28] sm:$0xff] }
 0x11e   :  { %9947 = vmatpush1.bf16.msra.mxu0 %v13188_v31  ;;  %10480 = vmatpush1.bf16.msra.mxu1 %v13190_v32  ;;  %v13244_v31 = vcombine.low %v536_v17, %v540_v18  ;;  %v13246_v32 = vcombine.low %v537_v19, %v541_v20  ;;  %v592_v17 = vld [vmem:[#allocation5 + $0xf40] sm:$0xff]  ;;  %v593_v19 = vld [vmem:[#allocation5 + $0xf48] sm:$0xff] }
 0x11f   :  { %9957 = vmatprep.subr.bf16.mxu0 %v13197_v34  ;;  %10490 = vmatprep.subr.bf16.mxu1 %v13199_v35  ;;  %v13253_v34 = vcombine.high %v544_v27, %v548_v28  ;;  %v13255_v35 = vcombine.high %v545_v29, %v549_v30  ;;  %v596_v18 = vld [vmem:[#allocation5 + $0xf60] sm:$0xff]  ;;  %v597_v20 = vld [vmem:[#allocation5 + $0xf68] sm:$0xff] }
 0x121   :  { %9949 = vmatmul.mubr.bf16.vlgmr.msra.gmra.mrb[0].mxu0 %v15221_v37  ;;  %10482 = vmatmul.mubr.bf16.vlgmr.msra.gmra.mrb[0].mxu1 %v15221_v37 }
 0x122   :  { %9958 = vmatpush1.bf16.msra.mxu0 %v13196_v41  ;;  %10491 = vmatpush1.bf16.msra.mxu1 %v13198_v42  ;;  %v13252_v41 = vcombine.low %v544_v27, %v548_v28  ;;  %v13254_v42 = vcombine.low %v545_v29, %v549_v30  ;;  %v600_v27 = vld [vmem:[#allocation5 + $0xf80] sm:$0xff]  ;;  %v601_v29 = vld [vmem:[#allocation5 + $0xf88] sm:$0xff] }
 0x123   :  { %9959 = vmatprep.subr.bf16.mxu0 %v13205_v43  ;;  %10492 = vmatprep.subr.bf16.mxu1 %v13207_v44  ;;  %v13261_v43 = vcombine.high %v552_v16, %v556_v36  ;;  %v13263_v44 = vcombine.high %v553_v38, %v557_v39  ;;  %v604_v28 = vld [vmem:[#allocation5 + $0xfa0] sm:$0xff]  ;;  %v605_v30 = vld [vmem:[#allocation5 + $0xfa8] sm:$0xff] }
 0x124   :  { %9989 = vmatprep.mubr.bf16.mxu0 %v15227_v47  ;;  %10522 = vmatprep.mubr.bf16.mxu1 %v15227_v47 }
 0x126   :  { %9960 = vmatpush1.bf16.msra.mxu0 %v13204_v49  ;;  %10493 = vmatpush1.bf16.msra.mxu1 %v13206_v50  ;;  %v13260_v49 = vcombine.low %v552_v16, %v556_v36  ;;  %v13262_v50 = vcombine.low %v553_v38, %v557_v39  ;;  %v608_v16 = vld [vmem:[#allocation5 + $0xfc0] sm:$0xff]  ;;  %v609_v38 = vld [vmem:[#allocation5 + $0xfc8] sm:$0xff] }
 0x127   :  { %9961 = vmatprep.subr.bf16.mxu0 %v13213_v51  ;;  %10494 = vmatprep.subr.bf16.mxu1 %v13215_v52  ;;  %v13269_v51 = vcombine.high %v560_v45, %v564_v46  ;;  %v13271_v52 = vcombine.high %v561_v25, %v565_v48  ;;  %v612_v36 = vld [vmem:[#allocation5 + $0xfe0] sm:$0xff]  ;;  %v613_v39 = vld [vmem:[#allocation5 + $0xfe8] sm:$0xff] }
 0x12a   :  { %9962 = vmatpush1.bf16.msra.mxu0 %v13212_v59  ;;  %10495 = vmatpush1.bf16.msra.mxu1 %v13214_v60  ;;  %v13268_v59 = vcombine.low %v560_v45, %v564_v46  ;;  %v13270_v60 = vcombine.low %v561_v25, %v565_v48  ;;  %v616_v45 = vld [vmem:[#allocation5 + $0x1000] sm:$0xff]  ;;  %v617_v25 = vld [vmem:[#allocation5 + $0x1008] sm:$0xff] }
 0x12b   :  { %9963 = vmatprep.subr.bf16.mxu0 %v13221_v61  ;;  %10496 = vmatprep.subr.bf16.mxu1 %v13223_v62  ;;  %v13277_v61 = vcombine.high %v568_v53, %v572_v55  ;;  %v13279_v62 = vcombine.high %v569_v56, %v573_v57  ;;  %v620_v46 = vld [vmem:[#allocation5 + $0x1020] sm:$0xff]  ;;  %v621_v48 = vld [vmem:[#allocation5 + $0x1028] sm:$0xff] }
 0x12e   :  { %9964 = vmatpush1.bf16.msra.mxu0 %v13220_v3  ;;  %10497 = vmatpush1.bf16.msra.mxu1 %v13222_v4  ;;  %v13276_v3 = vcombine.low %v568_v53, %v572_v55  ;;  %v13278_v4 = vcombine.low %v569_v56, %v573_v57  ;;  %v624_v53 = vld [vmem:[#allocation5 + $0x1040] sm:$0xff]  ;;  %v15235_v56 = vcombine.low %v15223_v40, %v15223_v40  ;;  %v625_v57 = vld [vmem:[#allocation5 + $0x1048] sm:$0xff] }
 0x12f   :  { %9965 = vmatprep.subr.bf16.mxu0 %v13229_v5  ;;  %10498 = vmatprep.subr.bf16.mxu1 %v13231_v6  ;;  %v13285_v5 = vcombine.high %v576_v63, %v580_v0  ;;  %v13287_v6 = vcombine.high %v577_v1, %v581_v2  ;;  %v628_v55 = vld [vmem:[#allocation5 + $0x1060] sm:$0xff]  ;;  %v633_v40 = vld [vmem:[#allocation5 + $0x1088] sm:$0xff] }
 0x132   :  { %9966 = vmatpush1.bf16.msra.mxu0 %v13228_v11  ;;  %10499 = vmatpush1.bf16.msra.mxu1 %v13230_v12  ;;  %v13284_v11 = vcombine.low %v576_v63, %v580_v0  ;;  %v13286_v12 = vcombine.low %v577_v1, %v581_v2  ;;  %v13333_v63 = vcombine.high %v624_v53, %v628_v55  ;;  %v632_v1 = vld [vmem:[#allocation5 + $0x1080] sm:$0xff] }
 0x133   :  { %9967 = vmatprep.subr.bf16.mxu0 %v13237_v14  ;;  %10500 = vmatprep.subr.bf16.mxu1 %v13239_v15  ;;  %v13293_v14 = vcombine.high %v584_v7, %v588_v8  ;;  %v13295_v15 = vcombine.high %v585_v9, %v589_v10  ;;  %v636_v2 = vld [vmem:[#allocation5 + $0x10a0] sm:$0xff] }
 0x136   :  { %9968 = vmatpush1.bf16.msra.mxu0 %v13236_v21  ;;  %10501 = vmatpush1.bf16.msra.mxu1 %v13238_v22  ;;  %v13292_v21 = vcombine.low %v584_v7, %v588_v8  ;;  %v13294_v22 = vcombine.low %v585_v9, %v589_v10  ;;  %v13341_v7 = vcombine.high %v632_v1, %v636_v2  ;;  %v640_v9 = vld [vmem:[#allocation5 + $0x10c0] sm:$0xff] }
 0x137   :  { %9969 = vmatprep.subr.bf16.mxu0 %v13245_v23  ;;  %10502 = vmatprep.subr.bf16.mxu1 %v13247_v24  ;;  %v13301_v23 = vcombine.high %v592_v17, %v596_v18  ;;  %v13303_v24 = vcombine.high %v593_v19, %v597_v20  ;;  %v644_v10 = vld [vmem:[#allocation5 + $0x10e0] sm:$0xff] }
 0x13a   :  { %9970 = vmatpush1.bf16.msra.mxu0 %v13244_v31  ;;  %10503 = vmatpush1.bf16.msra.mxu1 %v13246_v32  ;;  %v13300_v31 = vcombine.low %v592_v17, %v596_v18  ;;  %v13302_v32 = vcombine.low %v593_v19, %v597_v20  ;;  %v13349_v17 = vcombine.high %v640_v9, %v644_v10  ;;  %v648_v19 = vld [vmem:[#allocation5 + $0x1100] sm:$0xff] }
 0x13b   :  { %9971 = vmatprep.subr.bf16.mxu0 %v13253_v34  ;;  %10504 = vmatprep.subr.bf16.mxu1 %v13255_v35  ;;  %v13309_v34 = vcombine.high %v600_v27, %v604_v28  ;;  %v13311_v35 = vcombine.high %v601_v29, %v605_v30  ;;  %v652_v20 = vld [vmem:[#allocation5 + $0x1120] sm:$0xff] }
 0x13e   :  { %9972 = vmatpush1.bf16.msra.mxu0 %v13252_v41  ;;  %10505 = vmatpush1.bf16.msra.mxu1 %v13254_v42  ;;  %v13308_v41 = vcombine.low %v600_v27, %v604_v28  ;;  %v13310_v42 = vcombine.low %v601_v29, %v605_v30  ;;  %v13357_v27 = vcombine.high %v648_v19, %v652_v20  ;;  %v656_v29 = vld [vmem:[#allocation5 + $0x1140] sm:$0xff] }
 0x13f   :  { %9973 = vmatprep.subr.bf16.mxu0 %v13261_v43  ;;  %10506 = vmatprep.subr.bf16.mxu1 %v13263_v44  ;;  %v13317_v43 = vcombine.high %v608_v16, %v612_v36  ;;  %v13319_v44 = vcombine.high %v609_v38, %v613_v39  ;;  %v660_v30 = vld [vmem:[#allocation5 + $0x1160] sm:$0xff] }
 0x142   :  { %9974 = vmatpush1.bf16.msra.mxu0 %v13260_v49  ;;  %10507 = vmatpush1.bf16.msra.mxu1 %v13262_v50  ;;  %v13316_v49 = vcombine.low %v608_v16, %v612_v36  ;;  %v13318_v50 = vcombine.low %v609_v38, %v613_v39  ;;  %v13365_v16 = vcombine.high %v656_v29, %v660_v30  ;;  %v664_v38 = vld [vmem:[#allocation5 + $0x1180] sm:$0xff] }
 0x143   :  { %9975 = vmatprep.subr.bf16.mxu0 %v13269_v51  ;;  %10508 = vmatprep.subr.bf16.mxu1 %v13271_v52  ;;  %v13325_v51 = vcombine.high %v616_v45, %v620_v46  ;;  %v13327_v52 = vcombine.high %v617_v25, %v621_v48  ;;  %v668_v39 = vld [vmem:[#allocation5 + $0x11a0] sm:$0xff] }
 0x146   :  { %9976 = vmatpush1.bf16.msra.mxu0 %v13268_v59  ;;  %10509 = vmatpush1.bf16.msra.mxu1 %v13270_v60  ;;  %v629_v59 = vld [vmem:[#allocation5 + $0x1068] sm:$0xff]  ;;  %v15237_v60 = vld [vmem:[#allocation3 + $0x20] sm:$0xff] }
 0x147   :  { %9977 = vmatprep.subr.bf16.mxu0 %v13277_v61  ;;  %10510 = vmatprep.subr.bf16.mxu1 %v13279_v62  ;;  %v13324_v61 = vcombine.low %v616_v45, %v620_v46  ;;  %v13326_v62 = vcombine.low %v617_v25, %v621_v48  ;;  %v13335_v0 = vcombine.high %v625_v57, %v629_v59  ;;  %v672_v25 = vld [vmem:[#allocation5 + $0x11c0] sm:$0xff] }
 0x148   :  { %v13373_v45 = vcombine.high %v664_v38, %v668_v39  ;;  %v676_v48 = vld [vmem:[#allocation5 + $0x11e0] sm:$0xff] }
 0x14a   :  { %9978 = vmatpush1.bf16.msra.mxu0 %v13276_v3  ;;  %10511 = vmatpush1.bf16.msra.mxu1 %v13278_v4  ;;  %v15241_v3 = vcombine.high %v15237_v60, %v15237_v60  ;;  %v637_v4 = vld [vmem:[#allocation5 + $0x10a8] sm:$0xff] }
 0x14b   :  { %9979 = vmatprep.subr.bf16.mxu0 %v13285_v5  ;;  %10512 = vmatprep.subr.bf16.mxu1 %v13287_v6  ;;  %v13332_v5 = vcombine.low %v624_v53, %v628_v55  ;;  %v13334_v6 = vcombine.low %v625_v57, %v629_v59  ;;  %v13343_v8 = vcombine.high %v633_v40, %v637_v4  ;;  %v680_v57 = vld [vmem:[#allocation5 + $0x1200] sm:$0xff] }
 0x14c   :  { %v13381_v53 = vcombine.high %v672_v25, %v676_v48  ;;  %v684_v59 = vld [vmem:[#allocation5 + $0x1220] sm:$0xff] }
 0x14e   :  { %9980 = vmatpush1.bf16.msra.mxu0 %v13284_v11  ;;  %10513 = vmatpush1.bf16.msra.mxu1 %v13286_v12  ;;  %v641_v11 = vld [vmem:[#allocation5 + $0x10c8] sm:$0xff] }
 0x14f   :  { %9981 = vmatprep.subr.bf16.mxu0 %v13293_v14  ;;  %10514 = vmatprep.subr.bf16.mxu1 %v13295_v15  ;;  %v645_v12 = vld [vmem:[#allocation5 + $0x10e8] sm:$0xff]  ;;  %v13340_v14 = vcombine.low %v632_v1, %v636_v2  ;;  %v13342_v15 = vcombine.low %v633_v40, %v637_v4  ;;  %v13389_v1 = vcombine.high %v680_v57, %v684_v59  ;;  %v688_v40 = vld [vmem:[#allocation5 + $0x1240] sm:$0xff] }
 0x150   :  { %v13351_v18 = vcombine.high %v641_v11, %v645_v12  ;;  %v692_v4 = vld [vmem:[#allocation5 + $0x1260] sm:$0xff] }
 0x152   :  { %9982 = vmatpush1.bf16.msra.mxu0 %v13292_v21  ;;  %10515 = vmatpush1.bf16.msra.mxu1 %v13294_v22  ;;  %v649_v21 = vld [vmem:[#allocation5 + $0x1108] sm:$0xff] }
 0x153   :  { %9983 = vmatprep.subr.bf16.mxu0 %v13301_v23  ;;  %10516 = vmatprep.subr.bf16.mxu1 %v13303_v24  ;;  %v653_v22 = vld [vmem:[#allocation5 + $0x1128] sm:$0xff]  ;;  %v13348_v23 = vcombine.low %v640_v9, %v644_v10  ;;  %v13350_v24 = vcombine.low %v641_v11, %v645_v12  ;;  %v13397_v9 = vcombine.high %v688_v40, %v692_v4  ;;  %v696_v11 = vld [vmem:[#allocation5 + $0x1280] sm:$0xff] }
 0x154   :  { %v13359_v28 = vcombine.high %v649_v21, %v653_v22  ;;  %v700_v12 = vld [vmem:[#allocation5 + $0x12a0] sm:$0xff] }
 0x156   :  { %9984 = vmatpush1.bf16.msra.mxu0 %v13300_v31  ;;  %10517 = vmatpush1.bf16.msra.mxu1 %v13302_v32  ;;  %v657_v31 = vld [vmem:[#allocation5 + $0x1148] sm:$0xff] }
 0x157   :  { %9985 = vmatprep.subr.bf16.mxu0 %v13309_v34  ;;  %10518 = vmatprep.subr.bf16.mxu1 %v13311_v35  ;;  %v661_v32 = vld [vmem:[#allocation5 + $0x1168] sm:$0xff]  ;;  %v13356_v34 = vcombine.low %v648_v19, %v652_v20  ;;  %v13358_v35 = vcombine.low %v649_v21, %v653_v22  ;;  %v13405_v19 = vcombine.high %v696_v11, %v700_v12  ;;  %v704_v21 = vld [vmem:[#allocation5 + $0x12c0] sm:$0xff] }
 0x158   :  { %v13367_v36 = vcombine.high %v657_v31, %v661_v32  ;;  %v708_v22 = vld [vmem:[#allocation5 + $0x12e0] sm:$0xff] }
 0x15a   :  { %9986 = vmatpush1.bf16.msra.mxu0 %v13308_v41  ;;  %10519 = vmatpush1.bf16.msra.mxu1 %v13310_v42  ;;  %v665_v41 = vld [vmem:[#allocation5 + $0x1188] sm:$0xff] }
 0x15b   :  { %9987 = vmatprep.subr.bf16.mxu0 %v13317_v43  ;;  %10520 = vmatprep.subr.bf16.mxu1 %v13319_v44  ;;  %v669_v42 = vld [vmem:[#allocation5 + $0x11a8] sm:$0xff]  ;;  %v13364_v43 = vcombine.low %v656_v29, %v660_v30  ;;  %v13366_v44 = vcombine.low %v657_v31, %v661_v32  ;;  %v13413_v29 = vcombine.high %v704_v21, %v708_v22  ;;  %v712_v31 = vld [vmem:[#allocation5 + $0x1300] sm:$0xff] }
 0x15c   :  { %v13375_v46 = vcombine.high %v665_v41, %v669_v42  ;;  %v716_v32 = vld [vmem:[#allocation5 + $0x1320] sm:$0xff] }
 0x15e   :  { %9988 = vmatpush1.bf16.msra.mxu0 %v13316_v49  ;;  %10521 = vmatpush1.bf16.msra.mxu1 %v13318_v50  ;;  %v673_v49 = vld [vmem:[#allocation5 + $0x11c8] sm:$0xff] }
 0x15f   :  { %9998 = vmatprep.subr.bf16.mxu0 %v13325_v51  ;;  %10531 = vmatprep.subr.bf16.mxu1 %v13327_v52  ;;  %v677_v50 = vld [vmem:[#allocation5 + $0x11e8] sm:$0xff]  ;;  %v13372_v51 = vcombine.low %v664_v38, %v668_v39  ;;  %v13374_v52 = vcombine.low %v665_v41, %v669_v42  ;;  %v13421_v38 = vcombine.high %v712_v31, %v716_v32  ;;  %v720_v41 = vld [vmem:[#allocation5 + $0x1340] sm:$0xff] }
 0x160   :  { %v13383_v55 = vcombine.high %v673_v49, %v677_v50  ;;  %v724_v42 = vld [vmem:[#allocation5 + $0x1360] sm:$0xff] }
 0x161   :  { %9990 = vmatmul.mubr.bf16.vlgmr.msra.gmra.mrb[0].mxu0 %v15235_v56  ;;  %10523 = vmatmul.mubr.bf16.vlgmr.msra.gmra.mrb[0].mxu1 %v15235_v56 }
 0x162   :  { %9999 = vmatpush1.bf16.msra.mxu0 %v13324_v61  ;;  %10532 = vmatpush1.bf16.msra.mxu1 %v13326_v62  ;;  %v681_v61 = vld [vmem:[#allocation5 + $0x1208] sm:$0xff] }
 0x163   :  { %10000 = vmatprep.subr.bf16.mxu0 %v13333_v63  ;;  %10533 = vmatprep.subr.bf16.mxu1 %v13335_v0  ;;  %v685_v62 = vld [vmem:[#allocation5 + $0x1228] sm:$0xff]  ;;  %v13380_v63 = vcombine.low %v672_v25, %v676_v48  ;;  %v13382_v0 = vcombine.low %v673_v49, %v677_v50  ;;  %v13429_v25 = vcombine.high %v720_v41, %v724_v42  ;;  %v728_v49 = vld [vmem:[#allocation5 + $0x1380] sm:$0xff] }
 0x164   :  { %10030 = vmatprep.mubr.bf16.mxu0 %v15241_v3  ;;  %10563 = vmatprep.mubr.bf16.mxu1 %v15241_v3  ;;  %v13391_v2 = vcombine.high %v681_v61, %v685_v62  ;;  %v732_v50 = vld [vmem:[#allocation5 + $0x13a0] sm:$0xff] }
 0x166   :  { %10001 = vmatpush1.bf16.msra.mxu0 %v13332_v5  ;;  %10534 = vmatpush1.bf16.msra.mxu1 %v13334_v6  ;;  %v689_v5 = vld [vmem:[#allocation5 + $0x1248] sm:$0xff] }
 0x167   :  { %10002 = vmatprep.subr.bf16.mxu0 %v13341_v7  ;;  %10535 = vmatprep.subr.bf16.mxu1 %v13343_v8  ;;  %v693_v6 = vld [vmem:[#allocation5 + $0x1268] sm:$0xff]  ;;  %v13388_v7 = vcombine.low %v680_v57, %v684_v59  ;;  %v13390_v8 = vcombine.low %v681_v61, %v685_v62  ;;  %v13437_v57 = vcombine.high %v728_v49, %v732_v50  ;;  %v736_v61 = vld [vmem:[#allocation5 + $0x13c0] sm:$0xff] }
 0x168   :  { %v13399_v10 = vcombine.high %v689_v5, %v693_v6  ;;  %v740_v62 = vld [vmem:[#allocation5 + $0x13e0] sm:$0xff] }
 0x16a   :  { %10003 = vmatpush1.bf16.msra.mxu0 %v13340_v14  ;;  %10536 = vmatpush1.bf16.msra.mxu1 %v13342_v15  ;;  %v697_v14 = vld [vmem:[#allocation5 + $0x1288] sm:$0xff] }
 0x16b   :  { %10004 = vmatprep.subr.bf16.mxu0 %v13349_v17  ;;  %10537 = vmatprep.subr.bf16.mxu1 %v13351_v18  ;;  %v701_v15 = vld [vmem:[#allocation5 + $0x12a8] sm:$0xff]  ;;  %v13396_v17 = vcombine.low %v688_v40, %v692_v4  ;;  %v13398_v18 = vcombine.low %v689_v5, %v693_v6  ;;  %v13445_v40 = vcombine.high %v736_v61, %v740_v62  ;;  %v744_v5 = vld [vmem:[#allocation5 + $0x1400] sm:$0xff] }
 0x16c   :  { %v13407_v20 = vcombine.high %v697_v14, %v701_v15  ;;  %v748_v6 = vld [vmem:[#allocation5 + $0x1420] sm:$0xff] }
 0x16e   :  { %10005 = vmatpush1.bf16.msra.mxu0 %v13348_v23  ;;  %10538 = vmatpush1.bf16.msra.mxu1 %v13350_v24  ;;  %v705_v23 = vld [vmem:[#allocation5 + $0x12c8] sm:$0xff] }
 0x16f   :  { %10006 = vmatprep.subr.bf16.mxu0 %v13357_v27  ;;  %10539 = vmatprep.subr.bf16.mxu1 %v13359_v28  ;;  %v709_v24 = vld [vmem:[#allocation5 + $0x12e8] sm:$0xff]  ;;  %v13404_v27 = vcombine.low %v696_v11, %v700_v12  ;;  %v13406_v28 = vcombine.low %v697_v14, %v701_v15  ;;  %v13453_v11 = vcombine.high %v744_v5, %v748_v6  ;;  %v752_v14 = vld [vmem:[#allocation5 + $0x1440] sm:$0xff] }
 0x170   :  { %v13415_v30 = vcombine.high %v705_v23, %v709_v24  ;;  %v756_v15 = vld [vmem:[#allocation5 + $0x1460] sm:$0xff] }
 0x172   :  { %10007 = vmatpush1.bf16.msra.mxu0 %v13356_v34  ;;  %10540 = vmatpush1.bf16.msra.mxu1 %v13358_v35  ;;  %v713_v34 = vld [vmem:[#allocation5 + $0x1308] sm:$0xff] }
 0x173   :  { %10008 = vmatprep.subr.bf16.mxu0 %v13365_v16  ;;  %10541 = vmatprep.subr.bf16.mxu1 %v13367_v36  ;;  %v717_v35 = vld [vmem:[#allocation5 + $0x1328] sm:$0xff]  ;;  %v13412_v16 = vcombine.low %v704_v21, %v708_v22  ;;  %v13414_v36 = vcombine.low %v705_v23, %v709_v24  ;;  %v13452_v21 = vcombine.low %v744_v5, %v748_v6 }
 0x174   :  { %v13423_v39 = vcombine.high %v713_v34, %v717_v35  ;;  %v13461_v23 = vcombine.high %v752_v14, %v756_v15 }
 0x176   :  { %10009 = vmatpush1.bf16.msra.mxu0 %v13364_v43  ;;  %10542 = vmatpush1.bf16.msra.mxu1 %v13366_v44  ;;  %v721_v43 = vld [vmem:[#allocation5 + $0x1348] sm:$0xff] }
 0x177   :  { %10010 = vmatprep.subr.bf16.mxu0 %v13373_v45  ;;  %10543 = vmatprep.subr.bf16.mxu1 %v13375_v46  ;;  %v725_v44 = vld [vmem:[#allocation5 + $0x1368] sm:$0xff]  ;;  %v13420_v45 = vcombine.low %v712_v31, %v716_v32  ;;  %v13422_v46 = vcombine.low %v713_v34, %v717_v35  ;;  %v13460_v31 = vcombine.low %v752_v14, %v756_v15 }
 0x178   :  { %v13431_v48 = vcombine.high %v721_v43, %v725_v44 }
 0x17a   :  { %10011 = vmatpush1.bf16.msra.mxu0 %v13372_v51  ;;  %10544 = vmatpush1.bf16.msra.mxu1 %v13374_v52  ;;  %v729_v51 = vld [vmem:[#allocation5 + $0x1388] sm:$0xff] }
 0x17b   :  { %10012 = vmatprep.subr.bf16.mxu0 %v13381_v53  ;;  %10545 = vmatprep.subr.bf16.mxu1 %v13383_v55  ;;  %v733_v52 = vld [vmem:[#allocation5 + $0x13a8] sm:$0xff]  ;;  %v13428_v53 = vcombine.low %v720_v41, %v724_v42  ;;  %v13430_v55 = vcombine.low %v721_v43, %v725_v44 }
 0x17c   :  { %v13439_v59 = vcombine.high %v729_v51, %v733_v52 }
 0x17e   :  { %10013 = vmatpush1.bf16.msra.mxu0 %v13380_v63  ;;  %10546 = vmatpush1.bf16.msra.mxu1 %v13382_v0  ;;  %v737_v63 = vld [vmem:[#allocation5 + $0x13c8] sm:$0xff] }
 0x17f   :  { %10014 = vmatprep.subr.bf16.mxu0 %v13389_v1  ;;  %10547 = vmatprep.subr.bf16.mxu1 %v13391_v2  ;;  %v741_v0 = vld [vmem:[#allocation5 + $0x13e8] sm:$0xff]  ;;  %v13436_v1 = vcombine.low %v728_v49, %v732_v50  ;;  %v13438_v2 = vcombine.low %v729_v51, %v733_v52 }
 0x180   :  { %v13447_v4 = vcombine.high %v737_v63, %v741_v0 }
 0x182   :  { %10015 = vmatpush1.bf16.msra.mxu0 %v13388_v7  ;;  %10548 = vmatpush1.bf16.msra.mxu1 %v13390_v8  ;;  %v745_v7 = vld [vmem:[#allocation5 + $0x1408] sm:$0xff] }
 0x183   :  { %10016 = vmatprep.subr.bf16.mxu0 %v13397_v9  ;;  %10549 = vmatprep.subr.bf16.mxu1 %v13399_v10  ;;  %v749_v8 = vld [vmem:[#allocation5 + $0x1428] sm:$0xff]  ;;  %v13444_v9 = vcombine.low %v736_v61, %v740_v62  ;;  %v13446_v10 = vcombine.low %v737_v63, %v741_v0 }
 0x184   :  { %v13455_v12 = vcombine.high %v745_v7, %v749_v8  ;;  %v13454_v22 = vcombine.low %v745_v7, %v749_v8 }
 0x186   :  { %10017 = vmatpush1.bf16.msra.mxu0 %v13396_v17  ;;  %10550 = vmatpush1.bf16.msra.mxu1 %v13398_v18  ;;  %v15249_v17 = vcombine.low %v15237_v60, %v15237_v60  ;;  %v753_v18 = vld [vmem:[#allocation5 + $0x1448] sm:$0xff] }
 0x187   :  { %10018 = vmatprep.subr.bf16.mxu0 %v13405_v19  ;;  %10551 = vmatprep.subr.bf16.mxu1 %v13407_v20  ;;  %v757_v19 = vld [vmem:[#allocation5 + $0x1468] sm:$0xff] }
 0x188   :  { %v15251_v20 = vld [vmem:[#allocation3 + $0x28] sm:$0xff]  ;;  %v13463_v24 = vcombine.high %v753_v18, %v757_v19  ;;  %v13462_v32 = vcombine.low %v753_v18, %v757_v19 }
 0x189   :  { %v761_v60 = vld [vmem:[#allocation5 + $0x1488] sm:$0xff] }
 0x18a   :  { %10019 = vmatpush1.bf16.msra.mxu0 %v13404_v27  ;;  %10552 = vmatpush1.bf16.msra.mxu1 %v13406_v28  ;;  %v760_v27 = vld [vmem:[#allocation5 + $0x1480] sm:$0xff] }
 0x18b   :  { %10020 = vmatprep.subr.bf16.mxu0 %v13413_v29  ;;  %10553 = vmatprep.subr.bf16.mxu1 %v13415_v30  ;;  %v764_v28 = vld [vmem:[#allocation5 + $0x14a0] sm:$0xff]  ;;  %v15255_v29 = vcombine.high %v15251_v20, %v15251_v20  ;;  %v765_v30 = vld [vmem:[#allocation5 + $0x14a8] sm:$0xff] }
 0x18c   :  { %v13469_v34 = vcombine.high %v760_v27, %v764_v28  ;;  %v13471_v35 = vcombine.high %v761_v60, %v765_v30  ;;  %v13468_v41 = vcombine.low %v760_v27, %v764_v28  ;;  %v13470_v42 = vcombine.low %v761_v60, %v765_v30 }
 0x18e   :  { %10021 = vmatpush1.bf16.msra.mxu0 %v13412_v16  ;;  %10554 = vmatpush1.bf16.msra.mxu1 %v13414_v36  ;;  %v768_v16 = vld [vmem:[#allocation5 + $0x14c0] sm:$0xff] }
 0x18f   :  { %10022 = vmatprep.subr.bf16.mxu0 %v13421_v38  ;;  %10555 = vmatprep.subr.bf16.mxu1 %v13423_v39  ;;  %v772_v36 = vld [vmem:[#allocation5 + $0x14e0] sm:$0xff]  ;;  %v769_v38 = vld [vmem:[#allocation5 + $0x14c8] sm:$0xff] }
 0x190   :  { %v773_v39 = vld [vmem:[#allocation5 + $0x14e8] sm:$0xff]  ;;  %v13477_v43 = vcombine.high %v768_v16, %v772_v36  ;;  %v13476_v49 = vcombine.low %v768_v16, %v772_v36 }
 0x191   :  { %v13479_v44 = vcombine.high %v769_v38, %v773_v39  ;;  %v13478_v50 = vcombine.low %v769_v38, %v773_v39 }
 0x192   :  { %10023 = vmatpush1.bf16.msra.mxu0 %v13420_v45  ;;  %10556 = vmatpush1.bf16.msra.mxu1 %v13422_v46  ;;  %v776_v45 = vld [vmem:[#allocation5 + $0x1500] sm:$0xff] }
 0x193   :  { %10024 = vmatprep.subr.bf16.mxu0 %v13429_v25  ;;  %10557 = vmatprep.subr.bf16.mxu1 %v13431_v48  ;;  %v780_v46 = vld [vmem:[#allocation5 + $0x1520] sm:$0xff]  ;;  %v777_v25 = vld [vmem:[#allocation5 + $0x1508] sm:$0xff] }
 0x194   :  { %v781_v48 = vld [vmem:[#allocation5 + $0x1528] sm:$0xff]  ;;  %v13485_v51 = vcombine.high %v776_v45, %v780_v46  ;;  %v13484_v61 = vcombine.low %v776_v45, %v780_v46 }
 0x195   :  { %v13487_v52 = vcombine.high %v777_v25, %v781_v48  ;;  %v13486_v62 = vcombine.low %v777_v25, %v781_v48 }
 0x196   :  { %10025 = vmatpush1.bf16.msra.mxu0 %v13428_v53  ;;  %10558 = vmatpush1.bf16.msra.mxu1 %v13430_v55  ;;  %v784_v53 = vld [vmem:[#allocation5 + $0x1540] sm:$0xff] }
 0x197   :  { %10026 = vmatprep.subr.bf16.mxu0 %v13437_v57  ;;  %10559 = vmatprep.subr.bf16.mxu1 %v13439_v59  ;;  %v788_v55 = vld [vmem:[#allocation5 + $0x1560] sm:$0xff]  ;;  %v785_v57 = vld [vmem:[#allocation5 + $0x1548] sm:$0xff] }
 0x198   :  { %v789_v59 = vld [vmem:[#allocation5 + $0x1568] sm:$0xff]  ;;  %v13493_v63 = vcombine.high %v784_v53, %v788_v55  ;;  %v13492_v5 = vcombine.low %v784_v53, %v788_v55 }
 0x199   :  { %v13495_v0 = vcombine.high %v785_v57, %v789_v59  ;;  %v13494_v6 = vcombine.low %v785_v57, %v789_v59 }
 0x19a   :  { %10027 = vmatpush1.bf16.msra.mxu0 %v13436_v1  ;;  %10560 = vmatpush1.bf16.msra.mxu1 %v13438_v2  ;;  %v792_v1 = vld [vmem:[#allocation5 + $0x1580] sm:$0xff] }
 0x19b   :  { %10028 = vmatprep.subr.bf16.mxu0 %v13445_v40  ;;  %10561 = vmatprep.subr.bf16.mxu1 %v13447_v4  ;;  %v796_v2 = vld [vmem:[#allocation5 + $0x15a0] sm:$0xff]  ;;  %v793_v40 = vld [vmem:[#allocation5 + $0x1588] sm:$0xff] }
 0x19c   :  { %v797_v4 = vld [vmem:[#allocation5 + $0x15a8] sm:$0xff]  ;;  %v13501_v7 = vcombine.high %v792_v1, %v796_v2  ;;  %v13500_v14 = vcombine.low %v792_v1, %v796_v2 }
 0x19d   :  { %v13503_v8 = vcombine.high %v793_v40, %v797_v4  ;;  %v13502_v15 = vcombine.low %v793_v40, %v797_v4 }
 0x19e   :  { %10029 = vmatpush1.bf16.msra.mxu0 %v13444_v9  ;;  %10562 = vmatpush1.bf16.msra.mxu1 %v13446_v10  ;;  %v800_v9 = vld [vmem:[#allocation5 + $0x15c0] sm:$0xff] }
 0x19f   :  { %10039 = vmatprep.subr.bf16.mxu0 %v13453_v11  ;;  %10572 = vmatprep.subr.bf16.mxu1 %v13455_v12  ;;  %v804_v10 = vld [vmem:[#allocation5 + $0x15e0] sm:$0xff]  ;;  %v801_v11 = vld [vmem:[#allocation5 + $0x15c8] sm:$0xff] }
 0x1a0   :  { %v805_v12 = vld [vmem:[#allocation5 + $0x15e8] sm:$0xff]  ;;  %v13509_v18 = vcombine.high %v800_v9, %v804_v10  ;;  %v13508_v27 = vcombine.low %v800_v9, %v804_v10 }
 0x1a1   :  { %10031 = vmatmul.mubr.bf16.vlgmr.msra.gmra.mrb[0].mxu0 %v15249_v17  ;;  %10564 = vmatmul.mubr.bf16.vlgmr.msra.gmra.mrb[0].mxu1 %v15249_v17  ;;  %v13511_v19 = vcombine.high %v801_v11, %v805_v12  ;;  %v13510_v28 = vcombine.low %v801_v11, %v805_v12 }
 0x1a2   :  { %10040 = vmatpush1.bf16.msra.mxu0 %v13452_v21  ;;  %10573 = vmatpush1.bf16.msra.mxu1 %v13454_v22  ;;  %v808_v21 = vld [vmem:[#allocation5 + $0x1600] sm:$0xff] }
 0x1a3   :  { %10041 = vmatprep.subr.bf16.mxu0 %v13461_v23  ;;  %10574 = vmatprep.subr.bf16.mxu1 %v13463_v24  ;;  %v812_v22 = vld [vmem:[#allocation5 + $0x1620] sm:$0xff]  ;;  %v809_v23 = vld [vmem:[#allocation5 + $0x1608] sm:$0xff] }
 0x1a4   :  { %10071 = vmatprep.mubr.bf16.mxu0 %v15255_v29  ;;  %10604 = vmatprep.mubr.bf16.mxu1 %v15255_v29  ;;  %v813_v24 = vld [vmem:[#allocation5 + $0x1628] sm:$0xff]  ;;  %v13517_v60 = vcombine.high %v808_v21, %v812_v22  ;;  %v13516_v16 = vcombine.low %v808_v21, %v812_v22 }
 0x1a5   :  { %v13519_v30 = vcombine.high %v809_v23, %v813_v24  ;;  %v13518_v36 = vcombine.low %v809_v23, %v813_v24 }
 0x1a6   :  { %10042 = vmatpush1.bf16.msra.mxu0 %v13460_v31  ;;  %10575 = vmatpush1.bf16.msra.mxu1 %v13462_v32  ;;  %v816_v31 = vld [vmem:[#allocation5 + $0x1640] sm:$0xff] }
 0x1a7   :  { %10043 = vmatprep.subr.bf16.mxu0 %v13469_v34  ;;  %10576 = vmatprep.subr.bf16.mxu1 %v13471_v35  ;;  %v820_v32 = vld [vmem:[#allocation5 + $0x1660] sm:$0xff]  ;;  %v817_v34 = vld [vmem:[#allocation5 + $0x1648] sm:$0xff] }
 0x1a8   :  { %v821_v35 = vld [vmem:[#allocation5 + $0x1668] sm:$0xff]  ;;  %v13525_v38 = vcombine.high %v816_v31, %v820_v32  ;;  %v13524_v45 = vcombine.low %v816_v31, %v820_v32 }
 0x1a9   :  { %v13527_v39 = vcombine.high %v817_v34, %v821_v35  ;;  %v13526_v46 = vcombine.low %v817_v34, %v821_v35 }
 0x1aa   :  { %10044 = vmatpush1.bf16.msra.mxu0 %v13468_v41  ;;  %10577 = vmatpush1.bf16.msra.mxu1 %v13470_v42  ;;  %v824_v41 = vld [vmem:[#allocation5 + $0x1680] sm:$0xff] }
 0x1ab   :  { %10045 = vmatprep.subr.bf16.mxu0 %v13477_v43  ;;  %10578 = vmatprep.subr.bf16.mxu1 %v13479_v44  ;;  %v828_v42 = vld [vmem:[#allocation5 + $0x16a0] sm:$0xff]  ;;  %v825_v43 = vld [vmem:[#allocation5 + $0x1688] sm:$0xff] }
 0x1ac   :  { %v829_v44 = vld [vmem:[#allocation5 + $0x16a8] sm:$0xff]  ;;  %v13533_v25 = vcombine.high %v824_v41, %v828_v42  ;;  %v13532_v53 = vcombine.low %v824_v41, %v828_v42 }
 0x1ad   :  { %v13535_v48 = vcombine.high %v825_v43, %v829_v44  ;;  %v13534_v55 = vcombine.low %v825_v43, %v829_v44 }
 0x1ae   :  { %10046 = vmatpush1.bf16.msra.mxu0 %v13476_v49  ;;  %10579 = vmatpush1.bf16.msra.mxu1 %v13478_v50  ;;  %v832_v49 = vld [vmem:[#allocation5 + $0x16c0] sm:$0xff] }
 0x1af   :  { %10047 = vmatprep.subr.bf16.mxu0 %v13485_v51  ;;  %10580 = vmatprep.subr.bf16.mxu1 %v13487_v52  ;;  %v836_v50 = vld [vmem:[#allocation5 + $0x16e0] sm:$0xff]  ;;  %v833_v51 = vld [vmem:[#allocation5 + $0x16c8] sm:$0xff] }
 0x1b0   :  { %v837_v52 = vld [vmem:[#allocation5 + $0x16e8] sm:$0xff]  ;;  %v13541_v57 = vcombine.high %v832_v49, %v836_v50  ;;  %v13540_v1 = vcombine.low %v832_v49, %v836_v50 }
 0x1b1   :  { %v13543_v59 = vcombine.high %v833_v51, %v837_v52  ;;  %v13542_v2 = vcombine.low %v833_v51, %v837_v52  ;;  %v885_v49 = vld [vmem:[#allocation5 + $0x1868] sm:$0xff] }
 0x1b2   :  { %10048 = vmatpush1.bf16.msra.mxu0 %v13484_v61  ;;  %10581 = vmatpush1.bf16.msra.mxu1 %v13486_v62  ;;  %v840_v61 = vld [vmem:[#allocation5 + $0x1700] sm:$0xff]  ;;  %v15265_v50 = vld [vmem:[#allocation3 + $0x30] sm:$0xff] }
 0x1b3   :  { %10049 = vmatprep.subr.bf16.mxu0 %v13493_v63  ;;  %10582 = vmatprep.subr.bf16.mxu1 %v13495_v0  ;;  %v844_v62 = vld [vmem:[#allocation5 + $0x1720] sm:$0xff]  ;;  %v841_v63 = vld [vmem:[#allocation5 + $0x1708] sm:$0xff] }
 0x1b4   :  { %v845_v0 = vld [vmem:[#allocation5 + $0x1728] sm:$0xff]  ;;  %v13549_v40 = vcombine.high %v840_v61, %v844_v62  ;;  %v13548_v9 = vcombine.low %v840_v61, %v844_v62  ;;  %v15269_v61 = vcombine.high %v15265_v50, %v15265_v50 }
 0x1b5   :  { %v13551_v4 = vcombine.high %v841_v63, %v845_v0  ;;  %v13550_v10 = vcombine.low %v841_v63, %v845_v0  ;;  %v893_v62 = vld [vmem:[#allocation5 + $0x18a8] sm:$0xff] }
 0x1b6   :  { %10050 = vmatpush1.bf16.msra.mxu0 %v13492_v5  ;;  %10583 = vmatpush1.bf16.msra.mxu1 %v13494_v6  ;;  %v848_v5 = vld [vmem:[#allocation5 + $0x1740] sm:$0xff] }
 0x1b7   :  { %10051 = vmatprep.subr.bf16.mxu0 %v13501_v7  ;;  %10584 = vmatprep.subr.bf16.mxu1 %v13503_v8  ;;  %v852_v6 = vld [vmem:[#allocation5 + $0x1760] sm:$0xff]  ;;  %v849_v7 = vld [vmem:[#allocation5 + $0x1748] sm:$0xff] }
 0x1b8   :  { %v853_v8 = vld [vmem:[#allocation5 + $0x1768] sm:$0xff]  ;;  %v13557_v11 = vcombine.high %v848_v5, %v852_v6  ;;  %v13556_v21 = vcombine.low %v848_v5, %v852_v6 }
 0x1b9   :  { %v13559_v12 = vcombine.high %v849_v7, %v853_v8  ;;  %v13558_v22 = vcombine.low %v849_v7, %v853_v8  ;;  %v897_v5 = vld [vmem:[#allocation5 + $0x18c8] sm:$0xff] }
 0x1ba   :  { %10052 = vmatpush1.bf16.msra.mxu0 %v13500_v14  ;;  %10585 = vmatpush1.bf16.msra.mxu1 %v13502_v15  ;;  %v856_v14 = vld [vmem:[#allocation5 + $0x1780] sm:$0xff]  ;;  %v901_v6 = vld [vmem:[#allocation5 + $0x18e8] sm:$0xff] }
 0x1bb   :  { %10053 = vmatprep.subr.bf16.mxu0 %v13509_v18  ;;  %10586 = vmatprep.subr.bf16.mxu1 %v13511_v19  ;;  %v860_v15 = vld [vmem:[#allocation5 + $0x17a0] sm:$0xff]  ;;  %v857_v18 = vld [vmem:[#allocation5 + $0x1788] sm:$0xff] }
 0x1bc   :  { %v861_v19 = vld [vmem:[#allocation5 + $0x17a8] sm:$0xff]  ;;  %v13565_v23 = vcombine.high %v856_v14, %v860_v15  ;;  %v13564_v31 = vcombine.low %v856_v14, %v860_v15 }
 0x1bd   :  { %v13567_v24 = vcombine.high %v857_v18, %v861_v19  ;;  %v13566_v32 = vcombine.low %v857_v18, %v861_v19  ;;  %v905_v14 = vld [vmem:[#allocation5 + $0x1908] sm:$0xff]  ;;  %v13606_v19 = vcombine.low %v897_v5, %v901_v6 }
 0x1be   :  { %10054 = vmatpush1.bf16.msra.mxu0 %v13508_v27  ;;  %10587 = vmatpush1.bf16.msra.mxu1 %v13510_v28  ;;  %v864_v27 = vld [vmem:[#allocation5 + $0x17c0] sm:$0xff]  ;;  %v909_v15 = vld [vmem:[#allocation5 + $0x1928] sm:$0xff] }
 0x1bf   :  { %10055 = vmatprep.subr.bf16.mxu0 %v13517_v60  ;;  %10588 = vmatprep.subr.bf16.mxu1 %v13519_v30  ;;  %v868_v28 = vld [vmem:[#allocation5 + $0x17e0] sm:$0xff]  ;;  %v865_v60 = vld [vmem:[#allocation5 + $0x17c8] sm:$0xff] }
 0x1c0   :  { %v869_v30 = vld [vmem:[#allocation5 + $0x17e8] sm:$0xff]  ;;  %v13573_v34 = vcombine.high %v864_v27, %v868_v28  ;;  %v13572_v41 = vcombine.low %v864_v27, %v868_v28 }
 0x1c1   :  { %v13575_v35 = vcombine.high %v865_v60, %v869_v30  ;;  %v13574_v42 = vcombine.low %v865_v60, %v869_v30  ;;  %v913_v27 = vld [vmem:[#allocation5 + $0x1948] sm:$0xff]  ;;  %v13614_v30 = vcombine.low %v905_v14, %v909_v15 }
 0x1c2   :  { %10056 = vmatpush1.bf16.msra.mxu0 %v13516_v16  ;;  %10589 = vmatpush1.bf16.msra.mxu1 %v13518_v36  ;;  %v872_v16 = vld [vmem:[#allocation5 + $0x1800] sm:$0xff]  ;;  %v917_v28 = vld [vmem:[#allocation5 + $0x1968] sm:$0xff] }
 0x1c3   :  { %10057 = vmatprep.subr.bf16.mxu0 %v13525_v38  ;;  %10590 = vmatprep.subr.bf16.mxu1 %v13527_v39  ;;  %v876_v36 = vld [vmem:[#allocation5 + $0x1820] sm:$0xff]  ;;  %v873_v38 = vld [vmem:[#allocation5 + $0x1808] sm:$0xff] }
 0x1c4   :  { %v877_v39 = vld [vmem:[#allocation5 + $0x1828] sm:$0xff]  ;;  %v13581_v43 = vcombine.high %v872_v16, %v876_v36  ;;  %v13580_v51 = vcombine.low %v872_v16, %v876_v36 }
 0x1c5   :  { %v13583_v44 = vcombine.high %v873_v38, %v877_v39  ;;  %v13582_v52 = vcombine.low %v873_v38, %v877_v39  ;;  %v921_v16 = vld [vmem:[#allocation5 + $0x1988] sm:$0xff]  ;;  %v13622_v39 = vcombine.low %v913_v27, %v917_v28 }
 0x1c6   :  { %10058 = vmatpush1.bf16.msra.mxu0 %v13524_v45  ;;  %10591 = vmatpush1.bf16.msra.mxu1 %v13526_v46  ;;  %v880_v45 = vld [vmem:[#allocation5 + $0x1840] sm:$0xff]  ;;  %v925_v36 = vld [vmem:[#allocation5 + $0x19a8] sm:$0xff] }
 0x1c7   :  { %10059 = vmatprep.subr.bf16.mxu0 %v13533_v25  ;;  %10592 = vmatprep.subr.bf16.mxu1 %v13535_v48  ;;  %v884_v46 = vld [vmem:[#allocation5 + $0x1860] sm:$0xff]  ;;  %v15263_v25 = vcombine.low %v15251_v20, %v15251_v20  ;;  %v881_v48 = vld [vmem:[#allocation5 + $0x1848] sm:$0xff] }
 0x1c8   :  { %v889_v20 = vld [vmem:[#allocation5 + $0x1888] sm:$0xff]  ;;  %v13588_v63 = vcombine.low %v880_v45, %v884_v46  ;;  %v13590_v0 = vcombine.low %v881_v48, %v885_v49 }
 0x1c9   :  { %v13598_v8 = vcombine.low %v889_v20, %v893_v62 }
 0x1ca   :  { %10060 = vmatpush1.bf16.msra.mxu0 %v13532_v53  ;;  %10593 = vmatpush1.bf16.msra.mxu1 %v13534_v55  ;;  %v13589_v53 = vcombine.high %v880_v45, %v884_v46  ;;  %v13591_v55 = vcombine.high %v881_v48, %v885_v49  ;;  %v929_v45 = vld [vmem:[#allocation5 + $0x19c8] sm:$0xff]  ;;  %v13630_v49 = vcombine.low %v921_v16, %v925_v36 }
 0x1cb   :  { %10061 = vmatprep.subr.bf16.mxu0 %v13541_v57  ;;  %10594 = vmatprep.subr.bf16.mxu1 %v13543_v59  ;;  %v888_v57 = vld [vmem:[#allocation5 + $0x1880] sm:$0xff]  ;;  %v933_v46 = vld [vmem:[#allocation5 + $0x19e8] sm:$0xff] }
 0x1cc   :  { %v892_v59 = vld [vmem:[#allocation5 + $0x18a0] sm:$0xff] }
 0x1cd   :  { %v13596_v7 = vcombine.low %v888_v57, %v892_v59 }
 0x1ce   :  { %10062 = vmatpush1.bf16.msra.mxu0 %v13540_v1  ;;  %10595 = vmatpush1.bf16.msra.mxu1 %v13542_v2  ;;  %v13597_v1 = vcombine.high %v888_v57, %v892_v59  ;;  %v13599_v2 = vcombine.high %v889_v20, %v893_v62  ;;  %v937_v57 = vld [vmem:[#allocation5 + $0x1a08] sm:$0xff]  ;;  %v13638_v62 = vcombine.low %v929_v45, %v933_v46 }
 0x1cf   :  { %10063 = vmatprep.subr.bf16.mxu0 %v13549_v40  ;;  %10596 = vmatprep.subr.bf16.mxu1 %v13551_v4  ;;  %v896_v40 = vld [vmem:[#allocation5 + $0x18c0] sm:$0xff]  ;;  %v941_v59 = vld [vmem:[#allocation5 + $0x1a28] sm:$0xff] }
 0x1d0   :  { %v900_v4 = vld [vmem:[#allocation5 + $0x18e0] sm:$0xff] }
 0x1d1   :  { %v13604_v18 = vcombine.low %v896_v40, %v900_v4 }
 0x1d2   :  { %10064 = vmatpush1.bf16.msra.mxu0 %v13548_v9  ;;  %10597 = vmatpush1.bf16.msra.mxu1 %v13550_v10  ;;  %v13605_v9 = vcombine.high %v896_v40, %v900_v4  ;;  %v13607_v10 = vcombine.high %v897_v5, %v901_v6  ;;  %v945_v40 = vld [vmem:[#allocation5 + $0x1a48] sm:$0xff]  ;;  %v13646_v6 = vcombine.low %v937_v57, %v941_v59 }
 0x1d3   :  { %10065 = vmatprep.subr.bf16.mxu0 %v13557_v11  ;;  %10598 = vmatprep.subr.bf16.mxu1 %v13559_v12  ;;  %v904_v11 = vld [vmem:[#allocation5 + $0x1900] sm:$0xff]  ;;  %v949_v4 = vld [vmem:[#allocation5 + $0x1a68] sm:$0xff] }
 0x1d4   :  { %v908_v12 = vld [vmem:[#allocation5 + $0x1920] sm:$0xff] }
 0x1d5   :  { %v13612_v60 = vcombine.low %v904_v11, %v908_v12 }
 0x1d6   :  { %10066 = vmatpush1.bf16.msra.mxu0 %v13556_v21  ;;  %10599 = vmatpush1.bf16.msra.mxu1 %v13558_v22  ;;  %v13613_v21 = vcombine.high %v904_v11, %v908_v12  ;;  %v13615_v22 = vcombine.high %v905_v14, %v909_v15  ;;  %v953_v11 = vld [vmem:[#allocation5 + $0x1a88] sm:$0xff]  ;;  %v13654_v15 = vcombine.low %v945_v40, %v949_v4 }
 0x1d7   :  { %10067 = vmatprep.subr.bf16.mxu0 %v13565_v23  ;;  %10600 = vmatprep.subr.bf16.mxu1 %v13567_v24  ;;  %v912_v23 = vld [vmem:[#allocation5 + $0x1940] sm:$0xff]  ;;  %v957_v12 = vld [vmem:[#allocation5 + $0x1aa8] sm:$0xff] }
 0x1d8   :  { %v916_v24 = vld [vmem:[#allocation5 + $0x1960] sm:$0xff] }
 0x1d9   :  { %v13620_v38 = vcombine.low %v912_v23, %v916_v24 }
 0x1da   :  { %10068 = vmatpush1.bf16.msra.mxu0 %v13564_v31  ;;  %10601 = vmatpush1.bf16.msra.mxu1 %v13566_v32  ;;  %v13621_v31 = vcombine.high %v912_v23, %v916_v24  ;;  %v13623_v32 = vcombine.high %v913_v27, %v917_v28  ;;  %v961_v23 = vld [vmem:[#allocation5 + $0x1ac8] sm:$0xff]  ;;  %v13662_v28 = vcombine.low %v953_v11, %v957_v12 }
 0x1db   :  { %10069 = vmatprep.subr.bf16.mxu0 %v13573_v34  ;;  %10602 = vmatprep.subr.bf16.mxu1 %v13575_v35  ;;  %v920_v34 = vld [vmem:[#allocation5 + $0x1980] sm:$0xff]  ;;  %v965_v24 = vld [vmem:[#allocation5 + $0x1ae8] sm:$0xff] }
 0x1dc   :  { %v924_v35 = vld [vmem:[#allocation5 + $0x19a0] sm:$0xff] }
 0x1dd   :  { %v13628_v48 = vcombine.low %v920_v34, %v924_v35 }
 0x1de   :  { %10070 = vmatpush1.bf16.msra.mxu0 %v13572_v41  ;;  %10603 = vmatpush1.bf16.msra.mxu1 %v13574_v42  ;;  %v13629_v41 = vcombine.high %v920_v34, %v924_v35  ;;  %v13631_v42 = vcombine.high %v921_v16, %v925_v36  ;;  %v969_v34 = vld [vmem:[#allocation5 + $0x1b08] sm:$0xff]  ;;  %v13670_v36 = vcombine.low %v961_v23, %v965_v24 }
 0x1df   :  { %10080 = vmatprep.subr.bf16.mxu0 %v13581_v43  ;;  %10613 = vmatprep.subr.bf16.mxu1 %v13583_v44  ;;  %v928_v43 = vld [vmem:[#allocation5 + $0x19c0] sm:$0xff]  ;;  %v973_v35 = vld [vmem:[#allocation5 + $0x1b28] sm:$0xff] }
 0x1e0   :  { %v932_v44 = vld [vmem:[#allocation5 + $0x19e0] sm:$0xff] }
 0x1e1   :  { %10072 = vmatmul.mubr.bf16.vlgmr.msra.gmra.mrb[0].mxu0 %v15263_v25  ;;  %10605 = vmatmul.mubr.bf16.vlgmr.msra.gmra.mrb[0].mxu1 %v15263_v25  ;;  %v13636_v20 = vcombine.low %v928_v43, %v932_v44 }
 0x1e2   :  { %10081 = vmatpush1.bf16.msra.mxu0 %v13580_v51  ;;  %10614 = vmatpush1.bf16.msra.mxu1 %v13582_v52  ;;  %v13637_v51 = vcombine.high %v928_v43, %v932_v44  ;;  %v13639_v52 = vcombine.high %v929_v45, %v933_v46  ;;  %v977_v43 = vld [vmem:[#allocation5 + $0x1b48] sm:$0xff]  ;;  %v13678_v46 = vcombine.low %v969_v34, %v973_v35 }
 0x1e3   :  { %10082 = vmatprep.subr.bf16.mxu0 %v13589_v53  ;;  %10615 = vmatprep.subr.bf16.mxu1 %v13591_v55  ;;  %v936_v53 = vld [vmem:[#allocation5 + $0x1a00] sm:$0xff]  ;;  %v981_v44 = vld [vmem:[#allocation5 + $0x1b68] sm:$0xff] }
 0x1e4   :  { %10112 = vmatprep.mubr.bf16.mxu0 %v15269_v61  ;;  %10645 = vmatprep.mubr.bf16.mxu1 %v15269_v61  ;;  %v940_v55 = vld [vmem:[#allocation5 + $0x1a20] sm:$0xff] }
 0x1e5   :  { %v13644_v5 = vcombine.low %v936_v53, %v940_v55 }
 0x1e6   :  { %10083 = vmatpush1.bf16.msra.mxu0 %v13588_v63  ;;  %10616 = vmatpush1.bf16.msra.mxu1 %v13590_v0  ;;  %v13645_v63 = vcombine.high %v936_v53, %v940_v55  ;;  %v13647_v0 = vcombine.high %v937_v57, %v941_v59  ;;  %v985_v53 = vld [vmem:[#allocation5 + $0x1b88] sm:$0xff]  ;;  %v13686_v59 = vcombine.low %v977_v43, %v981_v44 }
 0x1e7   :  { %10084 = vmatprep.subr.bf16.mxu0 %v13597_v1  ;;  %10617 = vmatprep.subr.bf16.mxu1 %v13599_v2  ;;  %v944_v1 = vld [vmem:[#allocation5 + $0x1a40] sm:$0xff]  ;;  %v989_v55 = vld [vmem:[#allocation5 + $0x1ba8] sm:$0xff] }
 0x1e8   :  { %v948_v2 = vld [vmem:[#allocation5 + $0x1a60] sm:$0xff] }
 0x1e9   :  { %v13652_v14 = vcombine.low %v944_v1, %v948_v2 }
 0x1ea   :  { %10085 = vmatpush1.bf16.msra.mxu0 %v13596_v7  ;;  %10618 = vmatpush1.bf16.msra.mxu1 %v13598_v8  ;;  %v13653_v7 = vcombine.high %v944_v1, %v948_v2  ;;  %v13655_v8 = vcombine.high %v945_v40, %v949_v4  ;;  %v993_v1 = vld [vmem:[#allocation5 + $0x1bc8] sm:$0xff]  ;;  %v13694_v4 = vcombine.low %v985_v53, %v989_v55 }
 0x1eb   :  { %10086 = vmatprep.subr.bf16.mxu0 %v13605_v9  ;;  %10619 = vmatprep.subr.bf16.mxu1 %v13607_v10  ;;  %v952_v9 = vld [vmem:[#allocation5 + $0x1a80] sm:$0xff]  ;;  %v997_v2 = vld [vmem:[#allocation5 + $0x1be8] sm:$0xff] }
 0x1ec   :  { %v956_v10 = vld [vmem:[#allocation5 + $0x1aa0] sm:$0xff] }
 0x1ed   :  { %v13660_v27 = vcombine.low %v952_v9, %v956_v10 }
 0x1ee   :  { %10087 = vmatpush1.bf16.msra.mxu0 %v13604_v18  ;;  %10620 = vmatpush1.bf16.msra.mxu1 %v13606_v19  ;;  %v13661_v18 = vcombine.high %v952_v9, %v956_v10  ;;  %v13663_v19 = vcombine.high %v953_v11, %v957_v12  ;;  %v1001_v9 = vld [vmem:[#allocation5 + $0x1c08] sm:$0xff]  ;;  %v13702_v12 = vcombine.low %v993_v1, %v997_v2 }
 0x1ef   :  { %10088 = vmatprep.subr.bf16.mxu0 %v13613_v21  ;;  %10621 = vmatprep.subr.bf16.mxu1 %v13615_v22  ;;  %v960_v21 = vld [vmem:[#allocation5 + $0x1ac0] sm:$0xff]  ;;  %v1005_v10 = vld [vmem:[#allocation5 + $0x1c28] sm:$0xff] }
 0x1f0   :  { %v964_v22 = vld [vmem:[#allocation5 + $0x1ae0] sm:$0xff] }
 0x1f1   :  { %v13668_v16 = vcombine.low %v960_v21, %v964_v22 }
 0x1f2   :  { %10089 = vmatpush1.bf16.msra.mxu0 %v13612_v60  ;;  %10622 = vmatpush1.bf16.msra.mxu1 %v13614_v30  ;;  %v13669_v60 = vcombine.high %v960_v21, %v964_v22  ;;  %v13671_v30 = vcombine.high %v961_v23, %v965_v24  ;;  %v15277_v21 = vcombine.low %v15265_v50, %v15265_v50  ;;  %v1009_v22 = vld [vmem:[#allocation5 + $0x1c48] sm:$0xff]  ;;  %v15279_v24 = vld [vmem:[#allocation3 + $0x38] sm:$0xff] }
 0x1f3   :  { %10090 = vmatprep.subr.bf16.mxu0 %v13621_v31  ;;  %10623 = vmatprep.subr.bf16.mxu1 %v13623_v32  ;;  %v968_v31 = vld [vmem:[#allocation5 + $0x1b00] sm:$0xff]  ;;  %v1013_v23 = vld [vmem:[#allocation5 + $0x1c68] sm:$0xff] }
 0x1f4   :  { %v972_v32 = vld [vmem:[#allocation5 + $0x1b20] sm:$0xff]  ;;  %v1017_v50 = vld [vmem:[#allocation5 + $0x1c88] sm:$0xff] }
 0x1f5   :  { %v13676_v45 = vcombine.low %v968_v31, %v972_v32 }
 0x1f6   :  { %10091 = vmatpush1.bf16.msra.mxu0 %v13620_v38  ;;  %10624 = vmatpush1.bf16.msra.mxu1 %v13622_v39  ;;  %v13677_v38 = vcombine.high %v968_v31, %v972_v32  ;;  %v13679_v39 = vcombine.high %v969_v34, %v973_v35  ;;  %v1016_v31 = vld [vmem:[#allocation5 + $0x1c80] sm:$0xff]  ;;  %v15283_v34 = vcombine.high %v15279_v24, %v15279_v24  ;;  %v1021_v35 = vld [vmem:[#allocation5 + $0x1ca8] sm:$0xff] }
 0x1f7   :  { %10092 = vmatprep.subr.bf16.mxu0 %v13629_v41  ;;  %10625 = vmatprep.subr.bf16.mxu1 %v13631_v42  ;;  %v976_v41 = vld [vmem:[#allocation5 + $0x1b40] sm:$0xff] }
 0x1f8   :  { %v980_v42 = vld [vmem:[#allocation5 + $0x1b60] sm:$0xff] }
 0x1f9   :  { %v13684_v57 = vcombine.low %v976_v41, %v980_v42  ;;  %v1020_v32 = vld [vmem:[#allocation5 + $0x1ca0] sm:$0xff] }
 0x1fa   :  { %10093 = vmatpush1.bf16.msra.mxu0 %v13628_v48  ;;  %10626 = vmatpush1.bf16.msra.mxu1 %v13630_v49  ;;  %v13685_v48 = vcombine.high %v976_v41, %v980_v42  ;;  %v13687_v49 = vcombine.high %v977_v43, %v981_v44  ;;  %v1024_v41 = vld [vmem:[#allocation5 + $0x1cc0] sm:$0xff]  ;;  %v1025_v43 = vld [vmem:[#allocation5 + $0x1cc8] sm:$0xff] }
 0x1fb   :  { %10094 = vmatprep.subr.bf16.mxu0 %v13637_v51  ;;  %10627 = vmatprep.subr.bf16.mxu1 %v13639_v52  ;;  %v984_v51 = vld [vmem:[#allocation5 + $0x1b80] sm:$0xff]  ;;  %v1029_v44 = vld [vmem:[#allocation5 + $0x1ce8] sm:$0xff] }
 0x1fc   :  { %v988_v52 = vld [vmem:[#allocation5 + $0x1ba0] sm:$0xff] }
 0x1fd   :  { %v13692_v40 = vcombine.low %v984_v51, %v988_v52  ;;  %v1028_v42 = vld [vmem:[#allocation5 + $0x1ce0] sm:$0xff] }
 0x1fe   :  { %10095 = vmatpush1.bf16.msra.mxu0 %v13636_v20  ;;  %10628 = vmatpush1.bf16.msra.mxu1 %v13638_v62  ;;  %v13693_v20 = vcombine.high %v984_v51, %v988_v52  ;;  %v13695_v62 = vcombine.high %v985_v53, %v989_v55  ;;  %v1032_v51 = vld [vmem:[#allocation5 + $0x1d00] sm:$0xff]  ;;  %v1033_v53 = vld [vmem:[#allocation5 + $0x1d08] sm:$0xff] }
 0x1ff   :  { %10096 = vmatprep.subr.bf16.mxu0 %v13645_v63  ;;  %10629 = vmatprep.subr.bf16.mxu1 %v13647_v0  ;;  %v992_v63 = vld [vmem:[#allocation5 + $0x1bc0] sm:$0xff]  ;;  %v1037_v55 = vld [vmem:[#allocation5 + $0x1d28] sm:$0xff] }
 0x200   :  { %v996_v0 = vld [vmem:[#allocation5 + $0x1be0] sm:$0xff] }
 0x201   :  { %v13700_v11 = vcombine.low %v992_v63, %v996_v0  ;;  %v1036_v52 = vld [vmem:[#allocation5 + $0x1d20] sm:$0xff] }
 0x202   :  { %10097 = vmatpush1.bf16.msra.mxu0 %v13644_v5  ;;  %10630 = vmatpush1.bf16.msra.mxu1 %v13646_v6  ;;  %v13701_v5 = vcombine.high %v992_v63, %v996_v0  ;;  %v13703_v6 = vcombine.high %v993_v1, %v997_v2  ;;  %v1040_v63 = vld [vmem:[#allocation5 + $0x1d40] sm:$0xff]  ;;  %v1041_v1 = vld [vmem:[#allocation5 + $0x1d48] sm:$0xff] }
 0x203   :  { %10098 = vmatprep.subr.bf16.mxu0 %v13653_v7  ;;  %10631 = vmatprep.subr.bf16.mxu1 %v13655_v8  ;;  %v1000_v7 = vld [vmem:[#allocation5 + $0x1c00] sm:$0xff]  ;;  %v1045_v2 = vld [vmem:[#allocation5 + $0x1d68] sm:$0xff] }
 0x204   :  { %v1004_v8 = vld [vmem:[#allocation5 + $0x1c20] sm:$0xff] }
 0x205   :  { %v1044_v0 = vld [vmem:[#allocation5 + $0x1d60] sm:$0xff] }
 0x206   :  { %10099 = vmatpush1.bf16.msra.mxu0 %v13652_v14  ;;  %10632 = vmatpush1.bf16.msra.mxu1 %v13654_v15  ;;  %v13709_v14 = vcombine.high %v1000_v7, %v1004_v8  ;;  %v13711_v15 = vcombine.high %v1001_v9, %v1005_v10 }
 0x207   :  { %10100 = vmatprep.subr.bf16.mxu0 %v13661_v18  ;;  %10633 = vmatprep.subr.bf16.mxu1 %v13663_v19  ;;  %v1008_v18 = vld [vmem:[#allocation5 + $0x1c40] sm:$0xff] }
 0x208   :  { %v1012_v19 = vld [vmem:[#allocation5 + $0x1c60] sm:$0xff] }
 0x20a   :  { %10101 = vmatpush1.bf16.msra.mxu0 %v13660_v27  ;;  %10634 = vmatpush1.bf16.msra.mxu1 %v13662_v28  ;;  %v13708_v27 = vcombine.low %v1000_v7, %v1004_v8  ;;  %v13710_v28 = vcombine.low %v1001_v9, %v1005_v10  ;;  %v1048_v7 = vld [vmem:[#allocation5 + $0x1d80] sm:$0xff]  ;;  %v1049_v9 = vld [vmem:[#allocation5 + $0x1d88] sm:$0xff] }
 0x20b   :  { %10102 = vmatprep.subr.bf16.mxu0 %v13669_v60  ;;  %10635 = vmatprep.subr.bf16.mxu1 %v13671_v30  ;;  %v13717_v60 = vcombine.high %v1008_v18, %v1012_v19  ;;  %v13719_v30 = vcombine.high %v1009_v22, %v1013_v23  ;;  %v1052_v8 = vld [vmem:[#allocation5 + $0x1da0] sm:$0xff]  ;;  %v1053_v10 = vld [vmem:[#allocation5 + $0x1da8] sm:$0xff] }
 0x20e   :  { %10103 = vmatpush1.bf16.msra.mxu0 %v13668_v16  ;;  %10636 = vmatpush1.bf16.msra.mxu1 %v13670_v36  ;;  %v13716_v16 = vcombine.low %v1008_v18, %v1012_v19  ;;  %v13718_v36 = vcombine.low %v1009_v22, %v1013_v23  ;;  %v1056_v18 = vld [vmem:[#allocation5 + $0x1dc0] sm:$0xff]  ;;  %v1057_v22 = vld [vmem:[#allocation5 + $0x1dc8] sm:$0xff] }
 0x20f   :  { %10104 = vmatprep.subr.bf16.mxu0 %v13677_v38  ;;  %10637 = vmatprep.subr.bf16.mxu1 %v13679_v39  ;;  %v13725_v38 = vcombine.high %v1016_v31, %v1020_v32  ;;  %v13727_v39 = vcombine.high %v1017_v50, %v1021_v35  ;;  %v1060_v19 = vld [vmem:[#allocation5 + $0x1de0] sm:$0xff]  ;;  %v1061_v23 = vld [vmem:[#allocation5 + $0x1de8] sm:$0xff] }
 0x212   :  { %10105 = vmatpush1.bf16.msra.mxu0 %v13676_v45  ;;  %10638 = vmatpush1.bf16.msra.mxu1 %v13678_v46  ;;  %v13724_v45 = vcombine.low %v1016_v31, %v1020_v32  ;;  %v13726_v46 = vcombine.low %v1017_v50, %v1021_v35  ;;  %v1064_v31 = vld [vmem:[#allocation5 + $0x1e00] sm:$0xff]  ;;  %v1065_v50 = vld [vmem:[#allocation5 + $0x1e08] sm:$0xff] }
 0x213   :  { %10106 = vmatprep.subr.bf16.mxu0 %v13685_v48  ;;  %10639 = vmatprep.subr.bf16.mxu1 %v13687_v49  ;;  %v13733_v48 = vcombine.high %v1024_v41, %v1028_v42  ;;  %v13735_v49 = vcombine.high %v1025_v43, %v1029_v44  ;;  %v1068_v32 = vld [vmem:[#allocation5 + $0x1e20] sm:$0xff]  ;;  %v1069_v35 = vld [vmem:[#allocation5 + $0x1e28] sm:$0xff] }
 0x216   :  { %10107 = vmatpush1.bf16.msra.mxu0 %v13684_v57  ;;  %10640 = vmatpush1.bf16.msra.mxu1 %v13686_v59  ;;  %v13732_v57 = vcombine.low %v1024_v41, %v1028_v42  ;;  %v13734_v59 = vcombine.low %v1025_v43, %v1029_v44  ;;  %v1072_v41 = vld [vmem:[#allocation5 + $0x1e40] sm:$0xff]  ;;  %v1073_v43 = vld [vmem:[#allocation5 + $0x1e48] sm:$0xff] }
 0x217   :  { %10108 = vmatprep.subr.bf16.mxu0 %v13693_v20  ;;  %10641 = vmatprep.subr.bf16.mxu1 %v13695_v62  ;;  %v13741_v20 = vcombine.high %v1032_v51, %v1036_v52  ;;  %v13743_v62 = vcombine.high %v1033_v53, %v1037_v55  ;;  %v1076_v42 = vld [vmem:[#allocation5 + $0x1e60] sm:$0xff]  ;;  %v1077_v44 = vld [vmem:[#allocation5 + $0x1e68] sm:$0xff] }
 0x21a   :  { %10109 = vmatpush1.bf16.msra.mxu0 %v13692_v40  ;;  %10642 = vmatpush1.bf16.msra.mxu1 %v13694_v4  ;;  %v13740_v40 = vcombine.low %v1032_v51, %v1036_v52  ;;  %v13742_v4 = vcombine.low %v1033_v53, %v1037_v55  ;;  %v1080_v51 = vld [vmem:[#allocation5 + $0x1e80] sm:$0xff]  ;;  %v1081_v53 = vld [vmem:[#allocation5 + $0x1e88] sm:$0xff] }
 0x21b   :  { %10110 = vmatprep.subr.bf16.mxu0 %v13701_v5  ;;  %10643 = vmatprep.subr.bf16.mxu1 %v13703_v6  ;;  %v13749_v5 = vcombine.high %v1040_v63, %v1044_v0  ;;  %v13751_v6 = vcombine.high %v1041_v1, %v1045_v2  ;;  %v1084_v52 = vld [vmem:[#allocation5 + $0x1ea0] sm:$0xff]  ;;  %v1085_v55 = vld [vmem:[#allocation5 + $0x1ea8] sm:$0xff] }
 0x21e   :  { %10111 = vmatpush1.bf16.msra.mxu0 %v13700_v11  ;;  %10644 = vmatpush1.bf16.msra.mxu1 %v13702_v12  ;;  %v13748_v11 = vcombine.low %v1040_v63, %v1044_v0  ;;  %v13750_v12 = vcombine.low %v1041_v1, %v1045_v2  ;;  %v1088_v63 = vld [vmem:[#allocation5 + $0x1ec0] sm:$0xff]  ;;  %v1089_v1 = vld [vmem:[#allocation5 + $0x1ec8] sm:$0xff] }
 0x21f   :  { %10121 = vmatprep.subr.bf16.mxu0 %v13709_v14  ;;  %10654 = vmatprep.subr.bf16.mxu1 %v13711_v15  ;;  %v13757_v14 = vcombine.high %v1048_v7, %v1052_v8  ;;  %v13759_v15 = vcombine.high %v1049_v9, %v1053_v10  ;;  %v1092_v0 = vld [vmem:[#allocation5 + $0x1ee0] sm:$0xff]  ;;  %v1093_v2 = vld [vmem:[#allocation5 + $0x1ee8] sm:$0xff] }
 0x221   :  { %10113 = vmatmul.mubr.bf16.vlgmr.msra.gmra.mrb[0].mxu0 %v15277_v21  ;;  %10646 = vmatmul.mubr.bf16.vlgmr.msra.gmra.mrb[0].mxu1 %v15277_v21 }
 0x222   :  { %10122 = vmatpush1.bf16.msra.mxu0 %v13708_v27  ;;  %10655 = vmatpush1.bf16.msra.mxu1 %v13710_v28  ;;  %v13756_v27 = vcombine.low %v1048_v7, %v1052_v8  ;;  %v13758_v28 = vcombine.low %v1049_v9, %v1053_v10  ;;  %v1096_v7 = vld [vmem:[#allocation5 + $0x1f00] sm:$0xff]  ;;  %v1097_v9 = vld [vmem:[#allocation5 + $0x1f08] sm:$0xff] }
 0x223   :  { %10123 = vmatprep.subr.bf16.mxu0 %v13717_v60  ;;  %10656 = vmatprep.subr.bf16.mxu1 %v13719_v30  ;;  %v13765_v60 = vcombine.high %v1056_v18, %v1060_v19  ;;  %v13767_v30 = vcombine.high %v1057_v22, %v1061_v23  ;;  %v1100_v8 = vld [vmem:[#allocation5 + $0x1f20] sm:$0xff]  ;;  %v1101_v10 = vld [vmem:[#allocation5 + $0x1f28] sm:$0xff] }
 0x224   :  { %10153 = vmatprep.mubr.bf16.mxu0 %v15283_v34  ;;  %10686 = vmatprep.mubr.bf16.mxu1 %v15283_v34 }
 0x226   :  { %10124 = vmatpush1.bf16.msra.mxu0 %v13716_v16  ;;  %10657 = vmatpush1.bf16.msra.mxu1 %v13718_v36  ;;  %v13764_v16 = vcombine.low %v1056_v18, %v1060_v19  ;;  %v13766_v36 = vcombine.low %v1057_v22, %v1061_v23  ;;  %v1104_v18 = vld [vmem:[#allocation5 + $0x1f40] sm:$0xff]  ;;  %v1105_v22 = vld [vmem:[#allocation5 + $0x1f48] sm:$0xff] }
 0x227   :  { %10125 = vmatprep.subr.bf16.mxu0 %v13725_v38  ;;  %10658 = vmatprep.subr.bf16.mxu1 %v13727_v39  ;;  %v13773_v38 = vcombine.high %v1064_v31, %v1068_v32  ;;  %v13775_v39 = vcombine.high %v1065_v50, %v1069_v35  ;;  %v1108_v19 = vld [vmem:[#allocation5 + $0x1f60] sm:$0xff]  ;;  %v1109_v23 = vld [vmem:[#allocation5 + $0x1f68] sm:$0xff] }
 0x22a   :  { %10126 = vmatpush1.bf16.msra.mxu0 %v13724_v45  ;;  %10659 = vmatpush1.bf16.msra.mxu1 %v13726_v46  ;;  %v13772_v45 = vcombine.low %v1064_v31, %v1068_v32  ;;  %v13774_v46 = vcombine.low %v1065_v50, %v1069_v35  ;;  %v1112_v31 = vld [vmem:[#allocation5 + $0x1f80] sm:$0xff]  ;;  %v1113_v50 = vld [vmem:[#allocation5 + $0x1f88] sm:$0xff] }
 0x22b   :  { %10127 = vmatprep.subr.bf16.mxu0 %v13733_v48  ;;  %10660 = vmatprep.subr.bf16.mxu1 %v13735_v49  ;;  %v13781_v48 = vcombine.high %v1072_v41, %v1076_v42  ;;  %v13783_v49 = vcombine.high %v1073_v43, %v1077_v44  ;;  %v1116_v32 = vld [vmem:[#allocation5 + $0x1fa0] sm:$0xff]  ;;  %v1117_v35 = vld [vmem:[#allocation5 + $0x1fa8] sm:$0xff] }
 0x22e   :  { %10128 = vmatpush1.bf16.msra.mxu0 %v13732_v57  ;;  %10661 = vmatpush1.bf16.msra.mxu1 %v13734_v59  ;;  %v13780_v57 = vcombine.low %v1072_v41, %v1076_v42  ;;  %v13782_v59 = vcombine.low %v1073_v43, %v1077_v44  ;;  %v1120_v41 = vld [vmem:[#allocation5 + $0x1fc0] sm:$0xff]  ;;  %v1121_v43 = vld [vmem:[#allocation5 + $0x1fc8] sm:$0xff] }
 0x22f   :  { %10129 = vmatprep.subr.bf16.mxu0 %v13741_v20  ;;  %10662 = vmatprep.subr.bf16.mxu1 %v13743_v62  ;;  %v13789_v20 = vcombine.high %v1080_v51, %v1084_v52  ;;  %v13791_v62 = vcombine.high %v1081_v53, %v1085_v55  ;;  %v1124_v42 = vld [vmem:[#allocation5 + $0x1fe0] sm:$0xff]  ;;  %v1125_v44 = vld [vmem:[#allocation5 + $0x1fe8] sm:$0xff] }
 0x232   :  { %10130 = vmatpush1.bf16.msra.mxu0 %v13740_v40  ;;  %10663 = vmatpush1.bf16.msra.mxu1 %v13742_v4  ;;  %v13788_v40 = vcombine.low %v1080_v51, %v1084_v52  ;;  %v13790_v4 = vcombine.low %v1081_v53, %v1085_v55  ;;  %v1128_v51 = vld [vmem:[#allocation5 + $0x2000] sm:$0xff]  ;;  %v1129_v53 = vld [vmem:[#allocation5 + $0x2008] sm:$0xff] }
 0x233   :  { %10131 = vmatprep.subr.bf16.mxu0 %v13749_v5  ;;  %10664 = vmatprep.subr.bf16.mxu1 %v13751_v6  ;;  %v13797_v5 = vcombine.high %v1088_v63, %v1092_v0  ;;  %v13799_v6 = vcombine.high %v1089_v1, %v1093_v2  ;;  %v1132_v52 = vld [vmem:[#allocation5 + $0x2020] sm:$0xff]  ;;  %v1133_v55 = vld [vmem:[#allocation5 + $0x2028] sm:$0xff] }
 0x236   :  { %10132 = vmatpush1.bf16.msra.mxu0 %v13748_v11  ;;  %10665 = vmatpush1.bf16.msra.mxu1 %v13750_v12  ;;  %v13796_v11 = vcombine.low %v1088_v63, %v1092_v0  ;;  %v13798_v12 = vcombine.low %v1089_v1, %v1093_v2  ;;  %v1136_v63 = vld [vmem:[#allocation5 + $0x2040] sm:$0xff]  ;;  %v15291_v1 = vcombine.low %v15279_v24, %v15279_v24  ;;  %v1137_v2 = vld [vmem:[#allocation5 + $0x2048] sm:$0xff] }
 0x237   :  { %10133 = vmatprep.subr.bf16.mxu0 %v13757_v14  ;;  %10666 = vmatprep.subr.bf16.mxu1 %v13759_v15  ;;  %v13805_v14 = vcombine.high %v1096_v7, %v1100_v8  ;;  %v13807_v15 = vcombine.high %v1097_v9, %v1101_v10  ;;  %v1140_v0 = vld [vmem:[#allocation5 + $0x2060] sm:$0xff]  ;;  %v1145_v24 = vld [vmem:[#allocation5 + $0x2088] sm:$0xff] }
 0x23a   :  { %10134 = vmatpush1.bf16.msra.mxu0 %v13756_v27  ;;  %10667 = vmatpush1.bf16.msra.mxu1 %v13758_v28  ;;  %v13804_v27 = vcombine.low %v1096_v7, %v1100_v8  ;;  %v13806_v28 = vcombine.low %v1097_v9, %v1101_v10  ;;  %v13845_v7 = vcombine.high %v1136_v63, %v1140_v0  ;;  %v1144_v9 = vld [vmem:[#allocation5 + $0x2080] sm:$0xff] }
 0x23b   :  { %10135 = vmatprep.subr.bf16.mxu0 %v13765_v60  ;;  %10668 = vmatprep.subr.bf16.mxu1 %v13767_v30  ;;  %v13813_v60 = vcombine.high %v1104_v18, %v1108_v19  ;;  %v13815_v30 = vcombine.high %v1105_v22, %v1109_v23  ;;  %v1148_v10 = vld [vmem:[#allocation5 + $0x20a0] sm:$0xff] }
 0x23e   :  { %10136 = vmatpush1.bf16.msra.mxu0 %v13764_v16  ;;  %10669 = vmatpush1.bf16.msra.mxu1 %v13766_v36  ;;  %v13812_v16 = vcombine.low %v1104_v18, %v1108_v19  ;;  %v13814_v36 = vcombine.low %v1105_v22, %v1109_v23  ;;  %v13853_v18 = vcombine.high %v1144_v9, %v1148_v10  ;;  %v1152_v22 = vld [vmem:[#allocation5 + $0x20c0] sm:$0xff] }
 0x23f   :  { %10137 = vmatprep.subr.bf16.mxu0 %v13773_v38  ;;  %10670 = vmatprep.subr.bf16.mxu1 %v13775_v39  ;;  %v13821_v38 = vcombine.high %v1112_v31, %v1116_v32  ;;  %v13823_v39 = vcombine.high %v1113_v50, %v1117_v35  ;;  %v1156_v23 = vld [vmem:[#allocation5 + $0x20e0] sm:$0xff] }
 0x242   :  { %10138 = vmatpush1.bf16.msra.mxu0 %v13772_v45  ;;  %10671 = vmatpush1.bf16.msra.mxu1 %v13774_v46  ;;  %v13820_v45 = vcombine.low %v1112_v31, %v1116_v32  ;;  %v13822_v46 = vcombine.low %v1113_v50, %v1117_v35  ;;  %v13861_v31 = vcombine.high %v1152_v22, %v1156_v23  ;;  %v1160_v50 = vld [vmem:[#allocation5 + $0x2100] sm:$0xff] }
 0x243   :  { %10139 = vmatprep.subr.bf16.mxu0 %v13781_v48  ;;  %10672 = vmatprep.subr.bf16.mxu1 %v13783_v49  ;;  %v13829_v48 = vcombine.high %v1120_v41, %v1124_v42  ;;  %v13831_v49 = vcombine.high %v1121_v43, %v1125_v44  ;;  %v1164_v35 = vld [vmem:[#allocation5 + $0x2120] sm:$0xff] }
 0x246   :  { %10140 = vmatpush1.bf16.msra.mxu0 %v13780_v57  ;;  %10673 = vmatpush1.bf16.msra.mxu1 %v13782_v59  ;;  %v13828_v57 = vcombine.low %v1120_v41, %v1124_v42  ;;  %v13830_v59 = vcombine.low %v1121_v43, %v1125_v44  ;;  %v13869_v41 = vcombine.high %v1160_v50, %v1164_v35  ;;  %v1168_v43 = vld [vmem:[#allocation5 + $0x2140] sm:$0xff] }
 0x247   :  { %10141 = vmatprep.subr.bf16.mxu0 %v13789_v20  ;;  %10674 = vmatprep.subr.bf16.mxu1 %v13791_v62  ;;  %v13837_v20 = vcombine.high %v1128_v51, %v1132_v52  ;;  %v13839_v62 = vcombine.high %v1129_v53, %v1133_v55  ;;  %v1172_v44 = vld [vmem:[#allocation5 + $0x2160] sm:$0xff] }
 0x24a   :  { %10142 = vmatpush1.bf16.msra.mxu0 %v13788_v40  ;;  %10675 = vmatpush1.bf16.msra.mxu1 %v13790_v4  ;;  %v1141_v40 = vld [vmem:[#allocation5 + $0x2068] sm:$0xff]  ;;  %v15293_v4 = vld [vmem:[#allocation3 + $0x40] sm:$0xff] }
 0x24b   :  { %10143 = vmatprep.subr.bf16.mxu0 %v13797_v5  ;;  %10676 = vmatprep.subr.bf16.mxu1 %v13799_v6  ;;  %v13836_v5 = vcombine.low %v1128_v51, %v1132_v52  ;;  %v13838_v6 = vcombine.low %v1129_v53, %v1133_v55  ;;  %v13847_v8 = vcombine.high %v1137_v2, %v1141_v40  ;;  %v1176_v53 = vld [vmem:[#allocation5 + $0x2180] sm:$0xff] }
 0x24c   :  { %v13877_v51 = vcombine.high %v1168_v43, %v1172_v44  ;;  %v1180_v55 = vld [vmem:[#allocation5 + $0x21a0] sm:$0xff] }
 0x24e   :  { %10144 = vmatpush1.bf16.msra.mxu0 %v13796_v11  ;;  %10677 = vmatpush1.bf16.msra.mxu1 %v13798_v12  ;;  %v15297_v11 = vcombine.high %v15293_v4, %v15293_v4  ;;  %v1149_v12 = vld [vmem:[#allocation5 + $0x20a8] sm:$0xff] }
 0x24f   :  { %10145 = vmatprep.subr.bf16.mxu0 %v13805_v14  ;;  %10678 = vmatprep.subr.bf16.mxu1 %v13807_v15  ;;  %v13844_v14 = vcombine.low %v1136_v63, %v1140_v0  ;;  %v13846_v15 = vcombine.low %v1137_v2, %v1141_v40  ;;  %v13855_v19 = vcombine.high %v1145_v24, %v1149_v12  ;;  %v1184_v2 = vld [vmem:[#allocation5 + $0x21c0] sm:$0xff] }
 0x250   :  { %v13885_v63 = vcombine.high %v1176_v53, %v1180_v55  ;;  %v1188_v40 = vld [vmem:[#allocation5 + $0x21e0] sm:$0xff] }
 0x252   :  { %10146 = vmatpush1.bf16.msra.mxu0 %v13804_v27  ;;  %10679 = vmatpush1.bf16.msra.mxu1 %v13806_v28  ;;  %v1153_v27 = vld [vmem:[#allocation5 + $0x20c8] sm:$0xff] }
 0x253   :  { %10147 = vmatprep.subr.bf16.mxu0 %v13813_v60  ;;  %10680 = vmatprep.subr.bf16.mxu1 %v13815_v30  ;;  %v1157_v28 = vld [vmem:[#allocation5 + $0x20e8] sm:$0xff]  ;;  %v13852_v60 = vcombine.low %v1144_v9, %v1148_v10  ;;  %v13854_v30 = vcombine.low %v1145_v24, %v1149_v12  ;;  %v13893_v9 = vcombine.high %v1184_v2, %v1188_v40  ;;  %v1192_v24 = vld [vmem:[#allocation5 + $0x2200] sm:$0xff] }
 0x254   :  { %v13863_v32 = vcombine.high %v1153_v27, %v1157_v28  ;;  %v1196_v12 = vld [vmem:[#allocation5 + $0x2220] sm:$0xff] }
 0x256   :  { %10148 = vmatpush1.bf16.msra.mxu0 %v13812_v16  ;;  %10681 = vmatpush1.bf16.msra.mxu1 %v13814_v36  ;;  %v1161_v16 = vld [vmem:[#allocation5 + $0x2108] sm:$0xff] }
 0x257   :  { %10149 = vmatprep.subr.bf16.mxu0 %v13821_v38  ;;  %10682 = vmatprep.subr.bf16.mxu1 %v13823_v39  ;;  %v1165_v36 = vld [vmem:[#allocation5 + $0x2128] sm:$0xff]  ;;  %v13860_v38 = vcombine.low %v1152_v22, %v1156_v23  ;;  %v13862_v39 = vcombine.low %v1153_v27, %v1157_v28  ;;  %v13901_v22 = vcombine.high %v1192_v24, %v1196_v12  ;;  %v1200_v27 = vld [vmem:[#allocation5 + $0x2240] sm:$0xff] }
 0x258   :  { %v13871_v42 = vcombine.high %v1161_v16, %v1165_v36  ;;  %v1204_v28 = vld [vmem:[#allocation5 + $0x2260] sm:$0xff] }
 0x25a   :  { %10150 = vmatpush1.bf16.msra.mxu0 %v13820_v45  ;;  %10683 = vmatpush1.bf16.msra.mxu1 %v13822_v46  ;;  %v1169_v45 = vld [vmem:[#allocation5 + $0x2148] sm:$0xff] }
 0x25b   :  { %10151 = vmatprep.subr.bf16.mxu0 %v13829_v48  ;;  %10684 = vmatprep.subr.bf16.mxu1 %v13831_v49  ;;  %v1173_v46 = vld [vmem:[#allocation5 + $0x2168] sm:$0xff]  ;;  %v13868_v48 = vcombine.low %v1160_v50, %v1164_v35  ;;  %v13870_v49 = vcombine.low %v1161_v16, %v1165_v36  ;;  %v13909_v50 = vcombine.high %v1200_v27, %v1204_v28  ;;  %v1208_v16 = vld [vmem:[#allocation5 + $0x2280] sm:$0xff] }
 0x25c   :  { %v13879_v52 = vcombine.high %v1169_v45, %v1173_v46  ;;  %v1212_v36 = vld [vmem:[#allocation5 + $0x22a0] sm:$0xff] }
 0x25e   :  { %10152 = vmatpush1.bf16.msra.mxu0 %v13828_v57  ;;  %10685 = vmatpush1.bf16.msra.mxu1 %v13830_v59  ;;  %v1177_v57 = vld [vmem:[#allocation5 + $0x2188] sm:$0xff] }
 0x25f   :  { %10162 = vmatprep.subr.bf16.mxu0 %v13837_v20  ;;  %10695 = vmatprep.subr.bf16.mxu1 %v13839_v62  ;;  %v1181_v59 = vld [vmem:[#allocation5 + $0x21a8] sm:$0xff]  ;;  %v13876_v20 = vcombine.low %v1168_v43, %v1172_v44  ;;  %v13878_v62 = vcombine.low %v1169_v45, %v1173_v46  ;;  %v13917_v43 = vcombine.high %v1208_v16, %v1212_v36  ;;  %v1216_v45 = vld [vmem:[#allocation5 + $0x22c0] sm:$0xff] }
 0x260   :  { %v13887_v0 = vcombine.high %v1177_v57, %v1181_v59  ;;  %v1220_v46 = vld [vmem:[#allocation5 + $0x22e0] sm:$0xff] }
 0x261   :  { %10154 = vmatmul.mubr.bf16.vlgmr.msra.gmra.mrb[0].mxu0 %v15291_v1  ;;  %10687 = vmatmul.mubr.bf16.vlgmr.msra.gmra.mrb[0].mxu1 %v15291_v1 }
 0x262   :  { %10163 = vmatpush1.bf16.msra.mxu0 %v13836_v5  ;;  %10696 = vmatpush1.bf16.msra.mxu1 %v13838_v6  ;;  %v1185_v5 = vld [vmem:[#allocation5 + $0x21c8] sm:$0xff] }
 0x263   :  { %10164 = vmatprep.subr.bf16.mxu0 %v13845_v7  ;;  %10697 = vmatprep.subr.bf16.mxu1 %v13847_v8  ;;  %v1189_v6 = vld [vmem:[#allocation5 + $0x21e8] sm:$0xff]  ;;  %v13884_v7 = vcombine.low %v1176_v53, %v1180_v55  ;;  %v13886_v8 = vcombine.low %v1177_v57, %v1181_v59  ;;  %v13925_v53 = vcombine.high %v1216_v45, %v1220_v46  ;;  %v1224_v57 = vld [vmem:[#allocation5 + $0x2300] sm:$0xff] }
 0x264   :  { %10194 = vmatprep.mubr.bf16.mxu0 %v15297_v11  ;;  %10727 = vmatprep.mubr.bf16.mxu1 %v15297_v11  ;;  %v13895_v10 = vcombine.high %v1185_v5, %v1189_v6  ;;  %v1228_v59 = vld [vmem:[#allocation5 + $0x2320] sm:$0xff] }
 0x266   :  { %10165 = vmatpush1.bf16.msra.mxu0 %v13844_v14  ;;  %10698 = vmatpush1.bf16.msra.mxu1 %v13846_v15  ;;  %v1193_v14 = vld [vmem:[#allocation5 + $0x2208] sm:$0xff] }
 0x267   :  { %10166 = vmatprep.subr.bf16.mxu0 %v13853_v18  ;;  %10699 = vmatprep.subr.bf16.mxu1 %v13855_v19  ;;  %v1197_v15 = vld [vmem:[#allocation5 + $0x2228] sm:$0xff]  ;;  %v13892_v18 = vcombine.low %v1184_v2, %v1188_v40  ;;  %v13894_v19 = vcombine.low %v1185_v5, %v1189_v6  ;;  %v13933_v2 = vcombine.high %v1224_v57, %v1228_v59  ;;  %v1232_v5 = vld [vmem:[#allocation5 + $0x2340] sm:$0xff] }
 0x268   :  { %v13903_v23 = vcombine.high %v1193_v14, %v1197_v15  ;;  %v1236_v6 = vld [vmem:[#allocation5 + $0x2360] sm:$0xff] }
 0x26a   :  { %10167 = vmatpush1.bf16.msra.mxu0 %v13852_v60  ;;  %10700 = vmatpush1.bf16.msra.mxu1 %v13854_v30  ;;  %v1201_v60 = vld [vmem:[#allocation5 + $0x2248] sm:$0xff] }
 0x26b   :  { %10168 = vmatprep.subr.bf16.mxu0 %v13861_v31  ;;  %10701 = vmatprep.subr.bf16.mxu1 %v13863_v32  ;;  %v1205_v30 = vld [vmem:[#allocation5 + $0x2268] sm:$0xff]  ;;  %v13900_v31 = vcombine.low %v1192_v24, %v1196_v12  ;;  %v13902_v32 = vcombine.low %v1193_v14, %v1197_v15  ;;  %v13941_v24 = vcombine.high %v1232_v5, %v1236_v6  ;;  %v1240_v14 = vld [vmem:[#allocation5 + $0x2380] sm:$0xff] }
 0x26c   :  { %v13911_v35 = vcombine.high %v1201_v60, %v1205_v30  ;;  %v1244_v15 = vld [vmem:[#allocation5 + $0x23a0] sm:$0xff] }
 0x26e   :  { %10169 = vmatpush1.bf16.msra.mxu0 %v13860_v38  ;;  %10702 = vmatpush1.bf16.msra.mxu1 %v13862_v39  ;;  %v1209_v38 = vld [vmem:[#allocation5 + $0x2288] sm:$0xff] }
 0x26f   :  { %10170 = vmatprep.subr.bf16.mxu0 %v13869_v41  ;;  %10703 = vmatprep.subr.bf16.mxu1 %v13871_v42  ;;  %v1213_v39 = vld [vmem:[#allocation5 + $0x22a8] sm:$0xff]  ;;  %v13908_v41 = vcombine.low %v1200_v27, %v1204_v28  ;;  %v13910_v42 = vcombine.low %v1201_v60, %v1205_v30  ;;  %v13949_v27 = vcombine.high %v1240_v14, %v1244_v15  ;;  %v1248_v60 = vld [vmem:[#allocation5 + $0x23c0] sm:$0xff] }
 0x270   :  { %v13919_v44 = vcombine.high %v1209_v38, %v1213_v39  ;;  %v1252_v30 = vld [vmem:[#allocation5 + $0x23e0] sm:$0xff] }
 0x272   :  { %10171 = vmatpush1.bf16.msra.mxu0 %v13868_v48  ;;  %10704 = vmatpush1.bf16.msra.mxu1 %v13870_v49  ;;  %v1217_v48 = vld [vmem:[#allocation5 + $0x22c8] sm:$0xff] }
 0x273   :  { %10172 = vmatprep.subr.bf16.mxu0 %v13877_v51  ;;  %10705 = vmatprep.subr.bf16.mxu1 %v13879_v52  ;;  %v1221_v49 = vld [vmem:[#allocation5 + $0x22e8] sm:$0xff]  ;;  %v13916_v51 = vcombine.low %v1208_v16, %v1212_v36  ;;  %v13918_v52 = vcombine.low %v1209_v38, %v1213_v39  ;;  %v13957_v16 = vcombine.high %v1248_v60, %v1252_v30  ;;  %v1256_v38 = vld [vmem:[#allocation5 + $0x2400] sm:$0xff] }
 0x274   :  { %v13927_v55 = vcombine.high %v1217_v48, %v1221_v49  ;;  %v1260_v39 = vld [vmem:[#allocation5 + $0x2420] sm:$0xff] }
 0x276   :  { %10173 = vmatpush1.bf16.msra.mxu0 %v13876_v20  ;;  %10706 = vmatpush1.bf16.msra.mxu1 %v13878_v62  ;;  %v1225_v20 = vld [vmem:[#allocation5 + $0x2308] sm:$0xff] }
 0x277   :  { %10174 = vmatprep.subr.bf16.mxu0 %v13885_v63  ;;  %10707 = vmatprep.subr.bf16.mxu1 %v13887_v0  ;;  %v1229_v62 = vld [vmem:[#allocation5 + $0x2328] sm:$0xff]  ;;  %v13924_v63 = vcombine.low %v1216_v45, %v1220_v46  ;;  %v13926_v0 = vcombine.low %v1217_v48, %v1221_v49  ;;  %v13965_v45 = vcombine.high %v1256_v38, %v1260_v39  ;;  %v1264_v48 = vld [vmem:[#allocation5 + $0x2440] sm:$0xff] }
 0x278   :  { %v13935_v40 = vcombine.high %v1225_v20, %v1229_v62  ;;  %v1268_v49 = vld [vmem:[#allocation5 + $0x2460] sm:$0xff] }
 0x27a   :  { %10175 = vmatpush1.bf16.msra.mxu0 %v13884_v7  ;;  %10708 = vmatpush1.bf16.msra.mxu1 %v13886_v8  ;;  %v1233_v7 = vld [vmem:[#allocation5 + $0x2348] sm:$0xff] }
 0x27b   :  { %10176 = vmatprep.subr.bf16.mxu0 %v13893_v9  ;;  %10709 = vmatprep.subr.bf16.mxu1 %v13895_v10  ;;  %v1237_v8 = vld [vmem:[#allocation5 + $0x2368] sm:$0xff]  ;;  %v13932_v9 = vcombine.low %v1224_v57, %v1228_v59  ;;  %v13934_v10 = vcombine.low %v1225_v20, %v1229_v62  ;;  %v13964_v57 = vcombine.low %v1256_v38, %v1260_v39 }
 0x27c   :  { %v13943_v12 = vcombine.high %v1233_v7, %v1237_v8  ;;  %v13973_v20 = vcombine.high %v1264_v48, %v1268_v49 }
 0x27e   :  { %10177 = vmatpush1.bf16.msra.mxu0 %v13892_v18  ;;  %10710 = vmatpush1.bf16.msra.mxu1 %v13894_v19  ;;  %v1241_v18 = vld [vmem:[#allocation5 + $0x2388] sm:$0xff] }
 0x27f   :  { %10178 = vmatprep.subr.bf16.mxu0 %v13901_v22  ;;  %10711 = vmatprep.subr.bf16.mxu1 %v13903_v23  ;;  %v1245_v19 = vld [vmem:[#allocation5 + $0x23a8] sm:$0xff]  ;;  %v13940_v22 = vcombine.low %v1232_v5, %v1236_v6  ;;  %v13942_v23 = vcombine.low %v1233_v7, %v1237_v8  ;;  %v13972_v5 = vcombine.low %v1264_v48, %v1268_v49 }
 0x280   :  { %v13951_v28 = vcombine.high %v1241_v18, %v1245_v19 }
 0x282   :  { %10179 = vmatpush1.bf16.msra.mxu0 %v13900_v31  ;;  %10712 = vmatpush1.bf16.msra.mxu1 %v13902_v32  ;;  %v1249_v31 = vld [vmem:[#allocation5 + $0x23c8] sm:$0xff] }
 0x283   :  { %10180 = vmatprep.subr.bf16.mxu0 %v13909_v50  ;;  %10713 = vmatprep.subr.bf16.mxu1 %v13911_v35  ;;  %v1253_v32 = vld [vmem:[#allocation5 + $0x23e8] sm:$0xff]  ;;  %v13948_v50 = vcombine.low %v1240_v14, %v1244_v15  ;;  %v13950_v35 = vcombine.low %v1241_v18, %v1245_v19 }
 0x284   :  { %v13959_v36 = vcombine.high %v1249_v31, %v1253_v32 }
 0x286   :  { %10181 = vmatpush1.bf16.msra.mxu0 %v13908_v41  ;;  %10714 = vmatpush1.bf16.msra.mxu1 %v13910_v42  ;;  %v1257_v41 = vld [vmem:[#allocation5 + $0x2408] sm:$0xff] }
 0x287   :  { %10182 = vmatprep.subr.bf16.mxu0 %v13917_v43  ;;  %10715 = vmatprep.subr.bf16.mxu1 %v13919_v44  ;;  %v1261_v42 = vld [vmem:[#allocation5 + $0x2428] sm:$0xff]  ;;  %v13956_v43 = vcombine.low %v1248_v60, %v1252_v30  ;;  %v13958_v44 = vcombine.low %v1249_v31, %v1253_v32 }
 0x288   :  { %v13967_v46 = vcombine.high %v1257_v41, %v1261_v42  ;;  %v13966_v59 = vcombine.low %v1257_v41, %v1261_v42 }
 0x28a   :  { %10183 = vmatpush1.bf16.msra.mxu0 %v13916_v51  ;;  %10716 = vmatpush1.bf16.msra.mxu1 %v13918_v52  ;;  %v15305_v51 = vcombine.low %v15293_v4, %v15293_v4  ;;  %v1265_v52 = vld [vmem:[#allocation5 + $0x2448] sm:$0xff] }
 0x28b   :  { %10184 = vmatprep.subr.bf16.mxu0 %v13925_v53  ;;  %10717 = vmatprep.subr.bf16.mxu1 %v13927_v55  ;;  %v1269_v53 = vld [vmem:[#allocation5 + $0x2468] sm:$0xff] }
 0x28c   :  { %v15307_v55 = vld [vmem:[#allocation3 + $0x48] sm:$0xff]  ;;  %v13975_v62 = vcombine.high %v1265_v52, %v1269_v53  ;;  %v13974_v6 = vcombine.low %v1265_v52, %v1269_v53 }
 0x28d   :  { %v1273_v4 = vld [vmem:[#allocation5 + $0x2488] sm:$0xff] }
 0x28e   :  { %10185 = vmatpush1.bf16.msra.mxu0 %v13924_v63  ;;  %10718 = vmatpush1.bf16.msra.mxu1 %v13926_v0  ;;  %v1272_v63 = vld [vmem:[#allocation5 + $0x2480] sm:$0xff] }
 0x28f   :  { %10186 = vmatprep.subr.bf16.mxu0 %v13933_v2  ;;  %10719 = vmatprep.subr.bf16.mxu1 %v13935_v40  ;;  %v1276_v0 = vld [vmem:[#allocation5 + $0x24a0] sm:$0xff]  ;;  %v15311_v2 = vcombine.high %v15307_v55, %v15307_v55  ;;  %v1277_v40 = vld [vmem:[#allocation5 + $0x24a8] sm:$0xff] }
 0x290   :  { %v13981_v7 = vcombine.high %v1272_v63, %v1276_v0  ;;  %v13983_v8 = vcombine.high %v1273_v4, %v1277_v40  ;;  %v13980_v14 = vcombine.low %v1272_v63, %v1276_v0  ;;  %v13982_v15 = vcombine.low %v1273_v4, %v1277_v40 }
 0x292   :  { %10187 = vmatpush1.bf16.msra.mxu0 %v13932_v9  ;;  %10720 = vmatpush1.bf16.msra.mxu1 %v13934_v10  ;;  %v1280_v9 = vld [vmem:[#allocation5 + $0x24c0] sm:$0xff] }
 0x293   :  { %10188 = vmatprep.subr.bf16.mxu0 %v13941_v24  ;;  %10721 = vmatprep.subr.bf16.mxu1 %v13943_v12  ;;  %v1284_v10 = vld [vmem:[#allocation5 + $0x24e0] sm:$0xff]  ;;  %v1281_v24 = vld [vmem:[#allocation5 + $0x24c8] sm:$0xff] }
 0x294   :  { %v1285_v12 = vld [vmem:[#allocation5 + $0x24e8] sm:$0xff]  ;;  %v13989_v18 = vcombine.high %v1280_v9, %v1284_v10  ;;  %v13988_v60 = vcombine.low %v1280_v9, %v1284_v10 }
 0x295   :  { %v13991_v19 = vcombine.high %v1281_v24, %v1285_v12  ;;  %v13990_v30 = vcombine.low %v1281_v24, %v1285_v12 }
 0x296   :  { %10189 = vmatpush1.bf16.msra.mxu0 %v13940_v22  ;;  %10722 = vmatpush1.bf16.msra.mxu1 %v13942_v23  ;;  %v1288_v22 = vld [vmem:[#allocation5 + $0x2500] sm:$0xff] }
 0x297   :  { %10190 = vmatprep.subr.bf16.mxu0 %v13949_v27  ;;  %10723 = vmatprep.subr.bf16.mxu1 %v13951_v28  ;;  %v1292_v23 = vld [vmem:[#allocation5 + $0x2520] sm:$0xff]  ;;  %v1289_v27 = vld [vmem:[#allocation5 + $0x2508] sm:$0xff] }
 0x298   :  { %v1293_v28 = vld [vmem:[#allocation5 + $0x2528] sm:$0xff]  ;;  %v13997_v31 = vcombine.high %v1288_v22, %v1292_v23  ;;  %v13996_v38 = vcombine.low %v1288_v22, %v1292_v23 }
 0x299   :  { %v13999_v32 = vcombine.high %v1289_v27, %v1293_v28  ;;  %v13998_v39 = vcombine.low %v1289_v27, %v1293_v28 }
 0x29a   :  { %10191 = vmatpush1.bf16.msra.mxu0 %v13948_v50  ;;  %10724 = vmatpush1.bf16.msra.mxu1 %v13950_v35  ;;  %v1296_v50 = vld [vmem:[#allocation5 + $0x2540] sm:$0xff] }
 0x29b   :  { %10192 = vmatprep.subr.bf16.mxu0 %v13957_v16  ;;  %10725 = vmatprep.subr.bf16.mxu1 %v13959_v36  ;;  %v1300_v35 = vld [vmem:[#allocation5 + $0x2560] sm:$0xff]  ;;  %v1297_v16 = vld [vmem:[#allocation5 + $0x2548] sm:$0xff] }
 0x29c   :  { %v1301_v36 = vld [vmem:[#allocation5 + $0x2568] sm:$0xff]  ;;  %v14005_v41 = vcombine.high %v1296_v50, %v1300_v35  ;;  %v14004_v48 = vcombine.low %v1296_v50, %v1300_v35 }
 0x29d   :  { %v14007_v42 = vcombine.high %v1297_v16, %v1301_v36  ;;  %v14006_v49 = vcombine.low %v1297_v16, %v1301_v36 }
 0x29e   :  { %10193 = vmatpush1.bf16.msra.mxu0 %v13956_v43  ;;  %10726 = vmatpush1.bf16.msra.mxu1 %v13958_v44  ;;  %v1304_v43 = vld [vmem:[#allocation5 + $0x2580] sm:$0xff] }
 0x29f   :  { %10203 = vmatprep.subr.bf16.mxu0 %v13965_v45  ;;  %10736 = vmatprep.subr.bf16.mxu1 %v13967_v46  ;;  %v1308_v44 = vld [vmem:[#allocation5 + $0x25a0] sm:$0xff]  ;;  %v1305_v45 = vld [vmem:[#allocation5 + $0x2588] sm:$0xff] }
 0x2a0   :  { %v1309_v46 = vld [vmem:[#allocation5 + $0x25a8] sm:$0xff]  ;;  %v14013_v52 = vcombine.high %v1304_v43, %v1308_v44  ;;  %v14012_v63 = vcombine.low %v1304_v43, %v1308_v44 }
 0x2a1   :  { %10195 = vmatmul.mubr.bf16.vlgmr.msra.gmra.mrb[0].mxu0 %v15305_v51  ;;  %10728 = vmatmul.mubr.bf16.vlgmr.msra.gmra.mrb[0].mxu1 %v15305_v51  ;;  %v14015_v53 = vcombine.high %v1305_v45, %v1309_v46  ;;  %v14014_v0 = vcombine.low %v1305_v45, %v1309_v46 }
 0x2a2   :  { %10204 = vmatpush1.bf16.msra.mxu0 %v13964_v57  ;;  %10737 = vmatpush1.bf16.msra.mxu1 %v13966_v59  ;;  %v1312_v57 = vld [vmem:[#allocation5 + $0x25c0] sm:$0xff] }
 0x2a3   :  { %10205 = vmatprep.subr.bf16.mxu0 %v13973_v20  ;;  %10738 = vmatprep.subr.bf16.mxu1 %v13975_v62  ;;  %v1316_v59 = vld [vmem:[#allocation5 + $0x25e0] sm:$0xff]  ;;  %v1313_v20 = vld [vmem:[#allocation5 + $0x25c8] sm:$0xff] }
 0x2a4   :  { %10235 = vmatprep.mubr.bf16.mxu0 %v15311_v2  ;;  %10768 = vmatprep.mubr.bf16.mxu1 %v15311_v2  ;;  %v1317_v62 = vld [vmem:[#allocation5 + $0x25e8] sm:$0xff]  ;;  %v14021_v4 = vcombine.high %v1312_v57, %v1316_v59  ;;  %v14020_v9 = vcombine.low %v1312_v57, %v1316_v59 }
 0x2a5   :  { %v14023_v40 = vcombine.high %v1313_v20, %v1317_v62  ;;  %v14022_v10 = vcombine.low %v1313_v20, %v1317_v62 }
 0x2a6   :  { %10206 = vmatpush1.bf16.msra.mxu0 %v13972_v5  ;;  %10739 = vmatpush1.bf16.msra.mxu1 %v13974_v6  ;;  %v1320_v5 = vld [vmem:[#allocation5 + $0x2600] sm:$0xff] }
 0x2a7   :  { %10207 = vmatprep.subr.bf16.mxu0 %v13981_v7  ;;  %10740 = vmatprep.subr.bf16.mxu1 %v13983_v8  ;;  %v1324_v6 = vld [vmem:[#allocation5 + $0x2620] sm:$0xff]  ;;  %v1321_v7 = vld [vmem:[#allocation5 + $0x2608] sm:$0xff] }
 0x2a8   :  { %v1325_v8 = vld [vmem:[#allocation5 + $0x2628] sm:$0xff]  ;;  %v14029_v24 = vcombine.high %v1320_v5, %v1324_v6  ;;  %v14028_v22 = vcombine.low %v1320_v5, %v1324_v6 }
 0x2a9   :  { %v14031_v12 = vcombine.high %v1321_v7, %v1325_v8  ;;  %v14030_v23 = vcombine.low %v1321_v7, %v1325_v8 }
 0x2aa   :  { %10208 = vmatpush1.bf16.msra.mxu0 %v13980_v14  ;;  %10741 = vmatpush1.bf16.msra.mxu1 %v13982_v15  ;;  %v1328_v14 = vld [vmem:[#allocation5 + $0x2640] sm:$0xff] }
 0x2ab   :  { %10209 = vmatprep.subr.bf16.mxu0 %v13989_v18  ;;  %10742 = vmatprep.subr.bf16.mxu1 %v13991_v19  ;;  %v1332_v15 = vld [vmem:[#allocation5 + $0x2660] sm:$0xff]  ;;  %v1329_v18 = vld [vmem:[#allocation5 + $0x2648] sm:$0xff] }
 0x2ac   :  { %v1333_v19 = vld [vmem:[#allocation5 + $0x2668] sm:$0xff]  ;;  %v14037_v27 = vcombine.high %v1328_v14, %v1332_v15  ;;  %v14036_v50 = vcombine.low %v1328_v14, %v1332_v15 }
 0x2ad   :  { %v14039_v28 = vcombine.high %v1329_v18, %v1333_v19  ;;  %v14038_v35 = vcombine.low %v1329_v18, %v1333_v19 }
 0x2ae   :  { %10210 = vmatpush1.bf16.msra.mxu0 %v13988_v60  ;;  %10743 = vmatpush1.bf16.msra.mxu1 %v13990_v30  ;;  %v1336_v60 = vld [vmem:[#allocation5 + $0x2680] sm:$0xff] }
 0x2af   :  { %10211 = vmatprep.subr.bf16.mxu0 %v13997_v31  ;;  %10744 = vmatprep.subr.bf16.mxu1 %v13999_v32  ;;  %v1340_v30 = vld [vmem:[#allocation5 + $0x26a0] sm:$0xff]  ;;  %v1337_v31 = vld [vmem:[#allocation5 + $0x2688] sm:$0xff] }
 0x2b0   :  { %v1341_v32 = vld [vmem:[#allocation5 + $0x26a8] sm:$0xff]  ;;  %v14045_v16 = vcombine.high %v1336_v60, %v1340_v30  ;;  %v14044_v43 = vcombine.low %v1336_v60, %v1340_v30 }
 0x2b1   :  { %v14047_v36 = vcombine.high %v1337_v31, %v1341_v32  ;;  %v14046_v44 = vcombine.low %v1337_v31, %v1341_v32 }
 0x2b2   :  { %10212 = vmatpush1.bf16.msra.mxu0 %v13996_v38  ;;  %10745 = vmatpush1.bf16.msra.mxu1 %v13998_v39  ;;  %v1344_v38 = vld [vmem:[#allocation5 + $0x26c0] sm:$0xff] }
 0x2b3   :  { %10213 = vmatprep.subr.bf16.mxu0 %v14005_v41  ;;  %10746 = vmatprep.subr.bf16.mxu1 %v14007_v42  ;;  %v1348_v39 = vld [vmem:[#allocation5 + $0x26e0] sm:$0xff]  ;;  %v1345_v41 = vld [vmem:[#allocation5 + $0x26c8] sm:$0xff] }
 0x2b4   :  { %v1349_v42 = vld [vmem:[#allocation5 + $0x26e8] sm:$0xff]  ;;  %v14053_v45 = vcombine.high %v1344_v38, %v1348_v39  ;;  %v14052_v57 = vcombine.low %v1344_v38, %v1348_v39 }
 0x2b5   :  { %v14055_v46 = vcombine.high %v1345_v41, %v1349_v42  ;;  %v14054_v59 = vcombine.low %v1345_v41, %v1349_v42 }
 0x2b6   :  { %10214 = vmatpush1.bf16.msra.mxu0 %v14004_v48  ;;  %10747 = vmatpush1.bf16.msra.mxu1 %v14006_v49  ;;  %v1352_v48 = vld [vmem:[#allocation5 + $0x2700] sm:$0xff] }
 0x2b7   :  { %10215 = vmatprep.subr.bf16.mxu0 %v14013_v52  ;;  %10748 = vmatprep.subr.bf16.mxu1 %v14015_v53  ;;  %v1356_v49 = vld [vmem:[#allocation5 + $0x2720] sm:$0xff]  ;;  %v1353_v52 = vld [vmem:[#allocation5 + $0x2708] sm:$0xff] }
 0x2b8   :  { %v1357_v53 = vld [vmem:[#allocation5 + $0x2728] sm:$0xff]  ;;  %v14061_v20 = vcombine.high %v1352_v48, %v1356_v49  ;;  %v14060_v5 = vcombine.low %v1352_v48, %v1356_v49 }
 0x2b9   :  { %v14063_v62 = vcombine.high %v1353_v52, %v1357_v53  ;;  %v14062_v6 = vcombine.low %v1353_v52, %v1357_v53  ;;  %v1397_v48 = vld [vmem:[#allocation5 + $0x2868] sm:$0xff] }
 0x2ba   :  { %10216 = vmatpush1.bf16.msra.mxu0 %v14012_v63  ;;  %10749 = vmatpush1.bf16.msra.mxu1 %v14014_v0  ;;  %v1360_v63 = vld [vmem:[#allocation5 + $0x2740] sm:$0xff]  ;;  %v15321_v49 = vld [vmem:[#allocation3 + $0x50] sm:$0xff] }
 0x2bb   :  { %10217 = vmatprep.subr.bf16.mxu0 %v14021_v4  ;;  %10750 = vmatprep.subr.bf16.mxu1 %v14023_v40  ;;  %v1364_v0 = vld [vmem:[#allocation5 + $0x2760] sm:$0xff]  ;;  %v1361_v4 = vld [vmem:[#allocation5 + $0x2748] sm:$0xff] }
 0x2bc   :  { %v1365_v40 = vld [vmem:[#allocation5 + $0x2768] sm:$0xff]  ;;  %v14069_v7 = vcombine.high %v1360_v63, %v1364_v0  ;;  %v14068_v14 = vcombine.low %v1360_v63, %v1364_v0  ;;  %v15325_v63 = vcombine.high %v15321_v49, %v15321_v49 }
 0x2bd   :  { %v14071_v8 = vcombine.high %v1361_v4, %v1365_v40  ;;  %v14070_v15 = vcombine.low %v1361_v4, %v1365_v40  ;;  %v1405_v0 = vld [vmem:[#allocation5 + $0x28a8] sm:$0xff] }
 0x2be   :  { %10218 = vmatpush1.bf16.msra.mxu0 %v14020_v9  ;;  %10751 = vmatpush1.bf16.msra.mxu1 %v14022_v10  ;;  %v1368_v9 = vld [vmem:[#allocation5 + $0x2780] sm:$0xff] }
 0x2bf   :  { %10219 = vmatprep.subr.bf16.mxu0 %v14029_v24  ;;  %10752 = vmatprep.subr.bf16.mxu1 %v14031_v12  ;;  %v1372_v10 = vld [vmem:[#allocation5 + $0x27a0] sm:$0xff]  ;;  %v1369_v24 = vld [vmem:[#allocation5 + $0x2788] sm:$0xff] }
 0x2c0   :  { %v1373_v12 = vld [vmem:[#allocation5 + $0x27a8] sm:$0xff]  ;;  %v14077_v18 = vcombine.high %v1368_v9, %v1372_v10  ;;  %v14076_v60 = vcombine.low %v1368_v9, %v1372_v10 }
 0x2c1   :  { %v14079_v19 = vcombine.high %v1369_v24, %v1373_v12  ;;  %v14078_v30 = vcombine.low %v1369_v24, %v1373_v12  ;;  %v1409_v9 = vld [vmem:[#allocation5 + $0x28c8] sm:$0xff] }
 0x2c2   :  { %10220 = vmatpush1.bf16.msra.mxu0 %v14028_v22  ;;  %10753 = vmatpush1.bf16.msra.mxu1 %v14030_v23  ;;  %v1376_v22 = vld [vmem:[#allocation5 + $0x27c0] sm:$0xff]  ;;  %v1413_v10 = vld [vmem:[#allocation5 + $0x28e8] sm:$0xff] }
 0x2c3   :  { %10221 = vmatprep.subr.bf16.mxu0 %v14037_v27  ;;  %10754 = vmatprep.subr.bf16.mxu1 %v14039_v28  ;;  %v1380_v23 = vld [vmem:[#allocation5 + $0x27e0] sm:$0xff]  ;;  %v1377_v27 = vld [vmem:[#allocation5 + $0x27c8] sm:$0xff] }
 0x2c4   :  { %v1381_v28 = vld [vmem:[#allocation5 + $0x27e8] sm:$0xff]  ;;  %v14085_v31 = vcombine.high %v1376_v22, %v1380_v23  ;;  %v14084_v38 = vcombine.low %v1376_v22, %v1380_v23 }
 0x2c5   :  { %v14087_v32 = vcombine.high %v1377_v27, %v1381_v28  ;;  %v14086_v39 = vcombine.low %v1377_v27, %v1381_v28  ;;  %v1417_v22 = vld [vmem:[#allocation5 + $0x2908] sm:$0xff]  ;;  %v14118_v28 = vcombine.low %v1409_v9, %v1413_v10 }
 0x2c6   :  { %10222 = vmatpush1.bf16.msra.mxu0 %v14036_v50  ;;  %10755 = vmatpush1.bf16.msra.mxu1 %v14038_v35  ;;  %v1384_v50 = vld [vmem:[#allocation5 + $0x2800] sm:$0xff]  ;;  %v1421_v23 = vld [vmem:[#allocation5 + $0x2928] sm:$0xff] }
 0x2c7   :  { %10223 = vmatprep.subr.bf16.mxu0 %v14045_v16  ;;  %10756 = vmatprep.subr.bf16.mxu1 %v14047_v36  ;;  %v1388_v35 = vld [vmem:[#allocation5 + $0x2820] sm:$0xff]  ;;  %v1385_v16 = vld [vmem:[#allocation5 + $0x2808] sm:$0xff] }
 0x2c8   :  { %v1389_v36 = vld [vmem:[#allocation5 + $0x2828] sm:$0xff]  ;;  %v14093_v41 = vcombine.high %v1384_v50, %v1388_v35  ;;  %v14092_v52 = vcombine.low %v1384_v50, %v1388_v35 }
 0x2c9   :  { %v14095_v42 = vcombine.high %v1385_v16, %v1389_v36  ;;  %v14094_v53 = vcombine.low %v1385_v16, %v1389_v36  ;;  %v1425_v50 = vld [vmem:[#allocation5 + $0x2948] sm:$0xff]  ;;  %v14126_v36 = vcombine.low %v1417_v22, %v1421_v23 }
 0x2ca   :  { %10224 = vmatpush1.bf16.msra.mxu0 %v14044_v43  ;;  %10757 = vmatpush1.bf16.msra.mxu1 %v14046_v44  ;;  %v1392_v43 = vld [vmem:[#allocation5 + $0x2840] sm:$0xff]  ;;  %v1429_v35 = vld [vmem:[#allocation5 + $0x2968] sm:$0xff] }
 0x2cb   :  { %10225 = vmatprep.subr.bf16.mxu0 %v14053_v45  ;;  %10758 = vmatprep.subr.bf16.mxu1 %v14055_v46  ;;  %v1396_v44 = vld [vmem:[#allocation5 + $0x2860] sm:$0xff]  ;;  %v15319_v45 = vcombine.low %v15307_v55, %v15307_v55  ;;  %v1393_v46 = vld [vmem:[#allocation5 + $0x2848] sm:$0xff] }
 0x2cc   :  { %v1401_v55 = vld [vmem:[#allocation5 + $0x2888] sm:$0xff]  ;;  %v14100_v4 = vcombine.low %v1392_v43, %v1396_v44  ;;  %v14102_v40 = vcombine.low %v1393_v46, %v1397_v48 }
 0x2cd   :  { %v14110_v12 = vcombine.low %v1401_v55, %v1405_v0 }
 0x2ce   :  { %10226 = vmatpush1.bf16.msra.mxu0 %v14052_v57  ;;  %10759 = vmatpush1.bf16.msra.mxu1 %v14054_v59  ;;  %v14101_v57 = vcombine.high %v1392_v43, %v1396_v44  ;;  %v14103_v59 = vcombine.high %v1393_v46, %v1397_v48  ;;  %v1433_v43 = vld [vmem:[#allocation5 + $0x2988] sm:$0xff]  ;;  %v14134_v48 = vcombine.low %v1425_v50, %v1429_v35 }
 0x2cf   :  { %10227 = vmatprep.subr.bf16.mxu0 %v14061_v20  ;;  %10760 = vmatprep.subr.bf16.mxu1 %v14063_v62  ;;  %v1400_v20 = vld [vmem:[#allocation5 + $0x2880] sm:$0xff]  ;;  %v1437_v44 = vld [vmem:[#allocation5 + $0x29a8] sm:$0xff] }
 0x2d0   :  { %v1404_v62 = vld [vmem:[#allocation5 + $0x28a0] sm:$0xff] }
 0x2d1   :  { %v14108_v24 = vcombine.low %v1400_v20, %v1404_v62 }
 0x2d2   :  { %10228 = vmatpush1.bf16.msra.mxu0 %v14060_v5  ;;  %10761 = vmatpush1.bf16.msra.mxu1 %v14062_v6  ;;  %v14109_v5 = vcombine.high %v1400_v20, %v1404_v62  ;;  %v14111_v6 = vcombine.high %v1401_v55, %v1405_v0  ;;  %v1441_v20 = vld [vmem:[#allocation5 + $0x29c8] sm:$0xff]  ;;  %v14142_v0 = vcombine.low %v1433_v43, %v1437_v44 }
 0x2d3   :  { %10229 = vmatprep.subr.bf16.mxu0 %v14069_v7  ;;  %10762 = vmatprep.subr.bf16.mxu1 %v14071_v8  ;;  %v1408_v7 = vld [vmem:[#allocation5 + $0x28c0] sm:$0xff]  ;;  %v1445_v62 = vld [vmem:[#allocation5 + $0x29e8] sm:$0xff] }
 0x2d4   :  { %v1412_v8 = vld [vmem:[#allocation5 + $0x28e0] sm:$0xff] }
 0x2d5   :  { %v14116_v27 = vcombine.low %v1408_v7, %v1412_v8 }
 0x2d6   :  { %10230 = vmatpush1.bf16.msra.mxu0 %v14068_v14  ;;  %10763 = vmatpush1.bf16.msra.mxu1 %v14070_v15  ;;  %v14117_v14 = vcombine.high %v1408_v7, %v1412_v8  ;;  %v14119_v15 = vcombine.high %v1409_v9, %v1413_v10  ;;  %v1449_v7 = vld [vmem:[#allocation5 + $0x2a08] sm:$0xff]  ;;  %v14150_v10 = vcombine.low %v1441_v20, %v1445_v62 }
 0x2d7   :  { %10231 = vmatprep.subr.bf16.mxu0 %v14077_v18  ;;  %10764 = vmatprep.subr.bf16.mxu1 %v14079_v19  ;;  %v1416_v18 = vld [vmem:[#allocation5 + $0x2900] sm:$0xff]  ;;  %v1453_v8 = vld [vmem:[#allocation5 + $0x2a28] sm:$0xff] }
 0x2d8   :  { %v1420_v19 = vld [vmem:[#allocation5 + $0x2920] sm:$0xff] }
 0x2d9   :  { %v14124_v16 = vcombine.low %v1416_v18, %v1420_v19 }
 0x2da   :  { %10232 = vmatpush1.bf16.msra.mxu0 %v14076_v60  ;;  %10765 = vmatpush1.bf16.msra.mxu1 %v14078_v30  ;;  %v14125_v60 = vcombine.high %v1416_v18, %v1420_v19  ;;  %v14127_v30 = vcombine.high %v1417_v22, %v1421_v23  ;;  %v1457_v18 = vld [vmem:[#allocation5 + $0x2a48] sm:$0xff]  ;;  %v14158_v23 = vcombine.low %v1449_v7, %v1453_v8 }
 0x2db   :  { %10233 = vmatprep.subr.bf16.mxu0 %v14085_v31  ;;  %10766 = vmatprep.subr.bf16.mxu1 %v14087_v32  ;;  %v1424_v31 = vld [vmem:[#allocation5 + $0x2940] sm:$0xff]  ;;  %v1461_v19 = vld [vmem:[#allocation5 + $0x2a68] sm:$0xff] }
 0x2dc   :  { %v1428_v32 = vld [vmem:[#allocation5 + $0x2960] sm:$0xff] }
 0x2dd   :  { %v14132_v46 = vcombine.low %v1424_v31, %v1428_v32 }
 0x2de   :  { %10234 = vmatpush1.bf16.msra.mxu0 %v14084_v38  ;;  %10767 = vmatpush1.bf16.msra.mxu1 %v14086_v39  ;;  %v14133_v38 = vcombine.high %v1424_v31, %v1428_v32  ;;  %v14135_v39 = vcombine.high %v1425_v50, %v1429_v35  ;;  %v1465_v31 = vld [vmem:[#allocation5 + $0x2a88] sm:$0xff]  ;;  %v14166_v35 = vcombine.low %v1457_v18, %v1461_v19 }
 0x2df   :  { %10244 = vmatprep.subr.bf16.mxu0 %v14093_v41  ;;  %10777 = vmatprep.subr.bf16.mxu1 %v14095_v42  ;;  %v1432_v41 = vld [vmem:[#allocation5 + $0x2980] sm:$0xff]  ;;  %v1469_v32 = vld [vmem:[#allocation5 + $0x2aa8] sm:$0xff] }
 0x2e0   :  { %v1436_v42 = vld [vmem:[#allocation5 + $0x29a0] sm:$0xff] }
 0x2e1   :  { %10236 = vmatmul.mubr.bf16.vlgmr.msra.gmra.mrb[0].mxu0 %v15319_v45  ;;  %10769 = vmatmul.mubr.bf16.vlgmr.msra.gmra.mrb[0].mxu1 %v15319_v45  ;;  %v14140_v55 = vcombine.low %v1432_v41, %v1436_v42 }
 0x2e2   :  { %10245 = vmatpush1.bf16.msra.mxu0 %v14092_v52  ;;  %10778 = vmatpush1.bf16.msra.mxu1 %v14094_v53  ;;  %v14141_v52 = vcombine.high %v1432_v41, %v1436_v42  ;;  %v14143_v53 = vcombine.high %v1433_v43, %v1437_v44  ;;  %v1473_v41 = vld [vmem:[#allocation5 + $0x2ac8] sm:$0xff]  ;;  %v14174_v44 = vcombine.low %v1465_v31, %v1469_v32 }
 0x2e3   :  { %10246 = vmatprep.subr.bf16.mxu0 %v14101_v57  ;;  %10779 = vmatprep.subr.bf16.mxu1 %v14103_v59  ;;  %v1440_v57 = vld [vmem:[#allocation5 + $0x29c0] sm:$0xff]  ;;  %v1477_v42 = vld [vmem:[#allocation5 + $0x2ae8] sm:$0xff] }
 0x2e4   :  { %10276 = vmatprep.mubr.bf16.mxu0 %v15325_v63  ;;  %10809 = vmatprep.mubr.bf16.mxu1 %v15325_v63  ;;  %v1444_v59 = vld [vmem:[#allocation5 + $0x29e0] sm:$0xff] }
 0x2e5   :  { %v14148_v9 = vcombine.low %v1440_v57, %v1444_v59 }
 0x2e6   :  { %10247 = vmatpush1.bf16.msra.mxu0 %v14100_v4  ;;  %10780 = vmatpush1.bf16.msra.mxu1 %v14102_v40  ;;  %v14149_v4 = vcombine.high %v1440_v57, %v1444_v59  ;;  %v14151_v40 = vcombine.high %v1441_v20, %v1445_v62  ;;  %v1481_v57 = vld [vmem:[#allocation5 + $0x2b08] sm:$0xff]  ;;  %v14182_v62 = vcombine.low %v1473_v41, %v1477_v42 }
 0x2e7   :  { %10248 = vmatprep.subr.bf16.mxu0 %v14109_v5  ;;  %10781 = vmatprep.subr.bf16.mxu1 %v14111_v6  ;;  %v1448_v5 = vld [vmem:[#allocation5 + $0x2a00] sm:$0xff]  ;;  %v1485_v59 = vld [vmem:[#allocation5 + $0x2b28] sm:$0xff] }
 0x2e8   :  { %v1452_v6 = vld [vmem:[#allocation5 + $0x2a20] sm:$0xff] }
 0x2e9   :  { %v14156_v22 = vcombine.low %v1448_v5, %v1452_v6 }
 0x2ea   :  { %10249 = vmatpush1.bf16.msra.mxu0 %v14108_v24  ;;  %10782 = vmatpush1.bf16.msra.mxu1 %v14110_v12  ;;  %v14157_v24 = vcombine.high %v1448_v5, %v1452_v6  ;;  %v14159_v12 = vcombine.high %v1449_v7, %v1453_v8  ;;  %v1489_v5 = vld [vmem:[#allocation5 + $0x2b48] sm:$0xff]  ;;  %v14190_v8 = vcombine.low %v1481_v57, %v1485_v59 }
 0x2eb   :  { %10250 = vmatprep.subr.bf16.mxu0 %v14117_v14  ;;  %10783 = vmatprep.subr.bf16.mxu1 %v14119_v15  ;;  %v1456_v14 = vld [vmem:[#allocation5 + $0x2a40] sm:$0xff]  ;;  %v1493_v6 = vld [vmem:[#allocation5 + $0x2b68] sm:$0xff] }
 0x2ec   :  { %v1460_v15 = vld [vmem:[#allocation5 + $0x2a60] sm:$0xff] }
 0x2ed   :  { %v14164_v50 = vcombine.low %v1456_v14, %v1460_v15 }
 0x2ee   :  { %10251 = vmatpush1.bf16.msra.mxu0 %v14116_v27  ;;  %10784 = vmatpush1.bf16.msra.mxu1 %v14118_v28  ;;  %v14165_v27 = vcombine.high %v1456_v14, %v1460_v15  ;;  %v14167_v28 = vcombine.high %v1457_v18, %v1461_v19  ;;  %v1497_v14 = vld [vmem:[#allocation5 + $0x2b88] sm:$0xff]  ;;  %v14198_v19 = vcombine.low %v1489_v5, %v1493_v6 }
 0x2ef   :  { %10252 = vmatprep.subr.bf16.mxu0 %v14125_v60  ;;  %10785 = vmatprep.subr.bf16.mxu1 %v14127_v30  ;;  %v1464_v60 = vld [vmem:[#allocation5 + $0x2a80] sm:$0xff]  ;;  %v1501_v15 = vld [vmem:[#allocation5 + $0x2ba8] sm:$0xff] }
 0x2f0   :  { %v1468_v30 = vld [vmem:[#allocation5 + $0x2aa0] sm:$0xff] }
 0x2f1   :  { %v14172_v43 = vcombine.low %v1464_v60, %v1468_v30 }
 0x2f2   :  { %10253 = vmatpush1.bf16.msra.mxu0 %v14124_v16  ;;  %10786 = vmatpush1.bf16.msra.mxu1 %v14126_v36  ;;  %v14173_v16 = vcombine.high %v1464_v60, %v1468_v30  ;;  %v14175_v36 = vcombine.high %v1465_v31, %v1469_v32  ;;  %v1505_v60 = vld [vmem:[#allocation5 + $0x2bc8] sm:$0xff]  ;;  %v14206_v32 = vcombine.low %v1497_v14, %v1501_v15 }
 0x2f3   :  { %10254 = vmatprep.subr.bf16.mxu0 %v14133_v38  ;;  %10787 = vmatprep.subr.bf16.mxu1 %v14135_v39  ;;  %v1472_v38 = vld [vmem:[#allocation5 + $0x2ac0] sm:$0xff]  ;;  %v1509_v30 = vld [vmem:[#allocation5 + $0x2be8] sm:$0xff] }
 0x2f4   :  { %v1476_v39 = vld [vmem:[#allocation5 + $0x2ae0] sm:$0xff] }
 0x2f5   :  { %v14180_v20 = vcombine.low %v1472_v38, %v1476_v39 }
 0x2f6   :  { %10255 = vmatpush1.bf16.msra.mxu0 %v14132_v46  ;;  %10788 = vmatpush1.bf16.msra.mxu1 %v14134_v48  ;;  %v14181_v46 = vcombine.high %v1472_v38, %v1476_v39  ;;  %v14183_v48 = vcombine.high %v1473_v41, %v1477_v42  ;;  %v1513_v38 = vld [vmem:[#allocation5 + $0x2c08] sm:$0xff]  ;;  %v14214_v42 = vcombine.low %v1505_v60, %v1509_v30 }
 0x2f7   :  { %10256 = vmatprep.subr.bf16.mxu0 %v14141_v52  ;;  %10789 = vmatprep.subr.bf16.mxu1 %v14143_v53  ;;  %v1480_v52 = vld [vmem:[#allocation5 + $0x2b00] sm:$0xff]  ;;  %v1517_v39 = vld [vmem:[#allocation5 + $0x2c28] sm:$0xff] }
 0x2f8   :  { %v1484_v53 = vld [vmem:[#allocation5 + $0x2b20] sm:$0xff] }
 0x2f9   :  { %v14188_v7 = vcombine.low %v1480_v52, %v1484_v53 }
 0x2fa   :  { %10257 = vmatpush1.bf16.msra.mxu0 %v14140_v55  ;;  %10790 = vmatpush1.bf16.msra.mxu1 %v14142_v0  ;;  %v14189_v55 = vcombine.high %v1480_v52, %v1484_v53  ;;  %v14191_v0 = vcombine.high %v1481_v57, %v1485_v59  ;;  %v15333_v52 = vcombine.low %v15321_v49, %v15321_v49  ;;  %v1521_v53 = vld [vmem:[#allocation5 + $0x2c48] sm:$0xff]  ;;  %v15335_v59 = vld [vmem:[#allocation3 + $0x58] sm:$0xff] }
 0x2fb   :  { %10258 = vmatprep.subr.bf16.mxu0 %v14149_v4  ;;  %10791 = vmatprep.subr.bf16.mxu1 %v14151_v40  ;;  %v1488_v4 = vld [vmem:[#allocation5 + $0x2b40] sm:$0xff]  ;;  %v1525_v57 = vld [vmem:[#allocation5 + $0x2c68] sm:$0xff] }
 0x2fc   :  { %v1492_v40 = vld [vmem:[#allocation5 + $0x2b60] sm:$0xff]  ;;  %v1529_v49 = vld [vmem:[#allocation5 + $0x2c88] sm:$0xff] }
 0x2fd   :  { %v14196_v18 = vcombine.low %v1488_v4, %v1492_v40 }
 0x2fe   :  { %10259 = vmatpush1.bf16.msra.mxu0 %v14148_v9  ;;  %10792 = vmatpush1.bf16.msra.mxu1 %v14150_v10  ;;  %v14197_v9 = vcombine.high %v1488_v4, %v1492_v40  ;;  %v14199_v10 = vcombine.high %v1489_v5, %v1493_v6  ;;  %v1528_v4 = vld [vmem:[#allocation5 + $0x2c80] sm:$0xff]  ;;  %v15339_v5 = vcombine.high %v15335_v59, %v15335_v59  ;;  %v1533_v6 = vld [vmem:[#allocation5 + $0x2ca8] sm:$0xff] }
 0x2ff   :  { %10260 = vmatprep.subr.bf16.mxu0 %v14157_v24  ;;  %10793 = vmatprep.subr.bf16.mxu1 %v14159_v12  ;;  %v1496_v24 = vld [vmem:[#allocation5 + $0x2b80] sm:$0xff] }
 0x300   :  { %v1500_v12 = vld [vmem:[#allocation5 + $0x2ba0] sm:$0xff] }
 0x301   :  { %v14204_v31 = vcombine.low %v1496_v24, %v1500_v12  ;;  %v1532_v40 = vld [vmem:[#allocation5 + $0x2ca0] sm:$0xff] }
 0x302   :  { %10261 = vmatpush1.bf16.msra.mxu0 %v14156_v22  ;;  %10794 = vmatpush1.bf16.msra.mxu1 %v14158_v23  ;;  %v14205_v22 = vcombine.high %v1496_v24, %v1500_v12  ;;  %v14207_v23 = vcombine.high %v1497_v14, %v1501_v15  ;;  %v1536_v24 = vld [vmem:[#allocation5 + $0x2cc0] sm:$0xff]  ;;  %v1537_v14 = vld [vmem:[#allocation5 + $0x2cc8] sm:$0xff] }
 0x303   :  { %10262 = vmatprep.subr.bf16.mxu0 %v14165_v27  ;;  %10795 = vmatprep.subr.bf16.mxu1 %v14167_v28  ;;  %v1504_v27 = vld [vmem:[#allocation5 + $0x2bc0] sm:$0xff]  ;;  %v1541_v15 = vld [vmem:[#allocation5 + $0x2ce8] sm:$0xff] }
 0x304   :  { %v1508_v28 = vld [vmem:[#allocation5 + $0x2be0] sm:$0xff] }
 0x305   :  { %v14212_v41 = vcombine.low %v1504_v27, %v1508_v28  ;;  %v1540_v12 = vld [vmem:[#allocation5 + $0x2ce0] sm:$0xff] }
 0x306   :  { %10263 = vmatpush1.bf16.msra.mxu0 %v14164_v50  ;;  %10796 = vmatpush1.bf16.msra.mxu1 %v14166_v35  ;;  %v14213_v50 = vcombine.high %v1504_v27, %v1508_v28  ;;  %v14215_v35 = vcombine.high %v1505_v60, %v1509_v30  ;;  %v1544_v27 = vld [vmem:[#allocation5 + $0x2d00] sm:$0xff]  ;;  %v1545_v60 = vld [vmem:[#allocation5 + $0x2d08] sm:$0xff] }
 0x307   :  { %10264 = vmatprep.subr.bf16.mxu0 %v14173_v16  ;;  %10797 = vmatprep.subr.bf16.mxu1 %v14175_v36  ;;  %v1512_v16 = vld [vmem:[#allocation5 + $0x2c00] sm:$0xff]  ;;  %v1549_v30 = vld [vmem:[#allocation5 + $0x2d28] sm:$0xff] }
 0x308   :  { %v1516_v36 = vld [vmem:[#allocation5 + $0x2c20] sm:$0xff] }
 0x309   :  { %v1548_v28 = vld [vmem:[#allocation5 + $0x2d20] sm:$0xff] }
 0x30a   :  { %10265 = vmatpush1.bf16.msra.mxu0 %v14172_v43  ;;  %10798 = vmatpush1.bf16.msra.mxu1 %v14174_v44  ;;  %v14221_v43 = vcombine.high %v1512_v16, %v1516_v36  ;;  %v14223_v44 = vcombine.high %v1513_v38, %v1517_v39 }
 0x30b   :  { %10266 = vmatprep.subr.bf16.mxu0 %v14181_v46  ;;  %10799 = vmatprep.subr.bf16.mxu1 %v14183_v48  ;;  %v1520_v46 = vld [vmem:[#allocation5 + $0x2c40] sm:$0xff] }
 0x30c   :  { %v1524_v48 = vld [vmem:[#allocation5 + $0x2c60] sm:$0xff] }
 0x30e   :  { %10267 = vmatpush1.bf16.msra.mxu0 %v14180_v20  ;;  %10800 = vmatpush1.bf16.msra.mxu1 %v14182_v62  ;;  %v14220_v20 = vcombine.low %v1512_v16, %v1516_v36  ;;  %v14222_v62 = vcombine.low %v1513_v38, %v1517_v39  ;;  %v1552_v16 = vld [vmem:[#allocation5 + $0x2d40] sm:$0xff]  ;;  %v1553_v38 = vld [vmem:[#allocation5 + $0x2d48] sm:$0xff] }
 0x30f   :  { %10268 = vmatprep.subr.bf16.mxu0 %v14189_v55  ;;  %10801 = vmatprep.subr.bf16.mxu1 %v14191_v0  ;;  %v14229_v55 = vcombine.high %v1520_v46, %v1524_v48  ;;  %v14231_v0 = vcombine.high %v1521_v53, %v1525_v57  ;;  %v1556_v36 = vld [vmem:[#allocation5 + $0x2d60] sm:$0xff]  ;;  %v1557_v39 = vld [vmem:[#allocation5 + $0x2d68] sm:$0xff] }
 0x312   :  { %10269 = vmatpush1.bf16.msra.mxu0 %v14188_v7  ;;  %10802 = vmatpush1.bf16.msra.mxu1 %v14190_v8  ;;  %v14228_v7 = vcombine.low %v1520_v46, %v1524_v48  ;;  %v14230_v8 = vcombine.low %v1521_v53, %v1525_v57  ;;  %v1560_v46 = vld [vmem:[#allocation5 + $0x2d80] sm:$0xff]  ;;  %v1561_v53 = vld [vmem:[#allocation5 + $0x2d88] sm:$0xff] }
 0x313   :  { %10270 = vmatprep.subr.bf16.mxu0 %v14197_v9  ;;  %10803 = vmatprep.subr.bf16.mxu1 %v14199_v10  ;;  %v14237_v9 = vcombine.high %v1528_v4, %v1532_v40  ;;  %v14239_v10 = vcombine.high %v1529_v49, %v1533_v6  ;;  %v1564_v48 = vld [vmem:[#allocation5 + $0x2da0] sm:$0xff]  ;;  %v1565_v57 = vld [vmem:[#allocation5 + $0x2da8] sm:$0xff] }
 0x316   :  { %10271 = vmatpush1.bf16.msra.mxu0 %v14196_v18  ;;  %10804 = vmatpush1.bf16.msra.mxu1 %v14198_v19  ;;  %v14236_v18 = vcombine.low %v1528_v4, %v1532_v40  ;;  %v14238_v19 = vcombine.low %v1529_v49, %v1533_v6  ;;  %v1568_v4 = vld [vmem:[#allocation5 + $0x2dc0] sm:$0xff]  ;;  %v1569_v49 = vld [vmem:[#allocation5 + $0x2dc8] sm:$0xff] }
 0x317   :  { %10272 = vmatprep.subr.bf16.mxu0 %v14205_v22  ;;  %10805 = vmatprep.subr.bf16.mxu1 %v14207_v23  ;;  %v14245_v22 = vcombine.high %v1536_v24, %v1540_v12  ;;  %v14247_v23 = vcombine.high %v1537_v14, %v1541_v15  ;;  %v1572_v40 = vld [vmem:[#allocation5 + $0x2de0] sm:$0xff]  ;;  %v1573_v6 = vld [vmem:[#allocation5 + $0x2de8] sm:$0xff] }
 0x31a   :  { %10273 = vmatpush1.bf16.msra.mxu0 %v14204_v31  ;;  %10806 = vmatpush1.bf16.msra.mxu1 %v14206_v32  ;;  %v14244_v31 = vcombine.low %v1536_v24, %v1540_v12  ;;  %v14246_v32 = vcombine.low %v1537_v14, %v1541_v15  ;;  %v1576_v24 = vld [vmem:[#allocation5 + $0x2e00] sm:$0xff]  ;;  %v1577_v14 = vld [vmem:[#allocation5 + $0x2e08] sm:$0xff] }
 0x31b   :  { %10274 = vmatprep.subr.bf16.mxu0 %v14213_v50  ;;  %10807 = vmatprep.subr.bf16.mxu1 %v14215_v35  ;;  %v14253_v50 = vcombine.high %v1544_v27, %v1548_v28  ;;  %v14255_v35 = vcombine.high %v1545_v60, %v1549_v30  ;;  %v1580_v12 = vld [vmem:[#allocation5 + $0x2e20] sm:$0xff]  ;;  %v1581_v15 = vld [vmem:[#allocation5 + $0x2e28] sm:$0xff] }
 0x31e   :  { %10275 = vmatpush1.bf16.msra.mxu0 %v14212_v41  ;;  %10808 = vmatpush1.bf16.msra.mxu1 %v14214_v42  ;;  %v14252_v41 = vcombine.low %v1544_v27, %v1548_v28  ;;  %v14254_v42 = vcombine.low %v1545_v60, %v1549_v30  ;;  %v1584_v27 = vld [vmem:[#allocation5 + $0x2e40] sm:$0xff]  ;;  %v1585_v60 = vld [vmem:[#allocation5 + $0x2e48] sm:$0xff] }
 0x31f   :  { %10285 = vmatprep.subr.bf16.mxu0 %v14221_v43  ;;  %10818 = vmatprep.subr.bf16.mxu1 %v14223_v44  ;;  %v14261_v43 = vcombine.high %v1552_v16, %v1556_v36  ;;  %v14263_v44 = vcombine.high %v1553_v38, %v1557_v39  ;;  %v1588_v28 = vld [vmem:[#allocation5 + $0x2e60] sm:$0xff]  ;;  %v1589_v30 = vld [vmem:[#allocation5 + $0x2e68] sm:$0xff] }
 0x321   :  { %10277 = vmatmul.mubr.bf16.vlgmr.msra.gmra.mrb[0].mxu0 %v15333_v52  ;;  %10810 = vmatmul.mubr.bf16.vlgmr.msra.gmra.mrb[0].mxu1 %v15333_v52 }
 0x322   :  { %10286 = vmatpush1.bf16.msra.mxu0 %v14220_v20  ;;  %10819 = vmatpush1.bf16.msra.mxu1 %v14222_v62  ;;  %v14260_v20 = vcombine.low %v1552_v16, %v1556_v36  ;;  %v14262_v62 = vcombine.low %v1553_v38, %v1557_v39  ;;  %v1592_v16 = vld [vmem:[#allocation5 + $0x2e80] sm:$0xff]  ;;  %v1593_v38 = vld [vmem:[#allocation5 + $0x2e88] sm:$0xff] }
 0x323   :  { %10287 = vmatprep.subr.bf16.mxu0 %v14229_v55  ;;  %10820 = vmatprep.subr.bf16.mxu1 %v14231_v0  ;;  %v14269_v55 = vcombine.high %v1560_v46, %v1564_v48  ;;  %v14271_v0 = vcombine.high %v1561_v53, %v1565_v57  ;;  %v1596_v36 = vld [vmem:[#allocation5 + $0x2ea0] sm:$0xff]  ;;  %v1597_v39 = vld [vmem:[#allocation5 + $0x2ea8] sm:$0xff] }
 0x324   :  { %10317 = vmatprep.mubr.bf16.mxu0 %v15339_v5  ;;  %10850 = vmatprep.mubr.bf16.mxu1 %v15339_v5 }
 0x326   :  { %10288 = vmatpush1.bf16.msra.mxu0 %v14228_v7  ;;  %10821 = vmatpush1.bf16.msra.mxu1 %v14230_v8  ;;  %v14268_v7 = vcombine.low %v1560_v46, %v1564_v48  ;;  %v14270_v8 = vcombine.low %v1561_v53, %v1565_v57  ;;  %v1600_v46 = vld [vmem:[#allocation5 + $0x2ec0] sm:$0xff]  ;;  %v1601_v53 = vld [vmem:[#allocation5 + $0x2ec8] sm:$0xff] }
 0x327   :  { %10289 = vmatprep.subr.bf16.mxu0 %v14237_v9  ;;  %10822 = vmatprep.subr.bf16.mxu1 %v14239_v10  ;;  %v14277_v9 = vcombine.high %v1568_v4, %v1572_v40  ;;  %v14279_v10 = vcombine.high %v1569_v49, %v1573_v6  ;;  %v1604_v48 = vld [vmem:[#allocation5 + $0x2ee0] sm:$0xff]  ;;  %v1605_v57 = vld [vmem:[#allocation5 + $0x2ee8] sm:$0xff] }
 0x32a   :  { %10290 = vmatpush1.bf16.msra.mxu0 %v14236_v18  ;;  %10823 = vmatpush1.bf16.msra.mxu1 %v14238_v19  ;;  %v14276_v18 = vcombine.low %v1568_v4, %v1572_v40  ;;  %v14278_v19 = vcombine.low %v1569_v49, %v1573_v6  ;;  %v1608_v4 = vld [vmem:[#allocation5 + $0x2f00] sm:$0xff]  ;;  %v1609_v49 = vld [vmem:[#allocation5 + $0x2f08] sm:$0xff] }
 0x32b   :  { %10291 = vmatprep.subr.bf16.mxu0 %v14245_v22  ;;  %10824 = vmatprep.subr.bf16.mxu1 %v14247_v23  ;;  %v14285_v22 = vcombine.high %v1576_v24, %v1580_v12  ;;  %v14287_v23 = vcombine.high %v1577_v14, %v1581_v15  ;;  %v1612_v40 = vld [vmem:[#allocation5 + $0x2f20] sm:$0xff]  ;;  %v1613_v6 = vld [vmem:[#allocation5 + $0x2f28] sm:$0xff] }
 0x32e   :  { %10292 = vmatpush1.bf16.msra.mxu0 %v14244_v31  ;;  %10825 = vmatpush1.bf16.msra.mxu1 %v14246_v32  ;;  %v14284_v31 = vcombine.low %v1576_v24, %v1580_v12  ;;  %v14286_v32 = vcombine.low %v1577_v14, %v1581_v15  ;;  %v1616_v24 = vld [vmem:[#allocation5 + $0x2f40] sm:$0xff]  ;;  %v1617_v14 = vld [vmem:[#allocation5 + $0x2f48] sm:$0xff] }
 0x32f   :  { %10293 = vmatprep.subr.bf16.mxu0 %v14253_v50  ;;  %10826 = vmatprep.subr.bf16.mxu1 %v14255_v35  ;;  %v14293_v50 = vcombine.high %v1584_v27, %v1588_v28  ;;  %v14295_v35 = vcombine.high %v1585_v60, %v1589_v30  ;;  %v1620_v12 = vld [vmem:[#allocation5 + $0x2f60] sm:$0xff]  ;;  %v1621_v15 = vld [vmem:[#allocation5 + $0x2f68] sm:$0xff] }
 0x332   :  { %10294 = vmatpush1.bf16.msra.mxu0 %v14252_v41  ;;  %10827 = vmatpush1.bf16.msra.mxu1 %v14254_v42  ;;  %v14292_v41 = vcombine.low %v1584_v27, %v1588_v28  ;;  %v14294_v42 = vcombine.low %v1585_v60, %v1589_v30  ;;  %v1624_v27 = vld [vmem:[#allocation5 + $0x2f80] sm:$0xff]  ;;  %v1625_v60 = vld [vmem:[#allocation5 + $0x2f88] sm:$0xff] }
 0x333   :  { %10295 = vmatprep.subr.bf16.mxu0 %v14261_v43  ;;  %10828 = vmatprep.subr.bf16.mxu1 %v14263_v44  ;;  %v14301_v43 = vcombine.high %v1592_v16, %v1596_v36  ;;  %v14303_v44 = vcombine.high %v1593_v38, %v1597_v39  ;;  %v1628_v28 = vld [vmem:[#allocation5 + $0x2fa0] sm:$0xff]  ;;  %v1629_v30 = vld [vmem:[#allocation5 + $0x2fa8] sm:$0xff] }
 0x336   :  { %10296 = vmatpush1.bf16.msra.mxu0 %v14260_v20  ;;  %10829 = vmatpush1.bf16.msra.mxu1 %v14262_v62  ;;  %v14300_v20 = vcombine.low %v1592_v16, %v1596_v36  ;;  %v14302_v62 = vcombine.low %v1593_v38, %v1597_v39  ;;  %v1632_v16 = vld [vmem:[#allocation5 + $0x2fc0] sm:$0xff]  ;;  %v1633_v38 = vld [vmem:[#allocation5 + $0x2fc8] sm:$0xff] }
 0x337   :  { %10297 = vmatprep.subr.bf16.mxu0 %v14269_v55  ;;  %10830 = vmatprep.subr.bf16.mxu1 %v14271_v0  ;;  %v14309_v55 = vcombine.high %v1600_v46, %v1604_v48  ;;  %v14311_v0 = vcombine.high %v1601_v53, %v1605_v57  ;;  %v1636_v36 = vld [vmem:[#allocation5 + $0x2fe0] sm:$0xff]  ;;  %v1637_v39 = vld [vmem:[#allocation5 + $0x2fe8] sm:$0xff] }
 0x33a   :  { %10298 = vmatpush1.bf16.msra.mxu0 %v14268_v7  ;;  %10831 = vmatpush1.bf16.msra.mxu1 %v14270_v8  ;;  %v14308_v7 = vcombine.low %v1600_v46, %v1604_v48  ;;  %v14310_v8 = vcombine.low %v1601_v53, %v1605_v57  ;;  %v1640_v46 = vld [vmem:[#allocation5 + $0x3000] sm:$0xff]  ;;  %v1641_v53 = vld [vmem:[#allocation5 + $0x3008] sm:$0xff] }
 0x33b   :  { %10299 = vmatprep.subr.bf16.mxu0 %v14277_v9  ;;  %10832 = vmatprep.subr.bf16.mxu1 %v14279_v10  ;;  %v14317_v9 = vcombine.high %v1608_v4, %v1612_v40  ;;  %v14319_v10 = vcombine.high %v1609_v49, %v1613_v6  ;;  %v1644_v48 = vld [vmem:[#allocation5 + $0x3020] sm:$0xff]  ;;  %v1645_v57 = vld [vmem:[#allocation5 + $0x3028] sm:$0xff] }
 0x33e   :  { %10300 = vmatpush1.bf16.msra.mxu0 %v14276_v18  ;;  %10833 = vmatpush1.bf16.msra.mxu1 %v14278_v19  ;;  %v14316_v18 = vcombine.low %v1608_v4, %v1612_v40  ;;  %v14318_v19 = vcombine.low %v1609_v49, %v1613_v6  ;;  %v1648_v4 = vld [vmem:[#allocation5 + $0x3040] sm:$0xff]  ;;  %v15347_v49 = vcombine.low %v15335_v59, %v15335_v59  ;;  %v1649_v6 = vld [vmem:[#allocation5 + $0x3048] sm:$0xff] }
 0x33f   :  { %10301 = vmatprep.subr.bf16.mxu0 %v14285_v22  ;;  %10834 = vmatprep.subr.bf16.mxu1 %v14287_v23  ;;  %v14325_v22 = vcombine.high %v1616_v24, %v1620_v12  ;;  %v14327_v23 = vcombine.high %v1617_v14, %v1621_v15  ;;  %v1652_v40 = vld [vmem:[#allocation5 + $0x3060] sm:$0xff] }
 0x340   :  { %v14356_v59 = vcombine.low %v1648_v4, %v1652_v40 }
 0x342   :  { %10302 = vmatpush1.bf16.msra.mxu0 %v14284_v31  ;;  %10835 = vmatpush1.bf16.msra.mxu1 %v14286_v32  ;;  %v14324_v31 = vcombine.low %v1616_v24, %v1620_v12  ;;  %v14326_v32 = vcombine.low %v1617_v14, %v1621_v15  ;;  %v1656_v12 = vld [vmem:[#allocation5 + $0x3080] sm:$0xff]  ;;  %v1657_v15 = vld [vmem:[#allocation5 + $0x3088] sm:$0xff] }
 0x343   :  { %10303 = vmatprep.subr.bf16.mxu0 %v14293_v50  ;;  %10836 = vmatprep.subr.bf16.mxu1 %v14295_v35  ;;  %v14333_v50 = vcombine.high %v1624_v27, %v1628_v28  ;;  %v14335_v35 = vcombine.high %v1625_v60, %v1629_v30  ;;  %v1660_v14 = vld [vmem:[#allocation5 + $0x30a0] sm:$0xff] }
 0x346   :  { %10304 = vmatpush1.bf16.msra.mxu0 %v14292_v41  ;;  %10837 = vmatpush1.bf16.msra.mxu1 %v14294_v42  ;;  %v14332_v41 = vcombine.low %v1624_v27, %v1628_v28  ;;  %v14334_v42 = vcombine.low %v1625_v60, %v1629_v30  ;;  %v1664_v27 = vld [vmem:[#allocation5 + $0x30c0] sm:$0xff]  ;;  %v15075_v60 = vmov 0   ;;  %v1665_v30 = vld [vmem:[#allocation5 + $0x30c8] sm:$0xff] }
 0x347   :  { %10305 = vmatprep.subr.bf16.mxu0 %v14301_v43  ;;  %10838 = vmatprep.subr.bf16.mxu1 %v14303_v44  ;;  %v14341_v43 = vcombine.high %v1632_v16, %v1636_v36  ;;  %v14343_v44 = vcombine.high %v1633_v38, %v1637_v39  ;;  %v1668_v28 = vld [vmem:[#allocation5 + $0x30e0] sm:$0xff] }
 0x34a   :  { %10306 = vmatpush1.bf16.msra.mxu0 %v14300_v20  ;;  %10839 = vmatpush1.bf16.msra.mxu1 %v14302_v62  ;;  %v14340_v20 = vcombine.low %v1632_v16, %v1636_v36  ;;  %v14342_v62 = vcombine.low %v1633_v38, %v1637_v39  ;;  %v1672_v36 = vld [vmem:[#allocation5 + $0x3100] sm:$0xff]  ;;  %v1673_v39 = vld [vmem:[#allocation5 + $0x3108] sm:$0xff] }
 0x34b   :  { %10307 = vmatprep.subr.bf16.mxu0 %v14309_v55  ;;  %10840 = vmatprep.subr.bf16.mxu1 %v14311_v0  ;;  %v14349_v55 = vcombine.high %v1640_v46, %v1644_v48  ;;  %v14351_v0 = vcombine.high %v1641_v53, %v1645_v57  ;;  %v1676_v38 = vld [vmem:[#allocation5 + $0x3120] sm:$0xff] }
 0x34e   :  { %10308 = vmatpush1.bf16.msra.mxu0 %v14308_v7  ;;  %10841 = vmatpush1.bf16.msra.mxu1 %v14310_v8  ;;  %v1653_v7 = vld [vmem:[#allocation5 + $0x3068] sm:$0xff]  ;;  %v14348_v8 = vcombine.low %v1640_v46, %v1644_v48  ;;  %v1680_v48 = vld [vmem:[#allocation5 + $0x3140] sm:$0xff] }
 0x34f   :  { %10309 = vmatprep.subr.bf16.mxu0 %v14317_v9  ;;  %10842 = vmatprep.subr.bf16.mxu1 %v14319_v10  ;;  %v14350_v9 = vcombine.low %v1641_v53, %v1645_v57  ;;  %v14357_v10 = vcombine.high %v1648_v4, %v1652_v40  ;;  %v14359_v24 = vcombine.high %v1649_v6, %v1653_v7  ;;  %v1684_v53 = vld [vmem:[#allocation5 + $0x3160] sm:$0xff]  ;;  %v1681_v57 = vld [vmem:[#allocation5 + $0x3148] sm:$0xff] }
 0x350   :  { %v1688_v40 = vld [vmem:[#allocation5 + $0x3180] sm:$0xff] }
 0x352   :  { %10310 = vmatpush1.bf16.msra.mxu0 %v14316_v18  ;;  %10843 = vmatpush1.bf16.msra.mxu1 %v14318_v19  ;;  %v1661_v18 = vld [vmem:[#allocation5 + $0x30a8] sm:$0xff]  ;;  %v14358_v19 = vcombine.low %v1649_v6, %v1653_v7  ;;  %v1692_v6 = vld [vmem:[#allocation5 + $0x31a0] sm:$0xff] }
 0x353   :  { %10311 = vmatprep.subr.bf16.mxu0 %v14325_v22  ;;  %10844 = vmatprep.subr.bf16.mxu1 %v14327_v23  ;;  %v14365_v22 = vcombine.high %v1656_v12, %v1660_v14  ;;  %v14367_v23 = vcombine.high %v1657_v15, %v1661_v18  ;;  %v1689_v7 = vld [vmem:[#allocation5 + $0x3188] sm:$0xff] }
 0x356   :  { %10312 = vmatpush1.bf16.msra.mxu0 %v14324_v31  ;;  %10845 = vmatpush1.bf16.msra.mxu1 %v14326_v32  ;;  %v1669_v31 = vld [vmem:[#allocation5 + $0x30e8] sm:$0xff]  ;;  %v14364_v32 = vcombine.low %v1656_v12, %v1660_v14  ;;  %v1696_v14 = vld [vmem:[#allocation5 + $0x31c0] sm:$0xff] }
 0x357   :  { %10313 = vmatprep.subr.bf16.mxu0 %v14333_v50  ;;  %10846 = vmatprep.subr.bf16.mxu1 %v14335_v35  ;;  %v14366_v50 = vcombine.low %v1657_v15, %v1661_v18  ;;  %v14373_v35 = vcombine.high %v1664_v27, %v1668_v28  ;;  %v14375_v16 = vcombine.high %v1665_v30, %v1669_v31  ;;  %v1700_v15 = vld [vmem:[#allocation5 + $0x31e0] sm:$0xff]  ;;  %v1697_v18 = vld [vmem:[#allocation5 + $0x31c8] sm:$0xff] }
 0x35a   :  { %10314 = vmatpush1.bf16.msra.mxu0 %v14332_v41  ;;  %10847 = vmatpush1.bf16.msra.mxu1 %v14334_v42  ;;  %v1677_v41 = vld [vmem:[#allocation5 + $0x3128] sm:$0xff]  ;;  %v14372_v42 = vcombine.low %v1664_v27, %v1668_v28  ;;  %v106_v28 = vld [vmem:[#allocation5 + $0x10] sm:$0xff] }
 0x35b   :  { %10315 = vmatprep.subr.bf16.mxu0 %v14341_v43  ;;  %10848 = vmatprep.subr.bf16.mxu1 %v14343_v44  ;;  %v14374_v43 = vcombine.low %v1665_v30, %v1669_v31  ;;  %v14381_v44 = vcombine.high %v1672_v36, %v1676_v38  ;;  %v14383_v46 = vcombine.high %v1673_v39, %v1677_v41  ;;  %v110_v30 = vld [vmem:[#allocation5 + $0x30] sm:$0xff]  ;;  %v107_v31 = vld [vmem:[#allocation5 + $0x18] sm:$0xff] }
 0x35e   :  { %10316 = vmatpush1.bf16.msra.mxu0 %v14340_v20  ;;  %10849 = vmatpush1.bf16.msra.mxu1 %v14342_v62  ;;  %v1685_v20 = vld [vmem:[#allocation5 + $0x3168] sm:$0xff]  ;;  %v14380_v62 = vcombine.low %v1672_v36, %v1676_v38  ;;  %v114_v38 = vld [vmem:[#allocation5 + $0x50] sm:$0xff] }
 0x35f   :  { %10326 = vmatprep.subr.bf16.mxu0 %v14349_v55  ;;  %10859 = vmatprep.subr.bf16.mxu1 %v14351_v0  ;;  %v14382_v55 = vcombine.low %v1673_v39, %v1677_v41  ;;  %v14389_v0 = vcombine.high %v1680_v48, %v1684_v53  ;;  %v14391_v4 = vcombine.high %v1681_v57, %v1685_v20  ;;  %v118_v39 = vld [vmem:[#allocation5 + $0x70] sm:$0xff]  ;;  %v14880_v41 = vld [vmem:[#allocation3 + $0x60] ss:$0 sps:$4 sm:$0xff]  }
 0x361   :  { %10318 = vmatmul.mubr.bf16.vlgmr.msra.gmra.mrb[0].mxu0 %v15347_v49  ;;  %10851 = vmatmul.mubr.bf16.vlgmr.msra.gmra.mrb[0].mxu1 %v15347_v49 }
 0x362   :  { %10327 = vmatpush1.bf16.msra.mxu0 %v14348_v8  ;;  %10860 = vmatpush1.bf16.msra.mxu1 %v14350_v9  ;;  %v1693_v8 = vld [vmem:[#allocation5 + $0x31a8] sm:$0xff]  ;;  %v14388_v9 = vcombine.low %v1680_v48, %v1684_v53  ;;  %v12825_v48 = vcombine.high %v114_v38, %v118_v39 }
 0x363   :  { %10328 = vmatprep.subr.bf16.mxu0 %v14357_v10  ;;  %10861 = vmatprep.subr.bf16.mxu1 %v14359_v24  ;;  %v14390_v10 = vcombine.low %v1681_v57, %v1685_v20  ;;  %v14397_v24 = vcombine.high %v1688_v40, %v1692_v6  ;;  %v14399_v12 = vcombine.high %v1689_v7, %v1693_v8  ;;  %v122_v57 = vld [vmem:[#allocation5 + $0x90] sm:$0xff] }
 0x364   :  { %10358 = vmatprep.mubr.bf16.mxu0 %v15075_v60  ;;  %10891 = vmatprep.mubr.bf16.mxu1 %v15075_v60  ;;  %v126_v20 = vld [vmem:[#allocation5 + $0xb0] sm:$0xff] }
 0x366   :  { %10329 = vmatpush1.bf16.msra.mxu0 %v14356_v59  ;;  %10862 = vmatpush1.bf16.msra.mxu1 %v14358_v19  ;;  %v1701_v59 = vld [vmem:[#allocation5 + $0x31e8] sm:$0xff]  ;;  %v14396_v19 = vcombine.low %v1688_v40, %v1692_v6  ;;  %v12833_v40 = vcombine.high %v122_v57, %v126_v20 }
 0x367   :  { %10330 = vmatprep.subr.bf16.mxu0 %v14365_v22  ;;  %10863 = vmatprep.subr.bf16.mxu1 %v14367_v23  ;;  %v14398_v22 = vcombine.low %v1689_v7, %v1693_v8  ;;  %v14405_v23 = vcombine.high %v1696_v14, %v1700_v15  ;;  %v14407_v27 = vcombine.high %v1697_v18, %v1701_v59  ;;  %v130_v7 = vld [vmem:[#allocation5 + $0xd0] sm:$0xff] }
 0x368   :  { %v134_v8 = vld [vmem:[#allocation5 + $0xf0] sm:$0xff] }
 0x36a   :  { %10331 = vmatpush1.bf16.msra.mxu0 %v14364_v32  ;;  %10864 = vmatpush1.bf16.msra.mxu1 %v14366_v50  ;;  %v111_v32 = vld [vmem:[#allocation5 + $0x38] sm:$0xff]  ;;  %v14404_v50 = vcombine.low %v1696_v14, %v1700_v15  ;;  %v12841_v14 = vcombine.high %v130_v7, %v134_v8 }
 0x36b   :  { %10332 = vmatprep.subr.bf16.mxu0 %v14373_v35  ;;  %10865 = vmatprep.subr.bf16.mxu1 %v14375_v16  ;;  %v14406_v35 = vcombine.low %v1697_v18, %v1701_v59  ;;  %v12817_v16 = vcombine.high %v106_v28, %v110_v30  ;;  %v12819_v36 = vcombine.high %v107_v31, %v111_v32  ;;  %v138_v18 = vld [vmem:[#allocation5 + $0x110] sm:$0xff] }
 0x36c   :  { %v142_v59 = vld [vmem:[#allocation5 + $0x130] sm:$0xff] }
 0x36e   :  { %10333 = vmatpush1.bf16.msra.mxu0 %v14372_v42  ;;  %10866 = vmatpush1.bf16.msra.mxu1 %v14374_v43  ;;  %v115_v42 = vld [vmem:[#allocation5 + $0x58] sm:$0xff] }
 0x36f   :  { %10334 = vmatprep.subr.bf16.mxu0 %v14381_v44  ;;  %10867 = vmatprep.subr.bf16.mxu1 %v14383_v46  ;;  %v119_v43 = vld [vmem:[#allocation5 + $0x78] sm:$0xff]  ;;  %v12816_v44 = vcombine.low %v106_v28, %v110_v30  ;;  %v12818_v46 = vcombine.low %v107_v31, %v111_v32  ;;  %v12849_v28 = vcombine.high %v138_v18, %v142_v59  ;;  %v146_v30 = vld [vmem:[#allocation5 + $0x150] sm:$0xff] }
 0x370   :  { %v12827_v53 = vcombine.high %v115_v42, %v119_v43  ;;  %v150_v31 = vld [vmem:[#allocation5 + $0x170] sm:$0xff]  ;;  %v147_v32 = vld [vmem:[#allocation5 + $0x158] sm:$0xff] }
 0x372   :  { %10335 = vmatpush1.bf16.msra.mxu0 %v14380_v62  ;;  %10868 = vmatpush1.bf16.msra.mxu1 %v14382_v55  ;;  %v123_v62 = vld [vmem:[#allocation5 + $0x98] sm:$0xff] }
 0x373   :  { %10336 = vmatprep.subr.bf16.mxu0 %v14389_v0  ;;  %10869 = vmatprep.subr.bf16.mxu1 %v14391_v4  ;;  %v127_v55 = vld [vmem:[#allocation5 + $0xb8] sm:$0xff]  ;;  %v12824_v0 = vcombine.low %v114_v38, %v118_v39  ;;  %v12826_v4 = vcombine.low %v115_v42, %v119_v43  ;;  %v154_v39 = vld [vmem:[#allocation5 + $0x190] sm:$0xff] }
 0x374   :  { %v12835_v6 = vcombine.high %v123_v62, %v127_v55  ;;  %v155_v42 = vld [vmem:[#allocation5 + $0x198] sm:$0xff] }
 0x375   :  { %v159_v43 = vld [vmem:[#allocation5 + $0x1b8] sm:$0xff] }
 0x376   :  { %10337 = vmatpush1.bf16.msra.mxu0 %v14388_v9  ;;  %10870 = vmatpush1.bf16.msra.mxu1 %v14390_v10  ;;  %v131_v9 = vld [vmem:[#allocation5 + $0xd8] sm:$0xff] }
 0x377   :  { %10338 = vmatprep.subr.bf16.mxu0 %v14397_v24  ;;  %10871 = vmatprep.subr.bf16.mxu1 %v14399_v12  ;;  %v135_v10 = vld [vmem:[#allocation5 + $0xf8] sm:$0xff]  ;;  %v12832_v24 = vcombine.low %v122_v57, %v126_v20  ;;  %v12834_v12 = vcombine.low %v123_v62, %v127_v55  ;;  %v162_v57 = vld [vmem:[#allocation5 + $0x1d0] sm:$0xff] }
 0x378   :  { %v12843_v15 = vcombine.high %v131_v9, %v135_v10  ;;  %v166_v20 = vld [vmem:[#allocation5 + $0x1f0] sm:$0xff]  ;;  %v163_v62 = vld [vmem:[#allocation5 + $0x1d8] sm:$0xff] }
 0x379   :  { %v167_v55 = vld [vmem:[#allocation5 + $0x1f8] sm:$0xff] }
 0x37a   :  { %10339 = vmatpush1.bf16.msra.mxu0 %v14396_v19  ;;  %10872 = vmatpush1.bf16.msra.mxu1 %v14398_v22  ;;  %v139_v19 = vld [vmem:[#allocation5 + $0x118] sm:$0xff] }
 0x37b   :  { %10340 = vmatprep.subr.bf16.mxu0 %v14405_v23  ;;  %10873 = vmatprep.subr.bf16.mxu1 %v14407_v27  ;;  %v143_v22 = vld [vmem:[#allocation5 + $0x138] sm:$0xff]  ;;  %v12840_v23 = vcombine.low %v130_v7, %v134_v8  ;;  %v12842_v27 = vcombine.low %v131_v9, %v135_v10  ;;  %v170_v7 = vld [vmem:[#allocation5 + $0x210] sm:$0xff] }
 0x37c   :  { %v174_v8 = vld [vmem:[#allocation5 + $0x230] sm:$0xff]  ;;  %v171_v9 = vld [vmem:[#allocation5 + $0x218] sm:$0xff] }
 0x37d   :  { %v175_v10 = vld [vmem:[#allocation5 + $0x238] sm:$0xff] }
 0x37e   :  { %10341 = vmatpush1.bf16.msra.mxu0 %v14404_v50  ;;  %10874 = vmatpush1.bf16.msra.mxu1 %v14406_v35  ;;  %v151_v50 = vld [vmem:[#allocation5 + $0x178] sm:$0xff]  ;;  %v12848_v35 = vcombine.low %v138_v18, %v142_v59  ;;  %v178_v18 = vld [vmem:[#allocation5 + $0x250] sm:$0xff] }
 0x37f   :  { %10900 = vmatprep.subr.bf16.mxu0 %v12817_v16  ;;  %11433 = vmatprep.subr.bf16.mxu1 %v12819_v36  ;;  %v12850_v16 = vcombine.low %v139_v19, %v143_v22  ;;  %v12857_v36 = vcombine.high %v146_v30, %v150_v31  ;;  %v12859_v38 = vcombine.high %v147_v32, %v151_v50  ;;  %v182_v59 = vld [vmem:[#allocation5 + $0x270] sm:$0xff] }
 0x381   :  { %10359 = vmatmul.mubr.bf16.vlgmr.msra.gmra.mrb[0].mxu0 %v14880_v41  ;;  %10892 = vmatmul.mubr.bf16.vlgmr.msra.gmra.mrb[0].mxu1 %v14880_v41  ;;  %v158_v41 = vld [vmem:[#allocation5 + $0x1b0] sm:$0xff] }
 0x382   :  { %10901 = vmatpush1.bf16.msra.mxu0 %v12816_v44  ;;  %11434 = vmatpush1.bf16.msra.mxu1 %v12818_v46  ;;  %v12856_v44 = vcombine.low %v146_v30, %v150_v31  ;;  %v12858_v46 = vcombine.low %v147_v32, %v151_v50  ;;  %v186_v30 = vld [vmem:[#allocation5 + $0x290] sm:$0xff]  ;;  %v187_v32 = vld [vmem:[#allocation5 + $0x298] sm:$0xff] }
 0x383   :  { %10902 = vmatprep.subr.bf16.mxu0 %v12825_v48  ;;  %11435 = vmatprep.subr.bf16.mxu1 %v12827_v53  ;;  %v12865_v48 = vcombine.high %v154_v39, %v158_v41  ;;  %v12867_v53 = vcombine.high %v155_v42, %v159_v43  ;;  %v190_v31 = vld [vmem:[#allocation5 + $0x2b0] sm:$0xff]  ;;  %v191_v50 = vld [vmem:[#allocation5 + $0x2b8] sm:$0xff] }
 0x384   :  { %10932 = vmatprep.mubr.bf16.mxu0 %v15187_v58  ;;  %11465 = vmatprep.mubr.bf16.mxu1 %v15187_v58  ;;  %v12851_v58 = vcombine.high %v139_v19, %v143_v22  ;;  %v179_v19 = vld [vmem:[#allocation5 + $0x258] sm:$0xff] }
 0x385   :  { %v183_v22 = vld [vmem:[#allocation5 + $0x278] sm:$0xff] }
 0x386   :  { %10903 = vmatpush1.bf16.msra.mxu0 %v12824_v0  ;;  %11436 = vmatpush1.bf16.msra.mxu1 %v12826_v4  ;;  %v12864_v0 = vcombine.low %v154_v39, %v158_v41  ;;  %v12866_v4 = vcombine.low %v155_v42, %v159_v43  ;;  %v194_v39 = vld [vmem:[#allocation5 + $0x2d0] sm:$0xff]  ;;  %v195_v42 = vld [vmem:[#allocation5 + $0x2d8] sm:$0xff] }
 0x387   :  { %10904 = vmatprep.subr.bf16.mxu0 %v12833_v40  ;;  %11437 = vmatprep.subr.bf16.mxu1 %v12835_v6  ;;  %v12873_v40 = vcombine.high %v162_v57, %v166_v20  ;;  %v12875_v6 = vcombine.high %v163_v62, %v167_v55  ;;  %v198_v41 = vld [vmem:[#allocation5 + $0x2f0] sm:$0xff]  ;;  %v199_v43 = vld [vmem:[#allocation5 + $0x2f8] sm:$0xff] }
 0x38a   :  { %10905 = vmatpush1.bf16.msra.mxu0 %v12832_v24  ;;  %11438 = vmatpush1.bf16.msra.mxu1 %v12834_v12  ;;  %v12872_v24 = vcombine.low %v162_v57, %v166_v20  ;;  %v12874_v12 = vcombine.low %v163_v62, %v167_v55  ;;  %v202_v57 = vld [vmem:[#allocation5 + $0x310] sm:$0xff]  ;;  %v203_v62 = vld [vmem:[#allocation5 + $0x318] sm:$0xff] }
 0x38b   :  { %10906 = vmatprep.subr.bf16.mxu0 %v12841_v14  ;;  %11439 = vmatprep.subr.bf16.mxu1 %v12843_v15  ;;  %v12881_v14 = vcombine.high %v170_v7, %v174_v8  ;;  %v12883_v15 = vcombine.high %v171_v9, %v175_v10  ;;  %v206_v20 = vld [vmem:[#allocation5 + $0x330] sm:$0xff]  ;;  %v207_v55 = vld [vmem:[#allocation5 + $0x338] sm:$0xff] }
 0x38e   :  { %10907 = vmatpush1.bf16.msra.mxu0 %v12840_v23  ;;  %11440 = vmatpush1.bf16.msra.mxu1 %v12842_v27  ;;  %v12880_v23 = vcombine.low %v170_v7, %v174_v8  ;;  %v12882_v27 = vcombine.low %v171_v9, %v175_v10  ;;  %v210_v7 = vld [vmem:[#allocation5 + $0x350] sm:$0xff]  ;;  %v211_v9 = vld [vmem:[#allocation5 + $0x358] sm:$0xff] }
 0x38f   :  { %10908 = vmatprep.subr.bf16.mxu0 %v12849_v28  ;;  %11441 = vmatprep.subr.bf16.mxu1 %v12851_v58  ;;  %v12889_v28 = vcombine.high %v178_v18, %v182_v59  ;;  %v12891_v58 = vcombine.high %v179_v19, %v183_v22  ;;  %v214_v8 = vld [vmem:[#allocation5 + $0x370] sm:$0xff]  ;;  %v215_v10 = vld [vmem:[#allocation5 + $0x378] sm:$0xff] }
 0x392   :  { %10909 = vmatpush1.bf16.msra.mxu0 %v12848_v35  ;;  %11442 = vmatpush1.bf16.msra.mxu1 %v12850_v16  ;;  %v12888_v35 = vcombine.low %v178_v18, %v182_v59  ;;  %v12890_v16 = vcombine.low %v179_v19, %v183_v22  ;;  %v218_v18 = vld [vmem:[#allocation5 + $0x390] sm:$0xff]  ;;  %v219_v19 = vld [vmem:[#allocation5 + $0x398] sm:$0xff] }
 0x393   :  { %10910 = vmatprep.subr.bf16.mxu0 %v12857_v36  ;;  %11443 = vmatprep.subr.bf16.mxu1 %v12859_v38  ;;  %v12897_v36 = vcombine.high %v186_v30, %v190_v31  ;;  %v12899_v38 = vcombine.high %v187_v32, %v191_v50  ;;  %v222_v59 = vld [vmem:[#allocation5 + $0x3b0] sm:$0xff]  ;;  %v223_v22 = vld [vmem:[#allocation5 + $0x3b8] sm:$0xff] }
 0x396   :  { %10911 = vmatpush1.bf16.msra.mxu0 %v12856_v44  ;;  %11444 = vmatpush1.bf16.msra.mxu1 %v12858_v46  ;;  %v12896_v44 = vcombine.low %v186_v30, %v190_v31  ;;  %v12898_v46 = vcombine.low %v187_v32, %v191_v50  ;;  %v226_v30 = vld [vmem:[#allocation5 + $0x3d0] sm:$0xff]  ;;  %v227_v32 = vld [vmem:[#allocation5 + $0x3d8] sm:$0xff] }
 0x397   :  { %10912 = vmatprep.subr.bf16.mxu0 %v12865_v48  ;;  %11445 = vmatprep.subr.bf16.mxu1 %v12867_v53  ;;  %v12905_v48 = vcombine.high %v194_v39, %v198_v41  ;;  %v12907_v53 = vcombine.high %v195_v42, %v199_v43  ;;  %v230_v31 = vld [vmem:[#allocation5 + $0x3f0] sm:$0xff]  ;;  %v231_v50 = vld [vmem:[#allocation5 + $0x3f8] sm:$0xff] }
 0x39a   :  { %10913 = vmatpush1.bf16.msra.mxu0 %v12864_v0  ;;  %11446 = vmatpush1.bf16.msra.mxu1 %v12866_v4  ;;  %v12904_v0 = vcombine.low %v194_v39, %v198_v41  ;;  %v12906_v4 = vcombine.low %v195_v42, %v199_v43  ;;  %v234_v39 = vld [vmem:[#allocation5 + $0x410] sm:$0xff]  ;;  %v235_v42 = vld [vmem:[#allocation5 + $0x418] sm:$0xff] }
 0x39b   :  { %10914 = vmatprep.subr.bf16.mxu0 %v12873_v40  ;;  %11447 = vmatprep.subr.bf16.mxu1 %v12875_v6  ;;  %v12913_v40 = vcombine.high %v202_v57, %v206_v20  ;;  %v12915_v6 = vcombine.high %v203_v62, %v207_v55  ;;  %v238_v41 = vld [vmem:[#allocation5 + $0x430] sm:$0xff]  ;;  %v239_v43 = vld [vmem:[#allocation5 + $0x438] sm:$0xff] }
 0x39e   :  { %10915 = vmatpush1.bf16.msra.mxu0 %v12872_v24  ;;  %11448 = vmatpush1.bf16.msra.mxu1 %v12874_v12  ;;  %v12912_v24 = vcombine.low %v202_v57, %v206_v20  ;;  %v12914_v12 = vcombine.low %v203_v62, %v207_v55  ;;  %v242_v57 = vld [vmem:[#allocation5 + $0x450] sm:$0xff]  ;;  %v243_v62 = vld [vmem:[#allocation5 + $0x458] sm:$0xff] }
 0x39f   :  { %10916 = vmatprep.subr.bf16.mxu0 %v12881_v14  ;;  %11449 = vmatprep.subr.bf16.mxu1 %v12883_v15  ;;  %v12921_v14 = vcombine.high %v210_v7, %v214_v8  ;;  %v12923_v15 = vcombine.high %v211_v9, %v215_v10  ;;  %v246_v20 = vld [vmem:[#allocation5 + $0x470] sm:$0xff]  ;;  %v247_v55 = vld [vmem:[#allocation5 + $0x478] sm:$0xff] }
 0x3a2   :  { %10917 = vmatpush1.bf16.msra.mxu0 %v12880_v23  ;;  %11450 = vmatpush1.bf16.msra.mxu1 %v12882_v27  ;;  %v12920_v23 = vcombine.low %v210_v7, %v214_v8  ;;  %v12922_v27 = vcombine.low %v211_v9, %v215_v10  ;;  %v250_v7 = vld [vmem:[#allocation5 + $0x490] sm:$0xff]  ;;  %v251_v9 = vld [vmem:[#allocation5 + $0x498] sm:$0xff] }
 0x3a3   :  { %10918 = vmatprep.subr.bf16.mxu0 %v12889_v28  ;;  %11451 = vmatprep.subr.bf16.mxu1 %v12891_v58  ;;  %v12929_v28 = vcombine.high %v218_v18, %v222_v59  ;;  %v12931_v58 = vcombine.high %v219_v19, %v223_v22  ;;  %v254_v8 = vld [vmem:[#allocation5 + $0x4b0] sm:$0xff]  ;;  %v255_v10 = vld [vmem:[#allocation5 + $0x4b8] sm:$0xff] }
 0x3a6   :  { %10919 = vmatpush1.bf16.msra.mxu0 %v12888_v35  ;;  %11452 = vmatpush1.bf16.msra.mxu1 %v12890_v16  ;;  %v12928_v35 = vcombine.low %v218_v18, %v222_v59  ;;  %v12930_v16 = vcombine.low %v219_v19, %v223_v22  ;;  %v258_v18 = vld [vmem:[#allocation5 + $0x4d0] sm:$0xff]  ;;  %v259_v19 = vld [vmem:[#allocation5 + $0x4d8] sm:$0xff] }
 0x3a7   :  { %10920 = vmatprep.subr.bf16.mxu0 %v12897_v36  ;;  %11453 = vmatprep.subr.bf16.mxu1 %v12899_v38  ;;  %v12937_v36 = vcombine.high %v226_v30, %v230_v31  ;;  %v12939_v38 = vcombine.high %v227_v32, %v231_v50  ;;  %v262_v59 = vld [vmem:[#allocation5 + $0x4f0] sm:$0xff]  ;;  %v263_v22 = vld [vmem:[#allocation5 + $0x4f8] sm:$0xff] }
 0x3aa   :  { %10921 = vmatpush1.bf16.msra.mxu0 %v12896_v44  ;;  %11454 = vmatpush1.bf16.msra.mxu1 %v12898_v46  ;;  %v12936_v44 = vcombine.low %v226_v30, %v230_v31  ;;  %v12938_v46 = vcombine.low %v227_v32, %v231_v50  ;;  %v270_v30 = vld [vmem:[#allocation5 + $0x530] sm:$0xff]  ;;  %v267_v31 = vld [vmem:[#allocation5 + $0x518] sm:$0xff]  ;;  %v12968_v50 = vcombine.low %v258_v18, %v262_v59 }
 0x3ab   :  { %10922 = vmatprep.subr.bf16.mxu0 %v12905_v48  ;;  %11455 = vmatprep.subr.bf16.mxu1 %v12907_v53  ;;  %v12945_v48 = vcombine.high %v234_v39, %v238_v41  ;;  %v12947_v53 = vcombine.high %v235_v42, %v239_v43  ;;  %v271_v32 = vld [vmem:[#allocation5 + $0x538] sm:$0xff] }
 0x3ae   :  { %10923 = vmatpush1.bf16.msra.mxu0 %v12904_v0  ;;  %11456 = vmatpush1.bf16.msra.mxu1 %v12906_v4  ;;  %v12944_v0 = vcombine.low %v234_v39, %v238_v41  ;;  %v12946_v4 = vcombine.low %v235_v42, %v239_v43  ;;  %v275_v39 = vld [vmem:[#allocation5 + $0x558] sm:$0xff]  ;;  %v12978_v43 = vcombine.low %v267_v31, %v271_v32 }
 0x3af   :  { %10924 = vmatprep.subr.bf16.mxu0 %v12913_v40  ;;  %11457 = vmatprep.subr.bf16.mxu1 %v12915_v6  ;;  %v12953_v40 = vcombine.high %v242_v57, %v246_v20  ;;  %v12955_v6 = vcombine.high %v243_v62, %v247_v55  ;;  %v279_v41 = vld [vmem:[#allocation5 + $0x578] sm:$0xff] }
 0x3b2   :  { %10925 = vmatpush1.bf16.msra.mxu0 %v12912_v24  ;;  %11458 = vmatpush1.bf16.msra.mxu1 %v12914_v12  ;;  %v12952_v24 = vcombine.low %v242_v57, %v246_v20  ;;  %v12954_v12 = vcombine.low %v243_v62, %v247_v55  ;;  %v283_v57 = vld [vmem:[#allocation5 + $0x598] sm:$0xff]  ;;  %v12986_v55 = vcombine.low %v275_v39, %v279_v41 }
 0x3b3   :  { %10926 = vmatprep.subr.bf16.mxu0 %v12921_v14  ;;  %11459 = vmatprep.subr.bf16.mxu1 %v12923_v15  ;;  %v12961_v14 = vcombine.high %v250_v7, %v254_v8  ;;  %v12963_v15 = vcombine.high %v251_v9, %v255_v10  ;;  %v287_v20 = vld [vmem:[#allocation5 + $0x5b8] sm:$0xff] }
 0x3b6   :  { %10927 = vmatpush1.bf16.msra.mxu0 %v12920_v23  ;;  %11460 = vmatpush1.bf16.msra.mxu1 %v12922_v27  ;;  %v12960_v23 = vcombine.low %v250_v7, %v254_v8  ;;  %v12969_v27 = vcombine.high %v258_v18, %v262_v59  ;;  %v291_v7 = vld [vmem:[#allocation5 + $0x5d8] sm:$0xff] }
 0x3b7   :  { %10928 = vmatprep.subr.bf16.mxu0 %v12929_v28  ;;  %11461 = vmatprep.subr.bf16.mxu1 %v12931_v58  ;;  %v12971_v28 = vcombine.high %v259_v19, %v263_v22  ;;  %v266_v58 = vld [vmem:[#allocation5 + $0x510] sm:$0xff]  ;;  %v295_v8 = vld [vmem:[#allocation5 + $0x5f8] sm:$0xff] }
 0x3b8   :  { %v12976_v42 = vcombine.low %v266_v58, %v270_v30  ;;  %v299_v18 = vld [vmem:[#allocation5 + $0x618] sm:$0xff] }
 0x3b9   :  { %v303_v59 = vld [vmem:[#allocation5 + $0x638] sm:$0xff] }
 0x3ba   :  { %10929 = vmatpush1.bf16.msra.mxu0 %v12928_v35  ;;  %11462 = vmatpush1.bf16.msra.mxu1 %v12930_v16  ;;  %v12970_v35 = vcombine.low %v259_v19, %v263_v22  ;;  %v12977_v16 = vcombine.high %v266_v58, %v270_v30  ;;  %v13002_v22 = vcombine.low %v291_v7, %v295_v8  ;;  %v307_v58 = vld [vmem:[#allocation5 + $0x658] sm:$0xff] }
 0x3bb   :  { %10930 = vmatprep.subr.bf16.mxu0 %v12937_v36  ;;  %11463 = vmatprep.subr.bf16.mxu1 %v12939_v38  ;;  %v274_v36 = vld [vmem:[#allocation5 + $0x550] sm:$0xff]  ;;  %v311_v30 = vld [vmem:[#allocation5 + $0x678] sm:$0xff] }
 0x3bc   :  { %v278_v38 = vld [vmem:[#allocation5 + $0x570] sm:$0xff] }
 0x3bd   :  { %v12984_v62 = vcombine.low %v274_v36, %v278_v38 }
 0x3be   :  { %10931 = vmatpush1.bf16.msra.mxu0 %v12936_v44  ;;  %11464 = vmatpush1.bf16.msra.mxu1 %v12938_v46  ;;  %v12985_v44 = vcombine.high %v274_v36, %v278_v38  ;;  %v12987_v46 = vcombine.high %v275_v39, %v279_v41  ;;  %v315_v36 = vld [vmem:[#allocation5 + $0x698] sm:$0xff]  ;;  %v13018_v41 = vcombine.low %v307_v58, %v311_v30 }
 0x3bf   :  { %10941 = vmatprep.subr.bf16.mxu0 %v12945_v48  ;;  %11474 = vmatprep.subr.bf16.mxu1 %v12947_v53  ;;  %v282_v48 = vld [vmem:[#allocation5 + $0x590] sm:$0xff]  ;;  %v319_v38 = vld [vmem:[#allocation5 + $0x6b8] sm:$0xff] }
 0x3c0   :  { %v286_v53 = vld [vmem:[#allocation5 + $0x5b0] sm:$0xff] }
 0x3c1   :  { %10933 = vmatmul.mubr.bf16.vlgmr.msra.gmra.mrb[4].mxu0 %v15193_v13  ;;  %11466 = vmatmul.mubr.bf16.vlgmr.msra.gmra.mrb[4].mxu1 %v15193_v13  ;;  %v12962_v13 = vcombine.low %v251_v9, %v255_v10  ;;  %v12992_v9 = vcombine.low %v282_v48, %v286_v53  ;;  %v12994_v10 = vcombine.low %v283_v57, %v287_v20 }
 0x3c2   :  { %10942 = vmatpush1.bf16.msra.mxu0 %v12944_v0  ;;  %11475 = vmatpush1.bf16.msra.mxu1 %v12946_v4  ;;  %v12993_v0 = vcombine.high %v282_v48, %v286_v53  ;;  %v12995_v4 = vcombine.high %v283_v57, %v287_v20  ;;  %v323_v48 = vld [vmem:[#allocation5 + $0x6d8] sm:$0xff]  ;;  %v13026_v20 = vcombine.low %v315_v36, %v319_v38 }
 0x3c3   :  { %10943 = vmatprep.subr.bf16.mxu0 %v12953_v40  ;;  %11476 = vmatprep.subr.bf16.mxu1 %v12955_v6  ;;  %v290_v40 = vld [vmem:[#allocation5 + $0x5d0] sm:$0xff]  ;;  %v327_v53 = vld [vmem:[#allocation5 + $0x6f8] sm:$0xff] }
 0x3c4   :  { %10973 = vmatprep.mubr.bf16.mxu0 %v15199_v54  ;;  %11506 = vmatprep.mubr.bf16.mxu1 %v15199_v54  ;;  %v12979_v54 = vcombine.high %v267_v31, %v271_v32  ;;  %v294_v6 = vld [vmem:[#allocation5 + $0x5f0] sm:$0xff]  ;;  %v13010_v32 = vcombine.low %v299_v18, %v303_v59 }
 0x3c5   :  { %v13000_v19 = vcombine.low %v290_v40, %v294_v6 }
 0x3c6   :  { %10944 = vmatpush1.bf16.msra.mxu0 %v12952_v24  ;;  %11477 = vmatpush1.bf16.msra.mxu1 %v12954_v12  ;;  %v13001_v24 = vcombine.high %v290_v40, %v294_v6  ;;  %v13003_v12 = vcombine.high %v291_v7, %v295_v8  ;;  %v331_v40 = vld [vmem:[#allocation5 + $0x718] sm:$0xff]  ;;  %v13034_v8 = vcombine.low %v323_v48, %v327_v53 }
 0x3c7   :  { %10945 = vmatprep.subr.bf16.mxu0 %v12961_v14  ;;  %11478 = vmatprep.subr.bf16.mxu1 %v12963_v15  ;;  %v298_v14 = vld [vmem:[#allocation5 + $0x610] sm:$0xff]  ;;  %v335_v6 = vld [vmem:[#allocation5 + $0x738] sm:$0xff] }
 0x3c8   :  { %v302_v15 = vld [vmem:[#allocation5 + $0x630] sm:$0xff] }
 0x3c9   :  { %v13008_v31 = vcombine.low %v298_v14, %v302_v15 }
 0x3ca   :  { %10946 = vmatpush1.bf16.msra.mxu0 %v12960_v23  ;;  %11479 = vmatpush1.bf16.msra.mxu1 %v12962_v13  ;;  %v13009_v23 = vcombine.high %v298_v14, %v302_v15  ;;  %v13011_v13 = vcombine.high %v299_v18, %v303_v59  ;;  %v339_v14 = vld [vmem:[#allocation5 + $0x758] sm:$0xff]  ;;  %v13042_v59 = vcombine.low %v331_v40, %v335_v6 }
 0x3cb   :  { %10947 = vmatprep.subr.bf16.mxu0 %v12969_v27  ;;  %11480 = vmatprep.subr.bf16.mxu1 %v12971_v28  ;;  %v306_v27 = vld [vmem:[#allocation5 + $0x650] sm:$0xff]  ;;  %v343_v15 = vld [vmem:[#allocation5 + $0x778] sm:$0xff] }
 0x3cc   :  { %v310_v28 = vld [vmem:[#allocation5 + $0x670] sm:$0xff] }
 0x3cd   :  { %v13016_v39 = vcombine.low %v306_v27, %v310_v28 }
 0x3ce   :  { %10948 = vmatpush1.bf16.msra.mxu0 %v12968_v50  ;;  %11481 = vmatpush1.bf16.msra.mxu1 %v12970_v35  ;;  %v13017_v50 = vcombine.high %v306_v27, %v310_v28  ;;  %v13019_v35 = vcombine.high %v307_v58, %v311_v30  ;;  %v347_v27 = vld [vmem:[#allocation5 + $0x798] sm:$0xff]  ;;  %v13050_v30 = vcombine.low %v339_v14, %v343_v15 }
 0x3cf   :  { %10949 = vmatprep.subr.bf16.mxu0 %v12977_v16  ;;  %11482 = vmatprep.subr.bf16.mxu1 %v12979_v54  ;;  %v314_v16 = vld [vmem:[#allocation5 + $0x690] sm:$0xff]  ;;  %v351_v28 = vld [vmem:[#allocation5 + $0x7b8] sm:$0xff] }
 0x3d0   :  { %v318_v54 = vld [vmem:[#allocation5 + $0x6b0] sm:$0xff] }
 0x3d1   :  { %v13024_v57 = vcombine.low %v314_v16, %v318_v54 }
 0x3d2   :  { %10950 = vmatpush1.bf16.msra.mxu0 %v12976_v42  ;;  %11483 = vmatpush1.bf16.msra.mxu1 %v12978_v43  ;;  %v13025_v42 = vcombine.high %v314_v16, %v318_v54  ;;  %v13027_v43 = vcombine.high %v315_v36, %v319_v38  ;;  %v355_v16 = vld [vmem:[#allocation5 + $0x7d8] sm:$0xff]  ;;  %v13058_v38 = vcombine.low %v347_v27, %v351_v28 }
 0x3d3   :  { %10951 = vmatprep.subr.bf16.mxu0 %v12985_v44  ;;  %11484 = vmatprep.subr.bf16.mxu1 %v12987_v46  ;;  %v322_v44 = vld [vmem:[#allocation5 + $0x6d0] sm:$0xff]  ;;  %v359_v54 = vld [vmem:[#allocation5 + $0x7f8] sm:$0xff] }
 0x3d4   :  { %v326_v46 = vld [vmem:[#allocation5 + $0x6f0] sm:$0xff] }
 0x3d5   :  { %v13032_v7 = vcombine.low %v322_v44, %v326_v46 }
 0x3d6   :  { %10952 = vmatpush1.bf16.msra.mxu0 %v12984_v62  ;;  %11485 = vmatpush1.bf16.msra.mxu1 %v12986_v55  ;;  %v13033_v62 = vcombine.high %v322_v44, %v326_v46  ;;  %v13035_v55 = vcombine.high %v323_v48, %v327_v53  ;;  %v363_v44 = vld [vmem:[#allocation5 + $0x818] sm:$0xff]  ;;  %v13066_v53 = vcombine.low %v355_v16, %v359_v54 }
 0x3d7   :  { %10953 = vmatprep.subr.bf16.mxu0 %v12993_v0  ;;  %11486 = vmatprep.subr.bf16.mxu1 %v12995_v4  ;;  %v330_v0 = vld [vmem:[#allocation5 + $0x710] sm:$0xff]  ;;  %v367_v46 = vld [vmem:[#allocation5 + $0x838] sm:$0xff] }
 0x3d8   :  { %v334_v4 = vld [vmem:[#allocation5 + $0x730] sm:$0xff] }
 0x3d9   :  { %v13040_v18 = vcombine.low %v330_v0, %v334_v4 }
 0x3da   :  { %10954 = vmatpush1.bf16.msra.mxu0 %v12992_v9  ;;  %11487 = vmatpush1.bf16.msra.mxu1 %v12994_v10  ;;  %v13041_v9 = vcombine.high %v330_v0, %v334_v4  ;;  %v13043_v10 = vcombine.high %v331_v40, %v335_v6  ;;  %v371_v0 = vld [vmem:[#allocation5 + $0x858] sm:$0xff]  ;;  %v13074_v6 = vcombine.low %v363_v44, %v367_v46 }
 0x3db   :  { %10955 = vmatprep.subr.bf16.mxu0 %v13001_v24  ;;  %11488 = vmatprep.subr.bf16.mxu1 %v13003_v12  ;;  %v338_v24 = vld [vmem:[#allocation5 + $0x750] sm:$0xff]  ;;  %v375_v4 = vld [vmem:[#allocation5 + $0x878] sm:$0xff] }
 0x3dc   :  { %v342_v12 = vld [vmem:[#allocation5 + $0x770] sm:$0xff] }
 0x3dd   :  { %v13048_v58 = vcombine.low %v338_v24, %v342_v12 }
 0x3de   :  { %10956 = vmatpush1.bf16.msra.mxu0 %v13000_v19  ;;  %11489 = vmatpush1.bf16.msra.mxu1 %v13002_v22  ;;  %v13049_v19 = vcombine.high %v338_v24, %v342_v12  ;;  %v13051_v22 = vcombine.high %v339_v14, %v343_v15  ;;  %v379_v24 = vld [vmem:[#allocation5 + $0x898] sm:$0xff]  ;;  %v13082_v15 = vcombine.low %v371_v0, %v375_v4 }
 0x3df   :  { %10957 = vmatprep.subr.bf16.mxu0 %v13009_v23  ;;  %11490 = vmatprep.subr.bf16.mxu1 %v13011_v13  ;;  %v346_v23 = vld [vmem:[#allocation5 + $0x790] sm:$0xff]  ;;  %v383_v12 = vld [vmem:[#allocation5 + $0x8b8] sm:$0xff] }
 0x3e0   :  { %v350_v13 = vld [vmem:[#allocation5 + $0x7b0] sm:$0xff] }
 0x3e1   :  { %v13056_v36 = vcombine.low %v346_v23, %v350_v13 }
 0x3e2   :  { %10958 = vmatpush1.bf16.msra.mxu0 %v13008_v31  ;;  %11491 = vmatpush1.bf16.msra.mxu1 %v13010_v32  ;;  %v13057_v31 = vcombine.high %v346_v23, %v350_v13  ;;  %v13059_v32 = vcombine.high %v347_v27, %v351_v28  ;;  %v387_v23 = vld [vmem:[#allocation5 + $0x8d8] sm:$0xff] }
 0x3e3   :  { %10959 = vmatprep.subr.bf16.mxu0 %v13017_v50  ;;  %11492 = vmatprep.subr.bf16.mxu1 %v13019_v35  ;;  %v354_v50 = vld [vmem:[#allocation5 + $0x7d0] sm:$0xff]  ;;  %v391_v13 = vld [vmem:[#allocation5 + $0x8f8] sm:$0xff] }
 0x3e4   :  { %v358_v35 = vld [vmem:[#allocation5 + $0x7f0] sm:$0xff] }
 0x3e5   :  { %v13064_v48 = vcombine.low %v354_v50, %v358_v35 }
 0x3e6   :  { %10960 = vmatpush1.bf16.msra.mxu0 %v13016_v39  ;;  %11493 = vmatpush1.bf16.msra.mxu1 %v13018_v41  ;;  %v13065_v39 = vcombine.high %v354_v50, %v358_v35  ;;  %v13067_v41 = vcombine.high %v355_v16, %v359_v54  ;;  %v399_v50 = vld [vmem:[#allocation5 + $0x938] sm:$0xff]  ;;  %v13098_v16 = vcombine.low %v387_v23, %v391_v13 }
 0x3e7   :  { %10961 = vmatprep.subr.bf16.mxu0 %v13025_v42  ;;  %11494 = vmatprep.subr.bf16.mxu1 %v13027_v43  ;;  %v362_v42 = vld [vmem:[#allocation5 + $0x810] sm:$0xff] }
 0x3e8   :  { %v366_v43 = vld [vmem:[#allocation5 + $0x830] sm:$0xff] }
 0x3e9   :  { %v13072_v40 = vcombine.low %v362_v42, %v366_v43 }
 0x3ea   :  { %10962 = vmatpush1.bf16.msra.mxu0 %v13024_v57  ;;  %11495 = vmatpush1.bf16.msra.mxu1 %v13026_v20  ;;  %v13073_v57 = vcombine.high %v362_v42, %v366_v43  ;;  %v13075_v20 = vcombine.high %v363_v44, %v367_v46 }
 0x3eb   :  { %10963 = vmatprep.subr.bf16.mxu0 %v13033_v62  ;;  %11496 = vmatprep.subr.bf16.mxu1 %v13035_v55  ;;  %v370_v62 = vld [vmem:[#allocation5 + $0x850] sm:$0xff] }
 0x3ec   :  { %v374_v55 = vld [vmem:[#allocation5 + $0x870] sm:$0xff] }
 0x3ed   :  { %v13080_v14 = vcombine.low %v370_v62, %v374_v55 }
 0x3ee   :  { %10964 = vmatpush1.bf16.msra.mxu0 %v13032_v7  ;;  %11497 = vmatpush1.bf16.msra.mxu1 %v13034_v8  ;;  %v13081_v7 = vcombine.high %v370_v62, %v374_v55  ;;  %v13083_v8 = vcombine.high %v371_v0, %v375_v4 }
 0x3ef   :  { %10965 = vmatprep.subr.bf16.mxu0 %v13041_v9  ;;  %11498 = vmatprep.subr.bf16.mxu1 %v13043_v10  ;;  %v378_v9 = vld [vmem:[#allocation5 + $0x890] sm:$0xff] }
 0x3f0   :  { %v382_v10 = vld [vmem:[#allocation5 + $0x8b0] sm:$0xff] }
 0x3f1   :  { %v13088_v27 = vcombine.low %v378_v9, %v382_v10 }
 0x3f2   :  { %10966 = vmatpush1.bf16.msra.mxu0 %v13040_v18  ;;  %11499 = vmatpush1.bf16.msra.mxu1 %v13042_v59  ;;  %v13089_v18 = vcombine.high %v378_v9, %v382_v10  ;;  %v13091_v59 = vcombine.high %v379_v24, %v383_v12 }
 0x3f3   :  { %10967 = vmatprep.subr.bf16.mxu0 %v13049_v19  ;;  %11500 = vmatprep.subr.bf16.mxu1 %v13051_v22  ;;  %v386_v19 = vld [vmem:[#allocation5 + $0x8d0] sm:$0xff] }
 0x3f4   :  { %v390_v22 = vld [vmem:[#allocation5 + $0x8f0] sm:$0xff] }
 0x3f5   :  { %v13097_v28 = vcombine.high %v386_v19, %v390_v22  ;;  %v13096_v35 = vcombine.low %v386_v19, %v390_v22 }
 0x3f6   :  { %10968 = vmatpush1.bf16.msra.mxu0 %v13048_v58  ;;  %11501 = vmatpush1.bf16.msra.mxu1 %v13050_v30  ;;  %v13099_v58 = vcombine.high %v387_v23, %v391_v13  ;;  %v394_v30 = vld [vmem:[#allocation5 + $0x910] sm:$0xff] }
 0x3f7   :  { %10969 = vmatprep.subr.bf16.mxu0 %v13057_v31  ;;  %11502 = vmatprep.subr.bf16.mxu1 %v13059_v32  ;;  %v398_v31 = vld [vmem:[#allocation5 + $0x930] sm:$0xff]  ;;  %v395_v32 = vld [vmem:[#allocation5 + $0x918] sm:$0xff] }
 0x3f8   :  { %v13105_v54 = vcombine.high %v394_v30, %v398_v31  ;;  %v13104_v42 = vcombine.low %v394_v30, %v398_v31  ;;  %v13106_v43 = vcombine.low %v395_v32, %v399_v50 }
 0x3fa   :  { %10970 = vmatpush1.bf16.msra.mxu0 %v13056_v36  ;;  %11503 = vmatpush1.bf16.msra.mxu1 %v13058_v38  ;;  %v402_v36 = vld [vmem:[#allocation5 + $0x950] sm:$0xff] }
 0x3fb   :  { %10971 = vmatprep.subr.bf16.mxu0 %v13065_v39  ;;  %11504 = vmatprep.subr.bf16.mxu1 %v13067_v41  ;;  %v406_v38 = vld [vmem:[#allocation5 + $0x970] sm:$0xff]  ;;  %v403_v39 = vld [vmem:[#allocation5 + $0x958] sm:$0xff] }
 0x3fc   :  { %v407_v41 = vld [vmem:[#allocation5 + $0x978] sm:$0xff]  ;;  %v13113_v44 = vcombine.high %v402_v36, %v406_v38  ;;  %v13112_v62 = vcombine.low %v402_v36, %v406_v38 }
 0x3fd   :  { %v13115_v46 = vcombine.high %v403_v39, %v407_v41  ;;  %v13114_v55 = vcombine.low %v403_v39, %v407_v41 }
 0x3fe   :  { %10972 = vmatpush1.bf16.msra.mxu0 %v13064_v48  ;;  %11505 = vmatpush1.bf16.msra.mxu1 %v13066_v53  ;;  %v410_v48 = vld [vmem:[#allocation5 + $0x990] sm:$0xff] }
 0x3ff   :  { %10982 = vmatprep.subr.bf16.mxu0 %v13073_v57  ;;  %11515 = vmatprep.subr.bf16.mxu1 %v13075_v20  ;;  %v414_v53 = vld [vmem:[#allocation5 + $0x9b0] sm:$0xff]  ;;  %v411_v57 = vld [vmem:[#allocation5 + $0x998] sm:$0xff] }
 0x400   :  { %v415_v20 = vld [vmem:[#allocation5 + $0x9b8] sm:$0xff]  ;;  %v13121_v0 = vcombine.high %v410_v48, %v414_v53  ;;  %v13120_v9 = vcombine.low %v410_v48, %v414_v53 }
 0x401   :  { %10974 = vmatmul.mubr.bf16.vlgmr.msra.gmra.mrb[4].mxu0 %v15209_v26  ;;  %11507 = vmatmul.mubr.bf16.vlgmr.msra.gmra.mrb[4].mxu1 %v15209_v26  ;;  %v13090_v26 = vcombine.low %v379_v24, %v383_v12  ;;  %v13123_v4 = vcombine.high %v411_v57, %v415_v20  ;;  %v13122_v10 = vcombine.low %v411_v57, %v415_v20 }
 0x402   :  { %10983 = vmatpush1.bf16.msra.mxu0 %v13072_v40  ;;  %11516 = vmatpush1.bf16.msra.mxu1 %v13074_v6  ;;  %v418_v40 = vld [vmem:[#allocation5 + $0x9d0] sm:$0xff] }
 0x403   :  { %10984 = vmatprep.subr.bf16.mxu0 %v13081_v7  ;;  %11517 = vmatprep.subr.bf16.mxu1 %v13083_v8  ;;  %v422_v6 = vld [vmem:[#allocation5 + $0x9f0] sm:$0xff]  ;;  %v419_v7 = vld [vmem:[#allocation5 + $0x9d8] sm:$0xff] }
 0x404   :  { %11014 = vmatprep.mubr.bf16.mxu0 %v15213_v33  ;;  %11547 = vmatprep.mubr.bf16.mxu1 %v15213_v33  ;;  %v13107_v33 = vcombine.high %v395_v32, %v399_v50  ;;  %v423_v8 = vld [vmem:[#allocation5 + $0x9f8] sm:$0xff]  ;;  %v13129_v24 = vcombine.high %v418_v40, %v422_v6  ;;  %v13128_v19 = vcombine.low %v418_v40, %v422_v6 }
 0x405   :  { %v13131_v12 = vcombine.high %v419_v7, %v423_v8  ;;  %v13130_v22 = vcombine.low %v419_v7, %v423_v8 }
 0x406   :  { %10985 = vmatpush1.bf16.msra.mxu0 %v13080_v14  ;;  %11518 = vmatpush1.bf16.msra.mxu1 %v13082_v15  ;;  %v426_v14 = vld [vmem:[#allocation5 + $0xa10] sm:$0xff] }
 0x407   :  { %10986 = vmatprep.subr.bf16.mxu0 %v13089_v18  ;;  %11519 = vmatprep.subr.bf16.mxu1 %v13091_v59  ;;  %v430_v15 = vld [vmem:[#allocation5 + $0xa30] sm:$0xff]  ;;  %v427_v18 = vld [vmem:[#allocation5 + $0xa18] sm:$0xff] }
 0x408   :  { %v431_v59 = vld [vmem:[#allocation5 + $0xa38] sm:$0xff]  ;;  %v13137_v23 = vcombine.high %v426_v14, %v430_v15  ;;  %v13136_v30 = vcombine.low %v426_v14, %v430_v15 }
 0x409   :  { %v13139_v13 = vcombine.high %v427_v18, %v431_v59  ;;  %v13138_v31 = vcombine.low %v427_v18, %v431_v59 }
 0x40a   :  { %10987 = vmatpush1.bf16.msra.mxu0 %v13088_v27  ;;  %11520 = vmatpush1.bf16.msra.mxu1 %v13090_v26  ;;  %v434_v27 = vld [vmem:[#allocation5 + $0xa50] sm:$0xff] }
 0x40b   :  { %10988 = vmatprep.subr.bf16.mxu0 %v13097_v28  ;;  %11521 = vmatprep.subr.bf16.mxu1 %v13099_v58  ;;  %v438_v26 = vld [vmem:[#allocation5 + $0xa70] sm:$0xff]  ;;  %v435_v28 = vld [vmem:[#allocation5 + $0xa58] sm:$0xff] }
 0x40c   :  { %v439_v58 = vld [vmem:[#allocation5 + $0xa78] sm:$0xff]  ;;  %v13145_v32 = vcombine.high %v434_v27, %v438_v26  ;;  %v13144_v36 = vcombine.low %v434_v27, %v438_v26 }
 0x40d   :  { %v13147_v50 = vcombine.high %v435_v28, %v439_v58  ;;  %v13146_v38 = vcombine.low %v435_v28, %v439_v58 }
 0x40e   :  { %10989 = vmatpush1.bf16.msra.mxu0 %v13096_v35  ;;  %11522 = vmatpush1.bf16.msra.mxu1 %v13098_v16  ;;  %v442_v35 = vld [vmem:[#allocation5 + $0xa90] sm:$0xff] }
 0x40f   :  { %10990 = vmatprep.subr.bf16.mxu0 %v13105_v54  ;;  %11523 = vmatprep.subr.bf16.mxu1 %v13107_v33  ;;  %v446_v16 = vld [vmem:[#allocation5 + $0xab0] sm:$0xff]  ;;  %v443_v54 = vld [vmem:[#allocation5 + $0xa98] sm:$0xff] }
 0x410   :  { %v447_v33 = vld [vmem:[#allocation5 + $0xab8] sm:$0xff]  ;;  %v13153_v39 = vcombine.high %v442_v35, %v446_v16  ;;  %v13152_v48 = vcombine.low %v442_v35, %v446_v16 }
 0x411   :  { %v13155_v41 = vcombine.high %v443_v54, %v447_v33  ;;  %v13154_v53 = vcombine.low %v443_v54, %v447_v33 }
 0x412   :  { %10991 = vmatpush1.bf16.msra.mxu0 %v13104_v42  ;;  %11524 = vmatpush1.bf16.msra.mxu1 %v13106_v43  ;;  %v450_v42 = vld [vmem:[#allocation5 + $0xad0] sm:$0xff] }
 0x413   :  { %10992 = vmatprep.subr.bf16.mxu0 %v13113_v44  ;;  %11525 = vmatprep.subr.bf16.mxu1 %v13115_v46  ;;  %v454_v43 = vld [vmem:[#allocation5 + $0xaf0] sm:$0xff]  ;;  %v451_v44 = vld [vmem:[#allocation5 + $0xad8] sm:$0xff] }
 0x414   :  { %v455_v46 = vld [vmem:[#allocation5 + $0xaf8] sm:$0xff]  ;;  %v13161_v57 = vcombine.high %v450_v42, %v454_v43  ;;  %v13160_v40 = vcombine.low %v450_v42, %v454_v43 }
 0x415   :  { %v13163_v20 = vcombine.high %v451_v44, %v455_v46  ;;  %v13162_v6 = vcombine.low %v451_v44, %v455_v46 }
 0x416   :  { %10993 = vmatpush1.bf16.msra.mxu0 %v13112_v62  ;;  %11526 = vmatpush1.bf16.msra.mxu1 %v13114_v55  ;;  %v458_v62 = vld [vmem:[#allocation5 + $0xb10] sm:$0xff] }
 0x417   :  { %10994 = vmatprep.subr.bf16.mxu0 %v13121_v0  ;;  %11527 = vmatprep.subr.bf16.mxu1 %v13123_v4  ;;  %v462_v55 = vld [vmem:[#allocation5 + $0xb30] sm:$0xff]  ;;  %v459_v0 = vld [vmem:[#allocation5 + $0xb18] sm:$0xff] }
 0x418   :  { %v463_v4 = vld [vmem:[#allocation5 + $0xb38] sm:$0xff]  ;;  %v13169_v7 = vcombine.high %v458_v62, %v462_v55  ;;  %v13168_v14 = vcombine.low %v458_v62, %v462_v55 }
 0x419   :  { %v13171_v8 = vcombine.high %v459_v0, %v463_v4  ;;  %v13170_v15 = vcombine.low %v459_v0, %v463_v4 }
 0x41a   :  { %10995 = vmatpush1.bf16.msra.mxu0 %v13120_v9  ;;  %11528 = vmatpush1.bf16.msra.mxu1 %v13122_v10  ;;  %v466_v9 = vld [vmem:[#allocation5 + $0xb50] sm:$0xff] }
 0x41b   :  { %10996 = vmatprep.subr.bf16.mxu0 %v13129_v24  ;;  %11529 = vmatprep.subr.bf16.mxu1 %v13131_v12  ;;  %v470_v10 = vld [vmem:[#allocation5 + $0xb70] sm:$0xff]  ;;  %v467_v24 = vld [vmem:[#allocation5 + $0xb58] sm:$0xff] }
 0x41c   :  { %v471_v12 = vld [vmem:[#allocation5 + $0xb78] sm:$0xff]  ;;  %v13177_v18 = vcombine.high %v466_v9, %v470_v10  ;;  %v13176_v27 = vcombine.low %v466_v9, %v470_v10 }
 0x41d   :  { %v13179_v59 = vcombine.high %v467_v24, %v471_v12  ;;  %v13178_v26 = vcombine.low %v467_v24, %v471_v12 }
 0x41e   :  { %10997 = vmatpush1.bf16.msra.mxu0 %v13128_v19  ;;  %11530 = vmatpush1.bf16.msra.mxu1 %v13130_v22  ;;  %v474_v19 = vld [vmem:[#allocation5 + $0xb90] sm:$0xff] }
 0x41f   :  { %10998 = vmatprep.subr.bf16.mxu0 %v13137_v23  ;;  %11531 = vmatprep.subr.bf16.mxu1 %v13139_v13  ;;  %v478_v22 = vld [vmem:[#allocation5 + $0xbb0] sm:$0xff]  ;;  %v475_v23 = vld [vmem:[#allocation5 + $0xb98] sm:$0xff] }
 0x420   :  { %v479_v13 = vld [vmem:[#allocation5 + $0xbb8] sm:$0xff]  ;;  %v13185_v28 = vcombine.high %v474_v19, %v478_v22  ;;  %v13184_v35 = vcombine.low %v474_v19, %v478_v22 }
 0x421   :  { %v13187_v58 = vcombine.high %v475_v23, %v479_v13  ;;  %v13186_v16 = vcombine.low %v475_v23, %v479_v13  ;;  %v522_v13 = vld [vmem:[#allocation5 + $0xd10] sm:$0xff] }
 0x422   :  { %10999 = vmatpush1.bf16.msra.mxu0 %v13136_v30  ;;  %11532 = vmatpush1.bf16.msra.mxu1 %v13138_v31  ;;  %v482_v30 = vld [vmem:[#allocation5 + $0xbd0] sm:$0xff] }
 0x423   :  { %11000 = vmatprep.subr.bf16.mxu0 %v13145_v32  ;;  %11533 = vmatprep.subr.bf16.mxu1 %v13147_v50  ;;  %v486_v31 = vld [vmem:[#allocation5 + $0xbf0] sm:$0xff]  ;;  %v483_v32 = vld [vmem:[#allocation5 + $0xbd8] sm:$0xff] }
 0x424   :  { %v487_v50 = vld [vmem:[#allocation5 + $0xbf8] sm:$0xff]  ;;  %v13193_v54 = vcombine.high %v482_v30, %v486_v31  ;;  %v13192_v42 = vcombine.low %v482_v30, %v486_v31 }
 0x425   :  { %v13195_v33 = vcombine.high %v483_v32, %v487_v50  ;;  %v13194_v43 = vcombine.low %v483_v32, %v487_v50  ;;  %v530_v32 = vld [vmem:[#allocation5 + $0xd50] sm:$0xff] }
 0x426   :  { %11001 = vmatpush1.bf16.msra.mxu0 %v13144_v36  ;;  %11534 = vmatpush1.bf16.msra.mxu1 %v13146_v38  ;;  %v490_v36 = vld [vmem:[#allocation5 + $0xc10] sm:$0xff] }
 0x427   :  { %11002 = vmatprep.subr.bf16.mxu0 %v13153_v39  ;;  %11535 = vmatprep.subr.bf16.mxu1 %v13155_v41  ;;  %v494_v38 = vld [vmem:[#allocation5 + $0xc30] sm:$0xff]  ;;  %v491_v39 = vld [vmem:[#allocation5 + $0xc18] sm:$0xff] }
 0x428   :  { %v495_v41 = vld [vmem:[#allocation5 + $0xc38] sm:$0xff]  ;;  %v13201_v44 = vcombine.high %v490_v36, %v494_v38  ;;  %v13200_v62 = vcombine.low %v490_v36, %v494_v38  ;;  %v534_v50 = vld [vmem:[#allocation5 + $0xd70] sm:$0xff] }
 0x429   :  { %v13203_v46 = vcombine.high %v491_v39, %v495_v41  ;;  %v13202_v55 = vcombine.low %v491_v39, %v495_v41  ;;  %v13241_v36 = vcombine.high %v530_v32, %v534_v50  ;;  %v538_v39 = vld [vmem:[#allocation5 + $0xd90] sm:$0xff] }
 0x42a   :  { %11003 = vmatpush1.bf16.msra.mxu0 %v13152_v48  ;;  %11536 = vmatpush1.bf16.msra.mxu1 %v13154_v53  ;;  %v498_v48 = vld [vmem:[#allocation5 + $0xc50] sm:$0xff] }
 0x42b   :  { %11004 = vmatprep.subr.bf16.mxu0 %v13161_v57  ;;  %11537 = vmatprep.subr.bf16.mxu1 %v13163_v20  ;;  %v502_v53 = vld [vmem:[#allocation5 + $0xc70] sm:$0xff]  ;;  %v499_v57 = vld [vmem:[#allocation5 + $0xc58] sm:$0xff] }
 0x42c   :  { %v503_v20 = vld [vmem:[#allocation5 + $0xc78] sm:$0xff]  ;;  %v13209_v0 = vcombine.high %v498_v48, %v502_v53  ;;  %v13208_v9 = vcombine.low %v498_v48, %v502_v53  ;;  %v542_v41 = vld [vmem:[#allocation5 + $0xdb0] sm:$0xff] }
 0x42d   :  { %v13211_v4 = vcombine.high %v499_v57, %v503_v20  ;;  %v13210_v10 = vcombine.low %v499_v57, %v503_v20  ;;  %v13249_v48 = vcombine.high %v538_v39, %v542_v41  ;;  %v546_v20 = vld [vmem:[#allocation5 + $0xdd0] sm:$0xff] }
 0x42e   :  { %11005 = vmatpush1.bf16.msra.mxu0 %v13160_v40  ;;  %11538 = vmatpush1.bf16.msra.mxu1 %v13162_v6  ;;  %v506_v40 = vld [vmem:[#allocation5 + $0xc90] sm:$0xff] }
 0x42f   :  { %11006 = vmatprep.subr.bf16.mxu0 %v13169_v7  ;;  %11539 = vmatprep.subr.bf16.mxu1 %v13171_v8  ;;  %v510_v6 = vld [vmem:[#allocation5 + $0xcb0] sm:$0xff]  ;;  %v507_v7 = vld [vmem:[#allocation5 + $0xc98] sm:$0xff] }
 0x430   :  { %v511_v8 = vld [vmem:[#allocation5 + $0xcb8] sm:$0xff]  ;;  %v13217_v24 = vcombine.high %v506_v40, %v510_v6  ;;  %v13216_v19 = vcombine.low %v506_v40, %v510_v6 }
 0x431   :  { %v13219_v12 = vcombine.high %v507_v7, %v511_v8  ;;  %v551_v40 = vld [vmem:[#allocation5 + $0xdf8] sm:$0xff] }
 0x432   :  { %11007 = vmatpush1.bf16.msra.mxu0 %v13168_v14  ;;  %11540 = vmatpush1.bf16.msra.mxu1 %v13170_v15  ;;  %v514_v14 = vld [vmem:[#allocation5 + $0xcd0] sm:$0xff] }
 0x433   :  { %11008 = vmatprep.subr.bf16.mxu0 %v13177_v18  ;;  %11541 = vmatprep.subr.bf16.mxu1 %v13179_v59  ;;  %v518_v15 = vld [vmem:[#allocation5 + $0xcf0] sm:$0xff]  ;;  %v515_v18 = vld [vmem:[#allocation5 + $0xcd8] sm:$0xff] }
 0x434   :  { %v519_v59 = vld [vmem:[#allocation5 + $0xcf8] sm:$0xff]  ;;  %v13225_v22 = vcombine.high %v514_v14, %v518_v15 }
 0x435   :  { %v13227_v23 = vcombine.high %v515_v18, %v519_v59  ;;  %v13226_v30 = vcombine.low %v515_v18, %v519_v59  ;;  %v554_v18 = vld [vmem:[#allocation5 + $0xe10] sm:$0xff] }
 0x436   :  { %11009 = vmatpush1.bf16.msra.mxu0 %v13176_v27  ;;  %11542 = vmatpush1.bf16.msra.mxu1 %v13178_v26  ;;  %v526_v27 = vld [vmem:[#allocation5 + $0xd30] sm:$0xff]  ;;  %v523_v26 = vld [vmem:[#allocation5 + $0xd18] sm:$0xff] }
 0x437   :  { %11010 = vmatprep.subr.bf16.mxu0 %v13185_v28  ;;  %11543 = vmatprep.subr.bf16.mxu1 %v13187_v58  ;;  %v527_v28 = vld [vmem:[#allocation5 + $0xd38] sm:$0xff]  ;;  %v13224_v58 = vcombine.low %v514_v14, %v518_v15  ;;  %v13233_v31 = vcombine.high %v522_v13, %v526_v27  ;;  %v558_v59 = vld [vmem:[#allocation5 + $0xe30] sm:$0xff] }
 0x43a   :  { %11011 = vmatpush1.bf16.msra.mxu0 %v13184_v35  ;;  %11544 = vmatpush1.bf16.msra.mxu1 %v13186_v16  ;;  %v531_v35 = vld [vmem:[#allocation5 + $0xd58] sm:$0xff] }
 0x43b   :  { %11012 = vmatprep.subr.bf16.mxu0 %v13193_v54  ;;  %11545 = vmatprep.subr.bf16.mxu1 %v13195_v33  ;;  %v535_v16 = vld [vmem:[#allocation5 + $0xd78] sm:$0xff]  ;;  %v13232_v54 = vcombine.low %v522_v13, %v526_v27  ;;  %v13234_v33 = vcombine.low %v523_v26, %v527_v28  ;;  %v13265_v13 = vcombine.high %v554_v18, %v558_v59 }
 0x43c   :  { %v13243_v38 = vcombine.high %v531_v35, %v535_v16 }
 0x43e   :  { %11013 = vmatpush1.bf16.msra.mxu0 %v13192_v42  ;;  %11546 = vmatpush1.bf16.msra.mxu1 %v13194_v43  ;;  %v539_v42 = vld [vmem:[#allocation5 + $0xd98] sm:$0xff] }
 0x43f   :  { %11023 = vmatprep.subr.bf16.mxu0 %v13201_v44  ;;  %11556 = vmatprep.subr.bf16.mxu1 %v13203_v46  ;;  %v543_v43 = vld [vmem:[#allocation5 + $0xdb8] sm:$0xff]  ;;  %v13240_v44 = vcombine.low %v530_v32, %v534_v50  ;;  %v13242_v46 = vcombine.low %v531_v35, %v535_v16  ;;  %v570_v35 = vld [vmem:[#allocation5 + $0xe90] sm:$0xff] }
 0x440   :  { %v13251_v57 = vcombine.high %v539_v42, %v543_v43  ;;  %v574_v16 = vld [vmem:[#allocation5 + $0xeb0] sm:$0xff] }
 0x441   :  { %11015 = vmatmul.mubr.bf16.vlgmr.msra.gmra.mrb[4].mxu0 %v15221_v37  ;;  %11548 = vmatmul.mubr.bf16.vlgmr.msra.gmra.mrb[4].mxu1 %v15221_v37  ;;  %v13218_v37 = vcombine.low %v507_v7, %v511_v8  ;;  %v13248_v8 = vcombine.low %v538_v39, %v542_v41  ;;  %v13281_v39 = vcombine.high %v570_v35, %v574_v16 }
 0x442   :  { %11024 = vmatpush1.bf16.msra.mxu0 %v13200_v62  ;;  %11557 = vmatpush1.bf16.msra.mxu1 %v13202_v55  ;;  %v550_v62 = vld [vmem:[#allocation5 + $0xdf0] sm:$0xff] }
 0x443   :  { %11025 = vmatprep.subr.bf16.mxu0 %v13209_v0  ;;  %11558 = vmatprep.subr.bf16.mxu1 %v13211_v4  ;;  %v547_v4 = vld [vmem:[#allocation5 + $0xdd8] sm:$0xff] }
 0x444   :  { %11055 = vmatprep.mubr.bf16.mxu0 %v15227_v47  ;;  %11588 = vmatprep.mubr.bf16.mxu1 %v15227_v47  ;;  %v13235_v47 = vcombine.high %v523_v26, %v527_v28  ;;  %v13259_v15 = vcombine.high %v547_v4, %v551_v40  ;;  %v562_v26 = vld [vmem:[#allocation5 + $0xe50] sm:$0xff] }
 0x445   :  { %v566_v28 = vld [vmem:[#allocation5 + $0xe70] sm:$0xff] }
 0x446   :  { %11026 = vmatpush1.bf16.msra.mxu0 %v13208_v9  ;;  %11559 = vmatpush1.bf16.msra.mxu1 %v13210_v10  ;;  %v13273_v32 = vcombine.high %v562_v26, %v566_v28 }
 0x447   :  { %11027 = vmatprep.subr.bf16.mxu0 %v13217_v24  ;;  %11560 = vmatprep.subr.bf16.mxu1 %v13219_v12  ;;  %v13250_v24 = vcombine.low %v539_v42, %v543_v43  ;;  %v13257_v12 = vcombine.high %v546_v20, %v550_v62  ;;  %v578_v42 = vld [vmem:[#allocation5 + $0xed0] sm:$0xff] }
 0x448   :  { %v582_v43 = vld [vmem:[#allocation5 + $0xef0] sm:$0xff] }
 0x44a   :  { %11028 = vmatpush1.bf16.msra.mxu0 %v13216_v19  ;;  %11561 = vmatpush1.bf16.msra.mxu1 %v13218_v37  ;;  %v555_v19 = vld [vmem:[#allocation5 + $0xe18] sm:$0xff] }
 0x44b   :  { %11029 = vmatprep.subr.bf16.mxu0 %v13225_v22  ;;  %11562 = vmatprep.subr.bf16.mxu1 %v13227_v23  ;;  %v559_v37 = vld [vmem:[#allocation5 + $0xe38] sm:$0xff]  ;;  %v13256_v22 = vcombine.low %v546_v20, %v550_v62  ;;  %v13258_v23 = vcombine.low %v547_v4, %v551_v40  ;;  %v13289_v20 = vcombine.high %v578_v42, %v582_v43  ;;  %v586_v4 = vld [vmem:[#allocation5 + $0xf10] sm:$0xff] }
 0x44c   :  { %v13267_v27 = vcombine.high %v555_v19, %v559_v37  ;;  %v590_v40 = vld [vmem:[#allocation5 + $0xf30] sm:$0xff] }
 0x44e   :  { %11030 = vmatpush1.bf16.msra.mxu0 %v13224_v58  ;;  %11563 = vmatpush1.bf16.msra.mxu1 %v13226_v30  ;;  %v563_v58 = vld [vmem:[#allocation5 + $0xe58] sm:$0xff] }
 0x44f   :  { %11031 = vmatprep.subr.bf16.mxu0 %v13233_v31  ;;  %11564 = vmatprep.subr.bf16.mxu1 %v13235_v47  ;;  %v567_v30 = vld [vmem:[#allocation5 + $0xe78] sm:$0xff]  ;;  %v13264_v31 = vcombine.low %v554_v18, %v558_v59  ;;  %v13266_v47 = vcombine.low %v555_v19, %v559_v37  ;;  %v13296_v19 = vcombine.low %v586_v4, %v590_v40 }
 0x450   :  { %v13275_v50 = vcombine.high %v563_v58, %v567_v30  ;;  %v595_v18 = vld [vmem:[#allocation5 + $0xf58] sm:$0xff] }
 0x451   :  { %v599_v59 = vld [vmem:[#allocation5 + $0xf78] sm:$0xff] }
 0x452   :  { %11032 = vmatpush1.bf16.msra.mxu0 %v13232_v54  ;;  %11565 = vmatpush1.bf16.msra.mxu1 %v13234_v33  ;;  %v571_v54 = vld [vmem:[#allocation5 + $0xe98] sm:$0xff] }
 0x453   :  { %11033 = vmatprep.subr.bf16.mxu0 %v13241_v36  ;;  %11566 = vmatprep.subr.bf16.mxu1 %v13243_v38  ;;  %v575_v33 = vld [vmem:[#allocation5 + $0xeb8] sm:$0xff]  ;;  %v13272_v36 = vcombine.low %v562_v26, %v566_v28  ;;  %v13274_v38 = vcombine.low %v563_v58, %v567_v30  ;;  %v13306_v30 = vcombine.low %v595_v18, %v599_v59 }
 0x454   :  { %v15367_v53 = vpop.f32.mrb[0].mxu0  ;;  %v15369_v55 = vpop.f32.mrb[0].mxu1  ;;  %v13283_v41 = vcombine.high %v571_v54, %v575_v33  ;;  %v603_v26 = vld [vmem:[#allocation5 + $0xf98] sm:$0xff] }
 0x455   :  { %v15371_v0 = vpop.f32.mrb[1].mxu0  ;;  %v15373_v6 = vpop.f32.mrb[1].mxu1  ;;  %v607_v28 = vld [vmem:[#allocation5 + $0xfb8] sm:$0xff] }
 0x456   :  { %v10364_v7 = vpop.f32.mrb[2].mxu0  ;;  %11034 = vmatpush1.bf16.msra.mxu0 %v13240_v44  ;;  %v10897_v9 = vpop.f32.mrb[2].mxu1  ;;  %11567 = vmatpush1.bf16.msra.mxu1 %v13242_v46  ;;  %v579_v44 = vld [vmem:[#allocation5 + $0xed8] sm:$0xff] }
 0x457   :  { %v10365_v10 = vpop.f32.mrb[3].mxu0  ;;  %11035 = vmatprep.subr.bf16.mxu0 %v13249_v48  ;;  %v10898_v14 = vpop.f32.mrb[3].mxu1  ;;  %11568 = vmatprep.subr.bf16.mxu1 %v13251_v57  ;;  %v583_v46 = vld [vmem:[#allocation5 + $0xef8] sm:$0xff]  ;;  %v13280_v48 = vcombine.low %v570_v35, %v574_v16  ;;  %v13282_v57 = vcombine.low %v571_v54, %v575_v33  ;;  %v13288_v9 = vcombine.low %v578_v42, %v582_v43 }
 0x458   :  { %v13291_v62 = vcombine.high %v579_v44, %v583_v46  ;;  %v587_v7 = vld [vmem:[#allocation5 + $0xf18] sm:$0xff]  ;;  %v13290_v10 = vcombine.low %v579_v44, %v583_v46  ;;  %v594_v14 = vld [vmem:[#allocation5 + $0xf50] sm:$0xff]  ;;  %v13314_v33 = vcombine.low %v603_v26, %v607_v28 }
 0x459   :  { %v611_v35 = vld [vmem:[#allocation5 + $0xfd8] sm:$0xff] }
 0x45a   :  { %11036 = vmatpush1.bf16.msra.mxu0 %v13248_v8  ;;  %11569 = vmatpush1.bf16.msra.mxu1 %v13250_v24  ;;  %v591_v8 = vld [vmem:[#allocation5 + $0xf38] sm:$0xff]  ;;  %v13297_v24 = vcombine.high %v586_v4, %v590_v40 }
 0x45b   :  { %11037 = vmatprep.subr.bf16.mxu0 %v13257_v12  ;;  %11570 = vmatprep.subr.bf16.mxu1 %v13259_v15  ;;  %v13299_v12 = vcombine.high %v587_v7, %v591_v8  ;;  %v598_v15 = vld [vmem:[#allocation5 + $0xf70] sm:$0xff]  ;;  %v13298_v37 = vcombine.low %v587_v7, %v591_v8  ;;  %v615_v16 = vld [vmem:[#allocation5 + $0xff8] sm:$0xff] }
 0x45c   :  { %v13304_v58 = vcombine.low %v594_v14, %v598_v15  ;;  %v619_v42 = vld [vmem:[#allocation5 + $0x1018] sm:$0xff]  ;;  %v13322_v46 = vcombine.low %v611_v35, %v615_v16 }
 0x45d   :  { %v623_v43 = vld [vmem:[#allocation5 + $0x1038] sm:$0xff] }
 0x45e   :  { %11038 = vmatpush1.bf16.msra.mxu0 %v13256_v22  ;;  %11571 = vmatpush1.bf16.msra.mxu1 %v13258_v23  ;;  %v13305_v22 = vcombine.high %v594_v14, %v598_v15  ;;  %v13307_v23 = vcombine.high %v595_v18, %v599_v59  ;;  %v627_v4 = vld [vmem:[#allocation5 + $0x1058] sm:$0xff]  ;;  %v13330_v8 = vcombine.low %v619_v42, %v623_v43 }
 0x45f   :  { %11039 = vmatprep.subr.bf16.mxu0 %v13265_v13  ;;  %11572 = vmatprep.subr.bf16.mxu1 %v13267_v27  ;;  %v602_v13 = vld [vmem:[#allocation5 + $0xf90] sm:$0xff]  ;;  %v631_v40 = vld [vmem:[#allocation5 + $0x1078] sm:$0xff] }
 0x460   :  { %v606_v27 = vld [vmem:[#allocation5 + $0xfb0] sm:$0xff]  ;;  %v635_v14 = vld [vmem:[#allocation5 + $0x1098] sm:$0xff]  ;;  %v13338_v59 = vcombine.low %v627_v4, %v631_v40 }
 0x461   :  { %v13312_v54 = vcombine.low %v602_v13, %v606_v27  ;;  %v639_v15 = vld [vmem:[#allocation5 + $0x10b8] sm:$0xff] }
 0x462   :  { %11040 = vmatpush1.bf16.msra.mxu0 %v13264_v31  ;;  %11573 = vmatpush1.bf16.msra.mxu1 %v13266_v47  ;;  %v13313_v31 = vcombine.high %v602_v13, %v606_v27  ;;  %v13315_v47 = vcombine.high %v603_v26, %v607_v28  ;;  %v643_v13 = vld [vmem:[#allocation5 + $0x10d8] sm:$0xff] }
 0x463   :  { %11041 = vmatprep.subr.bf16.mxu0 %v13273_v32  ;;  %11574 = vmatprep.subr.bf16.mxu1 %v13275_v50  ;;  %v610_v32 = vld [vmem:[#allocation5 + $0xfd0] sm:$0xff]  ;;  %v647_v27 = vld [vmem:[#allocation5 + $0x10f8] sm:$0xff] }
 0x464   :  { %v614_v50 = vld [vmem:[#allocation5 + $0xff0] sm:$0xff] }
 0x465   :  { %v13320_v44 = vcombine.low %v610_v32, %v614_v50 }
 0x466   :  { %11042 = vmatpush1.bf16.msra.mxu0 %v13272_v36  ;;  %11575 = vmatpush1.bf16.msra.mxu1 %v13274_v38  ;;  %v13321_v36 = vcombine.high %v610_v32, %v614_v50  ;;  %v13323_v38 = vcombine.high %v611_v35, %v615_v16  ;;  %v655_v32 = vld [vmem:[#allocation5 + $0x1138] sm:$0xff]  ;;  %v13354_v35 = vcombine.low %v643_v13, %v647_v27 }
 0x467   :  { %11043 = vmatprep.subr.bf16.mxu0 %v13281_v39  ;;  %11576 = vmatprep.subr.bf16.mxu1 %v13283_v41  ;;  %v618_v39 = vld [vmem:[#allocation5 + $0x1010] sm:$0xff] }
 0x468   :  { %v622_v41 = vld [vmem:[#allocation5 + $0x1030] sm:$0xff] }
 0x469   :  { %v13328_v7 = vcombine.low %v618_v39, %v622_v41 }
 0x46a   :  { %11044 = vmatpush1.bf16.msra.mxu0 %v13280_v48  ;;  %11577 = vmatpush1.bf16.msra.mxu1 %v13282_v57  ;;  %v13329_v48 = vcombine.high %v618_v39, %v622_v41  ;;  %v13331_v57 = vcombine.high %v619_v42, %v623_v43 }
 0x46b   :  { %11045 = vmatprep.subr.bf16.mxu0 %v13289_v20  ;;  %11578 = vmatprep.subr.bf16.mxu1 %v13291_v62  ;;  %v626_v20 = vld [vmem:[#allocation5 + $0x1050] sm:$0xff] }
 0x46c   :  { %v630_v62 = vld [vmem:[#allocation5 + $0x1070] sm:$0xff] }
 0x46d   :  { %v13336_v18 = vcombine.low %v626_v20, %v630_v62 }
 0x46e   :  { %11046 = vmatpush1.bf16.msra.mxu0 %v13288_v9  ;;  %11579 = vmatpush1.bf16.msra.mxu1 %v13290_v10  ;;  %v13337_v9 = vcombine.high %v626_v20, %v630_v62  ;;  %v13339_v10 = vcombine.high %v627_v4, %v631_v40 }
 0x46f   :  { %11047 = vmatprep.subr.bf16.mxu0 %v13297_v24  ;;  %11580 = vmatprep.subr.bf16.mxu1 %v13299_v12  ;;  %v634_v24 = vld [vmem:[#allocation5 + $0x1090] sm:$0xff] }
 0x470   :  { %v638_v12 = vld [vmem:[#allocation5 + $0x10b0] sm:$0xff] }
 0x471   :  { %v13344_v26 = vcombine.low %v634_v24, %v638_v12 }
 0x472   :  { %11048 = vmatpush1.bf16.msra.mxu0 %v13296_v19  ;;  %11581 = vmatpush1.bf16.msra.mxu1 %v13298_v37  ;;  %v13345_v19 = vcombine.high %v634_v24, %v638_v12  ;;  %v13347_v37 = vcombine.high %v635_v14, %v639_v15 }
 0x473   :  { %11049 = vmatprep.subr.bf16.mxu0 %v13305_v22  ;;  %11582 = vmatprep.subr.bf16.mxu1 %v13307_v23  ;;  %v642_v22 = vld [vmem:[#allocation5 + $0x10d0] sm:$0xff] }
 0x474   :  { %v646_v23 = vld [vmem:[#allocation5 + $0x10f0] sm:$0xff] }
 0x475   :  { %v13353_v28 = vcombine.high %v642_v22, %v646_v23  ;;  %v13352_v50 = vcombine.low %v642_v22, %v646_v23 }
 0x476   :  { %11050 = vmatpush1.bf16.msra.mxu0 %v13304_v58  ;;  %11583 = vmatpush1.bf16.msra.mxu1 %v13306_v30  ;;  %v13355_v58 = vcombine.high %v643_v13, %v647_v27  ;;  %v650_v30 = vld [vmem:[#allocation5 + $0x1110] sm:$0xff] }
 0x477   :  { %11051 = vmatprep.subr.bf16.mxu0 %v13313_v31  ;;  %11584 = vmatprep.subr.bf16.mxu1 %v13315_v47  ;;  %v654_v31 = vld [vmem:[#allocation5 + $0x1130] sm:$0xff]  ;;  %v651_v47 = vld [vmem:[#allocation5 + $0x1118] sm:$0xff] }
 0x478   :  { %v13361_v16 = vcombine.high %v650_v30, %v654_v31  ;;  %v13360_v39 = vcombine.low %v650_v30, %v654_v31  ;;  %v13362_v41 = vcombine.low %v651_v47, %v655_v32 }
 0x47a   :  { %11052 = vmatpush1.bf16.msra.mxu0 %v13312_v54  ;;  %11585 = vmatpush1.bf16.msra.mxu1 %v13314_v33  ;;  %v658_v54 = vld [vmem:[#allocation5 + $0x1150] sm:$0xff] }
 0x47b   :  { %11053 = vmatprep.subr.bf16.mxu0 %v13321_v36  ;;  %11586 = vmatprep.subr.bf16.mxu1 %v13323_v38  ;;  %v662_v33 = vld [vmem:[#allocation5 + $0x1170] sm:$0xff]  ;;  %v659_v36 = vld [vmem:[#allocation5 + $0x1158] sm:$0xff] }
 0x47c   :  { %v663_v38 = vld [vmem:[#allocation5 + $0x1178] sm:$0xff]  ;;  %v13369_v42 = vcombine.high %v658_v54, %v662_v33  ;;  %v13368_v20 = vcombine.low %v658_v54, %v662_v33 }
 0x47d   :  { %v13371_v43 = vcombine.high %v659_v36, %v663_v38  ;;  %v13370_v62 = vcombine.low %v659_v36, %v663_v38 }
 0x47e   :  { %11054 = vmatpush1.bf16.msra.mxu0 %v13320_v44  ;;  %11587 = vmatpush1.bf16.msra.mxu1 %v13322_v46  ;;  %v666_v44 = vld [vmem:[#allocation5 + $0x1190] sm:$0xff] }
 0x47f   :  { %11064 = vmatprep.subr.bf16.mxu0 %v13329_v48  ;;  %11597 = vmatprep.subr.bf16.mxu1 %v13331_v57  ;;  %v670_v46 = vld [vmem:[#allocation5 + $0x11b0] sm:$0xff]  ;;  %v667_v48 = vld [vmem:[#allocation5 + $0x1198] sm:$0xff] }
 0x480   :  { %v671_v57 = vld [vmem:[#allocation5 + $0x11b8] sm:$0xff]  ;;  %v13377_v4 = vcombine.high %v666_v44, %v670_v46  ;;  %v13376_v24 = vcombine.low %v666_v44, %v670_v46 }
 0x481   :  { %11056 = vmatmul.mubr.bf16.vlgmr.msra.gmra.mrb[4].mxu0 %v15235_v56  ;;  %11589 = vmatmul.mubr.bf16.vlgmr.msra.gmra.mrb[4].mxu1 %v15235_v56  ;;  %v13346_v56 = vcombine.low %v635_v14, %v639_v15  ;;  %v13379_v40 = vcombine.high %v667_v48, %v671_v57  ;;  %v13378_v12 = vcombine.low %v667_v48, %v671_v57 }
 0x482   :  { %11065 = vmatpush1.bf16.msra.mxu0 %v13328_v7  ;;  %11598 = vmatpush1.bf16.msra.mxu1 %v13330_v8  ;;  %v674_v7 = vld [vmem:[#allocation5 + $0x11d0] sm:$0xff] }
 0x483   :  { %11066 = vmatprep.subr.bf16.mxu0 %v13337_v9  ;;  %11599 = vmatprep.subr.bf16.mxu1 %v13339_v10  ;;  %v678_v8 = vld [vmem:[#allocation5 + $0x11f0] sm:$0xff]  ;;  %v675_v9 = vld [vmem:[#allocation5 + $0x11d8] sm:$0xff] }
 0x484   :  { %11096 = vmatprep.mubr.bf16.mxu0 %v15241_v3  ;;  %11629 = vmatprep.mubr.bf16.mxu1 %v15241_v3  ;;  %v13363_v3 = vcombine.high %v651_v47, %v655_v32  ;;  %v679_v10 = vld [vmem:[#allocation5 + $0x11f8] sm:$0xff]  ;;  %v13385_v14 = vcombine.high %v674_v7, %v678_v8  ;;  %v13384_v22 = vcombine.low %v674_v7, %v678_v8 }
 0x485   :  { %v13387_v15 = vcombine.high %v675_v9, %v679_v10  ;;  %v13386_v23 = vcombine.low %v675_v9, %v679_v10 }
 0x486   :  { %11067 = vmatpush1.bf16.msra.mxu0 %v13336_v18  ;;  %11600 = vmatpush1.bf16.msra.mxu1 %v13338_v59  ;;  %v682_v18 = vld [vmem:[#allocation5 + $0x1210] sm:$0xff] }
 0x487   :  { %11068 = vmatprep.subr.bf16.mxu0 %v13345_v19  ;;  %11601 = vmatprep.subr.bf16.mxu1 %v13347_v37  ;;  %v686_v59 = vld [vmem:[#allocation5 + $0x1230] sm:$0xff]  ;;  %v683_v19 = vld [vmem:[#allocation5 + $0x1218] sm:$0xff] }
 0x488   :  { %v687_v37 = vld [vmem:[#allocation5 + $0x1238] sm:$0xff]  ;;  %v13393_v13 = vcombine.high %v682_v18, %v686_v59  ;;  %v13392_v30 = vcombine.low %v682_v18, %v686_v59 }
 0x489   :  { %v13395_v27 = vcombine.high %v683_v19, %v687_v37  ;;  %v13394_v31 = vcombine.low %v683_v19, %v687_v37 }
 0x48a   :  { %11069 = vmatpush1.bf16.msra.mxu0 %v13344_v26  ;;  %11602 = vmatpush1.bf16.msra.mxu1 %v13346_v56  ;;  %v690_v26 = vld [vmem:[#allocation5 + $0x1250] sm:$0xff] }
 0x48b   :  { %11070 = vmatprep.subr.bf16.mxu0 %v13353_v28  ;;  %11603 = vmatprep.subr.bf16.mxu1 %v13355_v58  ;;  %v694_v56 = vld [vmem:[#allocation5 + $0x1270] sm:$0xff]  ;;  %v691_v28 = vld [vmem:[#allocation5 + $0x1258] sm:$0xff] }
 0x48c   :  { %v695_v58 = vld [vmem:[#allocation5 + $0x1278] sm:$0xff]  ;;  %v13401_v47 = vcombine.high %v690_v26, %v694_v56  ;;  %v13400_v54 = vcombine.low %v690_v26, %v694_v56 }
 0x48d   :  { %v13403_v32 = vcombine.high %v691_v28, %v695_v58  ;;  %v13402_v33 = vcombine.low %v691_v28, %v695_v58 }
 0x48e   :  { %11071 = vmatpush1.bf16.msra.mxu0 %v13352_v50  ;;  %11604 = vmatpush1.bf16.msra.mxu1 %v13354_v35  ;;  %v698_v50 = vld [vmem:[#allocation5 + $0x1290] sm:$0xff] }
 0x48f   :  { %11072 = vmatprep.subr.bf16.mxu0 %v13361_v16  ;;  %11605 = vmatprep.subr.bf16.mxu1 %v13363_v3  ;;  %v702_v35 = vld [vmem:[#allocation5 + $0x12b0] sm:$0xff]  ;;  %v699_v16 = vld [vmem:[#allocation5 + $0x1298] sm:$0xff] }
 0x490   :  { %v703_v3 = vld [vmem:[#allocation5 + $0x12b8] sm:$0xff]  ;;  %v13409_v36 = vcombine.high %v698_v50, %v702_v35  ;;  %v13408_v44 = vcombine.low %v698_v50, %v702_v35 }
 0x491   :  { %v13411_v38 = vcombine.high %v699_v16, %v703_v3  ;;  %v13410_v46 = vcombine.low %v699_v16, %v703_v3 }
 0x492   :  { %11073 = vmatpush1.bf16.msra.mxu0 %v13360_v39  ;;  %11606 = vmatpush1.bf16.msra.mxu1 %v13362_v41  ;;  %v706_v39 = vld [vmem:[#allocation5 + $0x12d0] sm:$0xff] }
 0x493   :  { %11074 = vmatprep.subr.bf16.mxu0 %v13369_v42  ;;  %11607 = vmatprep.subr.bf16.mxu1 %v13371_v43  ;;  %v710_v41 = vld [vmem:[#allocation5 + $0x12f0] sm:$0xff]  ;;  %v707_v42 = vld [vmem:[#allocation5 + $0x12d8] sm:$0xff] }
 0x494   :  { %v711_v43 = vld [vmem:[#allocation5 + $0x12f8] sm:$0xff]  ;;  %v13417_v48 = vcombine.high %v706_v39, %v710_v41  ;;  %v13416_v7 = vcombine.low %v706_v39, %v710_v41 }
 0x495   :  { %v13419_v57 = vcombine.high %v707_v42, %v711_v43  ;;  %v13418_v8 = vcombine.low %v707_v42, %v711_v43 }
 0x496   :  { %11075 = vmatpush1.bf16.msra.mxu0 %v13368_v20  ;;  %11608 = vmatpush1.bf16.msra.mxu1 %v13370_v62  ;;  %v714_v20 = vld [vmem:[#allocation5 + $0x1310] sm:$0xff] }
 0x497   :  { %11076 = vmatprep.subr.bf16.mxu0 %v13377_v4  ;;  %11609 = vmatprep.subr.bf16.mxu1 %v13379_v40  ;;  %v718_v62 = vld [vmem:[#allocation5 + $0x1330] sm:$0xff]  ;;  %v715_v4 = vld [vmem:[#allocation5 + $0x1318] sm:$0xff] }
 0x498   :  { %v719_v40 = vld [vmem:[#allocation5 + $0x1338] sm:$0xff]  ;;  %v13425_v9 = vcombine.high %v714_v20, %v718_v62  ;;  %v13424_v18 = vcombine.low %v714_v20, %v718_v62 }
 0x499   :  { %v13427_v10 = vcombine.high %v715_v4, %v719_v40  ;;  %v13426_v59 = vcombine.low %v715_v4, %v719_v40 }
 0x49a   :  { %11077 = vmatpush1.bf16.msra.mxu0 %v13376_v24  ;;  %11610 = vmatpush1.bf16.msra.mxu1 %v13378_v12  ;;  %v722_v24 = vld [vmem:[#allocation5 + $0x1350] sm:$0xff] }
 0x49b   :  { %11078 = vmatprep.subr.bf16.mxu0 %v13385_v14  ;;  %11611 = vmatprep.subr.bf16.mxu1 %v13387_v15  ;;  %v726_v12 = vld [vmem:[#allocation5 + $0x1370] sm:$0xff]  ;;  %v723_v14 = vld [vmem:[#allocation5 + $0x1358] sm:$0xff] }
 0x49c   :  { %v727_v15 = vld [vmem:[#allocation5 + $0x1378] sm:$0xff]  ;;  %v13433_v19 = vcombine.high %v722_v24, %v726_v12  ;;  %v13432_v26 = vcombine.low %v722_v24, %v726_v12 }
 0x49d   :  { %v13435_v37 = vcombine.high %v723_v14, %v727_v15  ;;  %v13434_v56 = vcombine.low %v723_v14, %v727_v15 }
 0x49e   :  { %11079 = vmatpush1.bf16.msra.mxu0 %v13384_v22  ;;  %11612 = vmatpush1.bf16.msra.mxu1 %v13386_v23  ;;  %v730_v22 = vld [vmem:[#allocation5 + $0x1390] sm:$0xff] }
 0x49f   :  { %11080 = vmatprep.subr.bf16.mxu0 %v13393_v13  ;;  %11613 = vmatprep.subr.bf16.mxu1 %v13395_v27  ;;  %v734_v23 = vld [vmem:[#allocation5 + $0x13b0] sm:$0xff]  ;;  %v731_v13 = vld [vmem:[#allocation5 + $0x1398] sm:$0xff] }
 0x4a0   :  { %v735_v27 = vld [vmem:[#allocation5 + $0x13b8] sm:$0xff]  ;;  %v13441_v28 = vcombine.high %v730_v22, %v734_v23  ;;  %v13440_v50 = vcombine.low %v730_v22, %v734_v23 }
 0x4a1   :  { %v13443_v58 = vcombine.high %v731_v13, %v735_v27  ;;  %v13442_v35 = vcombine.low %v731_v13, %v735_v27  ;;  %v778_v27 = vld [vmem:[#allocation5 + $0x1510] sm:$0xff] }
 0x4a2   :  { %11081 = vmatpush1.bf16.msra.mxu0 %v13392_v30  ;;  %11614 = vmatpush1.bf16.msra.mxu1 %v13394_v31  ;;  %v738_v30 = vld [vmem:[#allocation5 + $0x13d0] sm:$0xff] }
 0x4a3   :  { %11082 = vmatprep.subr.bf16.mxu0 %v13401_v47  ;;  %11615 = vmatprep.subr.bf16.mxu1 %v13403_v32  ;;  %v742_v31 = vld [vmem:[#allocation5 + $0x13f0] sm:$0xff]  ;;  %v739_v47 = vld [vmem:[#allocation5 + $0x13d8] sm:$0xff] }
 0x4a4   :  { %v743_v32 = vld [vmem:[#allocation5 + $0x13f8] sm:$0xff]  ;;  %v13449_v16 = vcombine.high %v738_v30, %v742_v31  ;;  %v13448_v39 = vcombine.low %v738_v30, %v742_v31 }
 0x4a5   :  { %v13451_v3 = vcombine.high %v739_v47, %v743_v32  ;;  %v13450_v41 = vcombine.low %v739_v47, %v743_v32  ;;  %v786_v47 = vld [vmem:[#allocation5 + $0x1550] sm:$0xff] }
 0x4a6   :  { %11083 = vmatpush1.bf16.msra.mxu0 %v13400_v54  ;;  %11616 = vmatpush1.bf16.msra.mxu1 %v13402_v33  ;;  %v746_v54 = vld [vmem:[#allocation5 + $0x1410] sm:$0xff] }
 0x4a7   :  { %11084 = vmatprep.subr.bf16.mxu0 %v13409_v36  ;;  %11617 = vmatprep.subr.bf16.mxu1 %v13411_v38  ;;  %v750_v33 = vld [vmem:[#allocation5 + $0x1430] sm:$0xff]  ;;  %v747_v36 = vld [vmem:[#allocation5 + $0x1418] sm:$0xff] }
 0x4a8   :  { %v751_v38 = vld [vmem:[#allocation5 + $0x1438] sm:$0xff]  ;;  %v13457_v42 = vcombine.high %v746_v54, %v750_v33  ;;  %v13456_v20 = vcombine.low %v746_v54, %v750_v33  ;;  %v790_v32 = vld [vmem:[#allocation5 + $0x1570] sm:$0xff] }
 0x4a9   :  { %v13459_v43 = vcombine.high %v747_v36, %v751_v38  ;;  %v13458_v62 = vcombine.low %v747_v36, %v751_v38  ;;  %v13497_v54 = vcombine.high %v786_v47, %v790_v32  ;;  %v794_v36 = vld [vmem:[#allocation5 + $0x1590] sm:$0xff] }
 0x4aa   :  { %11085 = vmatpush1.bf16.msra.mxu0 %v13408_v44  ;;  %11618 = vmatpush1.bf16.msra.mxu1 %v13410_v46  ;;  %v754_v44 = vld [vmem:[#allocation5 + $0x1450] sm:$0xff] }
 0x4ab   :  { %11086 = vmatprep.subr.bf16.mxu0 %v13417_v48  ;;  %11619 = vmatprep.subr.bf16.mxu1 %v13419_v57  ;;  %v758_v46 = vld [vmem:[#allocation5 + $0x1470] sm:$0xff]  ;;  %v755_v48 = vld [vmem:[#allocation5 + $0x1458] sm:$0xff] }
 0x4ac   :  { %v759_v57 = vld [vmem:[#allocation5 + $0x1478] sm:$0xff]  ;;  %v13465_v4 = vcombine.high %v754_v44, %v758_v46  ;;  %v13464_v24 = vcombine.low %v754_v44, %v758_v46  ;;  %v798_v38 = vld [vmem:[#allocation5 + $0x15b0] sm:$0xff] }
 0x4ad   :  { %v13467_v40 = vcombine.high %v755_v48, %v759_v57  ;;  %v13466_v12 = vcombine.low %v755_v48, %v759_v57  ;;  %v13505_v44 = vcombine.high %v794_v36, %v798_v38  ;;  %v802_v48 = vld [vmem:[#allocation5 + $0x15d0] sm:$0xff] }
 0x4ae   :  { %11087 = vmatpush1.bf16.msra.mxu0 %v13416_v7  ;;  %11620 = vmatpush1.bf16.msra.mxu1 %v13418_v8  ;;  %v762_v7 = vld [vmem:[#allocation5 + $0x1490] sm:$0xff] }
 0x4af   :  { %11088 = vmatprep.subr.bf16.mxu0 %v13425_v9  ;;  %11621 = vmatprep.subr.bf16.mxu1 %v13427_v10  ;;  %v766_v8 = vld [vmem:[#allocation5 + $0x14b0] sm:$0xff]  ;;  %v763_v9 = vld [vmem:[#allocation5 + $0x1498] sm:$0xff] }
 0x4b0   :  { %v767_v10 = vld [vmem:[#allocation5 + $0x14b8] sm:$0xff]  ;;  %v13473_v14 = vcombine.high %v762_v7, %v766_v8  ;;  %v13472_v22 = vcombine.low %v762_v7, %v766_v8  ;;  %v806_v57 = vld [vmem:[#allocation5 + $0x15f0] sm:$0xff] }
 0x4b1   :  { %v13475_v15 = vcombine.high %v763_v9, %v767_v10  ;;  %v13513_v7 = vcombine.high %v802_v48, %v806_v57 }
 0x4b2   :  { %11089 = vmatpush1.bf16.msra.mxu0 %v13424_v18  ;;  %11622 = vmatpush1.bf16.msra.mxu1 %v13426_v59  ;;  %v770_v18 = vld [vmem:[#allocation5 + $0x14d0] sm:$0xff] }
 0x4b3   :  { %11090 = vmatprep.subr.bf16.mxu0 %v13433_v19  ;;  %11623 = vmatprep.subr.bf16.mxu1 %v13435_v37  ;;  %v774_v59 = vld [vmem:[#allocation5 + $0x14f0] sm:$0xff]  ;;  %v771_v19 = vld [vmem:[#allocation5 + $0x14d8] sm:$0xff] }
 0x4b4   :  { %v775_v37 = vld [vmem:[#allocation5 + $0x14f8] sm:$0xff]  ;;  %v13481_v23 = vcombine.high %v770_v18, %v774_v59 }
 0x4b5   :  { %v13483_v13 = vcombine.high %v771_v19, %v775_v37  ;;  %v13482_v30 = vcombine.low %v771_v19, %v775_v37  ;;  %v818_v19 = vld [vmem:[#allocation5 + $0x1650] sm:$0xff] }
 0x4b6   :  { %11091 = vmatpush1.bf16.msra.mxu0 %v13432_v26  ;;  %11624 = vmatpush1.bf16.msra.mxu1 %v13434_v56  ;;  %v782_v26 = vld [vmem:[#allocation5 + $0x1530] sm:$0xff]  ;;  %v779_v56 = vld [vmem:[#allocation5 + $0x1518] sm:$0xff] }
 0x4b7   :  { %11092 = vmatprep.subr.bf16.mxu0 %v13441_v28  ;;  %11625 = vmatprep.subr.bf16.mxu1 %v13443_v58  ;;  %v783_v28 = vld [vmem:[#allocation5 + $0x1538] sm:$0xff]  ;;  %v13480_v58 = vcombine.low %v770_v18, %v774_v59  ;;  %v13489_v31 = vcombine.high %v778_v27, %v782_v26  ;;  %v822_v37 = vld [vmem:[#allocation5 + $0x1670] sm:$0xff] }
 0x4ba   :  { %11093 = vmatpush1.bf16.msra.mxu0 %v13440_v50  ;;  %11626 = vmatpush1.bf16.msra.mxu1 %v13442_v35  ;;  %v787_v50 = vld [vmem:[#allocation5 + $0x1558] sm:$0xff] }
 0x4bb   :  { %11094 = vmatprep.subr.bf16.mxu0 %v13449_v16  ;;  %11627 = vmatprep.subr.bf16.mxu1 %v13451_v3  ;;  %v791_v35 = vld [vmem:[#allocation5 + $0x1578] sm:$0xff]  ;;  %v13488_v16 = vcombine.low %v778_v27, %v782_v26  ;;  %v13490_v3 = vcombine.low %v779_v56, %v783_v28  ;;  %v13529_v27 = vcombine.high %v818_v19, %v822_v37 }
 0x4bc   :  { %v13499_v33 = vcombine.high %v787_v50, %v791_v35 }
 0x4be   :  { %11095 = vmatpush1.bf16.msra.mxu0 %v13448_v39  ;;  %11628 = vmatpush1.bf16.msra.mxu1 %v13450_v41  ;;  %v795_v39 = vld [vmem:[#allocation5 + $0x1598] sm:$0xff] }
 0x4bf   :  { %11105 = vmatprep.subr.bf16.mxu0 %v13457_v42  ;;  %11638 = vmatprep.subr.bf16.mxu1 %v13459_v43  ;;  %v799_v41 = vld [vmem:[#allocation5 + $0x15b8] sm:$0xff]  ;;  %v13496_v42 = vcombine.low %v786_v47, %v790_v32  ;;  %v13498_v43 = vcombine.low %v787_v50, %v791_v35  ;;  %v834_v50 = vld [vmem:[#allocation5 + $0x16d0] sm:$0xff] }
 0x4c0   :  { %v13507_v46 = vcombine.high %v795_v39, %v799_v41  ;;  %v838_v35 = vld [vmem:[#allocation5 + $0x16f0] sm:$0xff] }
 0x4c1   :  { %11097 = vmatmul.mubr.bf16.vlgmr.msra.gmra.mrb[4].mxu0 %v15249_v17  ;;  %11630 = vmatmul.mubr.bf16.vlgmr.msra.gmra.mrb[4].mxu1 %v15249_v17  ;;  %v13474_v17 = vcombine.low %v763_v9, %v767_v10  ;;  %v810_v9 = vld [vmem:[#allocation5 + $0x1610] sm:$0xff] }
 0x4c2   :  { %11106 = vmatpush1.bf16.msra.mxu0 %v13456_v20  ;;  %11639 = vmatpush1.bf16.msra.mxu1 %v13458_v62  ;;  %v803_v20 = vld [vmem:[#allocation5 + $0x15d8] sm:$0xff]  ;;  %v814_v10 = vld [vmem:[#allocation5 + $0x1630] sm:$0xff] }
 0x4c3   :  { %11107 = vmatprep.subr.bf16.mxu0 %v13465_v4  ;;  %11640 = vmatprep.subr.bf16.mxu1 %v13467_v40  ;;  %v807_v62 = vld [vmem:[#allocation5 + $0x15f8] sm:$0xff]  ;;  %v13504_v4 = vcombine.low %v794_v36, %v798_v38  ;;  %v13506_v40 = vcombine.low %v795_v39, %v799_v41  ;;  %v13521_v18 = vcombine.high %v810_v9, %v814_v10  ;;  %v842_v39 = vld [vmem:[#allocation5 + $0x1710] sm:$0xff] }
 0x4c4   :  { %11137 = vmatprep.mubr.bf16.mxu0 %v15255_v29  ;;  %11670 = vmatprep.mubr.bf16.mxu1 %v15255_v29  ;;  %v13491_v29 = vcombine.high %v779_v56, %v783_v28  ;;  %v13515_v8 = vcombine.high %v803_v20, %v807_v62  ;;  %v826_v56 = vld [vmem:[#allocation5 + $0x1690] sm:$0xff]  ;;  %v13545_v36 = vcombine.high %v834_v50, %v838_v35 }
 0x4c5   :  { %v830_v28 = vld [vmem:[#allocation5 + $0x16b0] sm:$0xff] }
 0x4c6   :  { %11108 = vmatpush1.bf16.msra.mxu0 %v13464_v24  ;;  %11641 = vmatpush1.bf16.msra.mxu1 %v13466_v12  ;;  %v811_v24 = vld [vmem:[#allocation5 + $0x1618] sm:$0xff]  ;;  %v13537_v47 = vcombine.high %v826_v56, %v830_v28  ;;  %v846_v41 = vld [vmem:[#allocation5 + $0x1730] sm:$0xff] }
 0x4c7   :  { %11109 = vmatprep.subr.bf16.mxu0 %v13473_v14  ;;  %11642 = vmatprep.subr.bf16.mxu1 %v13475_v15  ;;  %v815_v12 = vld [vmem:[#allocation5 + $0x1638] sm:$0xff]  ;;  %v13512_v14 = vcombine.low %v802_v48, %v806_v57  ;;  %v13514_v15 = vcombine.low %v803_v20, %v807_v62  ;;  %v13553_v48 = vcombine.high %v842_v39, %v846_v41  ;;  %v850_v20 = vld [vmem:[#allocation5 + $0x1750] sm:$0xff] }
 0x4c8   :  { %v13523_v59 = vcombine.high %v811_v24, %v815_v12  ;;  %v854_v62 = vld [vmem:[#allocation5 + $0x1770] sm:$0xff] }
 0x4ca   :  { %11110 = vmatpush1.bf16.msra.mxu0 %v13472_v22  ;;  %11643 = vmatpush1.bf16.msra.mxu1 %v13474_v17  ;;  %v819_v22 = vld [vmem:[#allocation5 + $0x1658] sm:$0xff] }
 0x4cb   :  { %11111 = vmatprep.subr.bf16.mxu0 %v13481_v23  ;;  %11644 = vmatprep.subr.bf16.mxu1 %v13483_v13  ;;  %v823_v17 = vld [vmem:[#allocation5 + $0x1678] sm:$0xff]  ;;  %v13520_v23 = vcombine.low %v810_v9, %v814_v10  ;;  %v13522_v13 = vcombine.low %v811_v24, %v815_v12  ;;  %v13561_v9 = vcombine.high %v850_v20, %v854_v62  ;;  %v858_v24 = vld [vmem:[#allocation5 + $0x1790] sm:$0xff] }
 0x4cc   :  { %v13531_v26 = vcombine.high %v819_v22, %v823_v17  ;;  %v862_v12 = vld [vmem:[#allocation5 + $0x17b0] sm:$0xff] }
 0x4ce   :  { %11112 = vmatpush1.bf16.msra.mxu0 %v13480_v58  ;;  %11645 = vmatpush1.bf16.msra.mxu1 %v13482_v30  ;;  %v827_v58 = vld [vmem:[#allocation5 + $0x1698] sm:$0xff] }
 0x4cf   :  { %11113 = vmatprep.subr.bf16.mxu0 %v13489_v31  ;;  %11646 = vmatprep.subr.bf16.mxu1 %v13491_v29  ;;  %v831_v30 = vld [vmem:[#allocation5 + $0x16b8] sm:$0xff]  ;;  %v13528_v31 = vcombine.low %v818_v19, %v822_v37  ;;  %v13530_v29 = vcombine.low %v819_v22, %v823_v17  ;;  %v13569_v19 = vcombine.high %v858_v24, %v862_v12  ;;  %v866_v22 = vld [vmem:[#allocation5 + $0x17d0] sm:$0xff] }
 0x4d0   :  { %v13539_v32 = vcombine.high %v827_v58, %v831_v30  ;;  %v870_v17 = vld [vmem:[#allocation5 + $0x17f0] sm:$0xff] }
 0x4d2   :  { %11114 = vmatpush1.bf16.msra.mxu0 %v13488_v16  ;;  %11647 = vmatpush1.bf16.msra.mxu1 %v13490_v3  ;;  %v835_v16 = vld [vmem:[#allocation5 + $0x16d8] sm:$0xff] }
 0x4d3   :  { %11115 = vmatprep.subr.bf16.mxu0 %v13497_v54  ;;  %11648 = vmatprep.subr.bf16.mxu1 %v13499_v33  ;;  %v839_v3 = vld [vmem:[#allocation5 + $0x16f8] sm:$0xff]  ;;  %v13536_v54 = vcombine.low %v826_v56, %v830_v28  ;;  %v13538_v33 = vcombine.low %v827_v58, %v831_v30  ;;  %v13577_v56 = vcombine.high %v866_v22, %v870_v17  ;;  %v874_v58 = vld [vmem:[#allocation5 + $0x1810] sm:$0xff] }
 0x4d4   :  { %v13547_v38 = vcombine.high %v835_v16, %v839_v3  ;;  %v878_v30 = vld [vmem:[#allocation5 + $0x1830] sm:$0xff] }
 0x4d6   :  { %11116 = vmatpush1.bf16.msra.mxu0 %v13496_v42  ;;  %11649 = vmatpush1.bf16.msra.mxu1 %v13498_v43  ;;  %v843_v42 = vld [vmem:[#allocation5 + $0x1718] sm:$0xff] }
 0x4d7   :  { %11117 = vmatprep.subr.bf16.mxu0 %v13505_v44  ;;  %11650 = vmatprep.subr.bf16.mxu1 %v13507_v46  ;;  %v847_v43 = vld [vmem:[#allocation5 + $0x1738] sm:$0xff]  ;;  %v13544_v44 = vcombine.low %v834_v50, %v838_v35  ;;  %v13546_v46 = vcombine.low %v835_v16, %v839_v3  ;;  %v13585_v50 = vcombine.high %v874_v58, %v878_v30  ;;  %v882_v16 = vld [vmem:[#allocation5 + $0x1850] sm:$0xff] }
 0x4d8   :  { %v13555_v57 = vcombine.high %v843_v42, %v847_v43  ;;  %v886_v3 = vld [vmem:[#allocation5 + $0x1870] sm:$0xff] }
 0x4da   :  { %11118 = vmatpush1.bf16.msra.mxu0 %v13504_v4  ;;  %11651 = vmatpush1.bf16.msra.mxu1 %v13506_v40  ;;  %v851_v4 = vld [vmem:[#allocation5 + $0x1758] sm:$0xff] }
 0x4db   :  { %11119 = vmatprep.subr.bf16.mxu0 %v13513_v7  ;;  %11652 = vmatprep.subr.bf16.mxu1 %v13515_v8  ;;  %v855_v40 = vld [vmem:[#allocation5 + $0x1778] sm:$0xff]  ;;  %v13552_v7 = vcombine.low %v842_v39, %v846_v41  ;;  %v13554_v8 = vcombine.low %v843_v42, %v847_v43  ;;  %v13593_v39 = vcombine.high %v882_v16, %v886_v3  ;;  %v890_v42 = vld [vmem:[#allocation5 + $0x1890] sm:$0xff] }
 0x4dc   :  { %v13563_v10 = vcombine.high %v851_v4, %v855_v40  ;;  %v894_v43 = vld [vmem:[#allocation5 + $0x18b0] sm:$0xff] }
 0x4de   :  { %11120 = vmatpush1.bf16.msra.mxu0 %v13512_v14  ;;  %11653 = vmatpush1.bf16.msra.mxu1 %v13514_v15  ;;  %v859_v14 = vld [vmem:[#allocation5 + $0x1798] sm:$0xff] }
 0x4df   :  { %11121 = vmatprep.subr.bf16.mxu0 %v13521_v18  ;;  %11654 = vmatprep.subr.bf16.mxu1 %v13523_v59  ;;  %v863_v15 = vld [vmem:[#allocation5 + $0x17b8] sm:$0xff]  ;;  %v13560_v18 = vcombine.low %v850_v20, %v854_v62  ;;  %v13562_v59 = vcombine.low %v851_v4, %v855_v40  ;;  %v13601_v20 = vcombine.high %v890_v42, %v894_v43  ;;  %v898_v4 = vld [vmem:[#allocation5 + $0x18d0] sm:$0xff] }
 0x4e0   :  { %v13571_v37 = vcombine.high %v859_v14, %v863_v15  ;;  %v902_v40 = vld [vmem:[#allocation5 + $0x18f0] sm:$0xff] }
 0x4e2   :  { %11122 = vmatpush1.bf16.msra.mxu0 %v13520_v23  ;;  %11655 = vmatpush1.bf16.msra.mxu1 %v13522_v13  ;;  %v867_v23 = vld [vmem:[#allocation5 + $0x17d8] sm:$0xff] }
 0x4e3   :  { %11123 = vmatprep.subr.bf16.mxu0 %v13529_v27  ;;  %11656 = vmatprep.subr.bf16.mxu1 %v13531_v26  ;;  %v871_v13 = vld [vmem:[#allocation5 + $0x17f8] sm:$0xff]  ;;  %v13568_v27 = vcombine.low %v858_v24, %v862_v12  ;;  %v13570_v26 = vcombine.low %v859_v14, %v863_v15  ;;  %v906_v12 = vld [vmem:[#allocation5 + $0x1910] sm:$0xff] }
 0x4e4   :  { %v13579_v28 = vcombine.high %v867_v23, %v871_v13  ;;  %v910_v14 = vld [vmem:[#allocation5 + $0x1930] sm:$0xff]  ;;  %v907_v15 = vld [vmem:[#allocation5 + $0x1918] sm:$0xff] }
 0x4e6   :  { %11124 = vmatpush1.bf16.msra.mxu0 %v13528_v31  ;;  %11657 = vmatpush1.bf16.msra.mxu1 %v13530_v29  ;;  %v875_v31 = vld [vmem:[#allocation5 + $0x1818] sm:$0xff] }
 0x4e7   :  { %11125 = vmatprep.subr.bf16.mxu0 %v13537_v47  ;;  %11658 = vmatprep.subr.bf16.mxu1 %v13539_v32  ;;  %v879_v29 = vld [vmem:[#allocation5 + $0x1838] sm:$0xff]  ;;  %v13576_v47 = vcombine.low %v866_v22, %v870_v17  ;;  %v13578_v32 = vcombine.low %v867_v23, %v871_v13  ;;  %v914_v22 = vld [vmem:[#allocation5 + $0x1950] sm:$0xff] }
 0x4e8   :  { %v13587_v35 = vcombine.high %v875_v31, %v879_v29  ;;  %v918_v17 = vld [vmem:[#allocation5 + $0x1970] sm:$0xff]  ;;  %v915_v23 = vld [vmem:[#allocation5 + $0x1958] sm:$0xff] }
 0x4e9   :  { %v919_v13 = vld [vmem:[#allocation5 + $0x1978] sm:$0xff] }
 0x4ea   :  { %11126 = vmatpush1.bf16.msra.mxu0 %v13536_v54  ;;  %11659 = vmatpush1.bf16.msra.mxu1 %v13538_v33  ;;  %v883_v54 = vld [vmem:[#allocation5 + $0x1858] sm:$0xff] }
 0x4eb   :  { %11127 = vmatprep.subr.bf16.mxu0 %v13545_v36  ;;  %11660 = vmatprep.subr.bf16.mxu1 %v13547_v38  ;;  %v887_v33 = vld [vmem:[#allocation5 + $0x1878] sm:$0xff]  ;;  %v13584_v36 = vcombine.low %v874_v58, %v878_v30  ;;  %v13586_v38 = vcombine.low %v875_v31, %v879_v29  ;;  %v922_v58 = vld [vmem:[#allocation5 + $0x1990] sm:$0xff] }
 0x4ec   :  { %v13595_v41 = vcombine.high %v883_v54, %v887_v33  ;;  %v926_v30 = vld [vmem:[#allocation5 + $0x19b0] sm:$0xff]  ;;  %v923_v31 = vld [vmem:[#allocation5 + $0x1998] sm:$0xff] }
 0x4ed   :  { %v927_v29 = vld [vmem:[#allocation5 + $0x19b8] sm:$0xff] }
 0x4ee   :  { %11128 = vmatpush1.bf16.msra.mxu0 %v13544_v44  ;;  %11661 = vmatpush1.bf16.msra.mxu1 %v13546_v46  ;;  %v891_v44 = vld [vmem:[#allocation5 + $0x1898] sm:$0xff] }
 0x4ef   :  { %11129 = vmatprep.subr.bf16.mxu0 %v13553_v48  ;;  %11662 = vmatprep.subr.bf16.mxu1 %v13555_v57  ;;  %v895_v46 = vld [vmem:[#allocation5 + $0x18b8] sm:$0xff]  ;;  %v13592_v48 = vcombine.low %v882_v16, %v886_v3  ;;  %v13594_v57 = vcombine.low %v883_v54, %v887_v33  ;;  %v930_v16 = vld [vmem:[#allocation5 + $0x19d0] sm:$0xff] }
 0x4f0   :  { %v13603_v62 = vcombine.high %v891_v44, %v895_v46  ;;  %v934_v3 = vld [vmem:[#allocation5 + $0x19f0] sm:$0xff]  ;;  %v931_v54 = vld [vmem:[#allocation5 + $0x19d8] sm:$0xff] }
 0x4f1   :  { %v935_v33 = vld [vmem:[#allocation5 + $0x19f8] sm:$0xff] }
 0x4f2   :  { %11130 = vmatpush1.bf16.msra.mxu0 %v13552_v7  ;;  %11663 = vmatpush1.bf16.msra.mxu1 %v13554_v8  ;;  %v899_v7 = vld [vmem:[#allocation5 + $0x18d8] sm:$0xff] }
 0x4f3   :  { %11131 = vmatprep.subr.bf16.mxu0 %v13561_v9  ;;  %11664 = vmatprep.subr.bf16.mxu1 %v13563_v10  ;;  %v903_v8 = vld [vmem:[#allocation5 + $0x18f8] sm:$0xff]  ;;  %v13600_v9 = vcombine.low %v890_v42, %v894_v43  ;;  %v13609_v10 = vcombine.high %v898_v4, %v902_v40  ;;  %v938_v42 = vld [vmem:[#allocation5 + $0x1a10] sm:$0xff] }
 0x4f4   :  { %v13611_v24 = vcombine.high %v899_v7, %v903_v8  ;;  %v942_v43 = vld [vmem:[#allocation5 + $0x1a30] sm:$0xff] }
 0x4f6   :  { %11132 = vmatpush1.bf16.msra.mxu0 %v13560_v18  ;;  %11665 = vmatpush1.bf16.msra.mxu1 %v13562_v59  ;;  %v911_v18 = vld [vmem:[#allocation5 + $0x1938] sm:$0xff]  ;;  %v13608_v59 = vcombine.low %v898_v4, %v902_v40  ;;  %v946_v4 = vld [vmem:[#allocation5 + $0x1a50] sm:$0xff] }
 0x4f7   :  { %11133 = vmatprep.subr.bf16.mxu0 %v13569_v19  ;;  %11666 = vmatprep.subr.bf16.mxu1 %v13571_v37  ;;  %v13610_v19 = vcombine.low %v899_v7, %v903_v8  ;;  %v13617_v37 = vcombine.high %v906_v12, %v910_v14  ;;  %v950_v40 = vld [vmem:[#allocation5 + $0x1a70] sm:$0xff]  ;;  %v947_v7 = vld [vmem:[#allocation5 + $0x1a58] sm:$0xff] }
 0x4f8   :  { %v951_v8 = vld [vmem:[#allocation5 + $0x1a78] sm:$0xff] }
 0x4fa   :  { %11134 = vmatpush1.bf16.msra.mxu0 %v13568_v27  ;;  %11667 = vmatpush1.bf16.msra.mxu1 %v13570_v26  ;;  %v13616_v27 = vcombine.low %v906_v12, %v910_v14  ;;  %v13618_v26 = vcombine.low %v907_v15, %v911_v18  ;;  %v954_v12 = vld [vmem:[#allocation5 + $0x1a90] sm:$0xff] }
 0x4fb   :  { %11135 = vmatprep.subr.bf16.mxu0 %v13577_v56  ;;  %11668 = vmatprep.subr.bf16.mxu1 %v13579_v28  ;;  %v13625_v56 = vcombine.high %v914_v22, %v918_v17  ;;  %v13627_v28 = vcombine.high %v915_v23, %v919_v13  ;;  %v958_v14 = vld [vmem:[#allocation5 + $0x1ab0] sm:$0xff] }
 0x4fe   :  { %11136 = vmatpush1.bf16.msra.mxu0 %v13576_v47  ;;  %11669 = vmatpush1.bf16.msra.mxu1 %v13578_v32  ;;  %v13624_v47 = vcombine.low %v914_v22, %v918_v17  ;;  %v13626_v32 = vcombine.low %v915_v23, %v919_v13  ;;  %v962_v22 = vld [vmem:[#allocation5 + $0x1ad0] sm:$0xff]  ;;  %v963_v23 = vld [vmem:[#allocation5 + $0x1ad8] sm:$0xff] }
 0x4ff   :  { %11146 = vmatprep.subr.bf16.mxu0 %v13585_v50  ;;  %11679 = vmatprep.subr.bf16.mxu1 %v13587_v35  ;;  %v13633_v50 = vcombine.high %v922_v58, %v926_v30  ;;  %v13635_v35 = vcombine.high %v923_v31, %v927_v29  ;;  %v966_v17 = vld [vmem:[#allocation5 + $0x1af0] sm:$0xff]  ;;  %v967_v13 = vld [vmem:[#allocation5 + $0x1af8] sm:$0xff] }
 0x501   :  { %11138 = vmatmul.mubr.bf16.vlgmr.msra.gmra.mrb[4].mxu0 %v15263_v25  ;;  %11671 = vmatmul.mubr.bf16.vlgmr.msra.gmra.mrb[4].mxu1 %v15263_v25  ;;  %v13602_v25 = vcombine.low %v891_v44, %v895_v46  ;;  %v939_v44 = vld [vmem:[#allocation5 + $0x1a18] sm:$0xff] }
 0x502   :  { %11147 = vmatpush1.bf16.msra.mxu0 %v13584_v36  ;;  %11680 = vmatpush1.bf16.msra.mxu1 %v13586_v38  ;;  %v13632_v36 = vcombine.low %v922_v58, %v926_v30  ;;  %v13634_v38 = vcombine.low %v923_v31, %v927_v29  ;;  %v943_v46 = vld [vmem:[#allocation5 + $0x1a38] sm:$0xff]  ;;  %v970_v58 = vld [vmem:[#allocation5 + $0x1b10] sm:$0xff] }
 0x503   :  { %11148 = vmatprep.subr.bf16.mxu0 %v13593_v39  ;;  %11681 = vmatprep.subr.bf16.mxu1 %v13595_v41  ;;  %v13641_v39 = vcombine.high %v930_v16, %v934_v3  ;;  %v13643_v41 = vcombine.high %v931_v54, %v935_v33  ;;  %v974_v30 = vld [vmem:[#allocation5 + $0x1b30] sm:$0xff]  ;;  %v971_v31 = vld [vmem:[#allocation5 + $0x1b18] sm:$0xff] }
 0x504   :  { %11178 = vmatprep.mubr.bf16.mxu0 %v15269_v61  ;;  %11711 = vmatprep.mubr.bf16.mxu1 %v15269_v61  ;;  %v13619_v61 = vcombine.high %v907_v15, %v911_v18  ;;  %v955_v15 = vld [vmem:[#allocation5 + $0x1a98] sm:$0xff] }
 0x505   :  { %v959_v18 = vld [vmem:[#allocation5 + $0x1ab8] sm:$0xff] }
 0x506   :  { %11149 = vmatpush1.bf16.msra.mxu0 %v13592_v48  ;;  %11682 = vmatpush1.bf16.msra.mxu1 %v13594_v57  ;;  %v13640_v48 = vcombine.low %v930_v16, %v934_v3  ;;  %v13642_v57 = vcombine.low %v931_v54, %v935_v33  ;;  %v975_v29 = vld [vmem:[#allocation5 + $0x1b38] sm:$0xff]  ;;  %v978_v16 = vld [vmem:[#allocation5 + $0x1b50] sm:$0xff] }
 0x507   :  { %11150 = vmatprep.subr.bf16.mxu0 %v13601_v20  ;;  %11683 = vmatprep.subr.bf16.mxu1 %v13603_v62  ;;  %v13649_v20 = vcombine.high %v938_v42, %v942_v43  ;;  %v13651_v62 = vcombine.high %v939_v44, %v943_v46  ;;  %v982_v3 = vld [vmem:[#allocation5 + $0x1b70] sm:$0xff]  ;;  %v979_v54 = vld [vmem:[#allocation5 + $0x1b58] sm:$0xff] }
 0x508   :  { %v983_v33 = vld [vmem:[#allocation5 + $0x1b78] sm:$0xff] }
 0x50a   :  { %11151 = vmatpush1.bf16.msra.mxu0 %v13600_v9  ;;  %11684 = vmatpush1.bf16.msra.mxu1 %v13602_v25  ;;  %v13648_v9 = vcombine.low %v938_v42, %v942_v43  ;;  %v13650_v25 = vcombine.low %v939_v44, %v943_v46  ;;  %v986_v42 = vld [vmem:[#allocation5 + $0x1b90] sm:$0xff]  ;;  %v987_v44 = vld [vmem:[#allocation5 + $0x1b98] sm:$0xff] }
 0x50b   :  { %11152 = vmatprep.subr.bf16.mxu0 %v13609_v10  ;;  %11685 = vmatprep.subr.bf16.mxu1 %v13611_v24  ;;  %v13657_v10 = vcombine.high %v946_v4, %v950_v40  ;;  %v13659_v24 = vcombine.high %v947_v7, %v951_v8  ;;  %v990_v43 = vld [vmem:[#allocation5 + $0x1bb0] sm:$0xff]  ;;  %v991_v46 = vld [vmem:[#allocation5 + $0x1bb8] sm:$0xff] }
 0x50e   :  { %11153 = vmatpush1.bf16.msra.mxu0 %v13608_v59  ;;  %11686 = vmatpush1.bf16.msra.mxu1 %v13610_v19  ;;  %v13656_v59 = vcombine.low %v946_v4, %v950_v40  ;;  %v13658_v19 = vcombine.low %v947_v7, %v951_v8  ;;  %v994_v4 = vld [vmem:[#allocation5 + $0x1bd0] sm:$0xff]  ;;  %v995_v7 = vld [vmem:[#allocation5 + $0x1bd8] sm:$0xff] }
 0x50f   :  { %11154 = vmatprep.subr.bf16.mxu0 %v13617_v37  ;;  %11687 = vmatprep.subr.bf16.mxu1 %v13619_v61  ;;  %v13665_v37 = vcombine.high %v954_v12, %v958_v14  ;;  %v13667_v61 = vcombine.high %v955_v15, %v959_v18  ;;  %v998_v40 = vld [vmem:[#allocation5 + $0x1bf0] sm:$0xff]  ;;  %v999_v8 = vld [vmem:[#allocation5 + $0x1bf8] sm:$0xff] }
 0x512   :  { %11155 = vmatpush1.bf16.msra.mxu0 %v13616_v27  ;;  %11688 = vmatpush1.bf16.msra.mxu1 %v13618_v26  ;;  %v13664_v27 = vcombine.low %v954_v12, %v958_v14  ;;  %v13666_v26 = vcombine.low %v955_v15, %v959_v18  ;;  %v1002_v12 = vld [vmem:[#allocation5 + $0x1c10] sm:$0xff]  ;;  %v1003_v15 = vld [vmem:[#allocation5 + $0x1c18] sm:$0xff] }
 0x513   :  { %11156 = vmatprep.subr.bf16.mxu0 %v13625_v56  ;;  %11689 = vmatprep.subr.bf16.mxu1 %v13627_v28  ;;  %v13673_v56 = vcombine.high %v962_v22, %v966_v17  ;;  %v13675_v28 = vcombine.high %v963_v23, %v967_v13  ;;  %v1006_v14 = vld [vmem:[#allocation5 + $0x1c30] sm:$0xff]  ;;  %v1007_v18 = vld [vmem:[#allocation5 + $0x1c38] sm:$0xff] }
 0x516   :  { %11157 = vmatpush1.bf16.msra.mxu0 %v13624_v47  ;;  %11690 = vmatpush1.bf16.msra.mxu1 %v13626_v32  ;;  %v13672_v47 = vcombine.low %v962_v22, %v966_v17  ;;  %v13674_v32 = vcombine.low %v963_v23, %v967_v13  ;;  %v1010_v22 = vld [vmem:[#allocation5 + $0x1c50] sm:$0xff]  ;;  %v1011_v23 = vld [vmem:[#allocation5 + $0x1c58] sm:$0xff] }
 0x517   :  { %11158 = vmatprep.subr.bf16.mxu0 %v13633_v50  ;;  %11691 = vmatprep.subr.bf16.mxu1 %v13635_v35  ;;  %v13681_v50 = vcombine.high %v970_v58, %v974_v30  ;;  %v13683_v35 = vcombine.high %v971_v31, %v975_v29  ;;  %v1014_v17 = vld [vmem:[#allocation5 + $0x1c70] sm:$0xff]  ;;  %v1015_v13 = vld [vmem:[#allocation5 + $0x1c78] sm:$0xff] }
 0x51a   :  { %11159 = vmatpush1.bf16.msra.mxu0 %v13632_v36  ;;  %11692 = vmatpush1.bf16.msra.mxu1 %v13634_v38  ;;  %v13680_v36 = vcombine.low %v970_v58, %v974_v30  ;;  %v13682_v38 = vcombine.low %v971_v31, %v975_v29  ;;  %v1018_v58 = vld [vmem:[#allocation5 + $0x1c90] sm:$0xff]  ;;  %v1019_v31 = vld [vmem:[#allocation5 + $0x1c98] sm:$0xff] }
 0x51b   :  { %11160 = vmatprep.subr.bf16.mxu0 %v13641_v39  ;;  %11693 = vmatprep.subr.bf16.mxu1 %v13643_v41  ;;  %v13689_v39 = vcombine.high %v978_v16, %v982_v3  ;;  %v13691_v41 = vcombine.high %v979_v54, %v983_v33  ;;  %v1022_v30 = vld [vmem:[#allocation5 + $0x1cb0] sm:$0xff]  ;;  %v1023_v29 = vld [vmem:[#allocation5 + $0x1cb8] sm:$0xff] }
 0x51e   :  { %11161 = vmatpush1.bf16.msra.mxu0 %v13640_v48  ;;  %11694 = vmatpush1.bf16.msra.mxu1 %v13642_v57  ;;  %v13688_v48 = vcombine.low %v978_v16, %v982_v3  ;;  %v13690_v57 = vcombine.low %v979_v54, %v983_v33  ;;  %v1026_v16 = vld [vmem:[#allocation5 + $0x1cd0] sm:$0xff]  ;;  %v1027_v54 = vld [vmem:[#allocation5 + $0x1cd8] sm:$0xff] }
 0x51f   :  { %11162 = vmatprep.subr.bf16.mxu0 %v13649_v20  ;;  %11695 = vmatprep.subr.bf16.mxu1 %v13651_v62  ;;  %v13697_v20 = vcombine.high %v986_v42, %v990_v43  ;;  %v13699_v62 = vcombine.high %v987_v44, %v991_v46  ;;  %v1030_v3 = vld [vmem:[#allocation5 + $0x1cf0] sm:$0xff]  ;;  %v1031_v33 = vld [vmem:[#allocation5 + $0x1cf8] sm:$0xff] }
 0x522   :  { %11163 = vmatpush1.bf16.msra.mxu0 %v13648_v9  ;;  %11696 = vmatpush1.bf16.msra.mxu1 %v13650_v25  ;;  %v13696_v9 = vcombine.low %v986_v42, %v990_v43  ;;  %v13698_v25 = vcombine.low %v987_v44, %v991_v46  ;;  %v1038_v42 = vld [vmem:[#allocation5 + $0x1d30] sm:$0xff]  ;;  %v1035_v43 = vld [vmem:[#allocation5 + $0x1d18] sm:$0xff]  ;;  %v13736_v46 = vcombine.low %v1026_v16, %v1030_v3 }
 0x523   :  { %11164 = vmatprep.subr.bf16.mxu0 %v13657_v10  ;;  %11697 = vmatprep.subr.bf16.mxu1 %v13659_v24  ;;  %v13705_v10 = vcombine.high %v994_v4, %v998_v40  ;;  %v13707_v24 = vcombine.high %v995_v7, %v999_v8  ;;  %v1039_v44 = vld [vmem:[#allocation5 + $0x1d38] sm:$0xff] }
 0x526   :  { %11165 = vmatpush1.bf16.msra.mxu0 %v13656_v59  ;;  %11698 = vmatpush1.bf16.msra.mxu1 %v13658_v19  ;;  %v13704_v59 = vcombine.low %v994_v4, %v998_v40  ;;  %v13706_v19 = vcombine.low %v995_v7, %v999_v8  ;;  %v1043_v4 = vld [vmem:[#allocation5 + $0x1d58] sm:$0xff]  ;;  %v13746_v8 = vcombine.low %v1035_v43, %v1039_v44 }
 0x527   :  { %11166 = vmatprep.subr.bf16.mxu0 %v13665_v37  ;;  %11699 = vmatprep.subr.bf16.mxu1 %v13667_v61  ;;  %v13713_v37 = vcombine.high %v1002_v12, %v1006_v14  ;;  %v13715_v61 = vcombine.high %v1003_v15, %v1007_v18  ;;  %v1047_v40 = vld [vmem:[#allocation5 + $0x1d78] sm:$0xff] }
 0x52a   :  { %11167 = vmatpush1.bf16.msra.mxu0 %v13664_v27  ;;  %11700 = vmatpush1.bf16.msra.mxu1 %v13666_v26  ;;  %v13712_v27 = vcombine.low %v1002_v12, %v1006_v14  ;;  %v13714_v26 = vcombine.low %v1003_v15, %v1007_v18  ;;  %v1051_v12 = vld [vmem:[#allocation5 + $0x1d98] sm:$0xff]  ;;  %v13754_v18 = vcombine.low %v1043_v4, %v1047_v40 }
 0x52b   :  { %11168 = vmatprep.subr.bf16.mxu0 %v13673_v56  ;;  %11701 = vmatprep.subr.bf16.mxu1 %v13675_v28  ;;  %v13721_v56 = vcombine.high %v1010_v22, %v1014_v17  ;;  %v13723_v28 = vcombine.high %v1011_v23, %v1015_v13  ;;  %v1055_v14 = vld [vmem:[#allocation5 + $0x1db8] sm:$0xff] }
 0x52e   :  { %11169 = vmatpush1.bf16.msra.mxu0 %v13672_v47  ;;  %11702 = vmatpush1.bf16.msra.mxu1 %v13674_v32  ;;  %v13720_v47 = vcombine.low %v1010_v22, %v1014_v17  ;;  %v13722_v32 = vcombine.low %v1011_v23, %v1015_v13  ;;  %v1059_v22 = vld [vmem:[#allocation5 + $0x1dd8] sm:$0xff]  ;;  %v13762_v13 = vcombine.low %v1051_v12, %v1055_v14 }
 0x52f   :  { %11170 = vmatprep.subr.bf16.mxu0 %v13681_v50  ;;  %11703 = vmatprep.subr.bf16.mxu1 %v13683_v35  ;;  %v13729_v50 = vcombine.high %v1018_v58, %v1022_v30  ;;  %v13731_v35 = vcombine.high %v1019_v31, %v1023_v29  ;;  %v1063_v17 = vld [vmem:[#allocation5 + $0x1df8] sm:$0xff] }
 0x532   :  { %11171 = vmatpush1.bf16.msra.mxu0 %v13680_v36  ;;  %11704 = vmatpush1.bf16.msra.mxu1 %v13682_v38  ;;  %v13728_v36 = vcombine.low %v1018_v58, %v1022_v30  ;;  %v13737_v38 = vcombine.high %v1026_v16, %v1030_v3  ;;  %v1067_v58 = vld [vmem:[#allocation5 + $0x1e18] sm:$0xff] }
 0x533   :  { %11172 = vmatprep.subr.bf16.mxu0 %v13689_v39  ;;  %11705 = vmatprep.subr.bf16.mxu1 %v13691_v41  ;;  %v13739_v39 = vcombine.high %v1027_v54, %v1031_v33  ;;  %v1034_v41 = vld [vmem:[#allocation5 + $0x1d10] sm:$0xff]  ;;  %v1071_v30 = vld [vmem:[#allocation5 + $0x1e38] sm:$0xff] }
 0x534   :  { %v13744_v7 = vcombine.low %v1034_v41, %v1038_v42  ;;  %v1075_v16 = vld [vmem:[#allocation5 + $0x1e58] sm:$0xff] }
 0x535   :  { %v1079_v3 = vld [vmem:[#allocation5 + $0x1e78] sm:$0xff] }
 0x536   :  { %11173 = vmatpush1.bf16.msra.mxu0 %v13688_v48  ;;  %11706 = vmatpush1.bf16.msra.mxu1 %v13690_v57  ;;  %v13738_v48 = vcombine.low %v1027_v54, %v1031_v33  ;;  %v13745_v57 = vcombine.high %v1034_v41, %v1038_v42  ;;  %v13778_v33 = vcombine.low %v1067_v58, %v1071_v30  ;;  %v1083_v41 = vld [vmem:[#allocation5 + $0x1e98] sm:$0xff] }
 0x537   :  { %11174 = vmatprep.subr.bf16.mxu0 %v13697_v20  ;;  %11707 = vmatprep.subr.bf16.mxu1 %v13699_v62  ;;  %v1042_v20 = vld [vmem:[#allocation5 + $0x1d50] sm:$0xff]  ;;  %v1087_v42 = vld [vmem:[#allocation5 + $0x1eb8] sm:$0xff] }
 0x538   :  { %v1046_v62 = vld [vmem:[#allocation5 + $0x1d70] sm:$0xff] }
 0x539   :  { %v13752_v15 = vcombine.low %v1042_v20, %v1046_v62 }
 0x53a   :  { %11175 = vmatpush1.bf16.msra.mxu0 %v13696_v9  ;;  %11708 = vmatpush1.bf16.msra.mxu1 %v13698_v25  ;;  %v13753_v9 = vcombine.high %v1042_v20, %v1046_v62  ;;  %v13755_v25 = vcombine.high %v1043_v4, %v1047_v40  ;;  %v1091_v20 = vld [vmem:[#allocation5 + $0x1ed8] sm:$0xff]  ;;  %v13794_v40 = vcombine.low %v1083_v41, %v1087_v42 }
 0x53b   :  { %11176 = vmatprep.subr.bf16.mxu0 %v13705_v10  ;;  %11709 = vmatprep.subr.bf16.mxu1 %v13707_v24  ;;  %v1050_v10 = vld [vmem:[#allocation5 + $0x1d90] sm:$0xff]  ;;  %v1095_v62 = vld [vmem:[#allocation5 + $0x1ef8] sm:$0xff] }
 0x53c   :  { %v1054_v24 = vld [vmem:[#allocation5 + $0x1db0] sm:$0xff] }
 0x53d   :  { %v13760_v23 = vcombine.low %v1050_v10, %v1054_v24 }
 0x53e   :  { %11177 = vmatpush1.bf16.msra.mxu0 %v13704_v59  ;;  %11710 = vmatpush1.bf16.msra.mxu1 %v13706_v19  ;;  %v13761_v59 = vcombine.high %v1050_v10, %v1054_v24  ;;  %v13763_v19 = vcombine.high %v1051_v12, %v1055_v14  ;;  %v1099_v10 = vld [vmem:[#allocation5 + $0x1f18] sm:$0xff]  ;;  %v13802_v14 = vcombine.low %v1091_v20, %v1095_v62 }
 0x53f   :  { %11187 = vmatprep.subr.bf16.mxu0 %v13713_v37  ;;  %11720 = vmatprep.subr.bf16.mxu1 %v13715_v61  ;;  %v1058_v37 = vld [vmem:[#allocation5 + $0x1dd0] sm:$0xff]  ;;  %v1103_v24 = vld [vmem:[#allocation5 + $0x1f38] sm:$0xff] }
 0x540   :  { %v1062_v61 = vld [vmem:[#allocation5 + $0x1df0] sm:$0xff] }
 0x541   :  { %11179 = vmatmul.mubr.bf16.vlgmr.msra.gmra.mrb[4].mxu0 %v15277_v21  ;;  %11712 = vmatmul.mubr.bf16.vlgmr.msra.gmra.mrb[4].mxu1 %v15277_v21  ;;  %v13730_v21 = vcombine.low %v1019_v31, %v1023_v29  ;;  %v13768_v31 = vcombine.low %v1058_v37, %v1062_v61  ;;  %v13770_v29 = vcombine.low %v1059_v22, %v1063_v17 }
 0x542   :  { %11188 = vmatpush1.bf16.msra.mxu0 %v13712_v27  ;;  %11721 = vmatpush1.bf16.msra.mxu1 %v13714_v26  ;;  %v13769_v27 = vcombine.high %v1058_v37, %v1062_v61  ;;  %v13771_v26 = vcombine.high %v1059_v22, %v1063_v17  ;;  %v1107_v37 = vld [vmem:[#allocation5 + $0x1f58] sm:$0xff]  ;;  %v13810_v17 = vcombine.low %v1099_v10, %v1103_v24 }
 0x543   :  { %11189 = vmatprep.subr.bf16.mxu0 %v13721_v56  ;;  %11722 = vmatprep.subr.bf16.mxu1 %v13723_v28  ;;  %v1066_v56 = vld [vmem:[#allocation5 + $0x1e10] sm:$0xff]  ;;  %v1111_v61 = vld [vmem:[#allocation5 + $0x1f78] sm:$0xff] }
 0x544   :  { %11219 = vmatprep.mubr.bf16.mxu0 %v15283_v34  ;;  %11752 = vmatprep.mubr.bf16.mxu1 %v15283_v34  ;;  %v13747_v34 = vcombine.high %v1035_v43, %v1039_v44  ;;  %v1070_v28 = vld [vmem:[#allocation5 + $0x1e30] sm:$0xff]  ;;  %v13786_v44 = vcombine.low %v1075_v16, %v1079_v3 }
 0x545   :  { %v13776_v54 = vcombine.low %v1066_v56, %v1070_v28 }
 0x546   :  { %11190 = vmatpush1.bf16.msra.mxu0 %v13720_v47  ;;  %11723 = vmatpush1.bf16.msra.mxu1 %v13722_v32  ;;  %v13777_v47 = vcombine.high %v1066_v56, %v1070_v28  ;;  %v13779_v32 = vcombine.high %v1067_v58, %v1071_v30  ;;  %v1115_v56 = vld [vmem:[#allocation5 + $0x1f98] sm:$0xff]  ;;  %v13818_v30 = vcombine.low %v1107_v37, %v1111_v61 }
 0x547   :  { %11191 = vmatprep.subr.bf16.mxu0 %v13729_v50  ;;  %11724 = vmatprep.subr.bf16.mxu1 %v13731_v35  ;;  %v1074_v50 = vld [vmem:[#allocation5 + $0x1e50] sm:$0xff]  ;;  %v1119_v28 = vld [vmem:[#allocation5 + $0x1fb8] sm:$0xff] }
 0x548   :  { %v1078_v35 = vld [vmem:[#allocation5 + $0x1e70] sm:$0xff] }
 0x549   :  { %v13784_v43 = vcombine.low %v1074_v50, %v1078_v35 }
 0x54a   :  { %11192 = vmatpush1.bf16.msra.mxu0 %v13728_v36  ;;  %11725 = vmatpush1.bf16.msra.mxu1 %v13730_v21  ;;  %v13785_v36 = vcombine.high %v1074_v50, %v1078_v35  ;;  %v13787_v21 = vcombine.high %v1075_v16, %v1079_v3  ;;  %v1123_v50 = vld [vmem:[#allocation5 + $0x1fd8] sm:$0xff]  ;;  %v13826_v3 = vcombine.low %v1115_v56, %v1119_v28 }
 0x54b   :  { %11193 = vmatprep.subr.bf16.mxu0 %v13737_v38  ;;  %11726 = vmatprep.subr.bf16.mxu1 %v13739_v39  ;;  %v1082_v38 = vld [vmem:[#allocation5 + $0x1e90] sm:$0xff]  ;;  %v1127_v35 = vld [vmem:[#allocation5 + $0x1ff8] sm:$0xff] }
 0x54c   :  { %v1086_v39 = vld [vmem:[#allocation5 + $0x1eb0] sm:$0xff] }
 0x54d   :  { %v13792_v4 = vcombine.low %v1082_v38, %v1086_v39 }
 0x54e   :  { %11194 = vmatpush1.bf16.msra.mxu0 %v13736_v46  ;;  %11727 = vmatpush1.bf16.msra.mxu1 %v13738_v48  ;;  %v13793_v46 = vcombine.high %v1082_v38, %v1086_v39  ;;  %v13795_v48 = vcombine.high %v1083_v41, %v1087_v42  ;;  %v1131_v38 = vld [vmem:[#allocation5 + $0x2018] sm:$0xff]  ;;  %v13834_v42 = vcombine.low %v1123_v50, %v1127_v35 }
 0x54f   :  { %11195 = vmatprep.subr.bf16.mxu0 %v13745_v57  ;;  %11728 = vmatprep.subr.bf16.mxu1 %v13747_v34  ;;  %v1090_v57 = vld [vmem:[#allocation5 + $0x1ed0] sm:$0xff]  ;;  %v1135_v39 = vld [vmem:[#allocation5 + $0x2038] sm:$0xff] }
 0x550   :  { %v1094_v34 = vld [vmem:[#allocation5 + $0x1ef0] sm:$0xff] }
 0x551   :  { %v13800_v12 = vcombine.low %v1090_v57, %v1094_v34 }
 0x552   :  { %11196 = vmatpush1.bf16.msra.mxu0 %v13744_v7  ;;  %11729 = vmatpush1.bf16.msra.mxu1 %v13746_v8  ;;  %v13801_v7 = vcombine.high %v1090_v57, %v1094_v34  ;;  %v13803_v8 = vcombine.high %v1091_v20, %v1095_v62  ;;  %v1139_v57 = vld [vmem:[#allocation5 + $0x2058] sm:$0xff]  ;;  %v13842_v62 = vcombine.low %v1131_v38, %v1135_v39 }
 0x553   :  { %11197 = vmatprep.subr.bf16.mxu0 %v13753_v9  ;;  %11730 = vmatprep.subr.bf16.mxu1 %v13755_v25  ;;  %v1098_v9 = vld [vmem:[#allocation5 + $0x1f10] sm:$0xff]  ;;  %v1143_v34 = vld [vmem:[#allocation5 + $0x2078] sm:$0xff] }
 0x554   :  { %v1102_v25 = vld [vmem:[#allocation5 + $0x1f30] sm:$0xff] }
 0x555   :  { %v13808_v22 = vcombine.low %v1098_v9, %v1102_v25 }
 0x556   :  { %11198 = vmatpush1.bf16.msra.mxu0 %v13752_v15  ;;  %11731 = vmatpush1.bf16.msra.mxu1 %v13754_v18  ;;  %v13809_v15 = vcombine.high %v1098_v9, %v1102_v25  ;;  %v13811_v18 = vcombine.high %v1099_v10, %v1103_v24  ;;  %v1147_v9 = vld [vmem:[#allocation5 + $0x2098] sm:$0xff]  ;;  %v13850_v24 = vcombine.low %v1139_v57, %v1143_v34 }
 0x557   :  { %11199 = vmatprep.subr.bf16.mxu0 %v13761_v59  ;;  %11732 = vmatprep.subr.bf16.mxu1 %v13763_v19  ;;  %v1106_v59 = vld [vmem:[#allocation5 + $0x1f50] sm:$0xff]  ;;  %v1151_v25 = vld [vmem:[#allocation5 + $0x20b8] sm:$0xff] }
 0x558   :  { %v1110_v19 = vld [vmem:[#allocation5 + $0x1f70] sm:$0xff] }
 0x559   :  { %v13816_v58 = vcombine.low %v1106_v59, %v1110_v19 }
 0x55a   :  { %11200 = vmatpush1.bf16.msra.mxu0 %v13760_v23  ;;  %11733 = vmatpush1.bf16.msra.mxu1 %v13762_v13  ;;  %v13817_v23 = vcombine.high %v1106_v59, %v1110_v19  ;;  %v13819_v13 = vcombine.high %v1107_v37, %v1111_v61  ;;  %v1155_v59 = vld [vmem:[#allocation5 + $0x20d8] sm:$0xff] }
 0x55b   :  { %11201 = vmatprep.subr.bf16.mxu0 %v13769_v27  ;;  %11734 = vmatprep.subr.bf16.mxu1 %v13771_v26  ;;  %v1114_v27 = vld [vmem:[#allocation5 + $0x1f90] sm:$0xff]  ;;  %v1159_v19 = vld [vmem:[#allocation5 + $0x20f8] sm:$0xff] }
 0x55c   :  { %v1118_v26 = vld [vmem:[#allocation5 + $0x1fb0] sm:$0xff] }
 0x55d   :  { %v13824_v16 = vcombine.low %v1114_v27, %v1118_v26 }
 0x55e   :  { %11202 = vmatpush1.bf16.msra.mxu0 %v13768_v31  ;;  %11735 = vmatpush1.bf16.msra.mxu1 %v13770_v29  ;;  %v13825_v31 = vcombine.high %v1114_v27, %v1118_v26  ;;  %v13827_v29 = vcombine.high %v1115_v56, %v1119_v28  ;;  %v1167_v27 = vld [vmem:[#allocation5 + $0x2138] sm:$0xff]  ;;  %v13866_v56 = vcombine.low %v1155_v59, %v1159_v19 }
 0x55f   :  { %11203 = vmatprep.subr.bf16.mxu0 %v13777_v47  ;;  %11736 = vmatprep.subr.bf16.mxu1 %v13779_v32  ;;  %v1122_v47 = vld [vmem:[#allocation5 + $0x1fd0] sm:$0xff] }
 0x560   :  { %v1126_v32 = vld [vmem:[#allocation5 + $0x1ff0] sm:$0xff] }
 0x561   :  { %v13832_v41 = vcombine.low %v1122_v47, %v1126_v32 }
 0x562   :  { %11204 = vmatpush1.bf16.msra.mxu0 %v13776_v54  ;;  %11737 = vmatpush1.bf16.msra.mxu1 %v13778_v33  ;;  %v13833_v54 = vcombine.high %v1122_v47, %v1126_v32  ;;  %v13835_v33 = vcombine.high %v1123_v50, %v1127_v35 }
 0x563   :  { %11205 = vmatprep.subr.bf16.mxu0 %v13785_v36  ;;  %11738 = vmatprep.subr.bf16.mxu1 %v13787_v21  ;;  %v1130_v36 = vld [vmem:[#allocation5 + $0x2010] sm:$0xff] }
 0x564   :  { %v1134_v21 = vld [vmem:[#allocation5 + $0x2030] sm:$0xff] }
 0x565   :  { %v13840_v20 = vcombine.low %v1130_v36, %v1134_v21 }
 0x566   :  { %11206 = vmatpush1.bf16.msra.mxu0 %v13784_v43  ;;  %11739 = vmatpush1.bf16.msra.mxu1 %v13786_v44  ;;  %v13841_v43 = vcombine.high %v1130_v36, %v1134_v21  ;;  %v13843_v44 = vcombine.high %v1131_v38, %v1135_v39 }
 0x567   :  { %11207 = vmatprep.subr.bf16.mxu0 %v13793_v46  ;;  %11740 = vmatprep.subr.bf16.mxu1 %v13795_v48  ;;  %v1138_v46 = vld [vmem:[#allocation5 + $0x2050] sm:$0xff] }
 0x568   :  { %v1142_v48 = vld [vmem:[#allocation5 + $0x2070] sm:$0xff] }
 0x569   :  { %v13848_v10 = vcombine.low %v1138_v46, %v1142_v48 }
 0x56a   :  { %11208 = vmatpush1.bf16.msra.mxu0 %v13792_v4  ;;  %11741 = vmatpush1.bf16.msra.mxu1 %v13794_v40  ;;  %v13849_v4 = vcombine.high %v1138_v46, %v1142_v48  ;;  %v13851_v40 = vcombine.high %v1139_v57, %v1143_v34 }
 0x56b   :  { %11209 = vmatprep.subr.bf16.mxu0 %v13801_v7  ;;  %11742 = vmatprep.subr.bf16.mxu1 %v13803_v8  ;;  %v1146_v7 = vld [vmem:[#allocation5 + $0x2090] sm:$0xff] }
 0x56c   :  { %v1150_v8 = vld [vmem:[#allocation5 + $0x20b0] sm:$0xff] }
 0x56d   :  { %v13856_v37 = vcombine.low %v1146_v7, %v1150_v8 }
 0x56e   :  { %11210 = vmatpush1.bf16.msra.mxu0 %v13800_v12  ;;  %11743 = vmatpush1.bf16.msra.mxu1 %v13802_v14  ;;  %v13857_v12 = vcombine.high %v1146_v7, %v1150_v8  ;;  %v13859_v14 = vcombine.high %v1147_v9, %v1151_v25 }
 0x56f   :  { %11211 = vmatprep.subr.bf16.mxu0 %v13809_v15  ;;  %11744 = vmatprep.subr.bf16.mxu1 %v13811_v18  ;;  %v1154_v15 = vld [vmem:[#allocation5 + $0x20d0] sm:$0xff] }
 0x570   :  { %v1158_v18 = vld [vmem:[#allocation5 + $0x20f0] sm:$0xff] }
 0x571   :  { %v13865_v61 = vcombine.high %v1154_v15, %v1158_v18  ;;  %v13864_v26 = vcombine.low %v1154_v15, %v1158_v18 }
 0x572   :  { %11212 = vmatpush1.bf16.msra.mxu0 %v13808_v22  ;;  %11745 = vmatpush1.bf16.msra.mxu1 %v13810_v17  ;;  %v13867_v22 = vcombine.high %v1155_v59, %v1159_v19  ;;  %v1162_v17 = vld [vmem:[#allocation5 + $0x2110] sm:$0xff] }
 0x573   :  { %11213 = vmatprep.subr.bf16.mxu0 %v13817_v23  ;;  %11746 = vmatprep.subr.bf16.mxu1 %v13819_v13  ;;  %v1166_v23 = vld [vmem:[#allocation5 + $0x2130] sm:$0xff]  ;;  %v1163_v13 = vld [vmem:[#allocation5 + $0x2118] sm:$0xff] }
 0x574   :  { %v13873_v28 = vcombine.high %v1162_v17, %v1166_v23  ;;  %v13872_v47 = vcombine.low %v1162_v17, %v1166_v23  ;;  %v13874_v32 = vcombine.low %v1163_v13, %v1167_v27 }
 0x576   :  { %11214 = vmatpush1.bf16.msra.mxu0 %v13816_v58  ;;  %11747 = vmatpush1.bf16.msra.mxu1 %v13818_v30  ;;  %v1170_v58 = vld [vmem:[#allocation5 + $0x2150] sm:$0xff] }
 0x577   :  { %11215 = vmatprep.subr.bf16.mxu0 %v13825_v31  ;;  %11748 = vmatprep.subr.bf16.mxu1 %v13827_v29  ;;  %v1174_v30 = vld [vmem:[#allocation5 + $0x2170] sm:$0xff]  ;;  %v1171_v31 = vld [vmem:[#allocation5 + $0x2158] sm:$0xff] }
 0x578   :  { %v1175_v29 = vld [vmem:[#allocation5 + $0x2178] sm:$0xff]  ;;  %v13881_v50 = vcombine.high %v1170_v58, %v1174_v30  ;;  %v13880_v36 = vcombine.low %v1170_v58, %v1174_v30 }
 0x579   :  { %v13883_v35 = vcombine.high %v1171_v31, %v1175_v29  ;;  %v13882_v21 = vcombine.low %v1171_v31, %v1175_v29 }
 0x57a   :  { %11216 = vmatpush1.bf16.msra.mxu0 %v13824_v16  ;;  %11749 = vmatpush1.bf16.msra.mxu1 %v13826_v3  ;;  %v1178_v16 = vld [vmem:[#allocation5 + $0x2190] sm:$0xff] }
 0x57b   :  { %11217 = vmatprep.subr.bf16.mxu0 %v13833_v54  ;;  %11750 = vmatprep.subr.bf16.mxu1 %v13835_v33  ;;  %v1182_v3 = vld [vmem:[#allocation5 + $0x21b0] sm:$0xff]  ;;  %v1179_v54 = vld [vmem:[#allocation5 + $0x2198] sm:$0xff] }
 0x57c   :  { %v1183_v33 = vld [vmem:[#allocation5 + $0x21b8] sm:$0xff]  ;;  %v13889_v38 = vcombine.high %v1178_v16, %v1182_v3  ;;  %v13888_v46 = vcombine.low %v1178_v16, %v1182_v3 }
 0x57d   :  { %v13891_v39 = vcombine.high %v1179_v54, %v1183_v33  ;;  %v13890_v48 = vcombine.low %v1179_v54, %v1183_v33 }
 0x57e   :  { %11218 = vmatpush1.bf16.msra.mxu0 %v13832_v41  ;;  %11751 = vmatpush1.bf16.msra.mxu1 %v13834_v42  ;;  %v1186_v41 = vld [vmem:[#allocation5 + $0x21d0] sm:$0xff] }
 0x57f   :  { %11228 = vmatprep.subr.bf16.mxu0 %v13841_v43  ;;  %11761 = vmatprep.subr.bf16.mxu1 %v13843_v44  ;;  %v1190_v42 = vld [vmem:[#allocation5 + $0x21f0] sm:$0xff]  ;;  %v1187_v43 = vld [vmem:[#allocation5 + $0x21d8] sm:$0xff] }
 0x580   :  { %v1191_v44 = vld [vmem:[#allocation5 + $0x21f8] sm:$0xff]  ;;  %v13897_v57 = vcombine.high %v1186_v41, %v1190_v42  ;;  %v13896_v7 = vcombine.low %v1186_v41, %v1190_v42 }
 0x581   :  { %11220 = vmatmul.mubr.bf16.vlgmr.msra.gmra.mrb[4].mxu0 %v15291_v1  ;;  %11753 = vmatmul.mubr.bf16.vlgmr.msra.gmra.mrb[4].mxu1 %v15291_v1  ;;  %v13858_v1 = vcombine.low %v1147_v9, %v1151_v25  ;;  %v13899_v34 = vcombine.high %v1187_v43, %v1191_v44  ;;  %v13898_v8 = vcombine.low %v1187_v43, %v1191_v44 }
 0x582   :  { %11229 = vmatpush1.bf16.msra.mxu0 %v13840_v20  ;;  %11762 = vmatpush1.bf16.msra.mxu1 %v13842_v62  ;;  %v1194_v20 = vld [vmem:[#allocation5 + $0x2210] sm:$0xff] }
 0x583   :  { %11230 = vmatprep.subr.bf16.mxu0 %v13849_v4  ;;  %11763 = vmatprep.subr.bf16.mxu1 %v13851_v40  ;;  %v1198_v62 = vld [vmem:[#allocation5 + $0x2230] sm:$0xff]  ;;  %v1195_v4 = vld [vmem:[#allocation5 + $0x2218] sm:$0xff] }
 0x584   :  { %11260 = vmatprep.mubr.bf16.mxu0 %v15297_v11  ;;  %11793 = vmatprep.mubr.bf16.mxu1 %v15297_v11  ;;  %v13875_v11 = vcombine.high %v1163_v13, %v1167_v27  ;;  %v1199_v40 = vld [vmem:[#allocation5 + $0x2238] sm:$0xff]  ;;  %v13905_v9 = vcombine.high %v1194_v20, %v1198_v62  ;;  %v13904_v15 = vcombine.low %v1194_v20, %v1198_v62 }
 0x585   :  { %v13907_v25 = vcombine.high %v1195_v4, %v1199_v40  ;;  %v13906_v18 = vcombine.low %v1195_v4, %v1199_v40 }
 0x586   :  { %11231 = vmatpush1.bf16.msra.mxu0 %v13848_v10  ;;  %11764 = vmatpush1.bf16.msra.mxu1 %v13850_v24  ;;  %v1202_v10 = vld [vmem:[#allocation5 + $0x2250] sm:$0xff] }
 0x587   :  { %11232 = vmatprep.subr.bf16.mxu0 %v13857_v12  ;;  %11765 = vmatprep.subr.bf16.mxu1 %v13859_v14  ;;  %v1206_v24 = vld [vmem:[#allocation5 + $0x2270] sm:$0xff]  ;;  %v1203_v12 = vld [vmem:[#allocation5 + $0x2258] sm:$0xff] }
 0x588   :  { %v1207_v14 = vld [vmem:[#allocation5 + $0x2278] sm:$0xff]  ;;  %v13913_v59 = vcombine.high %v1202_v10, %v1206_v24  ;;  %v13912_v17 = vcombine.low %v1202_v10, %v1206_v24 }
 0x589   :  { %v13915_v19 = vcombine.high %v1203_v12, %v1207_v14  ;;  %v13914_v23 = vcombine.low %v1203_v12, %v1207_v14 }
 0x58a   :  { %11233 = vmatpush1.bf16.msra.mxu0 %v13856_v37  ;;  %11766 = vmatpush1.bf16.msra.mxu1 %v13858_v1  ;;  %v1210_v37 = vld [vmem:[#allocation5 + $0x2290] sm:$0xff] }
 0x58b   :  { %11234 = vmatprep.subr.bf16.mxu0 %v13865_v61  ;;  %11767 = vmatprep.subr.bf16.mxu1 %v13867_v22  ;;  %v1214_v1 = vld [vmem:[#allocation5 + $0x22b0] sm:$0xff]  ;;  %v1211_v61 = vld [vmem:[#allocation5 + $0x2298] sm:$0xff] }
 0x58c   :  { %v1215_v22 = vld [vmem:[#allocation5 + $0x22b8] sm:$0xff]  ;;  %v13921_v13 = vcombine.high %v1210_v37, %v1214_v1  ;;  %v13920_v58 = vcombine.low %v1210_v37, %v1214_v1 }
 0x58d   :  { %v13923_v27 = vcombine.high %v1211_v61, %v1215_v22  ;;  %v13922_v30 = vcombine.low %v1211_v61, %v1215_v22 }
 0x58e   :  { %11235 = vmatpush1.bf16.msra.mxu0 %v13864_v26  ;;  %11768 = vmatpush1.bf16.msra.mxu1 %v13866_v56  ;;  %v1218_v26 = vld [vmem:[#allocation5 + $0x22d0] sm:$0xff] }
 0x58f   :  { %11236 = vmatprep.subr.bf16.mxu0 %v13873_v28  ;;  %11769 = vmatprep.subr.bf16.mxu1 %v13875_v11  ;;  %v1222_v56 = vld [vmem:[#allocation5 + $0x22f0] sm:$0xff]  ;;  %v1219_v28 = vld [vmem:[#allocation5 + $0x22d8] sm:$0xff] }
 0x590   :  { %v1223_v11 = vld [vmem:[#allocation5 + $0x22f8] sm:$0xff]  ;;  %v13929_v31 = vcombine.high %v1218_v26, %v1222_v56  ;;  %v13928_v16 = vcombine.low %v1218_v26, %v1222_v56 }
 0x591   :  { %v13931_v29 = vcombine.high %v1219_v28, %v1223_v11  ;;  %v13930_v3 = vcombine.low %v1219_v28, %v1223_v11 }
 0x592   :  { %11237 = vmatpush1.bf16.msra.mxu0 %v13872_v47  ;;  %11770 = vmatpush1.bf16.msra.mxu1 %v13874_v32  ;;  %v1226_v47 = vld [vmem:[#allocation5 + $0x2310] sm:$0xff] }
 0x593   :  { %11238 = vmatprep.subr.bf16.mxu0 %v13881_v50  ;;  %11771 = vmatprep.subr.bf16.mxu1 %v13883_v35  ;;  %v1230_v32 = vld [vmem:[#allocation5 + $0x2330] sm:$0xff]  ;;  %v1227_v50 = vld [vmem:[#allocation5 + $0x2318] sm:$0xff] }
 0x594   :  { %v1231_v35 = vld [vmem:[#allocation5 + $0x2338] sm:$0xff]  ;;  %v13937_v54 = vcombine.high %v1226_v47, %v1230_v32  ;;  %v13936_v41 = vcombine.low %v1226_v47, %v1230_v32 }
 0x595   :  { %v13939_v33 = vcombine.high %v1227_v50, %v1231_v35  ;;  %v13938_v42 = vcombine.low %v1227_v50, %v1231_v35 }
 0x596   :  { %11239 = vmatpush1.bf16.msra.mxu0 %v13880_v36  ;;  %11772 = vmatpush1.bf16.msra.mxu1 %v13882_v21  ;;  %v1234_v36 = vld [vmem:[#allocation5 + $0x2350] sm:$0xff] }
 0x597   :  { %11240 = vmatprep.subr.bf16.mxu0 %v13889_v38  ;;  %11773 = vmatprep.subr.bf16.mxu1 %v13891_v39  ;;  %v1238_v21 = vld [vmem:[#allocation5 + $0x2370] sm:$0xff]  ;;  %v1235_v38 = vld [vmem:[#allocation5 + $0x2358] sm:$0xff] }
 0x598   :  { %v1239_v39 = vld [vmem:[#allocation5 + $0x2378] sm:$0xff]  ;;  %v13945_v43 = vcombine.high %v1234_v36, %v1238_v21  ;;  %v13944_v20 = vcombine.low %v1234_v36, %v1238_v21 }
 0x599   :  { %v13947_v44 = vcombine.high %v1235_v38, %v1239_v39  ;;  %v13946_v62 = vcombine.low %v1235_v38, %v1239_v39  ;;  %v1290_v39 = vld [vmem:[#allocation5 + $0x2510] sm:$0xff] }
 0x59a   :  { %11241 = vmatpush1.bf16.msra.mxu0 %v13888_v46  ;;  %11774 = vmatpush1.bf16.msra.mxu1 %v13890_v48  ;;  %v1242_v46 = vld [vmem:[#allocation5 + $0x2390] sm:$0xff] }
 0x59b   :  { %11242 = vmatprep.subr.bf16.mxu0 %v13897_v57  ;;  %11775 = vmatprep.subr.bf16.mxu1 %v13899_v34  ;;  %v1246_v48 = vld [vmem:[#allocation5 + $0x23b0] sm:$0xff]  ;;  %v1243_v57 = vld [vmem:[#allocation5 + $0x2398] sm:$0xff] }
 0x59c   :  { %v1247_v34 = vld [vmem:[#allocation5 + $0x23b8] sm:$0xff]  ;;  %v13953_v4 = vcombine.high %v1242_v46, %v1246_v48  ;;  %v13952_v10 = vcombine.low %v1242_v46, %v1246_v48 }
 0x59d   :  { %v13955_v40 = vcombine.high %v1243_v57, %v1247_v34  ;;  %v13954_v24 = vcombine.low %v1243_v57, %v1247_v34  ;;  %v1298_v57 = vld [vmem:[#allocation5 + $0x2550] sm:$0xff] }
 0x59e   :  { %11243 = vmatpush1.bf16.msra.mxu0 %v13896_v7  ;;  %11776 = vmatpush1.bf16.msra.mxu1 %v13898_v8  ;;  %v1250_v7 = vld [vmem:[#allocation5 + $0x23d0] sm:$0xff] }
 0x59f   :  { %11244 = vmatprep.subr.bf16.mxu0 %v13905_v9  ;;  %11777 = vmatprep.subr.bf16.mxu1 %v13907_v25  ;;  %v1254_v8 = vld [vmem:[#allocation5 + $0x23f0] sm:$0xff]  ;;  %v1251_v9 = vld [vmem:[#allocation5 + $0x23d8] sm:$0xff] }
 0x5a0   :  { %v1255_v25 = vld [vmem:[#allocation5 + $0x23f8] sm:$0xff]  ;;  %v13961_v12 = vcombine.high %v1250_v7, %v1254_v8  ;;  %v13960_v37 = vcombine.low %v1250_v7, %v1254_v8  ;;  %v1302_v34 = vld [vmem:[#allocation5 + $0x2570] sm:$0xff] }
 0x5a1   :  { %v13963_v14 = vcombine.high %v1251_v9, %v1255_v25  ;;  %v13962_v1 = vcombine.low %v1251_v9, %v1255_v25  ;;  %v14009_v7 = vcombine.high %v1298_v57, %v1302_v34  ;;  %v1306_v9 = vld [vmem:[#allocation5 + $0x2590] sm:$0xff] }
 0x5a2   :  { %11245 = vmatpush1.bf16.msra.mxu0 %v13904_v15  ;;  %11778 = vmatpush1.bf16.msra.mxu1 %v13906_v18  ;;  %v1258_v15 = vld [vmem:[#allocation5 + $0x2410] sm:$0xff] }
 0x5a3   :  { %11246 = vmatprep.subr.bf16.mxu0 %v13913_v59  ;;  %11779 = vmatprep.subr.bf16.mxu1 %v13915_v19  ;;  %v1262_v18 = vld [vmem:[#allocation5 + $0x2430] sm:$0xff]  ;;  %v1259_v59 = vld [vmem:[#allocation5 + $0x2418] sm:$0xff] }
 0x5a4   :  { %v1263_v19 = vld [vmem:[#allocation5 + $0x2438] sm:$0xff]  ;;  %v13969_v61 = vcombine.high %v1258_v15, %v1262_v18  ;;  %v13968_v26 = vcombine.low %v1258_v15, %v1262_v18  ;;  %v1310_v25 = vld [vmem:[#allocation5 + $0x25b0] sm:$0xff] }
 0x5a5   :  { %v13971_v22 = vcombine.high %v1259_v59, %v1263_v19  ;;  %v13970_v56 = vcombine.low %v1259_v59, %v1263_v19  ;;  %v14017_v15 = vcombine.high %v1306_v9, %v1310_v25  ;;  %v1314_v59 = vld [vmem:[#allocation5 + $0x25d0] sm:$0xff] }
 0x5a6   :  { %11247 = vmatpush1.bf16.msra.mxu0 %v13912_v17  ;;  %11780 = vmatpush1.bf16.msra.mxu1 %v13914_v23  ;;  %v1266_v17 = vld [vmem:[#allocation5 + $0x2450] sm:$0xff] }
 0x5a7   :  { %11248 = vmatprep.subr.bf16.mxu0 %v13921_v13  ;;  %11781 = vmatprep.subr.bf16.mxu1 %v13923_v27  ;;  %v1270_v23 = vld [vmem:[#allocation5 + $0x2470] sm:$0xff]  ;;  %v1267_v13 = vld [vmem:[#allocation5 + $0x2458] sm:$0xff] }
 0x5a8   :  { %v1271_v27 = vld [vmem:[#allocation5 + $0x2478] sm:$0xff]  ;;  %v13977_v28 = vcombine.high %v1266_v17, %v1270_v23  ;;  %v13976_v47 = vcombine.low %v1266_v17, %v1270_v23  ;;  %v1318_v19 = vld [vmem:[#allocation5 + $0x25f0] sm:$0xff] }
 0x5a9   :  { %v13979_v11 = vcombine.high %v1267_v13, %v1271_v27  ;;  %v13978_v32 = vcombine.low %v1267_v13, %v1271_v27  ;;  %v14025_v17 = vcombine.high %v1314_v59, %v1318_v19  ;;  %v1322_v13 = vld [vmem:[#allocation5 + $0x2610] sm:$0xff] }
 0x5aa   :  { %11249 = vmatpush1.bf16.msra.mxu0 %v13920_v58  ;;  %11782 = vmatpush1.bf16.msra.mxu1 %v13922_v30  ;;  %v1274_v58 = vld [vmem:[#allocation5 + $0x2490] sm:$0xff] }
 0x5ab   :  { %11250 = vmatprep.subr.bf16.mxu0 %v13929_v31  ;;  %11783 = vmatprep.subr.bf16.mxu1 %v13931_v29  ;;  %v1278_v30 = vld [vmem:[#allocation5 + $0x24b0] sm:$0xff]  ;;  %v1275_v31 = vld [vmem:[#allocation5 + $0x2498] sm:$0xff] }
 0x5ac   :  { %v1279_v29 = vld [vmem:[#allocation5 + $0x24b8] sm:$0xff]  ;;  %v13985_v50 = vcombine.high %v1274_v58, %v1278_v30  ;;  %v13984_v36 = vcombine.low %v1274_v58, %v1278_v30  ;;  %v1326_v27 = vld [vmem:[#allocation5 + $0x2630] sm:$0xff] }
 0x5ad   :  { %v13987_v35 = vcombine.high %v1275_v31, %v1279_v29  ;;  %v14033_v58 = vcombine.high %v1322_v13, %v1326_v27 }
 0x5ae   :  { %11251 = vmatpush1.bf16.msra.mxu0 %v13928_v16  ;;  %11784 = vmatpush1.bf16.msra.mxu1 %v13930_v3  ;;  %v1282_v16 = vld [vmem:[#allocation5 + $0x24d0] sm:$0xff] }
 0x5af   :  { %11252 = vmatprep.subr.bf16.mxu0 %v13937_v54  ;;  %11785 = vmatprep.subr.bf16.mxu1 %v13939_v33  ;;  %v1286_v3 = vld [vmem:[#allocation5 + $0x24f0] sm:$0xff]  ;;  %v1283_v54 = vld [vmem:[#allocation5 + $0x24d8] sm:$0xff] }
 0x5b0   :  { %v1287_v33 = vld [vmem:[#allocation5 + $0x24f8] sm:$0xff]  ;;  %v13993_v21 = vcombine.high %v1282_v16, %v1286_v3 }
 0x5b1   :  { %v13995_v38 = vcombine.high %v1283_v54, %v1287_v33  ;;  %v13994_v46 = vcombine.low %v1283_v54, %v1287_v33  ;;  %v1338_v54 = vld [vmem:[#allocation5 + $0x2690] sm:$0xff] }
 0x5b2   :  { %11253 = vmatpush1.bf16.msra.mxu0 %v13936_v41  ;;  %11786 = vmatpush1.bf16.msra.mxu1 %v13938_v42  ;;  %v1294_v41 = vld [vmem:[#allocation5 + $0x2530] sm:$0xff]  ;;  %v1291_v42 = vld [vmem:[#allocation5 + $0x2518] sm:$0xff] }
 0x5b3   :  { %11254 = vmatprep.subr.bf16.mxu0 %v13945_v43  ;;  %11787 = vmatprep.subr.bf16.mxu1 %v13947_v44  ;;  %v1295_v43 = vld [vmem:[#allocation5 + $0x2538] sm:$0xff]  ;;  %v13992_v44 = vcombine.low %v1282_v16, %v1286_v3  ;;  %v14001_v48 = vcombine.high %v1290_v39, %v1294_v41  ;;  %v1342_v33 = vld [vmem:[#allocation5 + $0x26b0] sm:$0xff] }
 0x5b6   :  { %11255 = vmatpush1.bf16.msra.mxu0 %v13944_v20  ;;  %11788 = vmatpush1.bf16.msra.mxu1 %v13946_v62  ;;  %v1299_v20 = vld [vmem:[#allocation5 + $0x2558] sm:$0xff] }
 0x5b7   :  { %11256 = vmatprep.subr.bf16.mxu0 %v13953_v4  ;;  %11789 = vmatprep.subr.bf16.mxu1 %v13955_v40  ;;  %v1303_v62 = vld [vmem:[#allocation5 + $0x2578] sm:$0xff]  ;;  %v14000_v4 = vcombine.low %v1290_v39, %v1294_v41  ;;  %v14002_v40 = vcombine.low %v1291_v42, %v1295_v43  ;;  %v14049_v39 = vcombine.high %v1338_v54, %v1342_v33 }
 0x5b8   :  { %v14011_v8 = vcombine.high %v1299_v20, %v1303_v62 }
 0x5ba   :  { %11257 = vmatpush1.bf16.msra.mxu0 %v13952_v10  ;;  %11790 = vmatpush1.bf16.msra.mxu1 %v13954_v24  ;;  %v1307_v10 = vld [vmem:[#allocation5 + $0x2598] sm:$0xff] }
 0x5bb   :  { %11258 = vmatprep.subr.bf16.mxu0 %v13961_v12  ;;  %11791 = vmatprep.subr.bf16.mxu1 %v13963_v14  ;;  %v1311_v24 = vld [vmem:[#allocation5 + $0x25b8] sm:$0xff]  ;;  %v14008_v12 = vcombine.low %v1298_v57, %v1302_v34  ;;  %v14010_v14 = vcombine.low %v1299_v20, %v1303_v62  ;;  %v1354_v20 = vld [vmem:[#allocation5 + $0x2710] sm:$0xff] }
 0x5bc   :  { %v14019_v18 = vcombine.high %v1307_v10, %v1311_v24  ;;  %v1358_v62 = vld [vmem:[#allocation5 + $0x2730] sm:$0xff] }
 0x5be   :  { %11259 = vmatpush1.bf16.msra.mxu0 %v13960_v37  ;;  %11792 = vmatpush1.bf16.msra.mxu1 %v13962_v1  ;;  %v1315_v37 = vld [vmem:[#allocation5 + $0x25d8] sm:$0xff] }
 0x5bf   :  { %11269 = vmatprep.subr.bf16.mxu0 %v13969_v61  ;;  %11802 = vmatprep.subr.bf16.mxu1 %v13971_v22  ;;  %v1319_v1 = vld [vmem:[#allocation5 + $0x25f8] sm:$0xff]  ;;  %v14016_v61 = vcombine.low %v1306_v9, %v1310_v25  ;;  %v14018_v22 = vcombine.low %v1307_v10, %v1311_v24  ;;  %v14065_v9 = vcombine.high %v1354_v20, %v1358_v62  ;;  %v1362_v10 = vld [vmem:[#allocation5 + $0x2750] sm:$0xff] }
 0x5c0   :  { %v14027_v23 = vcombine.high %v1315_v37, %v1319_v1  ;;  %v1366_v24 = vld [vmem:[#allocation5 + $0x2770] sm:$0xff] }
 0x5c1   :  { %11261 = vmatmul.mubr.bf16.vlgmr.msra.gmra.mrb[4].mxu0 %v15305_v51  ;;  %11794 = vmatmul.mubr.bf16.vlgmr.msra.gmra.mrb[4].mxu1 %v15305_v51  ;;  %v13986_v51 = vcombine.low %v1275_v31, %v1279_v29  ;;  %v1330_v31 = vld [vmem:[#allocation5 + $0x2650] sm:$0xff] }
 0x5c2   :  { %11270 = vmatpush1.bf16.msra.mxu0 %v13968_v26  ;;  %11803 = vmatpush1.bf16.msra.mxu1 %v13970_v56  ;;  %v1323_v26 = vld [vmem:[#allocation5 + $0x2618] sm:$0xff]  ;;  %v1334_v29 = vld [vmem:[#allocation5 + $0x2670] sm:$0xff] }
 0x5c3   :  { %11271 = vmatprep.subr.bf16.mxu0 %v13977_v28  ;;  %11804 = vmatprep.subr.bf16.mxu1 %v13979_v11  ;;  %v1327_v56 = vld [vmem:[#allocation5 + $0x2638] sm:$0xff]  ;;  %v14024_v28 = vcombine.low %v1314_v59, %v1318_v19  ;;  %v14026_v11 = vcombine.low %v1315_v37, %v1319_v1  ;;  %v14041_v16 = vcombine.high %v1330_v31, %v1334_v29  ;;  %v1370_v37 = vld [vmem:[#allocation5 + $0x2790] sm:$0xff] }
 0x5c4   :  { %11301 = vmatprep.mubr.bf16.mxu0 %v15311_v2  ;;  %11834 = vmatprep.mubr.bf16.mxu1 %v15311_v2  ;;  %v14003_v2 = vcombine.high %v1291_v42, %v1295_v43  ;;  %v14035_v30 = vcombine.high %v1323_v26, %v1327_v56  ;;  %v1346_v42 = vld [vmem:[#allocation5 + $0x26d0] sm:$0xff]  ;;  %v14073_v59 = vcombine.high %v1362_v10, %v1366_v24 }
 0x5c5   :  { %v1350_v43 = vld [vmem:[#allocation5 + $0x26f0] sm:$0xff] }
 0x5c6   :  { %11272 = vmatpush1.bf16.msra.mxu0 %v13976_v47  ;;  %11805 = vmatpush1.bf16.msra.mxu1 %v13978_v32  ;;  %v1331_v47 = vld [vmem:[#allocation5 + $0x2658] sm:$0xff]  ;;  %v14057_v57 = vcombine.high %v1346_v42, %v1350_v43  ;;  %v1374_v1 = vld [vmem:[#allocation5 + $0x27b0] sm:$0xff] }
 0x5c7   :  { %11273 = vmatprep.subr.bf16.mxu0 %v13985_v50  ;;  %11806 = vmatprep.subr.bf16.mxu1 %v13987_v35  ;;  %v1335_v32 = vld [vmem:[#allocation5 + $0x2678] sm:$0xff]  ;;  %v14032_v50 = vcombine.low %v1322_v13, %v1326_v27  ;;  %v14034_v35 = vcombine.low %v1323_v26, %v1327_v56  ;;  %v14081_v13 = vcombine.high %v1370_v37, %v1374_v1  ;;  %v1378_v26 = vld [vmem:[#allocation5 + $0x27d0] sm:$0xff] }
 0x5c8   :  { %v14043_v3 = vcombine.high %v1331_v47, %v1335_v32  ;;  %v1382_v56 = vld [vmem:[#allocation5 + $0x27f0] sm:$0xff] }
 0x5ca   :  { %11274 = vmatpush1.bf16.msra.mxu0 %v13984_v36  ;;  %11807 = vmatpush1.bf16.msra.mxu1 %v13986_v51  ;;  %v1339_v36 = vld [vmem:[#allocation5 + $0x2698] sm:$0xff] }
 0x5cb   :  { %11275 = vmatprep.subr.bf16.mxu0 %v13993_v21  ;;  %11808 = vmatprep.subr.bf16.mxu1 %v13995_v38  ;;  %v1343_v51 = vld [vmem:[#allocation5 + $0x26b8] sm:$0xff]  ;;  %v14040_v21 = vcombine.low %v1330_v31, %v1334_v29  ;;  %v14042_v38 = vcombine.low %v1331_v47, %v1335_v32  ;;  %v14089_v31 = vcombine.high %v1378_v26, %v1382_v56  ;;  %v1386_v47 = vld [vmem:[#allocation5 + $0x2810] sm:$0xff] }
 0x5cc   :  { %v14051_v41 = vcombine.high %v1339_v36, %v1343_v51  ;;  %v1390_v32 = vld [vmem:[#allocation5 + $0x2830] sm:$0xff] }
 0x5ce   :  { %11276 = vmatpush1.bf16.msra.mxu0 %v13992_v44  ;;  %11809 = vmatpush1.bf16.msra.mxu1 %v13994_v46  ;;  %v1347_v44 = vld [vmem:[#allocation5 + $0x26d8] sm:$0xff] }
 0x5cf   :  { %11277 = vmatprep.subr.bf16.mxu0 %v14001_v48  ;;  %11810 = vmatprep.subr.bf16.mxu1 %v14003_v2  ;;  %v1351_v46 = vld [vmem:[#allocation5 + $0x26f8] sm:$0xff]  ;;  %v14048_v48 = vcombine.low %v1338_v54, %v1342_v33  ;;  %v14050_v2 = vcombine.low %v1339_v36, %v1343_v51  ;;  %v14097_v54 = vcombine.high %v1386_v47, %v1390_v32  ;;  %v1394_v36 = vld [vmem:[#allocation5 + $0x2850] sm:$0xff] }
 0x5d0   :  { %v14059_v34 = vcombine.high %v1347_v44, %v1351_v46  ;;  %v1398_v51 = vld [vmem:[#allocation5 + $0x2870] sm:$0xff] }
 0x5d2   :  { %11278 = vmatpush1.bf16.msra.mxu0 %v14000_v4  ;;  %11811 = vmatpush1.bf16.msra.mxu1 %v14002_v40  ;;  %v1355_v4 = vld [vmem:[#allocation5 + $0x2718] sm:$0xff] }
 0x5d3   :  { %11279 = vmatprep.subr.bf16.mxu0 %v14009_v7  ;;  %11812 = vmatprep.subr.bf16.mxu1 %v14011_v8  ;;  %v1359_v40 = vld [vmem:[#allocation5 + $0x2738] sm:$0xff]  ;;  %v14056_v7 = vcombine.low %v1346_v42, %v1350_v43  ;;  %v14058_v8 = vcombine.low %v1347_v44, %v1351_v46  ;;  %v14105_v42 = vcombine.high %v1394_v36, %v1398_v51  ;;  %v1402_v44 = vld [vmem:[#allocation5 + $0x2890] sm:$0xff] }
 0x5d4   :  { %v14067_v25 = vcombine.high %v1355_v4, %v1359_v40  ;;  %v1406_v46 = vld [vmem:[#allocation5 + $0x28b0] sm:$0xff] }
 0x5d6   :  { %11280 = vmatpush1.bf16.msra.mxu0 %v14008_v12  ;;  %11813 = vmatpush1.bf16.msra.mxu1 %v14010_v14  ;;  %v1363_v12 = vld [vmem:[#allocation5 + $0x2758] sm:$0xff] }
 0x5d7   :  { %11281 = vmatprep.subr.bf16.mxu0 %v14017_v15  ;;  %11814 = vmatprep.subr.bf16.mxu1 %v14019_v18  ;;  %v1367_v14 = vld [vmem:[#allocation5 + $0x2778] sm:$0xff]  ;;  %v14064_v15 = vcombine.low %v1354_v20, %v1358_v62  ;;  %v14066_v18 = vcombine.low %v1355_v4, %v1359_v40  ;;  %v14113_v20 = vcombine.high %v1402_v44, %v1406_v46  ;;  %v1410_v4 = vld [vmem:[#allocation5 + $0x28d0] sm:$0xff] }
 0x5d8   :  { %v14075_v19 = vcombine.high %v1363_v12, %v1367_v14  ;;  %v1414_v40 = vld [vmem:[#allocation5 + $0x28f0] sm:$0xff] }
 0x5da   :  { %11282 = vmatpush1.bf16.msra.mxu0 %v14016_v61  ;;  %11815 = vmatpush1.bf16.msra.mxu1 %v14018_v22  ;;  %v1371_v61 = vld [vmem:[#allocation5 + $0x2798] sm:$0xff] }
 0x5db   :  { %11283 = vmatprep.subr.bf16.mxu0 %v14025_v17  ;;  %11816 = vmatprep.subr.bf16.mxu1 %v14027_v23  ;;  %v1375_v22 = vld [vmem:[#allocation5 + $0x27b8] sm:$0xff]  ;;  %v14072_v17 = vcombine.low %v1362_v10, %v1366_v24  ;;  %v14074_v23 = vcombine.low %v1363_v12, %v1367_v14  ;;  %v1418_v24 = vld [vmem:[#allocation5 + $0x2910] sm:$0xff] }
 0x5dc   :  { %v14083_v27 = vcombine.high %v1371_v61, %v1375_v22  ;;  %v1422_v12 = vld [vmem:[#allocation5 + $0x2930] sm:$0xff]  ;;  %v1419_v14 = vld [vmem:[#allocation5 + $0x2918] sm:$0xff] }
 0x5de   :  { %11284 = vmatpush1.bf16.msra.mxu0 %v14024_v28  ;;  %11817 = vmatpush1.bf16.msra.mxu1 %v14026_v11  ;;  %v1379_v28 = vld [vmem:[#allocation5 + $0x27d8] sm:$0xff] }
 0x5df   :  { %11285 = vmatprep.subr.bf16.mxu0 %v14033_v58  ;;  %11818 = vmatprep.subr.bf16.mxu1 %v14035_v30  ;;  %v1383_v11 = vld [vmem:[#allocation5 + $0x27f8] sm:$0xff]  ;;  %v14080_v58 = vcombine.low %v1370_v37, %v1374_v1  ;;  %v14082_v30 = vcombine.low %v1371_v61, %v1375_v22  ;;  %v1426_v37 = vld [vmem:[#allocation5 + $0x2950] sm:$0xff] }
 0x5e0   :  { %v14091_v29 = vcombine.high %v1379_v28, %v1383_v11  ;;  %v1430_v1 = vld [vmem:[#allocation5 + $0x2970] sm:$0xff]  ;;  %v1427_v61 = vld [vmem:[#allocation5 + $0x2958] sm:$0xff] }
 0x5e1   :  { %v1431_v22 = vld [vmem:[#allocation5 + $0x2978] sm:$0xff] }
 0x5e2   :  { %11286 = vmatpush1.bf16.msra.mxu0 %v14032_v50  ;;  %11819 = vmatpush1.bf16.msra.mxu1 %v14034_v35  ;;  %v1387_v50 = vld [vmem:[#allocation5 + $0x2818] sm:$0xff] }
 0x5e3   :  { %11287 = vmatprep.subr.bf16.mxu0 %v14041_v16  ;;  %11820 = vmatprep.subr.bf16.mxu1 %v14043_v3  ;;  %v1391_v35 = vld [vmem:[#allocation5 + $0x2838] sm:$0xff]  ;;  %v14088_v16 = vcombine.low %v1378_v26, %v1382_v56  ;;  %v14090_v3 = vcombine.low %v1379_v28, %v1383_v11  ;;  %v1434_v26 = vld [vmem:[#allocation5 + $0x2990] sm:$0xff] }
 0x5e4   :  { %v14099_v33 = vcombine.high %v1387_v50, %v1391_v35  ;;  %v1438_v56 = vld [vmem:[#allocation5 + $0x29b0] sm:$0xff]  ;;  %v1435_v28 = vld [vmem:[#allocation5 + $0x2998] sm:$0xff] }
 0x5e5   :  { %v1439_v11 = vld [vmem:[#allocation5 + $0x29b8] sm:$0xff] }
 0x5e6   :  { %11288 = vmatpush1.bf16.msra.mxu0 %v14040_v21  ;;  %11821 = vmatpush1.bf16.msra.mxu1 %v14042_v38  ;;  %v1395_v21 = vld [vmem:[#allocation5 + $0x2858] sm:$0xff] }
 0x5e7   :  { %11289 = vmatprep.subr.bf16.mxu0 %v14049_v39  ;;  %11822 = vmatprep.subr.bf16.mxu1 %v14051_v41  ;;  %v1399_v38 = vld [vmem:[#allocation5 + $0x2878] sm:$0xff]  ;;  %v14096_v39 = vcombine.low %v1386_v47, %v1390_v32  ;;  %v14098_v41 = vcombine.low %v1387_v50, %v1391_v35  ;;  %v1442_v47 = vld [vmem:[#allocation5 + $0x29d0] sm:$0xff] }
 0x5e8   :  { %v14107_v43 = vcombine.high %v1395_v21, %v1399_v38  ;;  %v1446_v32 = vld [vmem:[#allocation5 + $0x29f0] sm:$0xff]  ;;  %v1443_v50 = vld [vmem:[#allocation5 + $0x29d8] sm:$0xff] }
 0x5e9   :  { %v1447_v35 = vld [vmem:[#allocation5 + $0x29f8] sm:$0xff] }
 0x5ea   :  { %11290 = vmatpush1.bf16.msra.mxu0 %v14048_v48  ;;  %11823 = vmatpush1.bf16.msra.mxu1 %v14050_v2  ;;  %v1403_v48 = vld [vmem:[#allocation5 + $0x2898] sm:$0xff] }
 0x5eb   :  { %11291 = vmatprep.subr.bf16.mxu0 %v14057_v57  ;;  %11824 = vmatprep.subr.bf16.mxu1 %v14059_v34  ;;  %v1407_v2 = vld [vmem:[#allocation5 + $0x28b8] sm:$0xff]  ;;  %v14104_v57 = vcombine.low %v1394_v36, %v1398_v51  ;;  %v14106_v34 = vcombine.low %v1395_v21, %v1399_v38  ;;  %v1450_v36 = vld [vmem:[#allocation5 + $0x2a10] sm:$0xff] }
 0x5ec   :  { %v14115_v62 = vcombine.high %v1403_v48, %v1407_v2  ;;  %v1454_v51 = vld [vmem:[#allocation5 + $0x2a30] sm:$0xff]  ;;  %v1451_v21 = vld [vmem:[#allocation5 + $0x2a18] sm:$0xff] }
 0x5ed   :  { %v1455_v38 = vld [vmem:[#allocation5 + $0x2a38] sm:$0xff] }
 0x5ee   :  { %11292 = vmatpush1.bf16.msra.mxu0 %v14056_v7  ;;  %11825 = vmatpush1.bf16.msra.mxu1 %v14058_v8  ;;  %v1411_v7 = vld [vmem:[#allocation5 + $0x28d8] sm:$0xff] }
 0x5ef   :  { %11293 = vmatprep.subr.bf16.mxu0 %v14065_v9  ;;  %11826 = vmatprep.subr.bf16.mxu1 %v14067_v25  ;;  %v1415_v8 = vld [vmem:[#allocation5 + $0x28f8] sm:$0xff]  ;;  %v14112_v9 = vcombine.low %v1402_v44, %v1406_v46  ;;  %v14121_v25 = vcombine.high %v1410_v4, %v1414_v40  ;;  %v1458_v44 = vld [vmem:[#allocation5 + $0x2a50] sm:$0xff] }
 0x5f0   :  { %v14123_v10 = vcombine.high %v1411_v7, %v1415_v8  ;;  %v1462_v46 = vld [vmem:[#allocation5 + $0x2a70] sm:$0xff] }
 0x5f2   :  { %11294 = vmatpush1.bf16.msra.mxu0 %v14064_v15  ;;  %11827 = vmatpush1.bf16.msra.mxu1 %v14066_v18  ;;  %v1423_v15 = vld [vmem:[#allocation5 + $0x2938] sm:$0xff]  ;;  %v14120_v18 = vcombine.low %v1410_v4, %v1414_v40  ;;  %v1466_v4 = vld [vmem:[#allocation5 + $0x2a90] sm:$0xff] }
 0x5f3   :  { %11295 = vmatprep.subr.bf16.mxu0 %v14073_v59  ;;  %11828 = vmatprep.subr.bf16.mxu1 %v14075_v19  ;;  %v14122_v59 = vcombine.low %v1411_v7, %v1415_v8  ;;  %v14129_v19 = vcombine.high %v1418_v24, %v1422_v12  ;;  %v1470_v40 = vld [vmem:[#allocation5 + $0x2ab0] sm:$0xff]  ;;  %v1467_v7 = vld [vmem:[#allocation5 + $0x2a98] sm:$0xff] }
 0x5f4   :  { %v1471_v8 = vld [vmem:[#allocation5 + $0x2ab8] sm:$0xff] }
 0x5f6   :  { %11296 = vmatpush1.bf16.msra.mxu0 %v14072_v17  ;;  %11829 = vmatpush1.bf16.msra.mxu1 %v14074_v23  ;;  %v14128_v17 = vcombine.low %v1418_v24, %v1422_v12  ;;  %v14130_v23 = vcombine.low %v1419_v14, %v1423_v15  ;;  %v1474_v24 = vld [vmem:[#allocation5 + $0x2ad0] sm:$0xff] }
 0x5f7   :  { %11297 = vmatprep.subr.bf16.mxu0 %v14081_v13  ;;  %11830 = vmatprep.subr.bf16.mxu1 %v14083_v27  ;;  %v14137_v13 = vcombine.high %v1426_v37, %v1430_v1  ;;  %v14139_v27 = vcombine.high %v1427_v61, %v1431_v22  ;;  %v1478_v12 = vld [vmem:[#allocation5 + $0x2af0] sm:$0xff] }
 0x5fa   :  { %11298 = vmatpush1.bf16.msra.mxu0 %v14080_v58  ;;  %11831 = vmatpush1.bf16.msra.mxu1 %v14082_v30  ;;  %v14136_v58 = vcombine.low %v1426_v37, %v1430_v1  ;;  %v14138_v30 = vcombine.low %v1427_v61, %v1431_v22  ;;  %v1482_v37 = vld [vmem:[#allocation5 + $0x2b10] sm:$0xff]  ;;  %v1483_v61 = vld [vmem:[#allocation5 + $0x2b18] sm:$0xff] }
 0x5fb   :  { %11299 = vmatprep.subr.bf16.mxu0 %v14089_v31  ;;  %11832 = vmatprep.subr.bf16.mxu1 %v14091_v29  ;;  %v14145_v31 = vcombine.high %v1434_v26, %v1438_v56  ;;  %v14147_v29 = vcombine.high %v1435_v28, %v1439_v11  ;;  %v1486_v1 = vld [vmem:[#allocation5 + $0x2b30] sm:$0xff]  ;;  %v1487_v22 = vld [vmem:[#allocation5 + $0x2b38] sm:$0xff] }
 0x5fe   :  { %11300 = vmatpush1.bf16.msra.mxu0 %v14088_v16  ;;  %11833 = vmatpush1.bf16.msra.mxu1 %v14090_v3  ;;  %v14144_v16 = vcombine.low %v1434_v26, %v1438_v56  ;;  %v14146_v3 = vcombine.low %v1435_v28, %v1439_v11  ;;  %v1490_v26 = vld [vmem:[#allocation5 + $0x2b50] sm:$0xff]  ;;  %v1491_v28 = vld [vmem:[#allocation5 + $0x2b58] sm:$0xff] }
 0x5ff   :  { %11310 = vmatprep.subr.bf16.mxu0 %v14097_v54  ;;  %11843 = vmatprep.subr.bf16.mxu1 %v14099_v33  ;;  %v14153_v54 = vcombine.high %v1442_v47, %v1446_v32  ;;  %v14155_v33 = vcombine.high %v1443_v50, %v1447_v35  ;;  %v1494_v56 = vld [vmem:[#allocation5 + $0x2b70] sm:$0xff]  ;;  %v1495_v11 = vld [vmem:[#allocation5 + $0x2b78] sm:$0xff] }
 0x601   :  { %11302 = vmatmul.mubr.bf16.vlgmr.msra.gmra.mrb[4].mxu0 %v15319_v45  ;;  %11835 = vmatmul.mubr.bf16.vlgmr.msra.gmra.mrb[4].mxu1 %v15319_v45  ;;  %v14114_v45 = vcombine.low %v1403_v48, %v1407_v2  ;;  %v1459_v48 = vld [vmem:[#allocation5 + $0x2a58] sm:$0xff] }
 0x602   :  { %11311 = vmatpush1.bf16.msra.mxu0 %v14096_v39  ;;  %11844 = vmatpush1.bf16.msra.mxu1 %v14098_v41  ;;  %v14152_v39 = vcombine.low %v1442_v47, %v1446_v32  ;;  %v14154_v41 = vcombine.low %v1443_v50, %v1447_v35  ;;  %v1463_v2 = vld [vmem:[#allocation5 + $0x2a78] sm:$0xff]  ;;  %v1498_v47 = vld [vmem:[#allocation5 + $0x2b90] sm:$0xff] }
 0x603   :  { %11312 = vmatprep.subr.bf16.mxu0 %v14105_v42  ;;  %11845 = vmatprep.subr.bf16.mxu1 %v14107_v43  ;;  %v14161_v42 = vcombine.high %v1450_v36, %v1454_v51  ;;  %v14163_v43 = vcombine.high %v1451_v21, %v1455_v38  ;;  %v1502_v32 = vld [vmem:[#allocation5 + $0x2bb0] sm:$0xff]  ;;  %v1499_v50 = vld [vmem:[#allocation5 + $0x2b98] sm:$0xff] }
 0x604   :  { %11342 = vmatprep.mubr.bf16.mxu0 %v15325_v63  ;;  %11875 = vmatprep.mubr.bf16.mxu1 %v15325_v63  ;;  %v14131_v63 = vcombine.high %v1419_v14, %v1423_v15  ;;  %v1475_v14 = vld [vmem:[#allocation5 + $0x2ad8] sm:$0xff] }
 0x605   :  { %v1479_v15 = vld [vmem:[#allocation5 + $0x2af8] sm:$0xff] }
 0x606   :  { %11313 = vmatpush1.bf16.msra.mxu0 %v14104_v57  ;;  %11846 = vmatpush1.bf16.msra.mxu1 %v14106_v34  ;;  %v14160_v57 = vcombine.low %v1450_v36, %v1454_v51  ;;  %v14162_v34 = vcombine.low %v1451_v21, %v1455_v38  ;;  %v1503_v35 = vld [vmem:[#allocation5 + $0x2bb8] sm:$0xff]  ;;  %v1506_v36 = vld [vmem:[#allocation5 + $0x2bd0] sm:$0xff] }
 0x607   :  { %11314 = vmatprep.subr.bf16.mxu0 %v14113_v20  ;;  %11847 = vmatprep.subr.bf16.mxu1 %v14115_v62  ;;  %v14169_v20 = vcombine.high %v1458_v44, %v1462_v46  ;;  %v14171_v62 = vcombine.high %v1459_v48, %v1463_v2  ;;  %v1510_v51 = vld [vmem:[#allocation5 + $0x2bf0] sm:$0xff]  ;;  %v1507_v21 = vld [vmem:[#allocation5 + $0x2bd8] sm:$0xff] }
 0x608   :  { %v1511_v38 = vld [vmem:[#allocation5 + $0x2bf8] sm:$0xff] }
 0x60a   :  { %11315 = vmatpush1.bf16.msra.mxu0 %v14112_v9  ;;  %11848 = vmatpush1.bf16.msra.mxu1 %v14114_v45  ;;  %v14168_v9 = vcombine.low %v1458_v44, %v1462_v46  ;;  %v14170_v45 = vcombine.low %v1459_v48, %v1463_v2  ;;  %v1514_v44 = vld [vmem:[#allocation5 + $0x2c10] sm:$0xff]  ;;  %v1515_v48 = vld [vmem:[#allocation5 + $0x2c18] sm:$0xff] }
 0x60b   :  { %11316 = vmatprep.subr.bf16.mxu0 %v14121_v25  ;;  %11849 = vmatprep.subr.bf16.mxu1 %v14123_v10  ;;  %v14177_v25 = vcombine.high %v1466_v4, %v1470_v40  ;;  %v14179_v10 = vcombine.high %v1467_v7, %v1471_v8  ;;  %v1518_v46 = vld [vmem:[#allocation5 + $0x2c30] sm:$0xff]  ;;  %v1519_v2 = vld [vmem:[#allocation5 + $0x2c38] sm:$0xff] }
 0x60e   :  { %11317 = vmatpush1.bf16.msra.mxu0 %v14120_v18  ;;  %11850 = vmatpush1.bf16.msra.mxu1 %v14122_v59  ;;  %v14176_v18 = vcombine.low %v1466_v4, %v1470_v40  ;;  %v14178_v59 = vcombine.low %v1467_v7, %v1471_v8  ;;  %v1522_v4 = vld [vmem:[#allocation5 + $0x2c50] sm:$0xff]  ;;  %v1523_v7 = vld [vmem:[#allocation5 + $0x2c58] sm:$0xff] }
 0x60f   :  { %11318 = vmatprep.subr.bf16.mxu0 %v14129_v19  ;;  %11851 = vmatprep.subr.bf16.mxu1 %v14131_v63  ;;  %v14185_v19 = vcombine.high %v1474_v24, %v1478_v12  ;;  %v14187_v63 = vcombine.high %v1475_v14, %v1479_v15  ;;  %v1526_v40 = vld [vmem:[#allocation5 + $0x2c70] sm:$0xff]  ;;  %v1527_v8 = vld [vmem:[#allocation5 + $0x2c78] sm:$0xff] }
 0x612   :  { %11319 = vmatpush1.bf16.msra.mxu0 %v14128_v17  ;;  %11852 = vmatpush1.bf16.msra.mxu1 %v14130_v23  ;;  %v14184_v17 = vcombine.low %v1474_v24, %v1478_v12  ;;  %v14186_v23 = vcombine.low %v1475_v14, %v1479_v15  ;;  %v1530_v24 = vld [vmem:[#allocation5 + $0x2c90] sm:$0xff]  ;;  %v1531_v14 = vld [vmem:[#allocation5 + $0x2c98] sm:$0xff] }
 0x613   :  { %11320 = vmatprep.subr.bf16.mxu0 %v14137_v13  ;;  %11853 = vmatprep.subr.bf16.mxu1 %v14139_v27  ;;  %v14193_v13 = vcombine.high %v1482_v37, %v1486_v1  ;;  %v14195_v27 = vcombine.high %v1483_v61, %v1487_v22  ;;  %v1534_v12 = vld [vmem:[#allocation5 + $0x2cb0] sm:$0xff]  ;;  %v1535_v15 = vld [vmem:[#allocation5 + $0x2cb8] sm:$0xff] }
 0x616   :  { %11321 = vmatpush1.bf16.msra.mxu0 %v14136_v58  ;;  %11854 = vmatpush1.bf16.msra.mxu1 %v14138_v30  ;;  %v14192_v58 = vcombine.low %v1482_v37, %v1486_v1  ;;  %v14194_v30 = vcombine.low %v1483_v61, %v1487_v22  ;;  %v1538_v37 = vld [vmem:[#allocation5 + $0x2cd0] sm:$0xff]  ;;  %v1539_v61 = vld [vmem:[#allocation5 + $0x2cd8] sm:$0xff] }
 0x617   :  { %11322 = vmatprep.subr.bf16.mxu0 %v14145_v31  ;;  %11855 = vmatprep.subr.bf16.mxu1 %v14147_v29  ;;  %v14201_v31 = vcombine.high %v1490_v26, %v1494_v56  ;;  %v14203_v29 = vcombine.high %v1491_v28, %v1495_v11  ;;  %v1542_v1 = vld [vmem:[#allocation5 + $0x2cf0] sm:$0xff]  ;;  %v1543_v22 = vld [vmem:[#allocation5 + $0x2cf8] sm:$0xff] }
 0x61a   :  { %11323 = vmatpush1.bf16.msra.mxu0 %v14144_v16  ;;  %11856 = vmatpush1.bf16.msra.mxu1 %v14146_v3  ;;  %v14200_v16 = vcombine.low %v1490_v26, %v1494_v56  ;;  %v14202_v3 = vcombine.low %v1491_v28, %v1495_v11  ;;  %v1550_v26 = vld [vmem:[#allocation5 + $0x2d30] sm:$0xff]  ;;  %v1547_v56 = vld [vmem:[#allocation5 + $0x2d18] sm:$0xff]  ;;  %v14248_v11 = vcombine.low %v1538_v37, %v1542_v1 }
 0x61b   :  { %11324 = vmatprep.subr.bf16.mxu0 %v14153_v54  ;;  %11857 = vmatprep.subr.bf16.mxu1 %v14155_v33  ;;  %v14209_v54 = vcombine.high %v1498_v47, %v1502_v32  ;;  %v14211_v33 = vcombine.high %v1499_v50, %v1503_v35  ;;  %v1551_v28 = vld [vmem:[#allocation5 + $0x2d38] sm:$0xff] }
 0x61e   :  { %11325 = vmatpush1.bf16.msra.mxu0 %v14152_v39  ;;  %11858 = vmatpush1.bf16.msra.mxu1 %v14154_v41  ;;  %v14208_v39 = vcombine.low %v1498_v47, %v1502_v32  ;;  %v14210_v41 = vcombine.low %v1499_v50, %v1503_v35  ;;  %v1555_v47 = vld [vmem:[#allocation5 + $0x2d58] sm:$0xff]  ;;  %v14258_v35 = vcombine.low %v1547_v56, %v1551_v28 }
 0x61f   :  { %11326 = vmatprep.subr.bf16.mxu0 %v14161_v42  ;;  %11859 = vmatprep.subr.bf16.mxu1 %v14163_v43  ;;  %v14217_v42 = vcombine.high %v1506_v36, %v1510_v51  ;;  %v14219_v43 = vcombine.high %v1507_v21, %v1511_v38  ;;  %v1559_v32 = vld [vmem:[#allocation5 + $0x2d78] sm:$0xff] }
 0x622   :  { %11327 = vmatpush1.bf16.msra.mxu0 %v14160_v57  ;;  %11860 = vmatpush1.bf16.msra.mxu1 %v14162_v34  ;;  %v14216_v57 = vcombine.low %v1506_v36, %v1510_v51  ;;  %v14218_v34 = vcombine.low %v1507_v21, %v1511_v38  ;;  %v1563_v36 = vld [vmem:[#allocation5 + $0x2d98] sm:$0xff]  ;;  %v14266_v38 = vcombine.low %v1555_v47, %v1559_v32 }
 0x623   :  { %11328 = vmatprep.subr.bf16.mxu0 %v14169_v20  ;;  %11861 = vmatprep.subr.bf16.mxu1 %v14171_v62  ;;  %v14225_v20 = vcombine.high %v1514_v44, %v1518_v46  ;;  %v14227_v62 = vcombine.high %v1515_v48, %v1519_v2  ;;  %v1567_v51 = vld [vmem:[#allocation5 + $0x2db8] sm:$0xff] }
 0x626   :  { %11329 = vmatpush1.bf16.msra.mxu0 %v14168_v9  ;;  %11862 = vmatpush1.bf16.msra.mxu1 %v14170_v45  ;;  %v14224_v9 = vcombine.low %v1514_v44, %v1518_v46  ;;  %v14226_v45 = vcombine.low %v1515_v48, %v1519_v2  ;;  %v1571_v44 = vld [vmem:[#allocation5 + $0x2dd8] sm:$0xff]  ;;  %v14274_v2 = vcombine.low %v1563_v36, %v1567_v51 }
 0x627   :  { %11330 = vmatprep.subr.bf16.mxu0 %v14177_v25  ;;  %11863 = vmatprep.subr.bf16.mxu1 %v14179_v10  ;;  %v14233_v25 = vcombine.high %v1522_v4, %v1526_v40  ;;  %v14235_v10 = vcombine.high %v1523_v7, %v1527_v8  ;;  %v1575_v46 = vld [vmem:[#allocation5 + $0x2df8] sm:$0xff] }
 0x62a   :  { %11331 = vmatpush1.bf16.msra.mxu0 %v14176_v18  ;;  %11864 = vmatpush1.bf16.msra.mxu1 %v14178_v59  ;;  %v14232_v18 = vcombine.low %v1522_v4, %v1526_v40  ;;  %v14234_v59 = vcombine.low %v1523_v7, %v1527_v8  ;;  %v1579_v4 = vld [vmem:[#allocation5 + $0x2e18] sm:$0xff]  ;;  %v14282_v8 = vcombine.low %v1571_v44, %v1575_v46 }
 0x62b   :  { %11332 = vmatprep.subr.bf16.mxu0 %v14185_v19  ;;  %11865 = vmatprep.subr.bf16.mxu1 %v14187_v63  ;;  %v14241_v19 = vcombine.high %v1530_v24, %v1534_v12  ;;  %v14243_v63 = vcombine.high %v1531_v14, %v1535_v15  ;;  %v1583_v40 = vld [vmem:[#allocation5 + $0x2e38] sm:$0xff] }
 0x62e   :  { %11333 = vmatpush1.bf16.msra.mxu0 %v14184_v17  ;;  %11866 = vmatpush1.bf16.msra.mxu1 %v14186_v23  ;;  %v14240_v17 = vcombine.low %v1530_v24, %v1534_v12  ;;  %v14249_v23 = vcombine.high %v1538_v37, %v1542_v1  ;;  %v1587_v24 = vld [vmem:[#allocation5 + $0x2e58] sm:$0xff] }
 0x62f   :  { %11334 = vmatprep.subr.bf16.mxu0 %v14193_v13  ;;  %11867 = vmatprep.subr.bf16.mxu1 %v14195_v27  ;;  %v14251_v13 = vcombine.high %v1539_v61, %v1543_v22  ;;  %v1546_v27 = vld [vmem:[#allocation5 + $0x2d10] sm:$0xff]  ;;  %v1591_v12 = vld [vmem:[#allocation5 + $0x2e78] sm:$0xff] }
 0x630   :  { %v14256_v50 = vcombine.low %v1546_v27, %v1550_v26  ;;  %v1595_v37 = vld [vmem:[#allocation5 + $0x2e98] sm:$0xff] }
 0x631   :  { %v1599_v1 = vld [vmem:[#allocation5 + $0x2eb8] sm:$0xff] }
 0x632   :  { %11335 = vmatpush1.bf16.msra.mxu0 %v14192_v58  ;;  %11868 = vmatpush1.bf16.msra.mxu1 %v14194_v30  ;;  %v14250_v58 = vcombine.low %v1539_v61, %v1543_v22  ;;  %v14257_v30 = vcombine.high %v1546_v27, %v1550_v26  ;;  %v14298_v22 = vcombine.low %v1587_v24, %v1591_v12  ;;  %v1603_v27 = vld [vmem:[#allocation5 + $0x2ed8] sm:$0xff] }
 0x633   :  { %11336 = vmatprep.subr.bf16.mxu0 %v14201_v31  ;;  %11869 = vmatprep.subr.bf16.mxu1 %v14203_v29  ;;  %v1554_v31 = vld [vmem:[#allocation5 + $0x2d50] sm:$0xff]  ;;  %v1607_v26 = vld [vmem:[#allocation5 + $0x2ef8] sm:$0xff] }
 0x634   :  { %v1558_v29 = vld [vmem:[#allocation5 + $0x2d70] sm:$0xff] }
 0x635   :  { %v14264_v21 = vcombine.low %v1554_v31, %v1558_v29 }
 0x636   :  { %11337 = vmatpush1.bf16.msra.mxu0 %v14200_v16  ;;  %11870 = vmatpush1.bf16.msra.mxu1 %v14202_v3  ;;  %v14265_v16 = vcombine.high %v1554_v31, %v1558_v29  ;;  %v14267_v3 = vcombine.high %v1555_v47, %v1559_v32  ;;  %v1611_v31 = vld [vmem:[#allocation5 + $0x2f18] sm:$0xff]  ;;  %v14314_v32 = vcombine.low %v1603_v27, %v1607_v26 }
 0x637   :  { %11338 = vmatprep.subr.bf16.mxu0 %v14209_v54  ;;  %11871 = vmatprep.subr.bf16.mxu1 %v14211_v33  ;;  %v1562_v54 = vld [vmem:[#allocation5 + $0x2d90] sm:$0xff]  ;;  %v1615_v29 = vld [vmem:[#allocation5 + $0x2f38] sm:$0xff] }
 0x638   :  { %v1566_v33 = vld [vmem:[#allocation5 + $0x2db0] sm:$0xff] }
 0x639   :  { %v14272_v48 = vcombine.low %v1562_v54, %v1566_v33 }
 0x63a   :  { %11339 = vmatpush1.bf16.msra.mxu0 %v14208_v39  ;;  %11872 = vmatpush1.bf16.msra.mxu1 %v14210_v41  ;;  %v14273_v39 = vcombine.high %v1562_v54, %v1566_v33  ;;  %v14275_v41 = vcombine.high %v1563_v36, %v1567_v51  ;;  %v1619_v54 = vld [vmem:[#allocation5 + $0x2f58] sm:$0xff]  ;;  %v14322_v51 = vcombine.low %v1611_v31, %v1615_v29 }
 0x63b   :  { %11340 = vmatprep.subr.bf16.mxu0 %v14217_v42  ;;  %11873 = vmatprep.subr.bf16.mxu1 %v14219_v43  ;;  %v1570_v42 = vld [vmem:[#allocation5 + $0x2dd0] sm:$0xff]  ;;  %v1623_v33 = vld [vmem:[#allocation5 + $0x2f78] sm:$0xff] }
 0x63c   :  { %v1574_v43 = vld [vmem:[#allocation5 + $0x2df0] sm:$0xff] }
 0x63d   :  { %v14280_v7 = vcombine.low %v1570_v42, %v1574_v43 }
 0x63e   :  { %11341 = vmatpush1.bf16.msra.mxu0 %v14216_v57  ;;  %11874 = vmatpush1.bf16.msra.mxu1 %v14218_v34  ;;  %v14281_v57 = vcombine.high %v1570_v42, %v1574_v43  ;;  %v14283_v34 = vcombine.high %v1571_v44, %v1575_v46  ;;  %v1627_v42 = vld [vmem:[#allocation5 + $0x2f98] sm:$0xff]  ;;  %v14330_v46 = vcombine.low %v1619_v54, %v1623_v33 }
 0x63f   :  { %11351 = vmatprep.subr.bf16.mxu0 %v14225_v20  ;;  %11884 = vmatprep.subr.bf16.mxu1 %v14227_v62  ;;  %v1578_v20 = vld [vmem:[#allocation5 + $0x2e10] sm:$0xff]  ;;  %v1631_v43 = vld [vmem:[#allocation5 + $0x2fb8] sm:$0xff] }
 0x640   :  { %v1582_v62 = vld [vmem:[#allocation5 + $0x2e30] sm:$0xff] }
 0x641   :  { %11343 = vmatmul.mubr.bf16.vlgmr.msra.gmra.mrb[4].mxu0 %v15333_v52  ;;  %11876 = vmatmul.mubr.bf16.vlgmr.msra.gmra.mrb[4].mxu1 %v15333_v52  ;;  %v14242_v52 = vcombine.low %v1531_v14, %v1535_v15  ;;  %v14288_v14 = vcombine.low %v1578_v20, %v1582_v62  ;;  %v14290_v15 = vcombine.low %v1579_v4, %v1583_v40 }
 0x642   :  { %11352 = vmatpush1.bf16.msra.mxu0 %v14224_v9  ;;  %11885 = vmatpush1.bf16.msra.mxu1 %v14226_v45  ;;  %v14289_v9 = vcombine.high %v1578_v20, %v1582_v62  ;;  %v14291_v45 = vcombine.high %v1579_v4, %v1583_v40  ;;  %v1635_v20 = vld [vmem:[#allocation5 + $0x2fd8] sm:$0xff]  ;;  %v14338_v40 = vcombine.low %v1627_v42, %v1631_v43 }
 0x643   :  { %11353 = vmatprep.subr.bf16.mxu0 %v14233_v25  ;;  %11886 = vmatprep.subr.bf16.mxu1 %v14235_v10  ;;  %v1586_v25 = vld [vmem:[#allocation5 + $0x2e50] sm:$0xff]  ;;  %v1639_v62 = vld [vmem:[#allocation5 + $0x2ff8] sm:$0xff] }
 0x644   :  { %11383 = vmatprep.mubr.bf16.mxu0 %v15339_v5  ;;  %11916 = vmatprep.mubr.bf16.mxu1 %v15339_v5  ;;  %v14259_v5 = vcombine.high %v1547_v56, %v1551_v28  ;;  %v1590_v10 = vld [vmem:[#allocation5 + $0x2e70] sm:$0xff]  ;;  %v14306_v28 = vcombine.low %v1595_v37, %v1599_v1 }
 0x645   :  { %v14296_v61 = vcombine.low %v1586_v25, %v1590_v10 }
 0x646   :  { %11354 = vmatpush1.bf16.msra.mxu0 %v14232_v18  ;;  %11887 = vmatpush1.bf16.msra.mxu1 %v14234_v59  ;;  %v14297_v18 = vcombine.high %v1586_v25, %v1590_v10  ;;  %v14299_v59 = vcombine.high %v1587_v24, %v1591_v12  ;;  %v1643_v25 = vld [vmem:[#allocation5 + $0x3018] sm:$0xff]  ;;  %v14346_v12 = vcombine.low %v1635_v20, %v1639_v62 }
 0x647   :  { %11355 = vmatprep.subr.bf16.mxu0 %v14241_v19  ;;  %11888 = vmatprep.subr.bf16.mxu1 %v14243_v63  ;;  %v1594_v19 = vld [vmem:[#allocation5 + $0x2e90] sm:$0xff]  ;;  %v1647_v10 = vld [vmem:[#allocation5 + $0x3038] sm:$0xff] }
 0x648   :  { %v1598_v63 = vld [vmem:[#allocation5 + $0x2eb0] sm:$0xff] }
 0x649   :  { %v14304_v56 = vcombine.low %v1594_v19, %v1598_v63 }
 0x64a   :  { %11356 = vmatpush1.bf16.msra.mxu0 %v14240_v17  ;;  %11889 = vmatpush1.bf16.msra.mxu1 %v14242_v52  ;;  %v14305_v17 = vcombine.high %v1594_v19, %v1598_v63  ;;  %v14307_v52 = vcombine.high %v1595_v37, %v1599_v1  ;;  %v1651_v19 = vld [vmem:[#allocation5 + $0x3058] sm:$0xff]  ;;  %v14354_v1 = vcombine.low %v1643_v25, %v1647_v10 }
 0x64b   :  { %11357 = vmatprep.subr.bf16.mxu0 %v14249_v23  ;;  %11890 = vmatprep.subr.bf16.mxu1 %v14251_v13  ;;  %v1602_v23 = vld [vmem:[#allocation5 + $0x2ed0] sm:$0xff]  ;;  %v1655_v63 = vld [vmem:[#allocation5 + $0x3078] sm:$0xff] }
 0x64c   :  { %v1606_v13 = vld [vmem:[#allocation5 + $0x2ef0] sm:$0xff] }
 0x64d   :  { %v14312_v47 = vcombine.low %v1602_v23, %v1606_v13 }
 0x64e   :  { %11358 = vmatpush1.bf16.msra.mxu0 %v14248_v11  ;;  %11891 = vmatpush1.bf16.msra.mxu1 %v14250_v58  ;;  %v14313_v11 = vcombine.high %v1602_v23, %v1606_v13  ;;  %v14315_v58 = vcombine.high %v1603_v27, %v1607_v26  ;;  %v1659_v23 = vld [vmem:[#allocation5 + $0x3098] sm:$0xff]  ;;  %v14362_v26 = vcombine.low %v1651_v19, %v1655_v63 }
 0x64f   :  { %11359 = vmatprep.subr.bf16.mxu0 %v14257_v30  ;;  %11892 = vmatprep.subr.bf16.mxu1 %v14259_v5  ;;  %v1610_v30 = vld [vmem:[#allocation5 + $0x2f10] sm:$0xff]  ;;  %v1663_v13 = vld [vmem:[#allocation5 + $0x30b8] sm:$0xff] }
 0x650   :  { %v1614_v5 = vld [vmem:[#allocation5 + $0x2f30] sm:$0xff] }
 0x651   :  { %v14320_v36 = vcombine.low %v1610_v30, %v1614_v5 }
 0x652   :  { %11360 = vmatpush1.bf16.msra.mxu0 %v14256_v50  ;;  %11893 = vmatpush1.bf16.msra.mxu1 %v14258_v35  ;;  %v14321_v50 = vcombine.high %v1610_v30, %v1614_v5  ;;  %v14323_v35 = vcombine.high %v1611_v31, %v1615_v29  ;;  %v1667_v30 = vld [vmem:[#allocation5 + $0x30d8] sm:$0xff] }
 0x653   :  { %11361 = vmatprep.subr.bf16.mxu0 %v14265_v16  ;;  %11894 = vmatprep.subr.bf16.mxu1 %v14267_v3  ;;  %v1618_v16 = vld [vmem:[#allocation5 + $0x2f50] sm:$0xff]  ;;  %v1671_v5 = vld [vmem:[#allocation5 + $0x30f8] sm:$0xff] }
 0x654   :  { %v1622_v3 = vld [vmem:[#allocation5 + $0x2f70] sm:$0xff] }
 0x655   :  { %v14328_v44 = vcombine.low %v1618_v16, %v1622_v3 }
 0x656   :  { %11362 = vmatpush1.bf16.msra.mxu0 %v14264_v21  ;;  %11895 = vmatpush1.bf16.msra.mxu1 %v14266_v38  ;;  %v14329_v21 = vcombine.high %v1618_v16, %v1622_v3  ;;  %v14331_v38 = vcombine.high %v1619_v54, %v1623_v33  ;;  %v1675_v16 = vld [vmem:[#allocation5 + $0x3118] sm:$0xff]  ;;  %v14378_v33 = vcombine.low %v1667_v30, %v1671_v5 }
 0x657   :  { %11363 = vmatprep.subr.bf16.mxu0 %v14273_v39  ;;  %11896 = vmatprep.subr.bf16.mxu1 %v14275_v41  ;;  %v1626_v39 = vld [vmem:[#allocation5 + $0x2f90] sm:$0xff]  ;;  %v1679_v3 = vld [vmem:[#allocation5 + $0x3138] sm:$0xff] }
 0x658   :  { %v1630_v41 = vld [vmem:[#allocation5 + $0x2fb0] sm:$0xff] }
 0x659   :  { %v14336_v4 = vcombine.low %v1626_v39, %v1630_v41 }
 0x65a   :  { %11364 = vmatpush1.bf16.msra.mxu0 %v14272_v48  ;;  %11897 = vmatpush1.bf16.msra.mxu1 %v14274_v2  ;;  %v14337_v48 = vcombine.high %v1626_v39, %v1630_v41  ;;  %v14339_v2 = vcombine.high %v1627_v42, %v1631_v43  ;;  %v1683_v39 = vld [vmem:[#allocation5 + $0x3158] sm:$0xff]  ;;  %v14386_v43 = vcombine.low %v1675_v16, %v1679_v3 }
 0x65b   :  { %11365 = vmatprep.subr.bf16.mxu0 %v14281_v57  ;;  %11898 = vmatprep.subr.bf16.mxu1 %v14283_v34  ;;  %v1634_v57 = vld [vmem:[#allocation5 + $0x2fd0] sm:$0xff]  ;;  %v1687_v41 = vld [vmem:[#allocation5 + $0x3178] sm:$0xff] }
 0x65c   :  { %v1638_v34 = vld [vmem:[#allocation5 + $0x2ff0] sm:$0xff] }
 0x65d   :  { %v14344_v24 = vcombine.low %v1634_v57, %v1638_v34 }
 0x65e   :  { %11366 = vmatpush1.bf16.msra.mxu0 %v14280_v7  ;;  %11899 = vmatpush1.bf16.msra.mxu1 %v14282_v8  ;;  %v14345_v7 = vcombine.high %v1634_v57, %v1638_v34  ;;  %v14347_v8 = vcombine.high %v1635_v20, %v1639_v62  ;;  %v1691_v34 = vld [vmem:[#allocation5 + $0x3198] sm:$0xff]  ;;  %v15414_v62 = vld [vmem:[#allocation7] sm:$0xff] }
 0x65f   :  { %11367 = vmatprep.subr.bf16.mxu0 %v14289_v9  ;;  %11900 = vmatprep.subr.bf16.mxu1 %v14291_v45  ;;  %v1642_v9 = vld [vmem:[#allocation5 + $0x3010] sm:$0xff]  ;;  %v1695_v20 = vld [vmem:[#allocation5 + $0x31b8] sm:$0xff] }
 0x660   :  { %v1646_v45 = vld [vmem:[#allocation5 + $0x3030] sm:$0xff] }
 0x661   :  { %v14352_v37 = vcombine.low %v1642_v9, %v1646_v45 }
 0x662   :  { %11368 = vmatpush1.bf16.msra.mxu0 %v14288_v14  ;;  %11901 = vmatpush1.bf16.msra.mxu1 %v14290_v15  ;;  %v14353_v14 = vcombine.high %v1642_v9, %v1646_v45  ;;  %v14355_v15 = vcombine.high %v1643_v25, %v1647_v10  ;;  %v14403_v9 = vcombine.high %v1691_v34, %v1695_v20  ;;  %v1698_v45 = vld [vmem:[#allocation5 + $0x31d0] sm:$0xff] }
 0x663   :  { %11369 = vmatprep.subr.bf16.mxu0 %v14297_v18  ;;  %11902 = vmatprep.subr.bf16.mxu1 %v14299_v59  ;;  %v1650_v18 = vld [vmem:[#allocation5 + $0x3050] sm:$0xff] }
 0x664   :  { %v1654_v59 = vld [vmem:[#allocation5 + $0x3070] sm:$0xff] }
 0x665   :  { %v14360_v27 = vcombine.low %v1650_v18, %v1654_v59  ;;  %v1702_v25 = vld [vmem:[#allocation5 + $0x31f0] sm:$0xff] }
 0x666   :  { %11370 = vmatpush1.bf16.msra.mxu0 %v14296_v61  ;;  %11903 = vmatpush1.bf16.msra.mxu1 %v14298_v22  ;;  %v14361_v61 = vcombine.high %v1650_v18, %v1654_v59  ;;  %v14363_v22 = vcombine.high %v1651_v19, %v1655_v63  ;;  %v14402_v18 = vcombine.low %v1691_v34, %v1695_v20  ;;  %v14910_v20 = vld [vmem:[#allocation8 + $0xf8] sm:$0xff]  }
 0x667   :  { %11371 = vmatprep.subr.bf16.mxu0 %v14305_v17  ;;  %11904 = vmatprep.subr.bf16.mxu1 %v14307_v52  ;;  %v1658_v17 = vld [vmem:[#allocation5 + $0x3090] sm:$0xff]  ;;  %v14409_v59 = vcombine.high %v1698_v45, %v1702_v25 }
 0x668   :  { %v1662_v52 = vld [vmem:[#allocation5 + $0x30b0] sm:$0xff] }
 0x669   :  { %v14368_v31 = vcombine.low %v1658_v17, %v1662_v52 }
 0x66a   :  { %11372 = vmatpush1.bf16.msra.mxu0 %v14304_v56  ;;  %11905 = vmatpush1.bf16.msra.mxu1 %v14306_v28  ;;  %v14369_v56 = vcombine.high %v1658_v17, %v1662_v52  ;;  %v14371_v28 = vcombine.high %v1659_v23, %v1663_v13  ;;  %v14882_v17 = vld [vmem:[#allocation8 + $0xc0] sm:$0xff]  }
 0x66b   :  { %11373 = vmatprep.subr.bf16.mxu0 %v14313_v11  ;;  %11906 = vmatprep.subr.bf16.mxu1 %v14315_v58  ;;  %v1666_v11 = vld [vmem:[#allocation5 + $0x30d0] sm:$0xff] }
 0x66c   :  { %v1670_v58 = vld [vmem:[#allocation5 + $0x30f0] sm:$0xff] }
 0x66d   :  { %v14377_v29 = vcombine.high %v1666_v11, %v1670_v58  ;;  %v14376_v54 = vcombine.low %v1666_v11, %v1670_v58  ;;  %v14887_v11 = vld [vmem:[#allocation8 + $0x8] sm:$0xff]  }
 0x66e   :  { %11374 = vmatpush1.bf16.msra.mxu0 %v14312_v47  ;;  %11907 = vmatpush1.bf16.msra.mxu1 %v14314_v32  ;;  %v14379_v47 = vcombine.high %v1667_v30, %v1671_v5  ;;  %v1674_v32 = vld [vmem:[#allocation5 + $0x3110] sm:$0xff]  ;;  %v14889_v30 = vld [vmem:[#allocation8 + $0x50] sm:$0xff]  }
 0x66f   :  { %11375 = vmatprep.subr.bf16.mxu0 %v14321_v50  ;;  %11908 = vmatprep.subr.bf16.mxu1 %v14323_v35  ;;  %v1678_v50 = vld [vmem:[#allocation5 + $0x3130] sm:$0xff]  ;;  %v1706_v35 = vlaneseq  ;;  %v14890_v5 = vld [vmem:[#allocation8 + $0xd0] sm:$0xff]  }
 0x670   :  { %v14384_v42 = vcombine.low %v1674_v32, %v1678_v50  ;;  %v14888_v58 = vld [vmem:[#allocation8 + $0x88] sm:$0xff]  }
 0x672   :  { %11376 = vmatpush1.bf16.msra.mxu0 %v14320_v36  ;;  %11909 = vmatpush1.bf16.msra.mxu1 %v14322_v51  ;;  %v14385_v36 = vcombine.high %v1674_v32, %v1678_v50  ;;  %v1682_v51 = vld [vmem:[#allocation5 + $0x3150] sm:$0xff]  ;;  %v14895_v32 = vld [vmem:[#allocation8 + $0x18] sm:$0xff]  }
 0x673   :  { %11377 = vmatprep.subr.bf16.mxu0 %v14329_v21  ;;  %11910 = vmatprep.subr.bf16.mxu1 %v14331_v38  ;;  %v1686_v21 = vld [vmem:[#allocation5 + $0x3170] sm:$0xff]  ;;  %v15411_v38 = vshrl.u32 %v1706_v35, 7  ;;  %v14896_v50 = vld [vmem:[#allocation8 + $0x98] sm:$0xff]   ;;  %v14897_v35 = vld [vmem:[#allocation8 + $0x60] sm:$0xff]  }
 0x675   :  { %v1712_v57 = vsub.s32 1, %v15411_v38 }
 0x676   :  { %11378 = vmatpush1.bf16.msra.mxu0 %v14328_v44  ;;  %11911 = vmatpush1.bf16.msra.mxu1 %v14330_v46  ;;  %v14393_v44 = vcombine.high %v1682_v51, %v1686_v21  ;;  %v14395_v46 = vcombine.high %v1683_v39, %v1687_v41 }
 0x677   :  { %11379 = vmatprep.subr.bf16.mxu0 %v14337_v48  ;;  %11912 = vmatprep.subr.bf16.mxu1 %v14339_v2  ;;  %v1690_v48 = vld [vmem:[#allocation5 + $0x3190] sm:$0xff]  ;;  %v1713_v10 = vrot.slane %v15414_v62, %v1712_v57  ;;  %v14909_v57 = vld [vmem:[#allocation8 + $0x78] sm:$0xff]  }
 0x678   :  { %v1694_v2 = vld [vmem:[#allocation5 + $0x31b0] sm:$0xff] }
 0x679   :  { %v14643_v63 = vadd.f32 %v15371_v0, %v1713_v10  ;;  %v14916_v10 = vld [vmem:[#allocation8 + $0x180] sm:$0xff]  }
 0x67a   :  { %11380 = vmatpush1.bf16.msra.mxu0 %v14336_v4  ;;  %11913 = vmatpush1.bf16.msra.mxu1 %v14338_v40  ;;  %v1720_v4 = vsub.s32 3, %v15411_v38  ;;  %v14392_v40 = vcombine.low %v1682_v51, %v1686_v21  ;;  %v14902_v51 = vld [vmem:[#allocation8 + $0xe8] sm:$0xff]  }
 0x67b   :  { %11381 = vmatprep.subr.bf16.mxu0 %v14345_v7  ;;  %11914 = vmatprep.subr.bf16.mxu1 %v14347_v8  ;;  %v14394_v7 = vcombine.low %v1683_v39, %v1687_v41  ;;  %v14401_v8 = vcombine.high %v1690_v48, %v1694_v2  ;;  %v11967_v52 = vmax.f32 %v14643_v63, 0.0  ;;  %v14903_v21 = vld [vmem:[#allocation8 + $0x28] sm:$0xff]   ;;  %v14924_v63 = vld [vmem:[#allocation8 + $0x190] sm:$0xff]  }
 0x67c   :  { %v14904_v41 = vld [vmem:[#allocation8 + $0xa8] sm:$0xff]  }
 0x67d   :  { %v11975_v0 = vpack.c.bf16 %v11967_v52, %v11967_v52  ;;  %v14930_v52 = vld [vmem:[#allocation8 + $0x1e0] sm:$0xff]  }
 0x67e   :  { %11382 = vmatpush1.bf16.msra.mxu0 %v14344_v24  ;;  %11915 = vmatpush1.bf16.msra.mxu1 %v14346_v12  ;;  %v1699_v24 = vld [vmem:[#allocation5 + $0x31d8] sm:$0xff] }
 0x67f   :  { %11392 = vmatprep.subr.bf16.mxu0 %v14353_v14  ;;  %11925 = vmatprep.subr.bf16.mxu1 %v14355_v15  ;;  %v1703_v12 = vld [vmem:[#allocation5 + $0x31f8] sm:$0xff]  ;;  %v1721_v14 = vrot.slane %v15414_v62, %v1720_v4  ;;  %v14400_v15 = vcombine.low %v1690_v48, %v1694_v2  ;;  %v14911_v4 = vld [vmem:[#allocation8 + $0x38] sm:$0xff]  }
 0x680   :  { %v14411_v19 = vcombine.high %v1699_v24, %v1703_v12  ;;  %v14908_v2 = vld [vmem:[#allocation8 + $0xb0] sm:$0xff]  }
 0x681   :  { %11384 = vmatmul.mubr.bf16.vlgmr.msra.gmra.mrb[4].mxu0 %v15347_v49  ;;  %11917 = vmatmul.mubr.bf16.vlgmr.msra.gmra.mrb[4].mxu1 %v15347_v49  ;;  %v14370_v49 = vcombine.low %v1659_v23, %v1663_v13  ;;  %v14883_v13 = vld [vmem:[#allocation8] sm:$0xff]  }
 0x682   :  { %11393 = vmatpush1.bf16.msra.mxu0 %v14352_v37  ;;  %11926 = vmatpush1.bf16.msra.mxu1 %v14354_v1  ;;  %v14645_v37 = vadd.f32 %v15373_v6, %v1721_v14  ;;  %v14408_v1 = vcombine.low %v1698_v45, %v1702_v25  ;;  %v14886_v6 = vld [vmem:[#allocation8 + $0xc8] sm:$0xff]   ;;  %v14914_v45 = vld [vmem:[#allocation8 + $0x1c0] sm:$0xff]  }
 0x683   :  { %11394 = vmatprep.subr.bf16.mxu0 %v14361_v61  ;;  %11927 = vmatprep.subr.bf16.mxu1 %v14363_v22  ;;  %v14410_v61 = vcombine.low %v1699_v24, %v1703_v12  ;;  %v14881_v22 = vld [vmem:[#allocation8 + $0x40] sm:$0xff]   ;;  %v14917_v24 = vld [vmem:[#allocation8 + $0x148] sm:$0xff]  }
 0x684   :  { %11424 = vmatprep.mubr.bf16.mxu0 %v15075_v60  ;;  %11957 = vmatprep.mubr.bf16.mxu1 %v15075_v60  ;;  %v14387_v60 = vcombine.high %v1675_v16, %v1679_v3  ;;  %v11969_v23 = vmax.f32 %v14645_v37, 0.0  ;;  %v14898_v16 = vld [vmem:[#allocation8 + $0xe0] sm:$0xff]   ;;  %v14918_v12 = vld [vmem:[#allocation8 + $0x1c8] sm:$0xff]   ;;  %v14925_v37 = vld [vmem:[#allocation8 + $0x158] sm:$0xff]  }
 0x685   :  { %v14899_v3 = vld [vmem:[#allocation8 + $0x20] sm:$0xff]   ;;  %v14919_v14 = vld [vmem:[#allocation8 + $0x108] sm:$0xff]  }
 0x686   :  { %11395 = vmatpush1.bf16.msra.mxu0 %v14360_v27  ;;  %11928 = vmatpush1.bf16.msra.mxu1 %v14362_v26  ;;  %v14884_v27 = vld [vmem:[#allocation8 + $0x80] sm:$0xff]   ;;  %v14885_v26 = vld [vmem:[#allocation8 + $0x48] sm:$0xff]  }
 0x687   :  { %11396 = vmatprep.subr.bf16.mxu0 %v14369_v56  ;;  %11929 = vmatprep.subr.bf16.mxu1 %v14371_v28  ;;  %v14949_v56 = vld [vmem:[#allocation3 + $0x60] ss:$0 sps:$4 sm:$0xff]   ;;  %v11977_v28 = vpack.c.bf16 %v11969_v23, %v11969_v23  ;;  %v14931_v23 = vld [vmem:[#allocation8 + $0x120] sm:$0xff]  }
 0x68a   :  { %11397 = vmatpush1.bf16.msra.mxu0 %v14368_v31  ;;  %11930 = vmatpush1.bf16.msra.mxu1 %v14370_v49  ;;  %v14891_v31 = vld [vmem:[#allocation8 + $0x10] sm:$0xff]  }
 0x68b   :  { %11398 = vmatprep.subr.bf16.mxu0 %v14377_v29  ;;  %11931 = vmatprep.subr.bf16.mxu1 %v14379_v47  ;;  %v14892_v49 = vld [vmem:[#allocation8 + $0x90] sm:$0xff]   ;;  %v14893_v29 = vld [vmem:[#allocation8 + $0x58] sm:$0xff]  }
 0x68c   :  { %v14894_v47 = vld [vmem:[#allocation8 + $0xd8] sm:$0xff]  }
 0x68e   :  { %11399 = vmatpush1.bf16.msra.mxu0 %v14376_v54  ;;  %11932 = vmatpush1.bf16.msra.mxu1 %v14378_v33  ;;  %v1708_v54 = vsub.s32 0, %v15411_v38  ;;  %v14900_v33 = vld [vmem:[#allocation8 + $0xa0] sm:$0xff]  }
 0x68f   :  { %11400 = vmatprep.subr.bf16.mxu0 %v14385_v36  ;;  %11933 = vmatprep.subr.bf16.mxu1 %v14387_v60  ;;  %v14901_v36 = vld [vmem:[#allocation8 + $0x68] sm:$0xff]   ;;  %v1716_v60 = vsub.s32 2, %v15411_v38 }
 0x690   :  { %v1709_v39 = vrot.slane %v15414_v62, %v1708_v54 }
 0x692   :  { %11401 = vmatpush1.bf16.msra.mxu0 %v14384_v42  ;;  %11934 = vmatpush1.bf16.msra.mxu1 %v14386_v43  ;;  %v14905_v42 = vld [vmem:[#allocation8 + $0x70] sm:$0xff]   ;;  %v1717_v43 = vrot.slane %v15414_v62, %v1716_v60  ;;  %v14642_v48 = vadd.f32 %v15367_v53, %v1709_v39  ;;  %v14915_v53 = vld [vmem:[#allocation8 + $0x100] sm:$0xff]  }
 0x693   :  { %11402 = vmatprep.subr.bf16.mxu0 %v14393_v44  ;;  %11935 = vmatprep.subr.bf16.mxu1 %v14395_v46  ;;  %v14906_v44 = vld [vmem:[#allocation8 + $0xf0] sm:$0xff]  }
 0x694   :  { %v14907_v46 = vld [vmem:[#allocation8 + $0x30] sm:$0xff]   ;;  %v14644_v34 = vadd.f32 %v15369_v55, %v1717_v43 }
 0x696   :  { %11403 = vmatpush1.bf16.msra.mxu0 %v14392_v40  ;;  %11936 = vmatpush1.bf16.msra.mxu1 %v14394_v7  ;;  %v11966_v40 = vmax.f32 %v14642_v48, 0.0  ;;  %v14912_v7 = vld [vmem:[#allocation8 + $0xb8] sm:$0xff]  }
 0x697   :  { %11404 = vmatprep.subr.bf16.mxu0 %v14401_v8  ;;  %11937 = vmatprep.subr.bf16.mxu1 %v14403_v9  ;;  %v14913_v8 = vld [vmem:[#allocation8 + $0x140] sm:$0xff]   ;;  %v11968_v9 = vmax.f32 %v14644_v34, 0.0 }
 0x698   :  { %v11974_v25 = vpack.c.bf16 %v11966_v40, %v11966_v40 }
 0x699   :  { %v11976_v55 = vpack.c.bf16 %v11968_v9, %v11968_v9 }
 0x69a   :  { %11405 = vmatpush1.bf16.msra.mxu0 %v14400_v15  ;;  %11938 = vmatpush1.bf16.msra.mxu1 %v14402_v18  ;;  %v14920_v15 = vld [vmem:[#allocation8 + $0x188] sm:$0xff]   ;;  %v14921_v18 = vld [vmem:[#allocation8 + $0x150] sm:$0xff]  }
 0x69b   :  { %11406 = vmatprep.subr.bf16.mxu0 %v14409_v59  ;;  %11939 = vmatprep.subr.bf16.mxu1 %v14411_v19  ;;  %v14922_v59 = vld [vmem:[#allocation8 + $0x1d0] sm:$0xff]  }
 0x69c   :  { %v14923_v19 = vld [vmem:[#allocation8 + $0x110] sm:$0xff]  }
 0x69e   :  { %11407 = vmatpush1.bf16.msra.mxu0 %v14408_v1  ;;  %11940 = vmatpush1.bf16.msra.mxu1 %v14410_v61  ;;  %v14926_v1 = vld [vmem:[#allocation8 + $0x1d8] sm:$0xff]  }
 0x69f   :  { %14478 = vmatprep.subr.bf16.mxu0 %v14881_v22  ;;  %14500 = vmatprep.subr.bf16.mxu1 %v14882_v17  ;;  %v14927_v61 = vld [vmem:[#allocation8 + $0x118] sm:$0xff]   ;;  %v14929_v17 = vld [vmem:[#allocation8 + $0x160] sm:$0xff]  }
 0x6a0   :  { %v14928_v22 = vld [vmem:[#allocation8 + $0x198] sm:$0xff]  }
 0x6a1   :  { %11425 = vmatmul.mubr.bf16.vlgmr.msra.gmra.mrb[4].mxu0 %v14949_v56  ;;  %11958 = vmatmul.mubr.bf16.vlgmr.msra.gmra.mrb[4].mxu1 %v14949_v56  ;;  %v14936_v56 = vld [vmem:[#allocation8 + $0x1a8] sm:$0xff]  }
 0x6a2   :  { %14479 = vmatpush3.bf16.msra.mxu0 %v14883_v13  ;;  %12533 = vmatprep.mubr.bf16.mxu0 %v11975_v0  ;;  %v14932_v13 = vld [vmem:[#allocation8 + $0x1a0] sm:$0xff]   ;;  %v14935_v0 = vld [vmem:[#allocation8 + $0x128] sm:$0xff]  }
 0x6a3   :  { %14501 = vmatpush3.bf16.msra.mxu1 %v14884_v27  ;;  %12573 = vmatprep.mubr.bf16.mxu1 %v11977_v28  ;;  %v14933_v27 = vld [vmem:[#allocation8 + $0x168] sm:$0xff]   ;;  %v14938_v28 = vld [vmem:[#allocation8 + $0x1f0] sm:$0xff]  }
 0x6a4   :  { %14480 = vmatprep.subr.bf16.mxu0 %v14885_v26  ;;  %14502 = vmatprep.subr.bf16.mxu1 %v14886_v6  ;;  %v14934_v26 = vld [vmem:[#allocation8 + $0x1e8] sm:$0xff]   ;;  %v14937_v6 = vld [vmem:[#allocation8 + $0x170] sm:$0xff]  }
 0x6a6   :  { %14481 = vmatpush3.bf16.msra.mxu0 %v14887_v11  ;;  %v14939_v11 = vld [vmem:[#allocation8 + $0x130] sm:$0xff]  }
 0x6a7   :  { %14503 = vmatpush3.bf16.msra.mxu1 %v14888_v58  ;;  %14482 = vmatprep.subr.bf16.mxu0 %v14889_v30  ;;  %v14940_v58 = vld [vmem:[#allocation8 + $0x1b0] sm:$0xff]   ;;  %v14941_v30 = vld [vmem:[#allocation8 + $0x178] sm:$0xff]  }
 0x6a8   :  { %14504 = vmatprep.subr.bf16.mxu1 %v14890_v5  ;;  %v14942_v5 = vld [vmem:[#allocation8 + $0x1f8] sm:$0xff]  }
 0x6aa   :  { %14483 = vmatpush3.bf16.msra.mxu0 %v14891_v31  ;;  %v14943_v31 = vld [vmem:[#allocation8 + $0x138] sm:$0xff]  }
 0x6ab   :  { %14505 = vmatpush3.bf16.msra.mxu1 %v14892_v49  ;;  %14484 = vmatprep.subr.bf16.mxu0 %v14893_v29  ;;  %v14944_v49 = vld [vmem:[#allocation8 + $0x1b8] sm:$0xff]   ;;  %v15076_v29 = vmov 0.0|0.0  }
 0x6ac   :  { %14506 = vmatprep.subr.bf16.mxu1 %v14894_v47  ;;  %v1724_v47 = vsub.s32 4, %v15411_v38 }
 0x6ae   :  { %14485 = vmatpush3.bf16.msra.mxu0 %v14895_v32  ;;  %v1732_v32 = vsub.s32 6, %v15411_v38 }
 0x6af   :  { %14507 = vmatpush3.bf16.msra.mxu1 %v14896_v50  ;;  %14486 = vmatprep.subr.bf16.mxu0 %v14897_v35  ;;  %v1728_v50 = vsub.s32 5, %v15411_v38  ;;  %v1736_v35 = vsub.s32 7, %v15411_v38 }
 0x6b0   :  { %14508 = vmatprep.subr.bf16.mxu1 %v14898_v16  ;;  %v1725_v16 = vrot.slane %v15414_v62, %v1724_v47  ;;  %v12677_v47 = vld [vmem:[%s15499_s5 + $0x78] sm:$0xff] }
 0x6b1   :  { %v1729_v54 = vrot.slane %v15414_v62, %v1728_v50  ;;  %v15078_v50 = vmov 0.0  }
 0x6b2   :  { %14487 = vmatpush3.bf16.msra.mxu0 %v14899_v3  ;;  %v1733_v3 = vrot.slane %v15414_v62, %v1732_v32 }
 0x6b3   :  { %14509 = vmatpush3.bf16.msra.mxu1 %v14900_v33  ;;  %14488 = vmatprep.subr.bf16.mxu0 %v14901_v36  ;;  %v1737_v33 = vrot.slane %v15414_v62, %v1736_v35  ;;  %v12663_v62 = vld [vmem:[%s15499_s5 + $0x8] sm:$0xff] }
 0x6b4   :  { %14510 = vmatprep.subr.bf16.mxu1 %v14902_v51 }
 0x6b6   :  { %14489 = vmatpush3.bf16.msra.mxu0 %v14903_v21 }
 0x6b7   :  { %14511 = vmatpush3.bf16.msra.mxu1 %v14904_v41  ;;  %14490 = vmatprep.subr.bf16.mxu0 %v14905_v42 }
 0x6b8   :  { %14512 = vmatprep.subr.bf16.mxu1 %v14906_v44 }
 0x6ba   :  { %14491 = vmatpush3.bf16.msra.mxu0 %v14907_v46 }
 0x6bb   :  { %14513 = vmatpush3.bf16.msra.mxu1 %v14908_v2  ;;  %14492 = vmatprep.subr.bf16.mxu0 %v14909_v57  ;;  %v12662_v2 = vld [vmem:[%s15499_s5] sm:$0xff] }
 0x6bc   :  { %14514 = vmatprep.subr.bf16.mxu1 %v14910_v20 }
 0x6be   :  { %14493 = vmatpush3.bf16.msra.mxu0 %v14911_v4 }
 0x6bf   :  { %14515 = vmatpush3.bf16.msra.mxu1 %v14912_v7  ;;  %14522 = vmatprep.subr.bf16.mxu0 %v14913_v8  ;;  %v14619_v7 = vpack.c.bf16 %v12663_v62, %v12662_v2 }
 0x6c0   :  { %14544 = vmatprep.subr.bf16.mxu1 %v14914_v45  ;;  %v12664_v45 = vld [vmem:[%s15499_s5 + $0x10] sm:$0xff] }
 0x6c1   :  { %12534 = vmatmul.mubr.bf16.vlgmr.msra.gmra.mrb[8].mxu0 %v11974_v25 }
 0x6c2   :  { %12574 = vmatmul.mubr.bf16.vlgmr.msra.gmra.mrb[8].mxu1 %v11976_v55  ;;  %14523 = vmatpush3.bf16.msra.mxu0 %v14915_v53  ;;  %v12665_v53 = vld [vmem:[%s15499_s5 + $0x18] sm:$0xff]  ;;  %v12667_v55 = vld [vmem:[%s15499_s5 + $0x28] sm:$0xff] }
 0x6c3   :  { %14545 = vmatpush3.bf16.msra.mxu1 %v14916_v10  ;;  %14524 = vmatprep.subr.bf16.mxu0 %v14917_v24  ;;  %v14622_v10 = vpack.c.bf16 %v12665_v53, %v12664_v45  ;;  %v12666_v24 = vld [vmem:[%s15499_s5 + $0x20] sm:$0xff] }
 0x6c4   :  { %14546 = vmatprep.subr.bf16.mxu1 %v14918_v12  ;;  %v14625_v12 = vpack.c.bf16 %v12667_v55, %v12666_v24 }
 0x6c6   :  { %14525 = vmatpush3.bf16.msra.mxu0 %v14919_v14  ;;  %v12668_v14 = vld [vmem:[%s15499_s5 + $0x30] sm:$0xff] }
 0x6c7   :  { %14547 = vmatpush3.bf16.msra.mxu1 %v14920_v15  ;;  %14526 = vmatprep.subr.bf16.mxu0 %v14921_v18  ;;  %v12669_v15 = vld [vmem:[%s15499_s5 + $0x38] sm:$0xff] }
 0x6c8   :  { %14548 = vmatprep.subr.bf16.mxu1 %v14922_v59  ;;  %v14628_v18 = vpack.c.bf16 %v12669_v15, %v12668_v14  ;;  %v12670_v59 = vld [vmem:[%s15499_s5 + $0x40] sm:$0xff] }
 0x6ca   :  { %14527 = vmatpush3.bf16.msra.mxu0 %v14923_v19  ;;  %v12671_v19 = vld [vmem:[%s15499_s5 + $0x48] sm:$0xff] }
 0x6cb   :  { %14549 = vmatpush3.bf16.msra.mxu1 %v14924_v63  ;;  %14528 = vmatprep.subr.bf16.mxu0 %v14925_v37  ;;  %v14631_v63 = vpack.c.bf16 %v12671_v19, %v12670_v59  ;;  %v12672_v37 = vld [vmem:[%s15499_s5 + $0x50] sm:$0xff] }
 0x6cc   :  { %14550 = vmatprep.subr.bf16.mxu1 %v14926_v1  ;;  %v12673_v1 = vld [vmem:[%s15499_s5 + $0x58] sm:$0xff] }
 0x6ce   :  { %14529 = vmatpush3.bf16.msra.mxu0 %v14927_v61  ;;  %v14634_v61 = vpack.c.bf16 %v12673_v1, %v12672_v37 }
 0x6cf   :  { %14551 = vmatpush3.bf16.msra.mxu1 %v14928_v22  ;;  %14530 = vmatprep.subr.bf16.mxu0 %v14929_v17 }
 0x6d0   :  { %14552 = vmatprep.subr.bf16.mxu1 %v14930_v52  ;;  %v14412_v52 = vld [vmem:[#allocation10] ss:$0 sm:$0xff] }
 0x6d2   :  { %14531 = vmatpush3.bf16.msra.mxu0 %v14931_v23 }
 0x6d3   :  { %14553 = vmatpush3.bf16.msra.mxu1 %v14932_v13  ;;  %14532 = vmatprep.subr.bf16.mxu0 %v14933_v27 }
 0x6d4   :  { %14554 = vmatprep.subr.bf16.mxu1 %v14934_v26 }
 0x6d6   :  { %14533 = vmatpush3.bf16.msra.mxu0 %v14935_v0 }
 0x6d7   :  { %14555 = vmatpush3.bf16.msra.mxu1 %v14936_v56  ;;  %14534 = vmatprep.subr.bf16.mxu0 %v14937_v6 }
 0x6d8   :  { %14556 = vmatprep.subr.bf16.mxu1 %v14938_v28 }
 0x6da   :  { %14535 = vmatpush3.bf16.msra.mxu0 %v14939_v11 }
 0x6db   :  { %14557 = vmatpush3.bf16.msra.mxu1 %v14940_v58  ;;  %14536 = vmatprep.subr.bf16.mxu0 %v14941_v30  ;;  %v12674_v30 = vld [vmem:[%s15499_s5 + $0x60] sm:$0xff] }
 0x6dc   :  { %14558 = vmatprep.subr.bf16.mxu1 %v14942_v5  ;;  %v12675_v5 = vld [vmem:[%s15499_s5 + $0x68] sm:$0xff] }
 0x6de   :  { %14537 = vmatpush3.bf16.msra.mxu0 %v14943_v31  ;;  %v14637_v31 = vpack.c.bf16 %v12675_v5, %v12674_v30 }
 0x6df   :  { %14559 = vmatpush3.bf16.msra.mxu1 %v14944_v49  ;;  %14618 = vmatprep.subr.bf16.mxu0 %v15076_v29  ;;  %v12676_v49 = vld [vmem:[%s15499_s5 + $0x70] sm:$0xff]  ;;  %s15079_s5 = smov 1  }
 0x6e0   :  { %v14640_v32 = vpack.c.bf16 %v12677_v47, %v12676_v49 }
 0x774   :  { %v11426_v36 = vpop.f32.mrb[4].mxu0  ;;  %v11959_v51 = vpop.f32.mrb[4].mxu1 }
 0x775   :  { %v14646_v60 = vadd.f32 %v11426_v36, %v1725_v16  ;;  %v11428_v21 = vpop.f32.mrb[5].mxu0  ;;  %v14648_v39 = vadd.f32 %v11959_v51, %v1733_v3  ;;  %v11961_v42 = vpop.f32.mrb[5].mxu1 }
 0x776   :  { %v14647_v41 = vadd.f32 %v11428_v21, %v1729_v54  ;;  %v11430_v43 = vpop.f32.mrb[6].mxu0  ;;  %v14649_v46 = vadd.f32 %v11961_v42, %v1737_v33  ;;  %v11963_v48 = vpop.f32.mrb[6].mxu1 }
 0x777   :  { %v11970_v44 = vmax.f32 %v14646_v60, 0.0  ;;  %v11431_v38 = vpop.f32.mrb[7].mxu0  ;;  %v11972_v57 = vmax.f32 %v14648_v39, 0.0  ;;  %v11964_v20 = vpop.f32.mrb[7].mxu1  ;;  %v14477_v43 = vld [vmem:[#allocation2] ss:$0 sm:$0xff] }
 0x778   :  { %v11971_v34 = vmax.f32 %v14647_v41, 0.0  ;;  %v11973_v4 = vmax.f32 %v14649_v46, 0.0 }
 0x779   :  { %v11978_v8 = vpack.c.bf16 %v11970_v44, %v11970_v44  ;;  %v11980_v25 = vpack.c.bf16 %v11972_v57, %v11972_v57 }
 0x77a   :  { %v11979_v40 = vpack.c.bf16 %v11971_v34, %v11971_v34  ;;  %v11981_v9 = vpack.c.bf16 %v11973_v4, %v11973_v4 }
 0x77c   :  { %12613 = vmatprep.mubr.bf16.mxu0 %v11979_v40  ;;  %12653 = vmatprep.mubr.bf16.mxu1 %v11981_v9 }
 0x77d   :  { %12614 = vmatmul.mubr.bf16.vlgmr.msra.gmra.mrb[12].mxu0 %v11978_v8  ;;  %12654 = vmatmul.mubr.bf16.vlgmr.msra.gmra.mrb[12].mxu1 %v11980_v25 }
 0x77e   :  { %14620 = vmatpush3.bf16.msra.mxu0 %v14619_v7  ;;  %14615 = vmatprep.mubr.msk.f32.mxu0 %vm15077_vm0, %v15078_v50 }
 0x77f   :  { %14621 = vmatprep.subr.bf16.mxu0 %v15076_v29 }
 0x782   :  { %14623 = vmatpush3.bf16.msra.mxu0 %v14622_v10 }
 0x783   :  { %14624 = vmatprep.subr.bf16.mxu0 %v15076_v29 }
 0x786   :  { %14626 = vmatpush3.bf16.msra.mxu0 %v14625_v12 }
 0x787   :  { %14627 = vmatprep.subr.bf16.mxu0 %v15076_v29 }
 0x78a   :  { %14629 = vmatpush3.bf16.msra.mxu0 %v14628_v18 }
 0x78b   :  { %14630 = vmatprep.subr.bf16.mxu0 %v15076_v29 }
 0x78e   :  { %14632 = vmatpush3.bf16.msra.mxu0 %v14631_v63 }
 0x78f   :  { %14633 = vmatprep.subr.bf16.mxu0 %v15076_v29 }
 0x792   :  { %14635 = vmatpush3.bf16.msra.mxu0 %v14634_v61 }
 0x793   :  { %14636 = vmatprep.subr.bf16.mxu0 %v15076_v29 }
 0x794   :  { %v14494_v22 = vpop.f32.mrb[8].mxu0 }
 0x795   :  { %v14516_v17 = vpop.f32.mrb[8].mxu1  ;;  %v14495_v23 = vpop.f32.mrb[9].mxu0 }
 0x796   :  { %v14496_v13 = vadd.f32 %v14495_v23, %v14494_v22  ;;  %v14517_v27 = vpop.f32.mrb[9].mxu1  ;;  %v14497_v26 = vpop.f32.mrb[10].mxu0  ;;  %14638 = vmatpush3.bf16.msra.mxu0 %v14637_v31 }
 0x797   :  { %v14518_v0 = vadd.f32 %v14517_v27, %v14516_v17  ;;  %v14519_v56 = vpop.f32.mrb[10].mxu1  ;;  %v14498_v6 = vpop.f32.mrb[11].mxu0  ;;  %14639 = vmatprep.subr.bf16.mxu0 %v15076_v29 }
 0x798   :  { %v12536_v28 = vadd.f32 %v14496_v13, %v14412_v52  ;;  %v14520_v11 = vpop.f32.mrb[11].mxu1 }
 0x79a   :  { %v12576_v58 = vadd.f32 %v14518_v0, %v12536_v28  ;;  %14641 = vmatpush3.bf16.msra.mxu0 %v14640_v32 }
 0x850   :  { %v14538_v35 = vpop.f32.mrb[12].mxu0  ;;  %v14560_v16 = vpop.f32.mrb[12].mxu1 }
 0x851   :  { %v14539_v3 = vpop.f32.mrb[13].mxu0  ;;  %v14561_v33 = vpop.f32.mrb[13].mxu1 }
 0x852   :  { %v14540_v54 = vadd.f32 %v14539_v3, %v14538_v35  ;;  %v14541_v36 = vpop.f32.mrb[14].mxu0  ;;  %v14562_v29 = vadd.f32 %v14561_v33, %v14560_v16  ;;  %v14563_v60 = vpop.f32.mrb[14].mxu1 }
 0x853   :  { %v14542_v51 = vpop.f32.mrb[15].mxu0  ;;  %v14564_v39 = vpop.f32.mrb[15].mxu1 }
 0x854   :  { %v12616_v21 = vadd.f32 %v14540_v54, %v12576_v58 }
 0x856   :  { %v12656_v41 = vadd.f32 %v14562_v29, %v12616_v21 }
 0x858   :  { %v12661_v42 = vmax.f32 %v12656_v41, 0.0 }
 0x85a   :  { %14616 = vmatmul.mubr.f32.vlgmr.msra.gmra.mrb[16].mxu0 %v12661_v42 }
 0x92d   :  { %v12751_v44 = vpop.f32.mrb[16].mxu0 }
 0x92e   :  { %v12752_v46 = vadd.f32 %v14477_v43, %v12751_v44  ;;  %v14617_v48 = vpop.f32.mrb[17].mxu0 }
 0x930   :  { %v12756_v38 = vand.u32 2147483647, %v12752_v46  ;;  %v12755_v45 = vmax.f32 %v12752_v46, 0.0 }
 0x932   :  { %v12757_v2 = vsub.f32 0.0, %v12756_v38 }
 0x934   :  { %v12758_v62 = vmul.f32 1.442695, %v12757_v2 }
 0x936   :  { %14945 = vpow2.f32 %v12758_v62 }
 0x940   :  { %v14946_v57 = vpop.eup %14945 }
 0x941   :  { %v12760_v34 = vadd.f32 1.0, %v14946_v57  ;;  %v12763_v20 = vmul.f32 -0.5, %v14946_v57  ;;  %v12766_v40 = vand.u32 2147483647, %v14946_v57 }
 0x943   :  { %14947 = vlog2.f32 %v12760_v34  ;;  %v12764_v4 = vadd.f32 1.0, %v12763_v20  ;;  %vm12767_vm1 = vcmp.lt.f32.partialorder %v12766_v40, 0.0004427343 }
 0x945   :  { %v12765_v9 = vmul.f32 %v14946_v57, %v12764_v4 }
 0x94d   :  { %v14948_v7 = vpop.eup %14947 }
 0x94e   :  { %v12762_v8 = vmul.f32 0.6931472, %v14948_v7 }
 0x950   :  { %v12768_v53 = vsel %vm12767_vm1, %v12765_v9, %v12762_v8 }
 0x951   :  { %v12769_v25 = vadd.f32 %v12768_v53, %v12755_v45 }
 0x953   :  { %v12771_v10 = vsub.f32 %v12752_v46, %v12769_v25  ;;  %v12770_v24 = vsub.f32 0.0, %v12769_v25 }
 0x955   :  { %12773 = vrot.lane.b32.xlu0 %v12771_v10, %s15079_s5 }
 0x9c7   :  { %v12774_v55 = vpop.permute.xlu0 %12773 }
 0x9c8   :  { %v12777_v12 = vsel %vm12776_vm2, %v12770_v24, %v12774_v55 }
 0x9c9   :  { %12779 = vst.msk [vmem:[%s15501_s7] sm:$0xff] %vm12778_vm3, %v12777_v12 }
 0x9ca   :  { %12784 = vsyncpa [#allocation4], 1 }
 0x9cb   :  { %12785 = vsyncpa [#allocation6], 1 }
 0x9cc   :  { %12786 = vsyncpa [#allocation9], 1 }

</bundles_post_ra>
